<compile_context>
chip_gen: v5e
topology: v5e:2x2
jax: 0.10.0
libtpu: 0.0.40
codegen_flags: <defaults>
</compile_context>

<pallas_src>
import functools
import math

import jax
import jax.numpy as jnp
from jax.experimental import pallas as pl
from jax.experimental.pallas import tpu as pltpu


# ----------------------------------------------------------------------------
# in-kernel math helpers (f32, Mosaic-friendly)
# ----------------------------------------------------------------------------
def _sigmoid(x):
    # EUP recip (approx) keeps the divide off the VPU slot.
    return pl.reciprocal(1.0 + jnp.exp(-x), approx=True)


def _softplus(x):
    # matches torch.nn.functional.softplus (beta=1, threshold=20)
    return jnp.where(x > 20.0, x, jnp.log1p(jnp.exp(jnp.minimum(x, 20.0))))


# TODO(synk): torch nn.GELU() is erf-exact; erf has no clean Mosaic lowering,
# so the tanh approximation is used inside kernels (max abs err ~1e-3).
def _gelu(x):
    c = math.sqrt(2.0 / math.pi)
    return 0.5 * x * (1.0 + jnp.tanh(c * (x + 0.044715 * x * x * x)))


def _layernorm(x, g, b, eps=1e-5):
    mu = jnp.mean(x, axis=-1, keepdims=True)
    var = jnp.mean(jnp.square(x - mu), axis=-1, keepdims=True)
    return (x - mu) * jax.lax.rsqrt(var + eps) * g + b


# ----------------------------------------------------------------------------
# shared mamba layer step (operates on loaded values)
# ----------------------------------------------------------------------------
def _mamba_layer_step(x, pmask, nmask, ln_g, ln_b, w_in, conv_w, w_dt, b_dt,
                      w_out, scale):
    N = x.shape[0]
    di = w_dt.shape[0]

    xn = _layernorm(x, ln_g, ln_b)

    # fused in_proj (bias=False): one wide matmul, chunk into x1 / x2
    xp = jnp.dot(xn.astype(jnp.bfloat16), w_in,
                 preferred_element_type=jnp.float32)          # (N, 2*di)
    x1 = xp[:, :di]
    x2 = xp[:, di:]

    # depthwise conv1d (kernel=3, padding=1, non-causal) along each sequence:
    # sublane rolls on the flat slab, precomputed boundary masks zero the wrap.
    x1_prev = pmask * pltpu.roll(x1, 1, axis=0)
    x1_next = nmask * pltpu.roll(x1, N - 1, axis=0)
    x1_conv = x1_prev * conv_w[0:1, :] + x1 * conv_w[1:2, :] + x1_next * conv_w[2:3, :]

    # SiLU
    x1_ssm = x1_conv * _sigmoid(x1_conv)

    # dt projection (bias=True) + softplus, then gating (matches torch ref)
    dt = jnp.dot(x1_ssm.astype(jnp.bfloat16), w_dt,
                 preferred_element_type=jnp.float32) + b_dt
    dt = _softplus(dt)
    x_gated = x1_ssm * _sigmoid(dt) * _sigmoid(x2)

    out = jnp.dot(x_gated.astype(jnp.bfloat16), w_out,
                  preferred_element_type=jnp.float32)
    return out * scale + x                                    # layer_scale + residual


# ----------------------------------------------------------------------------
# kernels
# ----------------------------------------------------------------------------
def _text_stack_kernel(seq_len, batch,
                       x_ref, pmask_ref, nmask_ref,
                       ln_g_ref, ln_b_ref, w_in_ref, conv_w_ref, w_dt_ref,
                       b_dt_ref, w_out_ref, scale_ref,
                       tn_g_ref, tn_b_ref, tp_w_ref, tp_b_ref, tp_g_ref,
                       tp_beta_ref, ctx_w_ref, ctx_b_ref,
                       d_w1_ref, d_b1_ref, d_w2_ref, d_b2_ref,
                       feat_ref, ctx_ref, dur_ref, acc_ref):
    """Fused text encoder: grid=(num_layers,), activation resident in acc_ref.
    Last step also applies the final LayerNorm, the per-sequence mean-pool, the
    text_proj -> context_proj path and the duration regulator."""
    l = pl.program_id(0)

    @pl.when(l == 0)
    def _():
        acc_ref[...] = x_ref[...]

    acc_ref[...] = _mamba_layer_step(
        acc_ref[...], pmask_ref[...], nmask_ref[...],
        ln_g_ref[0], ln_b_ref[0], w_in_ref[0], conv_w_ref[0],
        w_dt_ref[0], b_dt_ref[0], w_out_ref[0], scale_ref[0])

    @pl.when(l == pl.num_programs(0) - 1)
    def _():
        # final encoder LayerNorm -> sequence features
        y = _layernorm(acc_ref[...], tn_g_ref[...], tn_b_ref[...])
        feat_ref[...] = y

        # pooled = per-sequence mean of the LN'd features
        segs = [jnp.mean(y[b * seq_len:(b + 1) * seq_len, :], axis=0, keepdims=True)
                for b in range(batch)]
        pooled = segs[0] if batch == 1 else jnp.concatenate(segs, axis=0)
        pb = pooled.astype(jnp.bfloat16)

        # text_proj: Linear -> LayerNorm -> GELU (Dropout = identity)
        t = jnp.dot(pb, tp_w_ref[...], preferred_element_type=jnp.float32) + tp_b_ref[...]
        t = _gelu(_layernorm(t, tp_g_ref[...], tp_beta_ref[...]))

        # audio_processor.context_proj
        ctx_ref[...] = (jnp.dot(t.astype(jnp.bfloat16), ctx_w_ref[...],
                                preferred_element_type=jnp.float32) + ctx_b_ref[...])

        # duration regulator: Linear -> GELU -> (VPU-reduced) Linear -> Softplus
        h = _gelu(jnp.dot(pb, d_w1_ref[...],
                          preferred_element_type=jnp.float32) + d_b1_ref[...])
        d = jnp.sum(h * d_w2_ref[...], axis=-1, keepdims=True) + d_b2_ref[...]
        dur_ref[...] = _softplus(d)


def _audio_stack_kernel(x_ref, pmask_ref, nmask_ref,
                        ln_g_ref, ln_b_ref, w_in_ref, conv_w_ref, w_dt_ref,
                        b_dt_ref, w_out_ref, scale_ref,
                        o_ref, acc_ref):
    """Fused 4-layer audio mamba stack: grid=(num_layers,), activation resident."""
    l = pl.program_id(0)

    @pl.when(l == 0)
    def _():
        acc_ref[...] = x_ref[...]

    acc_ref[...] = _mamba_layer_step(
        acc_ref[...], pmask_ref[...], nmask_ref[...],
        ln_g_ref[0], ln_b_ref[0], w_in_ref[0], conv_w_ref[0],
        w_dt_ref[0], b_dt_ref[0], w_out_ref[0], scale_ref[0])

    @pl.when(l == pl.num_programs(0) - 1)
    def _():
        o_ref[...] = acc_ref[...]


def _audio_embed_mean_kernel(emb_ref, g_ref, b_ref, ctx_ref, o_ref):
    """Per-codebook LayerNorm of the 8 gathered embeddings + mean + context add."""
    C = emb_ref.shape[0]
    N, D = o_ref.shape
    B = ctx_ref.shape[0]
    T = N // B

    acc = _layernorm(emb_ref[0], g_ref[0], b_ref[0])
    for c in range(1, C):
        acc = acc + _layernorm(emb_ref[c], g_ref[c], b_ref[c])
    acc = acc * (1.0 / C)

    ctx = ctx_ref[...]
    ctx_rows = jnp.concatenate(
        [jnp.broadcast_to(ctx[b:b + 1, :], (T, D)) for b in range(B)], axis=0)
    o_ref[...] = acc + ctx_rows


def _heads_kernel(x_ref, w1_ref, b1_ref, w2_ref, b2_ref, o_ref):
    """One output head per grid step (grid over codebooks, 'parallel' for v7x).
    Per-head LN affine is pre-folded into w1, so only x_hat is recomputed."""
    x = x_ref[...]
    mu = jnp.mean(x, axis=-1, keepdims=True)
    var = jnp.mean(jnp.square(x - mu), axis=-1, keepdims=True)
    x_hat = (x - mu) * jax.lax.rsqrt(var + 1e-5)

    h = jnp.dot(x_hat.astype(jnp.bfloat16), w1_ref[0],
                preferred_element_type=jnp.float32) + b1_ref[0]
    hb = _gelu(h).astype(jnp.bfloat16)
    o_ref[...] = jnp.dot(hb, w2_ref[0],
                         preferred_element_type=jnp.float32) + b2_ref[0]


# ----------------------------------------------------------------------------
# wrappers
# ----------------------------------------------------------------------------
def _boundary_masks(n_rows, seq_len):
    pos = jnp.arange(n_rows, dtype=jnp.int32) % seq_len
    pmask = (pos != 0).astype(jnp.float32)[:, None]          # zero at seq start
    nmask = (pos != seq_len - 1).astype(jnp.float32)[:, None]  # zero at seq end
    return pmask, nmask


def _stack_vmem_limit(stk, n_rows):
    """2x per-layer weights (double buffering) + working activations + margin."""
    per_layer = 0
    for v in stk.values():
        per_layer += (v.size // v.shape[0]) * v.dtype.itemsize
    d_wide = stk["w_in"].shape[-1]       # 2 * d_inner
    d_model = stk["w_out"].shape[-1]
    working = n_rows * (3 * d_wide + 6 * d_model) * 4
    limit = 2 * per_layer + working + (8 << 20)
    return int(min(max(limit, 16 << 20), 56 << 20))   # stay under v7x 64 MiB phys


def _mamba_stack_specs(N, D, di):
    return [
        pl.BlockSpec((N, D), lambda l: (0, 0)),             # x (resident)
        pl.BlockSpec((N, 1), lambda l: (0, 0)),              # prev mask (resident)
        pl.BlockSpec((N, 1), lambda l: (0, 0)),              # next mask (resident)
        pl.BlockSpec((1, 1, D), lambda l: (l, 0, 0)),         # ln_g
        pl.BlockSpec((1, 1, D), lambda l: (l, 0, 0)),         # ln_b
        pl.BlockSpec((1, D, 2 * di), lambda l: (l, 0, 0)),    # w_in
        pl.BlockSpec((1, 3, di), lambda l: (l, 0, 0)),        # conv_w
        pl.BlockSpec((1, di, di), lambda l: (l, 0, 0)),       # w_dt
        pl.BlockSpec((1, 1, di), lambda l: (l, 0, 0)),        # b_dt
        pl.BlockSpec((1, di, D), lambda l: (l, 0, 0)),        # w_out
        pl.BlockSpec((1, 1, D), lambda l: (l, 0, 0)),         # layer scale
    ]


def text_encoder_stack(x_flat, seq_len, batch, stk, tail):
    N, D = x_flat.shape
    di = stk["w_dt"].shape[-1]
    n_layers = stk["w_in"].shape[0]
    H = tail["d_w1"].shape[-1]
    pmask, nmask = _boundary_masks(N, seq_len)

    tail_specs = [
        pl.BlockSpec((1, D), lambda l: (0, 0)),   # tn_g
        pl.BlockSpec((1, D), lambda l: (0, 0)),   # tn_b
        pl.BlockSpec((D, D), lambda l: (0, 0)),   # tp_w
        pl.BlockSpec((1, D), lambda l: (0, 0)),   # tp_b
        pl.BlockSpec((1, D), lambda l: (0, 0)),   # tp_g
        pl.BlockSpec((1, D), lambda l: (0, 0)),   # tp_beta
        pl.BlockSpec((D, D), lambda l: (0, 0)),   # ctx_w
        pl.BlockSpec((1, D), lambda l: (0, 0)),   # ctx_b
        pl.BlockSpec((D, H), lambda l: (0, 0)),   # d_w1
        pl.BlockSpec((1, H), lambda l: (0, 0)),   # d_b1
        pl.BlockSpec((1, H), lambda l: (0, 0)),   # d_w2 (row vec, VPU reduce)
        pl.BlockSpec((1, 1), lambda l: (0, 0)),   # d_b2
    ]

    return pl.pallas_call(
        functools.partial(_text_stack_kernel, seq_len, batch),
        grid=(n_layers,),
        out_shape=(jax.ShapeDtypeStruct((N, D), jnp.float32),
                   jax.ShapeDtypeStruct((batch, D), jnp.float32),
                   jax.ShapeDtypeStruct((batch, 1), jnp.float32)),
        in_specs=_mamba_stack_specs(N, D, di) + tail_specs,
        out_specs=(pl.BlockSpec((N, D), lambda l: (0, 0)),
                   pl.BlockSpec((batch, D), lambda l: (0, 0)),
                   pl.BlockSpec((batch, 1), lambda l: (0, 0))),
        scratch_shapes=[pltpu.VMEM((N, D), jnp.float32)],
        compiler_params=pltpu.CompilerParams(
            dimension_semantics=("arbitrary",),
            vmem_limit_bytes=_stack_vmem_limit(stk, N)),
    )(x_flat, pmask, nmask,
      stk["ln_g"], stk["ln_b"], stk["w_in"], stk["conv_w"],
      stk["w_dt"], stk["b_dt"], stk["w_out"], stk["scale"],
      tail["tn_g"], tail["tn_b"], tail["tp_w"], tail["tp_b"],
      tail["tp_g"], tail["tp_beta"], tail["ctx_w"], tail["ctx_b"],
      tail["d_w1"], tail["d_b1"], tail["d_w2"], tail["d_b2"])


def audio_mamba_stack(x_flat, seq_len, stk):
    N, D = x_flat.shape
    di = stk["w_dt"].shape[-1]
    n_layers = stk["w_in"].shape[0]
    pmask, nmask = _boundary_masks(N, seq_len)
    return pl.pallas_call(
        _audio_stack_kernel,
        grid=(n_layers,),
        out_shape=jax.ShapeDtypeStruct((N, D), jnp.float32),
        in_specs=_mamba_stack_specs(N, D, di),
        out_specs=pl.BlockSpec((N, D), lambda l: (0, 0)),
        scratch_shapes=[pltpu.VMEM((N, D), jnp.float32)],
        compiler_params=pltpu.CompilerParams(
            dimension_semantics=("arbitrary",),
            vmem_limit_bytes=_stack_vmem_limit(stk, N)),
    )(x_flat, pmask, nmask,
      stk["ln_g"], stk["ln_b"], stk["w_in"], stk["conv_w"],
      stk["w_dt"], stk["b_dt"], stk["w_out"], stk["scale"])


def audio_embed_mean_add_ctx(embs, ln_g, ln_b, ctx):
    C, N, D = embs.shape
    return pl.pallas_call(
        _audio_embed_mean_kernel,
        out_shape=jax.ShapeDtypeStruct((N, D), jnp.float32),
    )(embs, ln_g, ln_b, ctx)


def output_heads(x_flat, hp):
    N, D = x_flat.shape
    C, _, H = hp["W1"].shape
    K = hp["w2"].shape[-1]
    return pl.pallas_call(
        _heads_kernel,
        grid=(C,),
        out_shape=jax.ShapeDtypeStruct((N, C * K), jnp.float32),
        in_specs=[
            pl.BlockSpec((N, D), lambda c: (0, 0)),
            pl.BlockSpec((1, D, H), lambda c: (c, 0, 0)),
            pl.BlockSpec((1, 1, H), lambda c: (c, 0, 0)),
            pl.BlockSpec((1, H, K), lambda c: (c, 0, 0)),
            pl.BlockSpec((1, 1, K), lambda c: (c, 0, 0)),
        ],
        out_specs=pl.BlockSpec((N, K), lambda c: (0, c)),
        compiler_params=pltpu.CompilerParams(dimension_semantics=("parallel",)),
    )(x_flat, hp["W1"], hp["B1"], hp["w2"], hp["b2"])


# ----------------------------------------------------------------------------
# parameter initialization (deterministic, synthetic)
# ----------------------------------------------------------------------------
def _init_mamba_stack(key, num_layers, D, di):
    s = 0.02
    bf = jnp.bfloat16
    ks = jax.random.split(key, num_layers)

    def one(k):
        k1, k2, k3, k4 = jax.random.split(k, 4)
        return {
            "ln_g": jnp.ones((1, D), jnp.float32),
            "ln_b": jnp.zeros((1, D), jnp.float32),
            "w_in": (jax.random.normal(k1, (D, 2 * di), jnp.float32) * s).astype(bf),
            "conv_w": jax.random.normal(k2, (3, di), jnp.float32) * 0.1,
            "w_dt": (jax.random.normal(k3, (di, di), jnp.float32) * s).astype(bf),
            "b_dt": jnp.zeros((1, di), jnp.float32),
            "w_out": (jax.random.normal(k4, (di, D), jnp.float32) * s).astype(bf),
            "scale": jnp.ones((1, D), jnp.float32) * 0.1,
        }

    per = [one(k) for k in ks]
    return {k: jnp.stack([p[k] for p in per], axis=0) for k in per[0]}


def _init_heads(key, D, H, K, C=8):
    k1, k2 = jax.random.split(key)
    s = 0.02
    gamma = jnp.ones((C, D), jnp.float32)       # per-head LayerNorm weight
    beta = jnp.zeros((C, D), jnp.float32)       # per-head LayerNorm bias
    w1 = jax.random.normal(k1, (C, D, H), jnp.float32) * s
    b1 = jnp.zeros((C, H), jnp.float32)
    w2 = jax.random.normal(k2, (C, H, K), jnp.float32) * s
    b2 = jnp.zeros((C, K), jnp.float32)
    # Fold per-head LayerNorm affine into the first Linear (exact):
    #   LN(x) @ w1 + b1 = x_hat @ (gamma[:,None]*w1) + (beta @ w1 + b1)
    w1_f = gamma[:, :, None] * w1
    b1_f = jnp.einsum("cd,cdh->ch", beta, w1) + b1
    return {
        "W1": w1_f.astype(jnp.bfloat16),     # (C, D, H)
        "B1": b1_f[:, None, :],              # (C, 1, H)
        "w2": w2.astype(jnp.bfloat16),       # (C, H, K)
        "b2": b2[:, None, :],                # (C, 1, K)
    }


def init_params(key, cfg):
    D = cfg["embed_dim"]
    H = D // 2
    di = int(D * cfg["expand_factor"])
    K = cfg["codebook_size"]
    V = cfg["vocab_size"]
    s = 0.02
    bf = jnp.bfloat16
    keys = jax.random.split(key, 16)
    ki = iter(keys)

    params = {}
    params["text_emb"] = jax.random.normal(next(ki), (V, D), jnp.float32) * s
    params["pos_enc"] = jax.random.normal(next(ki), (1, 2048, D), jnp.float32) * 0.02
    params["text_stack"] = _init_mamba_stack(next(ki), cfg["num_layers"], D, di)
    params["text_tail"] = {
        "tn_g": jnp.ones((1, D), jnp.float32),
        "tn_b": jnp.zeros((1, D), jnp.float32),
        "tp_w": (jax.random.normal(next(ki), (D, D), jnp.float32) * s).astype(bf),
        "tp_b": jnp.zeros((1, D), jnp.float32),
        "tp_g": jnp.ones((1, D), jnp.float32),
        "tp_beta": jnp.zeros((1, D), jnp.float32),
        "ctx_w": (jax.random.normal(next(ki), (D, D), jnp.float32) * s).astype(bf),
        "ctx_b": jnp.zeros((1, D), jnp.float32),
        "d_w1": (jax.random.normal(next(ki), (D, H), jnp.float32) * s).astype(bf),
        "d_b1": jnp.zeros((1, H), jnp.float32),
        "d_w2": jax.random.normal(next(ki), (1, H), jnp.float32) * s,   # VPU reduce
        "d_b2": jnp.zeros((1, 1), jnp.float32),
    }

    # audio processor: 8 embedding tables stacked flat -> one gather
    params["audio_emb_flat"] = jax.random.normal(next(ki), (8 * K, D), jnp.float32) * s
    params["audio_ln_g"] = jnp.ones((8, 1, D), jnp.float32)
    params["audio_ln_b"] = jnp.zeros((8, 1, D), jnp.float32)
    params["audio_stack"] = _init_mamba_stack(next(ki), 4, D, di)
    params["heads"] = _init_heads(next(ki), D, H, K)
    return params


# ----------------------------------------------------------------------------
# forward pass (inference)
# ----------------------------------------------------------------------------
def forward(params, text_tokens, audio_tokens):
    B, Lt = text_tokens.shape
    D = params["text_emb"].shape[1]

    # --- fused text encoder + pooled consumers (one pallas_call) ---
    x = params["text_emb"][text_tokens] + params["pos_enc"][:, :Lt, :]   # gather = glue
    xf = x.reshape(B * Lt, D)
    feat_flat, ctx, predicted_durations = text_encoder_stack(
        xf, Lt, B, params["text_stack"], params["text_tail"])
    text_features = feat_flat.reshape(B, Lt, D)

    if audio_tokens is None:
        return {"logits": None, "predicted_durations": predicted_durations,
                "text_features": text_features}

    # --- audio processor ---
    _, C, T = audio_tokens.shape
    if C < 8:
        pad = jnp.zeros((B, 8 - C, T), audio_tokens.dtype)
        audio_tokens = jnp.concatenate([audio_tokens, pad], axis=1)
    elif C > 8:
        audio_tokens = audio_tokens[:, :8, :]

    K = params["heads"]["w2"].shape[-1]
    # single gather over the flat (8*K, D) table (codebook offset folded in)
    offs = (jnp.arange(8, dtype=jnp.int32) * K)[:, None, None]
    idx = (jnp.transpose(audio_tokens, (1, 0, 2)).astype(jnp.int32) + offs)
    embs = params["audio_emb_flat"][idx.reshape(8, B * T)]               # (8, B*T, D)

    xa = audio_embed_mean_add_ctx(embs, params["audio_ln_g"],
                                  params["audio_ln_b"], ctx)             # (B*T, D)
    xa = audio_mamba_stack(xa, T, params["audio_stack"])                 # fused 4 layers

    logits_flat = output_heads(xa, params["heads"])                      # (B*T, 8*K)
    audio_logits = jnp.transpose(logits_flat.reshape(B, T, 8, K), (0, 2, 1, 3))

    return {
        "logits": audio_logits,                        # (B, 8, T, K)
        "predicted_durations": predicted_durations,    # (B, 1)
        "text_features": text_features,                # (B, L, D)
    }


# ----------------------------------------------------------------------------
if __name__ == "__main__":
    cfg = dict(
        embed_dim=256,       # small stand-in for 768 (keeps lane dims 128-aligned)
        expand_factor=1.5,   # d_inner = 384
        num_layers=2,        # text-encoder mamba layers (4 in the full config)
        codebook_size=128,
        vocab_size=100,
    )

    key = jax.random.PRNGKey(0)
    pkey, tkey, akey = jax.random.split(key, 3)
    params = init_params(pkey, cfg)

    B, L_text, T_audio = 2, 16, 12
    text_tokens = jax.random.randint(tkey, (B, L_text), 0, cfg["vocab_size"], jnp.int32)
    audio_tokens = jax.random.randint(akey, (B, 8, T_audio), 0, cfg["codebook_size"], jnp.int32)

    fwd = jax.jit(forward)
    out = fwd(params, text_tokens, audio_tokens)
    jax.block_until_ready(out)

    assert out["logits"].shape == (B, 8, T_audio, cfg["codebook_size"])
    assert out["predicted_durations"].shape == (B, 1)
    assert out["text_features"].shape == (B, L_text, cfg["embed_dim"])
    assert bool(jnp.all(jnp.isfinite(out["logits"])))
    assert bool(jnp.all(jnp.isfinite(out["predicted_durations"])))
    assert bool(jnp.all(jnp.isfinite(out["text_features"])))
    print("KERNEL_OK")
</pallas_src>

<mosaic_0001>
module attributes {stable_mosaic.version = 11 : i64} {
  func.func @_audio_embed_mean_kernel(%arg0: memref<8x24x256xf32, #tpu.memory_space<vmem>>, %arg1: memref<8x1x256xf32, #tpu.memory_space<vmem>>, %arg2: memref<8x1x256xf32, #tpu.memory_space<vmem>>, %arg3: memref<2x256xf32, #tpu.memory_space<vmem>>, %arg4: memref<24x256xf32, #tpu.memory_space<vmem>>) attributes {dimension_semantics = [], scalar_prefetch = 0 : i64, scratch_operands = 0 : i64, tpu.core_type = #tpu.core_type<tc>} {
    %c0 = arith.constant 0 : index
    %c0_0 = arith.constant 0 : index
    %c0_1 = arith.constant 0 : index
    %0 = vector.load %arg0[%c0, %c0_0, %c0_1] : memref<8x24x256xf32, #tpu.memory_space<vmem>>, vector<1x24x256xf32>
    %1 = vector.shape_cast %0 : vector<1x24x256xf32> to vector<24x256xf32>
    %c0_2 = arith.constant 0 : index
    %c0_3 = arith.constant 0 : index
    %c0_4 = arith.constant 0 : index
    %2 = vector.load %arg1[%c0_2, %c0_3, %c0_4] : memref<8x1x256xf32, #tpu.memory_space<vmem>>, vector<1x1x256xf32>
    %3 = vector.shape_cast %2 : vector<1x1x256xf32> to vector<1x256xf32>
    %c0_5 = arith.constant 0 : index
    %c0_6 = arith.constant 0 : index
    %c0_7 = arith.constant 0 : index
    %4 = vector.load %arg2[%c0_5, %c0_6, %c0_7] : memref<8x1x256xf32, #tpu.memory_space<vmem>>, vector<1x1x256xf32>
    %5 = vector.shape_cast %4 : vector<1x1x256xf32> to vector<1x256xf32>
    %cst = arith.constant dense<0.000000e+00> : vector<24xf32>
    %6 = vector.multi_reduction <add>, %1, %cst [1] : vector<24x256xf32> to vector<24xf32>
    %7 = vector.shape_cast %6 : vector<24xf32> to vector<24x1xf32>
    %cst_8 = arith.constant 2.560000e+02 : f32
    %8 = vector.broadcast %cst_8 : f32 to vector<24x1xf32>
    %9 = arith.divf %7, %8 : vector<24x1xf32>
    %10 = vector.broadcast %9 : vector<24x1xf32> to vector<24x256xf32>
    %11 = arith.subf %1, %10 : vector<24x256xf32>
    %12 = arith.mulf %11, %11 : vector<24x256xf32>
    %cst_9 = arith.constant dense<0.000000e+00> : vector<24xf32>
    %13 = vector.multi_reduction <add>, %12, %cst_9 [1] : vector<24x256xf32> to vector<24xf32>
    %14 = vector.shape_cast %13 : vector<24xf32> to vector<24x1xf32>
    %cst_10 = arith.constant 2.560000e+02 : f32
    %15 = vector.broadcast %cst_10 : f32 to vector<24x1xf32>
    %16 = arith.divf %14, %15 : vector<24x1xf32>
    %17 = vector.broadcast %9 : vector<24x1xf32> to vector<24x256xf32>
    %18 = arith.subf %1, %17 : vector<24x256xf32>
    %cst_11 = arith.constant 9.99999974E-6 : f32
    %19 = vector.broadcast %cst_11 : f32 to vector<24x1xf32>
    %20 = arith.addf %16, %19 : vector<24x1xf32>
    %21 = math.rsqrt %20 : vector<24x1xf32>
    %22 = vector.broadcast %21 : vector<24x1xf32> to vector<24x256xf32>
    %23 = arith.mulf %18, %22 : vector<24x256xf32>
    %24 = vector.broadcast %3 : vector<1x256xf32> to vector<24x256xf32>
    %25 = arith.mulf %23, %24 : vector<24x256xf32>
    %26 = vector.broadcast %5 : vector<1x256xf32> to vector<24x256xf32>
    %27 = arith.addf %25, %26 : vector<24x256xf32>
    %c1 = arith.constant 1 : index
    %c0_12 = arith.constant 0 : index
    %c0_13 = arith.constant 0 : index
    %28 = vector.load %arg0[%c1, %c0_12, %c0_13] : memref<8x24x256xf32, #tpu.memory_space<vmem>>, vector<1x24x256xf32>
    %29 = vector.shape_cast %28 : vector<1x24x256xf32> to vector<24x256xf32>
    %c1_14 = arith.constant 1 : index
    %c0_15 = arith.constant 0 : index
    %c0_16 = arith.constant 0 : index
    %30 = vector.load %arg1[%c1_14, %c0_15, %c0_16] : memref<8x1x256xf32, #tpu.memory_space<vmem>>, vector<1x1x256xf32>
    %31 = vector.shape_cast %30 : vector<1x1x256xf32> to vector<1x256xf32>
    %c1_17 = arith.constant 1 : index
    %c0_18 = arith.constant 0 : index
    %c0_19 = arith.constant 0 : index
    %32 = vector.load %arg2[%c1_17, %c0_18, %c0_19] : memref<8x1x256xf32, #tpu.memory_space<vmem>>, vector<1x1x256xf32>
    %33 = vector.shape_cast %32 : vector<1x1x256xf32> to vector<1x256xf32>
    %cst_20 = arith.constant dense<0.000000e+00> : vector<24xf32>
    %34 = vector.multi_reduction <add>, %29, %cst_20 [1] : vector<24x256xf32> to vector<24xf32>
    %35 = vector.shape_cast %34 : vector<24xf32> to vector<24x1xf32>
    %cst_21 = arith.constant 2.560000e+02 : f32
    %36 = vector.broadcast %cst_21 : f32 to vector<24x1xf32>
    %37 = arith.divf %35, %36 : vector<24x1xf32>
    %38 = vector.broadcast %37 : vector<24x1xf32> to vector<24x256xf32>
    %39 = arith.subf %29, %38 : vector<24x256xf32>
    %40 = arith.mulf %39, %39 : vector<24x256xf32>
    %cst_22 = arith.constant dense<0.000000e+00> : vector<24xf32>
    %41 = vector.multi_reduction <add>, %40, %cst_22 [1] : vector<24x256xf32> to vector<24xf32>
    %42 = vector.shape_cast %41 : vector<24xf32> to vector<24x1xf32>
    %cst_23 = arith.constant 2.560000e+02 : f32
    %43 = vector.broadcast %cst_23 : f32 to vector<24x1xf32>
    %44 = arith.divf %42, %43 : vector<24x1xf32>
    %45 = vector.broadcast %37 : vector<24x1xf32> to vector<24x256xf32>
    %46 = arith.subf %29, %45 : vector<24x256xf32>
    %cst_24 = arith.constant 9.99999974E-6 : f32
    %47 = vector.broadcast %cst_24 : f32 to vector<24x1xf32>
    %48 = arith.addf %44, %47 : vector<24x1xf32>
    %49 = math.rsqrt %48 : vector<24x1xf32>
    %50 = vector.broadcast %49 : vector<24x1xf32> to vector<24x256xf32>
    %51 = arith.mulf %46, %50 : vector<24x256xf32>
    %52 = vector.broadcast %31 : vector<1x256xf32> to vector<24x256xf32>
    %53 = arith.mulf %51, %52 : vector<24x256xf32>
    %54 = vector.broadcast %33 : vector<1x256xf32> to vector<24x256xf32>
    %55 = arith.addf %53, %54 : vector<24x256xf32>
    %56 = arith.addf %27, %55 : vector<24x256xf32>
    %c2 = arith.constant 2 : index
    %c0_25 = arith.constant 0 : index
    %c0_26 = arith.constant 0 : index
    %57 = vector.load %arg0[%c2, %c0_25, %c0_26] : memref<8x24x256xf32, #tpu.memory_space<vmem>>, vector<1x24x256xf32>
    %58 = vector.shape_cast %57 : vector<1x24x256xf32> to vector<24x256xf32>
    %c2_27 = arith.constant 2 : index
    %c0_28 = arith.constant 0 : index
    %c0_29 = arith.constant 0 : index
    %59 = vector.load %arg1[%c2_27, %c0_28, %c0_29] : memref<8x1x256xf32, #tpu.memory_space<vmem>>, vector<1x1x256xf32>
    %60 = vector.shape_cast %59 : vector<1x1x256xf32> to vector<1x256xf32>
    %c2_30 = arith.constant 2 : index
    %c0_31 = arith.constant 0 : index
    %c0_32 = arith.constant 0 : index
    %61 = vector.load %arg2[%c2_30, %c0_31, %c0_32] : memref<8x1x256xf32, #tpu.memory_space<vmem>>, vector<1x1x256xf32>
    %62 = vector.shape_cast %61 : vector<1x1x256xf32> to vector<1x256xf32>
    %cst_33 = arith.constant dense<0.000000e+00> : vector<24xf32>
    %63 = vector.multi_reduction <add>, %58, %cst_33 [1] : vector<24x256xf32> to vector<24xf32>
    %64 = vector.shape_cast %63 : vector<24xf32> to vector<24x1xf32>
    %cst_34 = arith.constant 2.560000e+02 : f32
    %65 = vector.broadcast %cst_34 : f32 to vector<24x1xf32>
    %66 = arith.divf %64, %65 : vector<24x1xf32>
    %67 = vector.broadcast %66 : vector<24x1xf32> to vector<24x256xf32>
    %68 = arith.subf %58, %67 : vector<24x256xf32>
    %69 = arith.mulf %68, %68 : vector<24x256xf32>
    %cst_35 = arith.constant dense<0.000000e+00> : vector<24xf32>
    %70 = vector.multi_reduction <add>, %69, %cst_35 [1] : vector<24x256xf32> to vector<24xf32>
    %71 = vector.shape_cast %70 : vector<24xf32> to vector<24x1xf32>
    %cst_36 = arith.constant 2.560000e+02 : f32
    %72 = vector.broadcast %cst_36 : f32 to vector<24x1xf32>
    %73 = arith.divf %71, %72 : vector<24x1xf32>
    %74 = vector.broadcast %66 : vector<24x1xf32> to vector<24x256xf32>
    %75 = arith.subf %58, %74 : vector<24x256xf32>
    %cst_37 = arith.constant 9.99999974E-6 : f32
    %76 = vector.broadcast %cst_37 : f32 to vector<24x1xf32>
    %77 = arith.addf %73, %76 : vector<24x1xf32>
    %78 = math.rsqrt %77 : vector<24x1xf32>
    %79 = vector.broadcast %78 : vector<24x1xf32> to vector<24x256xf32>
    %80 = arith.mulf %75, %79 : vector<24x256xf32>
    %81 = vector.broadcast %60 : vector<1x256xf32> to vector<24x256xf32>
    %82 = arith.mulf %80, %81 : vector<24x256xf32>
    %83 = vector.broadcast %62 : vector<1x256xf32> to vector<24x256xf32>
    %84 = arith.addf %82, %83 : vector<24x256xf32>
    %85 = arith.addf %56, %84 : vector<24x256xf32>
    %c3 = arith.constant 3 : index
    %c0_38 = arith.constant 0 : index
    %c0_39 = arith.constant 0 : index
    %86 = vector.load %arg0[%c3, %c0_38, %c0_39] : memref<8x24x256xf32, #tpu.memory_space<vmem>>, vector<1x24x256xf32>
    %87 = vector.shape_cast %86 : vector<1x24x256xf32> to vector<24x256xf32>
    %c3_40 = arith.constant 3 : index
    %c0_41 = arith.constant 0 : index
    %c0_42 = arith.constant 0 : index
    %88 = vector.load %arg1[%c3_40, %c0_41, %c0_42] : memref<8x1x256xf32, #tpu.memory_space<vmem>>, vector<1x1x256xf32>
    %89 = vector.shape_cast %88 : vector<1x1x256xf32> to vector<1x256xf32>
    %c3_43 = arith.constant 3 : index
    %c0_44 = arith.constant 0 : index
    %c0_45 = arith.constant 0 : index
    %90 = vector.load %arg2[%c3_43, %c0_44, %c0_45] : memref<8x1x256xf32, #tpu.memory_space<vmem>>, vector<1x1x256xf32>
    %91 = vector.shape_cast %90 : vector<1x1x256xf32> to vector<1x256xf32>
    %cst_46 = arith.constant dense<0.000000e+00> : vector<24xf32>
    %92 = vector.multi_reduction <add>, %87, %cst_46 [1] : vector<24x256xf32> to vector<24xf32>
    %93 = vector.shape_cast %92 : vector<24xf32> to vector<24x1xf32>
    %cst_47 = arith.constant 2.560000e+02 : f32
    %94 = vector.broadcast %cst_47 : f32 to vector<24x1xf32>
    %95 = arith.divf %93, %94 : vector<24x1xf32>
    %96 = vector.broadcast %95 : vector<24x1xf32> to vector<24x256xf32>
    %97 = arith.subf %87, %96 : vector<24x256xf32>
    %98 = arith.mulf %97, %97 : vector<24x256xf32>
    %cst_48 = arith.constant dense<0.000000e+00> : vector<24xf32>
    %99 = vector.multi_reduction <add>, %98, %cst_48 [1] : vector<24x256xf32> to vector<24xf32>
    %100 = vector.shape_cast %99 : vector<24xf32> to vector<24x1xf32>
    %cst_49 = arith.constant 2.560000e+02 : f32
    %101 = vector.broadcast %cst_49 : f32 to vector<24x1xf32>
    %102 = arith.divf %100, %101 : vector<24x1xf32>
    %103 = vector.broadcast %95 : vector<24x1xf32> to vector<24x256xf32>
    %104 = arith.subf %87, %103 : vector<24x256xf32>
    %cst_50 = arith.constant 9.99999974E-6 : f32
    %105 = vector.broadcast %cst_50 : f32 to vector<24x1xf32>
    %106 = arith.addf %102, %105 : vector<24x1xf32>
    %107 = math.rsqrt %106 : vector<24x1xf32>
    %108 = vector.broadcast %107 : vector<24x1xf32> to vector<24x256xf32>
    %109 = arith.mulf %104, %108 : vector<24x256xf32>
    %110 = vector.broadcast %89 : vector<1x256xf32> to vector<24x256xf32>
    %111 = arith.mulf %109, %110 : vector<24x256xf32>
    %112 = vector.broadcast %91 : vector<1x256xf32> to vector<24x256xf32>
    %113 = arith.addf %111, %112 : vector<24x256xf32>
    %114 = arith.addf %85, %113 : vector<24x256xf32>
    %c4 = arith.constant 4 : index
    %c0_51 = arith.constant 0 : index
    %c0_52 = arith.constant 0 : index
    %115 = vector.load %arg0[%c4, %c0_51, %c0_52] : memref<8x24x256xf32, #tpu.memory_space<vmem>>, vector<1x24x256xf32>
    %116 = vector.shape_cast %115 : vector<1x24x256xf32> to vector<24x256xf32>
    %c4_53 = arith.constant 4 : index
    %c0_54 = arith.constant 0 : index
    %c0_55 = arith.constant 0 : index
    %117 = vector.load %arg1[%c4_53, %c0_54, %c0_55] : memref<8x1x256xf32, #tpu.memory_space<vmem>>, vector<1x1x256xf32>
    %118 = vector.shape_cast %117 : vector<1x1x256xf32> to vector<1x256xf32>
    %c4_56 = arith.constant 4 : index
    %c0_57 = arith.constant 0 : index
    %c0_58 = arith.constant 0 : index
    %119 = vector.load %arg2[%c4_56, %c0_57, %c0_58] : memref<8x1x256xf32, #tpu.memory_space<vmem>>, vector<1x1x256xf32>
    %120 = vector.shape_cast %119 : vector<1x1x256xf32> to vector<1x256xf32>
    %cst_59 = arith.constant dense<0.000000e+00> : vector<24xf32>
    %121 = vector.multi_reduction <add>, %116, %cst_59 [1] : vector<24x256xf32> to vector<24xf32>
    %122 = vector.shape_cast %121 : vector<24xf32> to vector<24x1xf32>
    %cst_60 = arith.constant 2.560000e+02 : f32
    %123 = vector.broadcast %cst_60 : f32 to vector<24x1xf32>
    %124 = arith.divf %122, %123 : vector<24x1xf32>
    %125 = vector.broadcast %124 : vector<24x1xf32> to vector<24x256xf32>
    %126 = arith.subf %116, %125 : vector<24x256xf32>
    %127 = arith.mulf %126, %126 : vector<24x256xf32>
    %cst_61 = arith.constant dense<0.000000e+00> : vector<24xf32>
    %128 = vector.multi_reduction <add>, %127, %cst_61 [1] : vector<24x256xf32> to vector<24xf32>
    %129 = vector.shape_cast %128 : vector<24xf32> to vector<24x1xf32>
    %cst_62 = arith.constant 2.560000e+02 : f32
    %130 = vector.broadcast %cst_62 : f32 to vector<24x1xf32>
    %131 = arith.divf %129, %130 : vector<24x1xf32>
    %132 = vector.broadcast %124 : vector<24x1xf32> to vector<24x256xf32>
    %133 = arith.subf %116, %132 : vector<24x256xf32>
    %cst_63 = arith.constant 9.99999974E-6 : f32
    %134 = vector.broadcast %cst_63 : f32 to vector<24x1xf32>
    %135 = arith.addf %131, %134 : vector<24x1xf32>
    %136 = math.rsqrt %135 : vector<24x1xf32>
    %137 = vector.broadcast %136 : vector<24x1xf32> to vector<24x256xf32>
    %138 = arith.mulf %133, %137 : vector<24x256xf32>
    %139 = vector.broadcast %118 : vector<1x256xf32> to vector<24x256xf32>
    %140 = arith.mulf %138, %139 : vector<24x256xf32>
    %141 = vector.broadcast %120 : vector<1x256xf32> to vector<24x256xf32>
    %142 = arith.addf %140, %141 : vector<24x256xf32>
    %143 = arith.addf %114, %142 : vector<24x256xf32>
    %c5 = arith.constant 5 : index
    %c0_64 = arith.constant 0 : index
    %c0_65 = arith.constant 0 : index
    %144 = vector.load %arg0[%c5, %c0_64, %c0_65] : memref<8x24x256xf32, #tpu.memory_space<vmem>>, vector<1x24x256xf32>
    %145 = vector.shape_cast %144 : vector<1x24x256xf32> to vector<24x256xf32>
    %c5_66 = arith.constant 5 : index
    %c0_67 = arith.constant 0 : index
    %c0_68 = arith.constant 0 : index
    %146 = vector.load %arg1[%c5_66, %c0_67, %c0_68] : memref<8x1x256xf32, #tpu.memory_space<vmem>>, vector<1x1x256xf32>
    %147 = vector.shape_cast %146 : vector<1x1x256xf32> to vector<1x256xf32>
    %c5_69 = arith.constant 5 : index
    %c0_70 = arith.constant 0 : index
    %c0_71 = arith.constant 0 : index
    %148 = vector.load %arg2[%c5_69, %c0_70, %c0_71] : memref<8x1x256xf32, #tpu.memory_space<vmem>>, vector<1x1x256xf32>
    %149 = vector.shape_cast %148 : vector<1x1x256xf32> to vector<1x256xf32>
    %cst_72 = arith.constant dense<0.000000e+00> : vector<24xf32>
    %150 = vector.multi_reduction <add>, %145, %cst_72 [1] : vector<24x256xf32> to vector<24xf32>
    %151 = vector.shape_cast %150 : vector<24xf32> to vector<24x1xf32>
    %cst_73 = arith.constant 2.560000e+02 : f32
    %152 = vector.broadcast %cst_73 : f32 to vector<24x1xf32>
    %153 = arith.divf %151, %152 : vector<24x1xf32>
    %154 = vector.broadcast %153 : vector<24x1xf32> to vector<24x256xf32>
    %155 = arith.subf %145, %154 : vector<24x256xf32>
    %156 = arith.mulf %155, %155 : vector<24x256xf32>
    %cst_74 = arith.constant dense<0.000000e+00> : vector<24xf32>
    %157 = vector.multi_reduction <add>, %156, %cst_74 [1] : vector<24x256xf32> to vector<24xf32>
    %158 = vector.shape_cast %157 : vector<24xf32> to vector<24x1xf32>
    %cst_75 = arith.constant 2.560000e+02 : f32
    %159 = vector.broadcast %cst_75 : f32 to vector<24x1xf32>
    %160 = arith.divf %158, %159 : vector<24x1xf32>
    %161 = vector.broadcast %153 : vector<24x1xf32> to vector<24x256xf32>
    %162 = arith.subf %145, %161 : vector<24x256xf32>
    %cst_76 = arith.constant 9.99999974E-6 : f32
    %163 = vector.broadcast %cst_76 : f32 to vector<24x1xf32>
    %164 = arith.addf %160, %163 : vector<24x1xf32>
    %165 = math.rsqrt %164 : vector<24x1xf32>
    %166 = vector.broadcast %165 : vector<24x1xf32> to vector<24x256xf32>
    %167 = arith.mulf %162, %166 : vector<24x256xf32>
    %168 = vector.broadcast %147 : vector<1x256xf32> to vector<24x256xf32>
    %169 = arith.mulf %167, %168 : vector<24x256xf32>
    %170 = vector.broadcast %149 : vector<1x256xf32> to vector<24x256xf32>
    %171 = arith.addf %169, %170 : vector<24x256xf32>
    %172 = arith.addf %143, %171 : vector<24x256xf32>
    %c6 = arith.constant 6 : index
    %c0_77 = arith.constant 0 : index
    %c0_78 = arith.constant 0 : index
    %173 = vector.load %arg0[%c6, %c0_77, %c0_78] : memref<8x24x256xf32, #tpu.memory_space<vmem>>, vector<1x24x256xf32>
    %174 = vector.shape_cast %173 : vector<1x24x256xf32> to vector<24x256xf32>
    %c6_79 = arith.constant 6 : index
    %c0_80 = arith.constant 0 : index
    %c0_81 = arith.constant 0 : index
    %175 = vector.load %arg1[%c6_79, %c0_80, %c0_81] : memref<8x1x256xf32, #tpu.memory_space<vmem>>, vector<1x1x256xf32>
    %176 = vector.shape_cast %175 : vector<1x1x256xf32> to vector<1x256xf32>
    %c6_82 = arith.constant 6 : index
    %c0_83 = arith.constant 0 : index
    %c0_84 = arith.constant 0 : index
    %177 = vector.load %arg2[%c6_82, %c0_83, %c0_84] : memref<8x1x256xf32, #tpu.memory_space<vmem>>, vector<1x1x256xf32>
    %178 = vector.shape_cast %177 : vector<1x1x256xf32> to vector<1x256xf32>
    %cst_85 = arith.constant dense<0.000000e+00> : vector<24xf32>
    %179 = vector.multi_reduction <add>, %174, %cst_85 [1] : vector<24x256xf32> to vector<24xf32>
    %180 = vector.shape_cast %179 : vector<24xf32> to vector<24x1xf32>
    %cst_86 = arith.constant 2.560000e+02 : f32
    %181 = vector.broadcast %cst_86 : f32 to vector<24x1xf32>
    %182 = arith.divf %180, %181 : vector<24x1xf32>
    %183 = vector.broadcast %182 : vector<24x1xf32> to vector<24x256xf32>
    %184 = arith.subf %174, %183 : vector<24x256xf32>
    %185 = arith.mulf %184, %184 : vector<24x256xf32>
    %cst_87 = arith.constant dense<0.000000e+00> : vector<24xf32>
    %186 = vector.multi_reduction <add>, %185, %cst_87 [1] : vector<24x256xf32> to vector<24xf32>
    %187 = vector.shape_cast %186 : vector<24xf32> to vector<24x1xf32>
    %cst_88 = arith.constant 2.560000e+02 : f32
    %188 = vector.broadcast %cst_88 : f32 to vector<24x1xf32>
    %189 = arith.divf %187, %188 : vector<24x1xf32>
    %190 = vector.broadcast %182 : vector<24x1xf32> to vector<24x256xf32>
    %191 = arith.subf %174, %190 : vector<24x256xf32>
    %cst_89 = arith.constant 9.99999974E-6 : f32
    %192 = vector.broadcast %cst_89 : f32 to vector<24x1xf32>
    %193 = arith.addf %189, %192 : vector<24x1xf32>
    %194 = math.rsqrt %193 : vector<24x1xf32>
    %195 = vector.broadcast %194 : vector<24x1xf32> to vector<24x256xf32>
    %196 = arith.mulf %191, %195 : vector<24x256xf32>
    %197 = vector.broadcast %176 : vector<1x256xf32> to vector<24x256xf32>
    %198 = arith.mulf %196, %197 : vector<24x256xf32>
    %199 = vector.broadcast %178 : vector<1x256xf32> to vector<24x256xf32>
    %200 = arith.addf %198, %199 : vector<24x256xf32>
    %201 = arith.addf %172, %200 : vector<24x256xf32>
    %c7 = arith.constant 7 : index
    %c0_90 = arith.constant 0 : index
    %c0_91 = arith.constant 0 : index
    %202 = vector.load %arg0[%c7, %c0_90, %c0_91] : memref<8x24x256xf32, #tpu.memory_space<vmem>>, vector<1x24x256xf32>
    %203 = vector.shape_cast %202 : vector<1x24x256xf32> to vector<24x256xf32>
    %c7_92 = arith.constant 7 : index
    %c0_93 = arith.constant 0 : index
    %c0_94 = arith.constant 0 : index
    %204 = vector.load %arg1[%c7_92, %c0_93, %c0_94] : memref<8x1x256xf32, #tpu.memory_space<vmem>>, vector<1x1x256xf32>
    %205 = vector.shape_cast %204 : vector<1x1x256xf32> to vector<1x256xf32>
    %c7_95 = arith.constant 7 : index
    %c0_96 = arith.constant 0 : index
    %c0_97 = arith.constant 0 : index
    %206 = vector.load %arg2[%c7_95, %c0_96, %c0_97] : memref<8x1x256xf32, #tpu.memory_space<vmem>>, vector<1x1x256xf32>
    %207 = vector.shape_cast %206 : vector<1x1x256xf32> to vector<1x256xf32>
    %cst_98 = arith.constant dense<0.000000e+00> : vector<24xf32>
    %208 = vector.multi_reduction <add>, %203, %cst_98 [1] : vector<24x256xf32> to vector<24xf32>
    %209 = vector.shape_cast %208 : vector<24xf32> to vector<24x1xf32>
    %cst_99 = arith.constant 2.560000e+02 : f32
    %210 = vector.broadcast %cst_99 : f32 to vector<24x1xf32>
    %211 = arith.divf %209, %210 : vector<24x1xf32>
    %212 = vector.broadcast %211 : vector<24x1xf32> to vector<24x256xf32>
    %213 = arith.subf %203, %212 : vector<24x256xf32>
    %214 = arith.mulf %213, %213 : vector<24x256xf32>
    %cst_100 = arith.constant dense<0.000000e+00> : vector<24xf32>
    %215 = vector.multi_reduction <add>, %214, %cst_100 [1] : vector<24x256xf32> to vector<24xf32>
    %216 = vector.shape_cast %215 : vector<24xf32> to vector<24x1xf32>
    %cst_101 = arith.constant 2.560000e+02 : f32
    %217 = vector.broadcast %cst_101 : f32 to vector<24x1xf32>
    %218 = arith.divf %216, %217 : vector<24x1xf32>
    %219 = vector.broadcast %211 : vector<24x1xf32> to vector<24x256xf32>
    %220 = arith.subf %203, %219 : vector<24x256xf32>
    %cst_102 = arith.constant 9.99999974E-6 : f32
    %221 = vector.broadcast %cst_102 : f32 to vector<24x1xf32>
    %222 = arith.addf %218, %221 : vector<24x1xf32>
    %223 = math.rsqrt %222 : vector<24x1xf32>
    %224 = vector.broadcast %223 : vector<24x1xf32> to vector<24x256xf32>
    %225 = arith.mulf %220, %224 : vector<24x256xf32>
    %226 = vector.broadcast %205 : vector<1x256xf32> to vector<24x256xf32>
    %227 = arith.mulf %225, %226 : vector<24x256xf32>
    %228 = vector.broadcast %207 : vector<1x256xf32> to vector<24x256xf32>
    %229 = arith.addf %227, %228 : vector<24x256xf32>
    %230 = arith.addf %201, %229 : vector<24x256xf32>
    %cst_103 = arith.constant 1.250000e-01 : f32
    %231 = vector.broadcast %cst_103 : f32 to vector<24x256xf32>
    %232 = arith.mulf %230, %231 : vector<24x256xf32>
    %c0_104 = arith.constant 0 : index
    %c0_105 = arith.constant 0 : index
    %233 = vector.load %arg3[%c0_104, %c0_105] : memref<2x256xf32, #tpu.memory_space<vmem>>, vector<2x256xf32>
    %234 = vector.extract_strided_slice %233 {offsets = [0, 0], sizes = [1, 256], strides = [1, 1]} : vector<2x256xf32> to vector<1x256xf32>
    %235 = vector.shape_cast %234 : vector<1x256xf32> to vector<1x256xf32>
    %236 = vector.broadcast %235 : vector<1x256xf32> to vector<12x256xf32>
    %237 = vector.extract_strided_slice %233 {offsets = [1, 0], sizes = [1, 256], strides = [1, 1]} : vector<2x256xf32> to vector<1x256xf32>
    %238 = vector.shape_cast %237 : vector<1x256xf32> to vector<1x256xf32>
    %239 = vector.broadcast %238 : vector<1x256xf32> to vector<12x256xf32>
    %240 = tpu.concatenate %236, %239 in 0 : vector<12x256xf32>, vector<12x256xf32> -> vector<24x256xf32>
    %241 = arith.addf %232, %240 : vector<24x256xf32>
    %c0_106 = arith.constant 0 : index
    %c0_107 = arith.constant 0 : index
    %242 = vector.load %arg4[%c0_106, %c0_107] : memref<24x256xf32, #tpu.memory_space<vmem>>, vector<24x256xf32>
    tpu.vector_store %arg4[%c0_106, %c0_107], %241 {strides = array<i32>} : memref<24x256xf32, #tpu.memory_space<vmem>>, vector<24x256xf32>,
    return
  }
}

module attributes {stable_mosaic.version = 11 : i64} {
  func.func @_text_stack_kernel(%arg0: i32, %arg1: memref<32x256xf32, #tpu.memory_space<vmem>>, %arg2: memref<32x1xf32, #tpu.memory_space<vmem>>, %arg3: memref<32x1xf32, #tpu.memory_space<vmem>>, %arg4: memref<1x1x256xf32, #tpu.memory_space<vmem>>, %arg5: memref<1x1x256xf32, #tpu.memory_space<vmem>>, %arg6: memref<1x256x768xbf16, #tpu.memory_space<vmem>>, %arg7: memref<1x3x384xf32, #tpu.memory_space<vmem>>, %arg8: memref<1x384x384xbf16, #tpu.memory_space<vmem>>, %arg9: memref<1x1x384xf32, #tpu.memory_space<vmem>>, %arg10: memref<1x384x256xbf16, #tpu.memory_space<vmem>>, %arg11: memref<1x1x256xf32, #tpu.memory_space<vmem>>, %arg12: memref<1x256xf32, #tpu.memory_space<vmem>>, %arg13: memref<1x256xf32, #tpu.memory_space<vmem>>, %arg14: memref<256x256xbf16, #tpu.memory_space<vmem>>, %arg15: memref<1x256xf32, #tpu.memory_space<vmem>>, %arg16: memref<1x256xf32, #tpu.memory_space<vmem>>, %arg17: memref<1x256xf32, #tpu.memory_space<vmem>>, %arg18: memref<256x256xbf16, #tpu.memory_space<vmem>>, %arg19: memref<1x256xf32, #tpu.memory_space<vmem>>, %arg20: memref<256x128xbf16, #tpu.memory_space<vmem>>, %arg21: memref<1x128xf32, #tpu.memory_space<vmem>>, %arg22: memref<1x128xf32, #tpu.memory_space<vmem>>, %arg23: memref<1x1xf32, #tpu.memory_space<vmem>>, %arg24: memref<32x256xf32, #tpu.memory_space<vmem>>, %arg25: memref<2x256xf32, #tpu.memory_space<vmem>>, %arg26: memref<2x1xf32, #tpu.memory_space<vmem>>, %arg27: memref<32x256xf32, #tpu.memory_space<vmem>>) attributes {dimension_semantics = [#tpu.dimension_semantics<arbitrary>], iteration_bounds = array<i64: 2>, scalar_prefetch = 0 : i64, scratch_operands = 1 : i64, tpu.core_type = #tpu.core_type<tc>, window_params = [{pipeline_mode = #tpu.pipeline_mode<synchronous>, transform_indices = @transform_0, window_bounds = array<i64: 32, 256>}, {pipeline_mode = #tpu.pipeline_mode<synchronous>, transform_indices = @transform_1, window_bounds = array<i64: 32, 1>}, {pipeline_mode = #tpu.pipeline_mode<synchronous>, transform_indices = @transform_2, window_bounds = array<i64: 32, 1>}, {transform_indices = @transform_3, window_bounds = array<i64: 1, 1, 256>}, {transform_indices = @transform_4, window_bounds = array<i64: 1, 1, 256>}, {transform_indices = @transform_5, window_bounds = array<i64: 1, 256, 768>}, {transform_indices = @transform_6, window_bounds = array<i64: 1, 3, 384>}, {transform_indices = @transform_7, window_bounds = array<i64: 1, 384, 384>}, {transform_indices = @transform_8, window_bounds = array<i64: 1, 1, 384>}, {transform_indices = @transform_9, window_bounds = array<i64: 1, 384, 256>}, {transform_indices = @transform_10, window_bounds = array<i64: 1, 1, 256>}, {pipeline_mode = #tpu.pipeline_mode<synchronous>, transform_indices = @transform_11, window_bounds = array<i64: 1, 256>}, {pipeline_mode = #tpu.pipeline_mode<synchronous>, transform_indices = @transform_12, window_bounds = array<i64: 1, 256>}, {pipeline_mode = #tpu.pipeline_mode<synchronous>, transform_indices = @transform_13, window_bounds = array<i64: 256, 256>}, {pipeline_mode = #tpu.pipeline_mode<synchronous>, transform_indices = @transform_14, window_bounds = array<i64: 1, 256>}, {pipeline_mode = #tpu.pipeline_mode<synchronous>, transform_indices = @transform_15, window_bounds = array<i64: 1, 256>}, {pipeline_mode = #tpu.pipeline_mode<synchronous>, transform_indices = @transform_16, window_bounds = array<i64: 1, 256>}, {pipeline_mode = #tpu.pipeline_mode<synchronous>, transform_indices = @transform_17, window_bounds = array<i64: 256, 256>}, {pipeline_mode = #tpu.pipeline_mode<synchronous>, transform_indices = @transform_18, window_bounds = array<i64: 1, 256>}, {pipeline_mode = #tpu.pipeline_mode<synchronous>, transform_indices = @transform_19, window_bounds = array<i64: 256, 128>}, {pipeline_mode = #tpu.pipeline_mode<synchronous>, transform_indices = @transform_20, window_bounds = array<i64: 1, 128>}, {pipeline_mode = #tpu.pipeline_mode<synchronous>, transform_indices = @transform_21, window_bounds = array<i64: 1, 128>}, {pipeline_mode = #tpu.pipeline_mode<synchronous>, transform_indices = @transform_22, window_bounds = array<i64: 1, 1>}, {pipeline_mode = #tpu.pipeline_mode<synchronous>, transform_indices = @transform_23, window_bounds = array<i64: 32, 256>}, {pipeline_mode = #tpu.pipeline_mode<synchronous>, transform_indices = @transform_24, window_bounds = array<i64: 2, 256>}, {pipeline_mode = #tpu.pipeline_mode<synchronous>, transform_indices = @transform_25, window_bounds = array<i64: 2, 1>}]} {
    %c0_i32 = arith.constant 0 : i32
    %0 = arith.cmpi eq, %arg0, %c0_i32 : i32
    %1 = arith.extui %0 : i1 to i32
    %c0_i32_0 = arith.constant 0 : i32
    %2 = arith.cmpi ne, %1, %c0_i32_0 : i32
    scf.if %2 {
      %c0_49 = arith.constant 0 : index
      %c0_50 = arith.constant 0 : index
      %106 = vector.load %arg1[%c0_49, %c0_50] : memref<32x256xf32, #tpu.memory_space<vmem>>, vector<32x256xf32>
      %c0_51 = arith.constant 0 : index
      %c0_52 = arith.constant 0 : index
      %107 = vector.load %arg27[%c0_51, %c0_52] : memref<32x256xf32, #tpu.memory_space<vmem>>, vector<32x256xf32>
      tpu.vector_store %arg27[%c0_51, %c0_52], %106 {strides = array<i32>} : memref<32x256xf32, #tpu.memory_space<vmem>>, vector<32x256xf32>,
    } else {
    }
    %c0 = arith.constant 0 : index
    %c0_1 = arith.constant 0 : index
    %3 = vector.load %arg27[%c0, %c0_1] : memref<32x256xf32, #tpu.memory_space<vmem>>, vector<32x256xf32>
    %c0_2 = arith.constant 0 : index
    %c0_3 = arith.constant 0 : index
    %4 = vector.load %arg2[%c0_2, %c0_3] : memref<32x1xf32, #tpu.memory_space<vmem>>, vector<32x1xf32>
    %c0_4 = arith.constant 0 : index
    %c0_5 = arith.constant 0 : index
    %5 = vector.load %arg3[%c0_4, %c0_5] : memref<32x1xf32, #tpu.memory_space<vmem>>, vector<32x1xf32>
    %c0_6 = arith.constant 0 : index
    %c0_7 = arith.constant 0 : index
    %c0_8 = arith.constant 0 : index
    %6 = vector.load %arg4[%c0_6, %c0_7, %c0_8] : memref<1x1x256xf32, #tpu.memory_space<vmem>>, vector<1x1x256xf32>
    %7 = vector.shape_cast %6 : vector<1x1x256xf32> to vector<1x256xf32>
    %c0_9 = arith.constant 0 : index
    %c0_10 = arith.constant 0 : index
    %c0_11 = arith.constant 0 : index
    %8 = vector.load %arg5[%c0_9, %c0_10, %c0_11] : memref<1x1x256xf32, #tpu.memory_space<vmem>>, vector<1x1x256xf32>
    %9 = vector.shape_cast %8 : vector<1x1x256xf32> to vector<1x256xf32>
    %c0_12 = arith.constant 0 : index
    %c0_13 = arith.constant 0 : index
    %c0_14 = arith.constant 0 : index
    %10 = vector.load %arg6[%c0_12, %c0_13, %c0_14] : memref<1x256x768xbf16, #tpu.memory_space<vmem>>, vector<1x256x768xbf16>
    %11 = vector.shape_cast %10 : vector<1x256x768xbf16> to vector<256x768xbf16>
    %c0_15 = arith.constant 0 : index
    %c0_16 = arith.constant 0 : index
    %c0_17 = arith.constant 0 : index
    %12 = vector.load %arg7[%c0_15, %c0_16, %c0_17] : memref<1x3x384xf32, #tpu.memory_space<vmem>>, vector<1x3x384xf32>
    %13 = vector.shape_cast %12 : vector<1x3x384xf32> to vector<3x384xf32>
    %c0_18 = arith.constant 0 : index
    %c0_19 = arith.constant 0 : index
    %c0_20 = arith.constant 0 : index
    %14 = vector.load %arg8[%c0_18, %c0_19, %c0_20] : memref<1x384x384xbf16, #tpu.memory_space<vmem>>, vector<1x384x384xbf16>
    %15 = vector.shape_cast %14 : vector<1x384x384xbf16> to vector<384x384xbf16>
    %c0_21 = arith.constant 0 : index
    %c0_22 = arith.constant 0 : index
    %c0_23 = arith.constant 0 : index
    %16 = vector.load %arg9[%c0_21, %c0_22, %c0_23] : memref<1x1x384xf32, #tpu.memory_space<vmem>>, vector<1x1x384xf32>
    %17 = vector.shape_cast %16 : vector<1x1x384xf32> to vector<1x384xf32>
    %c0_24 = arith.constant 0 : index
    %c0_25 = arith.constant 0 : index
    %c0_26 = arith.constant 0 : index
    %18 = vector.load %arg10[%c0_24, %c0_25, %c0_26] : memref<1x384x256xbf16, #tpu.memory_space<vmem>>, vector<1x384x256xbf16>
    %19 = vector.shape_cast %18 : vector<1x384x256xbf16> to vector<384x256xbf16>
    %c0_27 = arith.constant 0 : index
    %c0_28 = arith.constant 0 : index
    %c0_29 = arith.constant 0 : index
    %20 = vector.load %arg11[%c0_27, %c0_28, %c0_29] : memref<1x1x256xf32, #tpu.memory_space<vmem>>, vector<1x1x256xf32>
    %21 = vector.shape_cast %20 : vector<1x1x256xf32> to vector<1x256xf32>
    %cst = arith.constant dense<0.000000e+00> : vector<32xf32>
    %22 = vector.multi_reduction <add>, %3, %cst [1] : vector<32x256xf32> to vector<32xf32>
    %23 = vector.shape_cast %22 : vector<32xf32> to vector<32x1xf32>
    %cst_30 = arith.constant 2.560000e+02 : f32
    %24 = vector.broadcast %cst_30 : f32 to vector<32x1xf32>
    %25 = arith.divf %23, %24 : vector<32x1xf32>
    %26 = vector.broadcast %25 : vector<32x1xf32> to vector<32x256xf32>
    %27 = arith.subf %3, %26 : vector<32x256xf32>
    %28 = arith.mulf %27, %27 : vector<32x256xf32>
    %cst_31 = arith.constant dense<0.000000e+00> : vector<32xf32>
    %29 = vector.multi_reduction <add>, %28, %cst_31 [1] : vector<32x256xf32> to vector<32xf32>
    %30 = vector.shape_cast %29 : vector<32xf32> to vector<32x1xf32>
    %cst_32 = arith.constant 2.560000e+02 : f32
    %31 = vector.broadcast %cst_32 : f32 to vector<32x1xf32>
    %32 = arith.divf %30, %31 : vector<32x1xf32>
    %33 = vector.broadcast %25 : vector<32x1xf32> to vector<32x256xf32>
    %34 = arith.subf %3, %33 : vector<32x256xf32>
    %cst_33 = arith.constant 9.99999974E-6 : f32
    %35 = vector.broadcast %cst_33 : f32 to vector<32x1xf32>
    %36 = arith.addf %32, %35 : vector<32x1xf32>
    %37 = math.rsqrt %36 : vector<32x1xf32>
    %38 = vector.broadcast %37 : vector<32x1xf32> to vector<32x256xf32>
    %39 = arith.mulf %34, %38 : vector<32x256xf32>
    %40 = vector.broadcast %7 : vector<1x256xf32> to vector<32x256xf32>
    %41 = arith.mulf %39, %40 : vector<32x256xf32>
    %42 = vector.broadcast %9 : vector<1x256xf32> to vector<32x256xf32>
    %43 = arith.addf %41, %42 : vector<32x256xf32>
    %44 = arith.truncf %43 : vector<32x256xf32> to vector<32x256xbf16>
    %cst_34 = arith.constant dense<0.000000e+00> : vector<32x768xf32>
    %45 = tpu.matmul %44, %11, %cst_34 {dimension_numbers = #tpu.dot_dimension_numbers<[1], [0], [0], [1], [0, 0, 1, 1], [], []>} : vector<32x256xbf16>, vector<256x768xbf16>, vector<32x768xf32> -> vector<32x768xf32>
    %46 = vector.extract_strided_slice %45 {offsets = [0, 0], sizes = [32, 384], strides = [1, 1]} : vector<32x768xf32> to vector<32x384xf32>
    %47 = vector.extract_strided_slice %45 {offsets = [0, 384], sizes = [32, 384], strides = [1, 1]} : vector<32x768xf32> to vector<32x384xf32>
    %c1_i32 = arith.constant 1 : i32
    %48 = tpu.dynamic_rotate %46 by %c1_i32 dim 0 : vector<32x384xf32>, i32 -> vector<32x384xf32>
    %49 = vector.broadcast %4 : vector<32x1xf32> to vector<32x384xf32>
    %50 = arith.mulf %49, %48 : vector<32x384xf32>
    %c31_i32 = arith.constant 31 : i32
    %51 = tpu.dynamic_rotate %46 by %c31_i32 dim 0 : vector<32x384xf32>, i32 -> vector<32x384xf32>
    %52 = vector.broadcast %5 : vector<32x1xf32> to vector<32x384xf32>
    %53 = arith.mulf %52, %51 : vector<32x384xf32>
    %54 = vector.extract_strided_slice %13 {offsets = [0, 0], sizes = [1, 384], strides = [1, 1]} : vector<3x384xf32> to vector<1x384xf32>
    %55 = vector.broadcast %54 : vector<1x384xf32> to vector<32x384xf32>
    %56 = arith.mulf %50, %55 : vector<32x384xf32>
    %57 = vector.extract_strided_slice %13 {offsets = [1, 0], sizes = [1, 384], strides = [1, 1]} : vector<3x384xf32> to vector<1x384xf32>
    %58 = vector.broadcast %57 : vector<1x384xf32> to vector<32x384xf32>
    %59 = arith.mulf %46, %58 : vector<32x384xf32>
    %60 = arith.addf %56, %59 : vector<32x384xf32>
    %61 = vector.extract_strided_slice %13 {offsets = [2, 0], sizes = [1, 384], strides = [1, 1]} : vector<3x384xf32> to vector<1x384xf32>
    %62 = vector.broadcast %61 : vector<1x384xf32> to vector<32x384xf32>
    %63 = arith.mulf %53, %62 : vector<32x384xf32>
    %64 = arith.addf %60, %63 : vector<32x384xf32>
    %cst_35 = arith.constant 0.000000e+00 : f32
    %65 = vector.broadcast %cst_35 : f32 to vector<32x384xf32>
    %66 = arith.subf %65, %64 : vector<32x384xf32>
    %67 = math.exp %66 : vector<32x384xf32>
    %cst_36 = arith.constant 1.000000e+00 : f32
    %68 = vector.broadcast %cst_36 : f32 to vector<32x384xf32>
    %69 = arith.addf %68, %67 : vector<32x384xf32>
    %70 = tpu.reciprocal %69 {approx = true} : vector<32x384xf32> -> vector<32x384xf32>
    %71 = arith.mulf %64, %70 : vector<32x384xf32>
    %72 = arith.truncf %71 : vector<32x384xf32> to vector<32x384xbf16>
    %cst_37 = arith.constant dense<0.000000e+00> : vector<32x384xf32>
    %73 = tpu.matmul %72, %15, %cst_37 {dimension_numbers = #tpu.dot_dimension_numbers<[1], [0], [0], [1], [0, 0, 1, 1], [], []>} : vector<32x384xbf16>, vector<384x384xbf16>, vector<32x384xf32> -> vector<32x384xf32>
    %74 = vector.broadcast %17 : vector<1x384xf32> to vector<32x384xf32>
    %75 = arith.addf %73, %74 : vector<32x384xf32>
    %cst_38 = arith.constant 2.000000e+01 : f32
    %76 = vector.broadcast %cst_38 : f32 to vector<32x384xf32>
    %77 = arith.cmpf ogt, %75, %76 : vector<32x384xf32>
    %cst_39 = arith.constant 2.000000e+01 : f32
    %78 = vector.broadcast %cst_39 : f32 to vector<32x384xf32>
    %79 = arith.minimumf %75, %78 : vector<32x384xf32>
    %80 = math.exp %79 : vector<32x384xf32>
    %81 = math.log1p %80 : vector<32x384xf32>
    %82 = arith.select %77, %75, %81 : vector<32x384xi1>, vector<32x384xf32>
    %cst_40 = arith.constant 0.000000e+00 : f32
    %83 = vector.broadcast %cst_40 : f32 to vector<32x384xf32>
    %84 = arith.subf %83, %82 : vector<32x384xf32>
    %85 = math.exp %84 : vector<32x384xf32>
    %cst_41 = arith.constant 1.000000e+00 : f32
    %86 = vector.broadcast %cst_41 : f32 to vector<32x384xf32>
    %87 = arith.addf %86, %85 : vector<32x384xf32>
    %88 = tpu.reciprocal %87 {approx = true} : vector<32x384xf32> -> vector<32x384xf32>
    %89 = arith.mulf %71, %88 : vector<32x384xf32>
    %cst_42 = arith.constant 0.000000e+00 : f32
    %90 = vector.broadcast %cst_42 : f32 to vector<32x384xf32>
    %91 = arith.subf %90, %47 : vector<32x384xf32>
    %92 = math.exp %91 : vector<32x384xf32>
    %cst_43 = arith.constant 1.000000e+00 : f32
    %93 = vector.broadcast %cst_43 : f32 to vector<32x384xf32>
    %94 = arith.addf %93, %92 : vector<32x384xf32>
    %95 = tpu.reciprocal %94 {approx = true} : vector<32x384xf32> -> vector<32x384xf32>
    %96 = arith.mulf %89, %95 : vector<32x384xf32>
    %97 = arith.truncf %96 : vector<32x384xf32> to vector<32x384xbf16>
    %cst_44 = arith.constant dense<0.000000e+00> : vector<32x256xf32>
    %98 = tpu.matmul %97, %19, %cst_44 {dimension_numbers = #tpu.dot_dimension_numbers<[1], [0], [0], [1], [0, 0, 1, 1], [], []>} : vector<32x384xbf16>, vector<384x256xbf16>, vector<32x256xf32> -> vector<32x256xf32>
    %99 = vector.broadcast %21 : vector<1x256xf32> to vector<32x256xf32>
    %100 = arith.mulf %98, %99 : vector<32x256xf32>
    %101 = arith.addf %100, %3 : vector<32x256xf32>
    %c0_45 = arith.constant 0 : index
    %c0_46 = arith.constant 0 : index
    %102 = vector.load %arg27[%c0_45, %c0_46] : memref<32x256xf32, #tpu.memory_space<vmem>>, vector<32x256xf32>
    tpu.vector_store %arg27[%c0_45, %c0_46], %101 {strides = array<i32>} : memref<32x256xf32, #tpu.memory_space<vmem>>, vector<32x256xf32>,
    %c1_i32_47 = arith.constant 1 : i32
    %103 = arith.cmpi eq, %arg0, %c1_i32_47 : i32
    %104 = arith.extui %103 : i1 to i32
    %c0_i32_48 = arith.constant 0 : i32
    %105 = arith.cmpi ne, %104, %c0_i32_48 : i32
    scf.if %105 {
      %c0_49 = arith.constant 0 : index
      %c0_50 = arith.constant 0 : index
      %106 = vector.load %arg27[%c0_49, %c0_50] : memref<32x256xf32, #tpu.memory_space<vmem>>, vector<32x256xf32>
      %c0_51 = arith.constant 0 : index
      %c0_52 = arith.constant 0 : index
      %107 = vector.load %arg12[%c0_51, %c0_52] : memref<1x256xf32, #tpu.memory_space<vmem>>, vector<1x256xf32>
      %c0_53 = arith.constant 0 : index
      %c0_54 = arith.constant 0 : index
      %108 = vector.load %arg13[%c0_53, %c0_54] : memref<1x256xf32, #tpu.memory_space<vmem>>, vector<1x256xf32>
      %cst_55 = arith.constant dense<0.000000e+00> : vector<32xf32>
      %109 = vector.multi_reduction <add>, %106, %cst_55 [1] : vector<32x256xf32> to vector<32xf32>
      %110 = vector.shape_cast %109 : vector<32xf32> to vector<32x1xf32>
      %cst_56 = arith.constant 2.560000e+02 : f32
      %111 = vector.broadcast %cst_56 : f32 to vector<32x1xf32>
      %112 = arith.divf %110, %111 : vector<32x1xf32>
      %113 = vector.broadcast %112 : vector<32x1xf32> to vector<32x256xf32>
      %114 = arith.subf %106, %113 : vector<32x256xf32>
      %115 = arith.mulf %114, %114 : vector<32x256xf32>
      %cst_57 = arith.constant dense<0.000000e+00> : vector<32xf32>
      %116 = vector.multi_reduction <add>, %115, %cst_57 [1] : vector<32x256xf32> to vector<32xf32>
      %117 = vector.shape_cast %116 : vector<32xf32> to vector<32x1xf32>
      %cst_58 = arith.constant 2.560000e+02 : f32
      %118 = vector.broadcast %cst_58 : f32 to vector<32x1xf32>
      %119 = arith.divf %117, %118 : vector<32x1xf32>
      %120 = vector.broadcast %112 : vector<32x1xf32> to vector<32x256xf32>
      %121 = arith.subf %106, %120 : vector<32x256xf32>
      %cst_59 = arith.constant 9.99999974E-6 : f32
      %122 = vector.broadcast %cst_59 : f32 to vector<32x1xf32>
      %123 = arith.addf %119, %122 : vector<32x1xf32>
      %124 = math.rsqrt %123 : vector<32x1xf32>
      %125 = vector.broadcast %124 : vector<32x1xf32> to vector<32x256xf32>
      %126 = arith.mulf %121, %125 : vector<32x256xf32>
      %127 = vector.broadcast %107 : vector<1x256xf32> to vector<32x256xf32>
      %128 = arith.mulf %126, %127 : vector<32x256xf32>
      %129 = vector.broadcast %108 : vector<1x256xf32> to vector<32x256xf32>
      %130 = arith.addf %128, %129 : vector<32x256xf32>
      %c0_60 = arith.constant 0 : index
      %c0_61 = arith.constant 0 : index
      %131 = vector.load %arg24[%c0_60, %c0_61] : memref<32x256xf32, #tpu.memory_space<vmem>>, vector<32x256xf32>
      tpu.vector_store %arg24[%c0_60, %c0_61], %130 {strides = array<i32>} : memref<32x256xf32, #tpu.memory_space<vmem>>, vector<32x256xf32>,
      %132 = vector.extract_strided_slice %130 {offsets = [0, 0], sizes = [16, 256], strides = [1, 1]} : vector<32x256xf32> to vector<16x256xf32>
      %cst_62 = arith.constant dense<0.000000e+00> : vector<256xf32>
      %133 = vector.multi_reduction <add>, %132, %cst_62 [0] : vector<16x256xf32> to vector<256xf32>
      %134 = vector.shape_cast %133 : vector<256xf32> to vector<1x256xf32>
      %cst_63 = arith.constant 1.600000e+01 : f32
      %135 = vector.broadcast %cst_63 : f32 to vector<1x256xf32>
      %136 = arith.divf %134, %135 : vector<1x256xf32>
      %137 = vector.extract_strided_slice %130 {offsets = [16, 0], sizes = [16, 256], strides = [1, 1]} : vector<32x256xf32> to vector<16x256xf32>
      %cst_64 = arith.constant dense<0.000000e+00> : vector<256xf32>
      %138 = vector.multi_reduction <add>, %137, %cst_64 [0] : vector<16x256xf32> to vector<256xf32>
      %139 = vector.shape_cast %138 : vector<256xf32> to vector<1x256xf32>
      %cst_65 = arith.constant 1.600000e+01 : f32
      %140 = vector.broadcast %cst_65 : f32 to vector<1x256xf32>
      %141 = arith.divf %139, %140 : vector<1x256xf32>
      %142 = tpu.concatenate %136, %141 in 0 : vector<1x256xf32>, vector<1x256xf32> -> vector<2x256xf32>
      %143 = arith.truncf %142 : vector<2x256xf32> to vector<2x256xbf16>
      %c0_66 = arith.constant 0 : index
      %c0_67 = arith.constant 0 : index
      %144 = vector.load %arg14[%c0_66, %c0_67] : memref<256x256xbf16, #tpu.memory_space<vmem>>, vector<256x256xbf16>
      %cst_68 = arith.constant dense<0.000000e+00> : vector<2x256xf32>
      %145 = tpu.matmul %143, %144, %cst_68 {dimension_numbers = #tpu.dot_dimension_numbers<[1], [0], [0], [1], [0, 0, 1, 1], [], []>} : vector<2x256xbf16>, vector<256x256xbf16>, vector<2x256xf32> -> vector<2x256xf32>
      %c0_69 = arith.constant 0 : index
      %c0_70 = arith.constant 0 : index
      %146 = vector.load %arg15[%c0_69, %c0_70] : memref<1x256xf32, #tpu.memory_space<vmem>>, vector<1x256xf32>
      %147 = vector.broadcast %146 : vector<1x256xf32> to vector<2x256xf32>
      %148 = arith.addf %145, %147 : vector<2x256xf32>
      %c0_71 = arith.constant 0 : index
      %c0_72 = arith.constant 0 : index
      %149 = vector.load %arg16[%c0_71, %c0_72] : memref<1x256xf32, #tpu.memory_space<vmem>>, vector<1x256xf32>
      %c0_73 = arith.constant 0 : index
      %c0_74 = arith.constant 0 : index
      %150 = vector.load %arg17[%c0_73, %c0_74] : memref<1x256xf32, #tpu.memory_space<vmem>>, vector<1x256xf32>
      %cst_75 = arith.constant dense<0.000000e+00> : vector<2xf32>
      %151 = vector.multi_reduction <add>, %148, %cst_75 [1] : vector<2x256xf32> to vector<2xf32>
      %152 = vector.shape_cast %151 : vector<2xf32> to vector<2x1xf32>
      %cst_76 = arith.constant 2.560000e+02 : f32
      %153 = vector.broadcast %cst_76 : f32 to vector<2x1xf32>
      %154 = arith.divf %152, %153 : vector<2x1xf32>
      %155 = vector.broadcast %154 : vector<2x1xf32> to vector<2x256xf32>
      %156 = arith.subf %148, %155 : vector<2x256xf32>
      %157 = arith.mulf %156, %156 : vector<2x256xf32>
      %cst_77 = arith.constant dense<0.000000e+00> : vector<2xf32>
      %158 = vector.multi_reduction <add>, %157, %cst_77 [1] : vector<2x256xf32> to vector<2xf32>
      %159 = vector.shape_cast %158 : vector<2xf32> to vector<2x1xf32>
      %cst_78 = arith.constant 2.560000e+02 : f32
      %160 = vector.broadcast %cst_78 : f32 to vector<2x1xf32>
      %161 = arith.divf %159, %160 : vector<2x1xf32>
      %162 = vector.broadcast %154 : vector<2x1xf32> to vector<2x256xf32>
      %163 = arith.subf %148, %162 : vector<2x256xf32>
      %cst_79 = arith.constant 9.99999974E-6 : f32
      %164 = vector.broadcast %cst_79 : f32 to vector<2x1xf32>
      %165 = arith.addf %161, %164 : vector<2x1xf32>
      %166 = math.rsqrt %165 : vector<2x1xf32>
      %167 = vector.broadcast %166 : vector<2x1xf32> to vector<2x256xf32>
      %168 = arith.mulf %163, %167 : vector<2x256xf32>
      %169 = vector.broadcast %149 : vector<1x256xf32> to vector<2x256xf32>
      %170 = arith.mulf %168, %169 : vector<2x256xf32>
      %171 = vector.broadcast %150 : vector<1x256xf32> to vector<2x256xf32>
      %172 = arith.addf %170, %171 : vector<2x256xf32>
      %cst_80 = arith.constant 5.000000e-01 : f32
      %173 = vector.broadcast %cst_80 : f32 to vector<2x256xf32>
      %174 = arith.mulf %173, %172 : vector<2x256xf32>
      %cst_81 = arith.constant 4.471500e-02 : f32
      %175 = vector.broadcast %cst_81 : f32 to vector<2x256xf32>
      %176 = arith.mulf %175, %172 : vector<2x256xf32>
      %177 = arith.mulf %176, %172 : vector<2x256xf32>
      %178 = arith.mulf %177, %172 : vector<2x256xf32>
      %179 = arith.addf %172, %178 : vector<2x256xf32>
      %cst_82 = arith.constant 0.797884583 : f32
      %180 = vector.broadcast %cst_82 : f32 to vector<2x256xf32>
      %181 = arith.mulf %180, %179 : vector<2x256xf32>
      %182 = math.tanh %181 : vector<2x256xf32>
      %cst_83 = arith.constant 1.000000e+00 : f32
      %183 = vector.broadcast %cst_83 : f32 to vector<2x256xf32>
      %184 = arith.addf %183, %182 : vector<2x256xf32>
      %185 = arith.mulf %174, %184 : vector<2x256xf32>
      %186 = arith.truncf %185 : vector<2x256xf32> to vector<2x256xbf16>
      %c0_84 = arith.constant 0 : index
      %c0_85 = arith.constant 0 : index
      %187 = vector.load %arg18[%c0_84, %c0_85] : memref<256x256xbf16, #tpu.memory_space<vmem>>, vector<256x256xbf16>
      %cst_86 = arith.constant dense<0.000000e+00> : vector<2x256xf32>
      %188 = tpu.matmul %186, %187, %cst_86 {dimension_numbers = #tpu.dot_dimension_numbers<[1], [0], [0], [1], [0, 0, 1, 1], [], []>} : vector<2x256xbf16>, vector<256x256xbf16>, vector<2x256xf32> -> vector<2x256xf32>
      %c0_87 = arith.constant 0 : index
      %c0_88 = arith.constant 0 : index
      %189 = vector.load %arg19[%c0_87, %c0_88] : memref<1x256xf32, #tpu.memory_space<vmem>>, vector<1x256xf32>
      %190 = vector.broadcast %189 : vector<1x256xf32> to vector<2x256xf32>
      %191 = arith.addf %188, %190 : vector<2x256xf32>
      %c0_89 = arith.constant 0 : index
      %c0_90 = arith.constant 0 : index
      %192 = vector.load %arg25[%c0_89, %c0_90] : memref<2x256xf32, #tpu.memory_space<vmem>>, vector<2x256xf32>
      tpu.vector_store %arg25[%c0_89, %c0_90], %191 {strides = array<i32>} : memref<2x256xf32, #tpu.memory_space<vmem>>, vector<2x256xf32>,
      %c0_91 = arith.constant 0 : index
      %c0_92 = arith.constant 0 : index
      %193 = vector.load %arg20[%c0_91, %c0_92] : memref<256x128xbf16, #tpu.memory_space<vmem>>, vector<256x128xbf16>
      %cst_93 = arith.constant dense<0.000000e+00> : vector<2x128xf32>
      %194 = tpu.matmul %143, %193, %cst_93 {dimension_numbers = #tpu.dot_dimension_numbers<[1], [0], [0], [1], [0, 0, 1, 1], [], []>} : vector<2x256xbf16>, vector<256x128xbf16>, vector<2x128xf32> -> vector<2x128xf32>
      %c0_94 = arith.constant 0 : index
      %c0_95 = arith.constant 0 : index
      %195 = vector.load %arg21[%c0_94, %c0_95] : memref<1x128xf32, #tpu.memory_space<vmem>>, vector<1x128xf32>
      %196 = vector.broadcast %195 : vector<1x128xf32> to vector<2x128xf32>
      %197 = arith.addf %194, %196 : vector<2x128xf32>
      %cst_96 = arith.constant 5.000000e-01 : f32
      %198 = vector.broadcast %cst_96 : f32 to vector<2x128xf32>
      %199 = arith.mulf %198, %197 : vector<2x128xf32>
      %cst_97 = arith.constant 4.471500e-02 : f32
      %200 = vector.broadcast %cst_97 : f32 to vector<2x128xf32>
      %201 = arith.mulf %200, %197 : vector<2x128xf32>
      %202 = arith.mulf %201, %197 : vector<2x128xf32>
      %203 = arith.mulf %202, %197 : vector<2x128xf32>
      %204 = arith.addf %197, %203 : vector<2x128xf32>
      %cst_98 = arith.constant 0.797884583 : f32
      %205 = vector.broadcast %cst_98 : f32 to vector<2x128xf32>
      %206 = arith.mulf %205, %204 : vector<2x128xf32>
      %207 = math.tanh %206 : vector<2x128xf32>
      %cst_99 = arith.constant 1.000000e+00 : f32
      %208 = vector.broadcast %cst_99 : f32 to vector<2x128xf32>
      %209 = arith.addf %208, %207 : vector<2x128xf32>
      %210 = arith.mulf %199, %209 : vector<2x128xf32>
      %c0_100 = arith.constant 0 : index
      %c0_101 = arith.constant 0 : index
      %211 = vector.load %arg22[%c0_100, %c0_101] : memref<1x128xf32, #tpu.memory_space<vmem>>, vector<1x128xf32>
      %212 = vector.broadcast %211 : vector<1x128xf32> to vector<2x128xf32>
      %213 = arith.mulf %210, %212 : vector<2x128xf32>
      %cst_102 = arith.constant dense<0.000000e+00> : vector<2xf32>
      %214 = vector.multi_reduction <add>, %213, %cst_102 [1] : vector<2x128xf32> to vector<2xf32>
      %215 = vector.shape_cast %214 : vector<2xf32> to vector<2x1xf32>
      %c0_103 = arith.constant 0 : index
      %c0_104 = arith.constant 0 : index
      %216 = vector.load %arg23[%c0_103, %c0_104] : memref<1x1xf32, #tpu.memory_space<vmem>>, vector<1x1xf32>
      %217 = vector.broadcast %216 : vector<1x1xf32> to vector<2x1xf32>
      %218 = arith.addf %215, %217 : vector<2x1xf32>
      %cst_105 = arith.constant 2.000000e+01 : f32
      %219 = vector.broadcast %cst_105 : f32 to vector<2x1xf32>
      %220 = arith.cmpf ogt, %218, %219 : vector<2x1xf32>
      %cst_106 = arith.constant 2.000000e+01 : f32
      %221 = vector.broadcast %cst_106 : f32 to vector<2x1xf32>
      %222 = arith.minimumf %218, %221 : vector<2x1xf32>
      %223 = math.exp %222 : vector<2x1xf32>
      %224 = math.log1p %223 : vector<2x1xf32>
      %225 = arith.select %220, %218, %224 : vector<2x1xi1>, vector<2x1xf32>
      %c0_107 = arith.constant 0 : index
      %c0_108 = arith.constant 0 : index
      %226 = vector.load %arg26[%c0_107, %c0_108] : memref<2x1xf32, #tpu.memory_space<vmem>>, vector<2x1xf32>
      tpu.vector_store %arg26[%c0_107, %c0_108], %225 {strides = array<i32>} : memref<2x1xf32, #tpu.memory_space<vmem>>, vector<2x1xf32>,
    } else {
    }
    return
  }
  func.func @transform_0(%arg0: i32) -> (i32, i32) {
    %c0_i32 = arith.constant 0 : i32
    %c0_i32_0 = arith.constant 0 : i32
    %c0_i32_1 = arith.constant 0 : i32
    return %c0_i32, %c0_i32_0 : i32, i32
  }
  func.func @transform_1(%arg0: i32) -> (i32, i32) {
    %c0_i32 = arith.constant 0 : i32
    %c0_i32_0 = arith.constant 0 : i32
    %c0_i32_1 = arith.constant 0 : i32
    return %c0_i32, %c0_i32_0 : i32, i32
  }
  func.func @transform_2(%arg0: i32) -> (i32, i32) {
    %c0_i32 = arith.constant 0 : i32
    %c0_i32_0 = arith.constant 0 : i32
    %c0_i32_1 = arith.constant 0 : i32
    return %c0_i32, %c0_i32_0 : i32, i32
  }
  func.func @transform_3(%arg0: i32) -> (i32, i32, i32) {
    %c0_i32 = arith.constant 0 : i32
    %c0_i32_0 = arith.constant 0 : i32
    %c0_i32_1 = arith.constant 0 : i32
    return %arg0, %c0_i32, %c0_i32_0 : i32, i32, i32
  }
  func.func @transform_4(%arg0: i32) -> (i32, i32, i32) {
    %c0_i32 = arith.constant 0 : i32
    %c0_i32_0 = arith.constant 0 : i32
    %c0_i32_1 = arith.constant 0 : i32
    return %arg0, %c0_i32, %c0_i32_0 : i32, i32, i32
  }
  func.func @transform_5(%arg0: i32) -> (i32, i32, i32) {
    %c0_i32 = arith.constant 0 : i32
    %c0_i32_0 = arith.constant 0 : i32
    %c0_i32_1 = arith.constant 0 : i32
    return %arg0, %c0_i32, %c0_i32_0 : i32, i32, i32
  }
  func.func @transform_6(%arg0: i32) -> (i32, i32, i32) {
    %c0_i32 = arith.constant 0 : i32
    %c0_i32_0 = arith.constant 0 : i32
    %c0_i32_1 = arith.constant 0 : i32
    return %arg0, %c0_i32, %c0_i32_0 : i32, i32, i32
  }
  func.func @transform_7(%arg0: i32) -> (i32, i32, i32) {
    %c0_i32 = arith.constant 0 : i32
    %c0_i32_0 = arith.constant 0 : i32
    %c0_i32_1 = arith.constant 0 : i32
    return %arg0, %c0_i32, %c0_i32_0 : i32, i32, i32
  }
  func.func @transform_8(%arg0: i32) -> (i32, i32, i32) {
    %c0_i32 = arith.constant 0 : i32
    %c0_i32_0 = arith.constant 0 : i32
    %c0_i32_1 = arith.constant 0 : i32
    return %arg0, %c0_i32, %c0_i32_0 : i32, i32, i32
  }
  func.func @transform_9(%arg0: i32) -> (i32, i32, i32) {
    %c0_i32 = arith.constant 0 : i32
    %c0_i32_0 = arith.constant 0 : i32
    %c0_i32_1 = arith.constant 0 : i32
    return %arg0, %c0_i32, %c0_i32_0 : i32, i32, i32
  }
  func.func @transform_10(%arg0: i32) -> (i32, i32, i32) {
    %c0_i32 = arith.constant 0 : i32
    %c0_i32_0 = arith.constant 0 : i32
    %c0_i32_1 = arith.constant 0 : i32
    return %arg0, %c0_i32, %c0_i32_0 : i32, i32, i32
  }
  func.func @transform_11(%arg0: i32) -> (i32, i32) {
    %c0_i32 = arith.constant 0 : i32
    %c0_i32_0 = arith.constant 0 : i32
    %c0_i32_1 = arith.constant 0 : i32
    return %c0_i32, %c0_i32_0 : i32, i32
  }
  func.func @transform_12(%arg0: i32) -> (i32, i32) {
    %c0_i32 = arith.constant 0 : i32
    %c0_i32_0 = arith.constant 0 : i32
    %c0_i32_1 = arith.constant 0 : i32
    return %c0_i32, %c0_i32_0 : i32, i32
  }
  func.func @transform_13(%arg0: i32) -> (i32, i32) {
    %c0_i32 = arith.constant 0 : i32
    %c0_i32_0 = arith.constant 0 : i32
    %c0_i32_1 = arith.constant 0 : i32
    return %c0_i32, %c0_i32_0 : i32, i32
  }
  func.func @transform_14(%arg0: i32) -> (i32, i32) {
    %c0_i32 = arith.constant 0 : i32
    %c0_i32_0 = arith.constant 0 : i32
    %c0_i32_1 = arith.constant 0 : i32
    return %c0_i32, %c0_i32_0 : i32, i32
  }
  func.func @transform_15(%arg0: i32) -> (i32, i32) {
    %c0_i32 = arith.constant 0 : i32
    %c0_i32_0 = arith.constant 0 : i32
    %c0_i32_1 = arith.constant 0 : i32
    return %c0_i32, %c0_i32_0 : i32, i32
  }
  func.func @transform_16(%arg0: i32) -> (i32, i32) {
    %c0_i32 = arith.constant 0 : i32
    %c0_i32_0 = arith.constant 0 : i32
    %c0_i32_1 = arith.constant 0 : i32
    return %c0_i32, %c0_i32_0 : i32, i32
  }
  func.func @transform_17(%arg0: i32) -> (i32, i32) {
    %c0_i32 = arith.constant 0 : i32
    %c0_i32_0 = arith.constant 0 : i32
    %c0_i32_1 = arith.constant 0 : i32
    return %c0_i32, %c0_i32_0 : i32, i32
  }
  func.func @transform_18(%arg0: i32) -> (i32, i32) {
    %c0_i32 = arith.constant 0 : i32
    %c0_i32_0 = arith.constant 0 : i32
    %c0_i32_1 = arith.constant 0 : i32
    return %c0_i32, %c0_i32_0 : i32, i32
  }
  func.func @transform_19(%arg0: i32) -> (i32, i32) {
    %c0_i32 = arith.constant 0 : i32
    %c0_i32_0 = arith.constant 0 : i32
    %c0_i32_1 = arith.constant 0 : i32
    return %c0_i32, %c0_i32_0 : i32, i32
  }
  func.func @transform_20(%arg0: i32) -> (i32, i32) {
    %c0_i32 = arith.constant 0 : i32
    %c0_i32_0 = arith.constant 0 : i32
    %c0_i32_1 = arith.constant 0 : i32
    return %c0_i32, %c0_i32_0 : i32, i32
  }
  func.func @transform_21(%arg0: i32) -> (i32, i32) {
    %c0_i32 = arith.constant 0 : i32
    %c0_i32_0 = arith.constant 0 : i32
    %c0_i32_1 = arith.constant 0 : i32
    return %c0_i32, %c0_i32_0 : i32, i32
  }
  func.func @transform_22(%arg0: i32) -> (i32, i32) {
    %c0_i32 = arith.constant 0 : i32
    %c0_i32_0 = arith.constant 0 : i32
    %c0_i32_1 = arith.constant 0 : i32
    return %c0_i32, %c0_i32_0 : i32, i32
  }
  func.func @transform_23(%arg0: i32) -> (i32, i32) {
    %c0_i32 = arith.constant 0 : i32
    %c0_i32_0 = arith.constant 0 : i32
    %c0_i32_1 = arith.constant 0 : i32
    return %c0_i32, %c0_i32_0 : i32, i32
  }
  func.func @transform_24(%arg0: i32) -> (i32, i32) {
    %c0_i32 = arith.constant 0 : i32
    %c0_i32_0 = arith.constant 0 : i32
    %c0_i32_1 = arith.constant 0 : i32
    return %c0_i32, %c0_i32_0 : i32, i32
  }
  func.func @transform_25(%arg0: i32) -> (i32, i32) {
    %c0_i32 = arith.constant 0 : i32
    %c0_i32_0 = arith.constant 0 : i32
    %c0_i32_1 = arith.constant 0 : i32
    return %c0_i32, %c0_i32_0 : i32, i32
  }
}

module attributes {stable_mosaic.version = 11 : i64} {
  func.func @_audio_stack_kernel(%arg0: i32, %arg1: memref<24x256xf32, #tpu.memory_space<vmem>>, %arg2: memref<24x1xf32, #tpu.memory_space<vmem>>, %arg3: memref<24x1xf32, #tpu.memory_space<vmem>>, %arg4: memref<1x1x256xf32, #tpu.memory_space<vmem>>, %arg5: memref<1x1x256xf32, #tpu.memory_space<vmem>>, %arg6: memref<1x256x768xbf16, #tpu.memory_space<vmem>>, %arg7: memref<1x3x384xf32, #tpu.memory_space<vmem>>, %arg8: memref<1x384x384xbf16, #tpu.memory_space<vmem>>, %arg9: memref<1x1x384xf32, #tpu.memory_space<vmem>>, %arg10: memref<1x384x256xbf16, #tpu.memory_space<vmem>>, %arg11: memref<1x1x256xf32, #tpu.memory_space<vmem>>, %arg12: memref<24x256xf32, #tpu.memory_space<vmem>>, %arg13: memref<24x256xf32, #tpu.memory_space<vmem>>) attributes {dimension_semantics = [#tpu.dimension_semantics<arbitrary>], iteration_bounds = array<i64: 4>, scalar_prefetch = 0 : i64, scratch_operands = 1 : i64, tpu.core_type = #tpu.core_type<tc>, window_params = [{pipeline_mode = #tpu.pipeline_mode<synchronous>, transform_indices = @transform_0, window_bounds = array<i64: 24, 256>}, {pipeline_mode = #tpu.pipeline_mode<synchronous>, transform_indices = @transform_1, window_bounds = array<i64: 24, 1>}, {pipeline_mode = #tpu.pipeline_mode<synchronous>, transform_indices = @transform_2, window_bounds = array<i64: 24, 1>}, {transform_indices = @transform_3, window_bounds = array<i64: 1, 1, 256>}, {transform_indices = @transform_4, window_bounds = array<i64: 1, 1, 256>}, {transform_indices = @transform_5, window_bounds = array<i64: 1, 256, 768>}, {transform_indices = @transform_6, window_bounds = array<i64: 1, 3, 384>}, {transform_indices = @transform_7, window_bounds = array<i64: 1, 384, 384>}, {transform_indices = @transform_8, window_bounds = array<i64: 1, 1, 384>}, {transform_indices = @transform_9, window_bounds = array<i64: 1, 384, 256>}, {transform_indices = @transform_10, window_bounds = array<i64: 1, 1, 256>}, {pipeline_mode = #tpu.pipeline_mode<synchronous>, transform_indices = @transform_11, window_bounds = array<i64: 24, 256>}]} {
    %c0_i32 = arith.constant 0 : i32
    %0 = arith.cmpi eq, %arg0, %c0_i32 : i32
    %1 = arith.extui %0 : i1 to i32
    %c0_i32_0 = arith.constant 0 : i32
    %2 = arith.cmpi ne, %1, %c0_i32_0 : i32
    scf.if %2 {
      %c0_48 = arith.constant 0 : index
      %c0_49 = arith.constant 0 : index
      %106 = vector.load %arg1[%c0_48, %c0_49] : memref<24x256xf32, #tpu.memory_space<vmem>>, vector<24x256xf32>
      %c0_50 = arith.constant 0 : index
      %c0_51 = arith.constant 0 : index
      %107 = vector.load %arg13[%c0_50, %c0_51] : memref<24x256xf32, #tpu.memory_space<vmem>>, vector<24x256xf32>
      tpu.vector_store %arg13[%c0_50, %c0_51], %106 {strides = array<i32>} : memref<24x256xf32, #tpu.memory_space<vmem>>, vector<24x256xf32>,
    } else {
    }
    %c0 = arith.constant 0 : index
    %c0_1 = arith.constant 0 : index
    %3 = vector.load %arg13[%c0, %c0_1] : memref<24x256xf32, #tpu.memory_space<vmem>>, vector<24x256xf32>
    %c0_2 = arith.constant 0 : index
    %c0_3 = arith.constant 0 : index
    %4 = vector.load %arg2[%c0_2, %c0_3] : memref<24x1xf32, #tpu.memory_space<vmem>>, vector<24x1xf32>
    %c0_4 = arith.constant 0 : index
    %c0_5 = arith.constant 0 : index
    %5 = vector.load %arg3[%c0_4, %c0_5] : memref<24x1xf32, #tpu.memory_space<vmem>>, vector<24x1xf32>
    %c0_6 = arith.constant 0 : index
    %c0_7 = arith.constant 0 : index
    %c0_8 = arith.constant 0 : index
    %6 = vector.load %arg4[%c0_6, %c0_7, %c0_8] : memref<1x1x256xf32, #tpu.memory_space<vmem>>, vector<1x1x256xf32>
    %7 = vector.shape_cast %6 : vector<1x1x256xf32> to vector<1x256xf32>
    %c0_9 = arith.constant 0 : index
    %c0_10 = arith.constant 0 : index
    %c0_11 = arith.constant 0 : index
    %8 = vector.load %arg5[%c0_9, %c0_10, %c0_11] : memref<1x1x256xf32, #tpu.memory_space<vmem>>, vector<1x1x256xf32>
    %9 = vector.shape_cast %8 : vector<1x1x256xf32> to vector<1x256xf32>
    %c0_12 = arith.constant 0 : index
    %c0_13 = arith.constant 0 : index
    %c0_14 = arith.constant 0 : index
    %10 = vector.load %arg6[%c0_12, %c0_13, %c0_14] : memref<1x256x768xbf16, #tpu.memory_space<vmem>>, vector<1x256x768xbf16>
    %11 = vector.shape_cast %10 : vector<1x256x768xbf16> to vector<256x768xbf16>
    %c0_15 = arith.constant 0 : index
    %c0_16 = arith.constant 0 : index
    %c0_17 = arith.constant 0 : index
    %12 = vector.load %arg7[%c0_15, %c0_16, %c0_17] : memref<1x3x384xf32, #tpu.memory_space<vmem>>, vector<1x3x384xf32>
    %13 = vector.shape_cast %12 : vector<1x3x384xf32> to vector<3x384xf32>
    %c0_18 = arith.constant 0 : index
    %c0_19 = arith.constant 0 : index
    %c0_20 = arith.constant 0 : index
    %14 = vector.load %arg8[%c0_18, %c0_19, %c0_20] : memref<1x384x384xbf16, #tpu.memory_space<vmem>>, vector<1x384x384xbf16>
    %15 = vector.shape_cast %14 : vector<1x384x384xbf16> to vector<384x384xbf16>
    %c0_21 = arith.constant 0 : index
    %c0_22 = arith.constant 0 : index
    %c0_23 = arith.constant 0 : index
    %16 = vector.load %arg9[%c0_21, %c0_22, %c0_23] : memref<1x1x384xf32, #tpu.memory_space<vmem>>, vector<1x1x384xf32>
    %17 = vector.shape_cast %16 : vector<1x1x384xf32> to vector<1x384xf32>
    %c0_24 = arith.constant 0 : index
    %c0_25 = arith.constant 0 : index
    %c0_26 = arith.constant 0 : index
    %18 = vector.load %arg10[%c0_24, %c0_25, %c0_26] : memref<1x384x256xbf16, #tpu.memory_space<vmem>>, vector<1x384x256xbf16>
    %19 = vector.shape_cast %18 : vector<1x384x256xbf16> to vector<384x256xbf16>
    %c0_27 = arith.constant 0 : index
    %c0_28 = arith.constant 0 : index
    %c0_29 = arith.constant 0 : index
    %20 = vector.load %arg11[%c0_27, %c0_28, %c0_29] : memref<1x1x256xf32, #tpu.memory_space<vmem>>, vector<1x1x256xf32>
    %21 = vector.shape_cast %20 : vector<1x1x256xf32> to vector<1x256xf32>
    %cst = arith.constant dense<0.000000e+00> : vector<24xf32>
    %22 = vector.multi_reduction <add>, %3, %cst [1] : vector<24x256xf32> to vector<24xf32>
    %23 = vector.shape_cast %22 : vector<24xf32> to vector<24x1xf32>
    %cst_30 = arith.constant 2.560000e+02 : f32
    %24 = vector.broadcast %cst_30 : f32 to vector<24x1xf32>
    %25 = arith.divf %23, %24 : vector<24x1xf32>
    %26 = vector.broadcast %25 : vector<24x1xf32> to vector<24x256xf32>
    %27 = arith.subf %3, %26 : vector<24x256xf32>
    %28 = arith.mulf %27, %27 : vector<24x256xf32>
    %cst_31 = arith.constant dense<0.000000e+00> : vector<24xf32>
    %29 = vector.multi_reduction <add>, %28, %cst_31 [1] : vector<24x256xf32> to vector<24xf32>
    %30 = vector.shape_cast %29 : vector<24xf32> to vector<24x1xf32>
    %cst_32 = arith.constant 2.560000e+02 : f32
    %31 = vector.broadcast %cst_32 : f32 to vector<24x1xf32>
    %32 = arith.divf %30, %31 : vector<24x1xf32>
    %33 = vector.broadcast %25 : vector<24x1xf32> to vector<24x256xf32>
    %34 = arith.subf %3, %33 : vector<24x256xf32>
    %cst_33 = arith.constant 9.99999974E-6 : f32
    %35 = vector.broadcast %cst_33 : f32 to vector<24x1xf32>
    %36 = arith.addf %32, %35 : vector<24x1xf32>
    %37 = math.rsqrt %36 : vector<24x1xf32>
    %38 = vector.broadcast %37 : vector<24x1xf32> to vector<24x256xf32>
    %39 = arith.mulf %34, %38 : vector<24x256xf32>
    %40 = vector.broadcast %7 : vector<1x256xf32> to vector<24x256xf32>
    %41 = arith.mulf %39, %40 : vector<24x256xf32>
    %42 = vector.broadcast %9 : vector<1x256xf32> to vector<24x256xf32>
    %43 = arith.addf %41, %42 : vector<24x256xf32>
    %44 = arith.truncf %43 : vector<24x256xf32> to vector<24x256xbf16>
    %cst_34 = arith.constant dense<0.000000e+00> : vector<24x768xf32>
    %45 = tpu.matmul %44, %11, %cst_34 {dimension_numbers = #tpu.dot_dimension_numbers<[1], [0], [0], [1], [0, 0, 1, 1], [], []>} : vector<24x256xbf16>, vector<256x768xbf16>, vector<24x768xf32> -> vector<24x768xf32>
    %46 = vector.extract_strided_slice %45 {offsets = [0, 0], sizes = [24, 384], strides = [1, 1]} : vector<24x768xf32> to vector<24x384xf32>
    %47 = vector.extract_strided_slice %45 {offsets = [0, 384], sizes = [24, 384], strides = [1, 1]} : vector<24x768xf32> to vector<24x384xf32>
    %c1_i32 = arith.constant 1 : i32
    %48 = tpu.dynamic_rotate %46 by %c1_i32 dim 0 : vector<24x384xf32>, i32 -> vector<24x384xf32>
    %49 = vector.broadcast %4 : vector<24x1xf32> to vector<24x384xf32>
    %50 = arith.mulf %49, %48 : vector<24x384xf32>
    %c23_i32 = arith.constant 23 : i32
    %51 = tpu.dynamic_rotate %46 by %c23_i32 dim 0 : vector<24x384xf32>, i32 -> vector<24x384xf32>
    %52 = vector.broadcast %5 : vector<24x1xf32> to vector<24x384xf32>
    %53 = arith.mulf %52, %51 : vector<24x384xf32>
    %54 = vector.extract_strided_slice %13 {offsets = [0, 0], sizes = [1, 384], strides = [1, 1]} : vector<3x384xf32> to vector<1x384xf32>
    %55 = vector.broadcast %54 : vector<1x384xf32> to vector<24x384xf32>
    %56 = arith.mulf %50, %55 : vector<24x384xf32>
    %57 = vector.extract_strided_slice %13 {offsets = [1, 0], sizes = [1, 384], strides = [1, 1]} : vector<3x384xf32> to vector<1x384xf32>
    %58 = vector.broadcast %57 : vector<1x384xf32> to vector<24x384xf32>
    %59 = arith.mulf %46, %58 : vector<24x384xf32>
    %60 = arith.addf %56, %59 : vector<24x384xf32>
    %61 = vector.extract_strided_slice %13 {offsets = [2, 0], sizes = [1, 384], strides = [1, 1]} : vector<3x384xf32> to vector<1x384xf32>
    %62 = vector.broadcast %61 : vector<1x384xf32> to vector<24x384xf32>
    %63 = arith.mulf %53, %62 : vector<24x384xf32>
    %64 = arith.addf %60, %63 : vector<24x384xf32>
    %cst_35 = arith.constant 0.000000e+00 : f32
    %65 = vector.broadcast %cst_35 : f32 to vector<24x384xf32>
    %66 = arith.subf %65, %64 : vector<24x384xf32>
    %67 = math.exp %66 : vector<24x384xf32>
    %cst_36 = arith.constant 1.000000e+00 : f32
    %68 = vector.broadcast %cst_36 : f32 to vector<24x384xf32>
    %69 = arith.addf %68, %67 : vector<24x384xf32>
    %70 = tpu.reciprocal %69 {approx = true} : vector<24x384xf32> -> vector<24x384xf32>
    %71 = arith.mulf %64, %70 : vector<24x384xf32>
    %72 = arith.truncf %71 : vector<24x384xf32> to vector<24x384xbf16>
    %cst_37 = arith.constant dense<0.000000e+00> : vector<24x384xf32>
    %73 = tpu.matmul %72, %15, %cst_37 {dimension_numbers = #tpu.dot_dimension_numbers<[1], [0], [0], [1], [0, 0, 1, 1], [], []>} : vector<24x384xbf16>, vector<384x384xbf16>, vector<24x384xf32> -> vector<24x384xf32>
    %74 = vector.broadcast %17 : vector<1x384xf32> to vector<24x384xf32>
    %75 = arith.addf %73, %74 : vector<24x384xf32>
    %cst_38 = arith.constant 2.000000e+01 : f32
    %76 = vector.broadcast %cst_38 : f32 to vector<24x384xf32>
    %77 = arith.cmpf ogt, %75, %76 : vector<24x384xf32>
    %cst_39 = arith.constant 2.000000e+01 : f32
    %78 = vector.broadcast %cst_39 : f32 to vector<24x384xf32>
    %79 = arith.minimumf %75, %78 : vector<24x384xf32>
    %80 = math.exp %79 : vector<24x384xf32>
    %81 = math.log1p %80 : vector<24x384xf32>
    %82 = arith.select %77, %75, %81 : vector<24x384xi1>, vector<24x384xf32>
    %cst_40 = arith.constant 0.000000e+00 : f32
    %83 = vector.broadcast %cst_40 : f32 to vector<24x384xf32>
    %84 = arith.subf %83, %82 : vector<24x384xf32>
    %85 = math.exp %84 : vector<24x384xf32>
    %cst_41 = arith.constant 1.000000e+00 : f32
    %86 = vector.broadcast %cst_41 : f32 to vector<24x384xf32>
    %87 = arith.addf %86, %85 : vector<24x384xf32>
    %88 = tpu.reciprocal %87 {approx = true} : vector<24x384xf32> -> vector<24x384xf32>
    %89 = arith.mulf %71, %88 : vector<24x384xf32>
    %cst_42 = arith.constant 0.000000e+00 : f32
    %90 = vector.broadcast %cst_42 : f32 to vector<24x384xf32>
    %91 = arith.subf %90, %47 : vector<24x384xf32>
    %92 = math.exp %91 : vector<24x384xf32>
    %cst_43 = arith.constant 1.000000e+00 : f32
    %93 = vector.broadcast %cst_43 : f32 to vector<24x384xf32>
    %94 = arith.addf %93, %92 : vector<24x384xf32>
    %95 = tpu.reciprocal %94 {approx = true} : vector<24x384xf32> -> vector<24x384xf32>
    %96 = arith.mulf %89, %95 : vector<24x384xf32>
    %97 = arith.truncf %96 : vector<24x384xf32> to vector<24x384xbf16>
    %cst_44 = arith.constant dense<0.000000e+00> : vector<24x256xf32>
    %98 = tpu.matmul %97, %19, %cst_44 {dimension_numbers = #tpu.dot_dimension_numbers<[1], [0], [0], [1], [0, 0, 1, 1], [], []>} : vector<24x384xbf16>, vector<384x256xbf16>, vector<24x256xf32> -> vector<24x256xf32>
    %99 = vector.broadcast %21 : vector<1x256xf32> to vector<24x256xf32>
    %100 = arith.mulf %98, %99 : vector<24x256xf32>
    %101 = arith.addf %100, %3 : vector<24x256xf32>
    %c0_45 = arith.constant 0 : index
    %c0_46 = arith.constant 0 : index
    %102 = vector.load %arg13[%c0_45, %c0_46] : memref<24x256xf32, #tpu.memory_space<vmem>>, vector<24x256xf32>
    tpu.vector_store %arg13[%c0_45, %c0_46], %101 {strides = array<i32>} : memref<24x256xf32, #tpu.memory_space<vmem>>, vector<24x256xf32>,
    %c3_i32 = arith.constant 3 : i32
    %103 = arith.cmpi eq, %arg0, %c3_i32 : i32
    %104 = arith.extui %103 : i1 to i32
    %c0_i32_47 = arith.constant 0 : i32
    %105 = arith.cmpi ne, %104, %c0_i32_47 : i32
    scf.if %105 {
      %c0_48 = arith.constant 0 : index
      %c0_49 = arith.constant 0 : index
      %106 = vector.load %arg13[%c0_48, %c0_49] : memref<24x256xf32, #tpu.memory_space<vmem>>, vector<24x256xf32>
      %c0_50 = arith.constant 0 : index
      %c0_51 = arith.constant 0 : index
      %107 = vector.load %arg12[%c0_50, %c0_51] : memref<24x256xf32, #tpu.memory_space<vmem>>, vector<24x256xf32>
      tpu.vector_store %arg12[%c0_50, %c0_51], %106 {strides = array<i32>} : memref<24x256xf32, #tpu.memory_space<vmem>>, vector<24x256xf32>,
    } else {
    }
    return
  }
  func.func @transform_0(%arg0: i32) -> (i32, i32) {
    %c0_i32 = arith.constant 0 : i32
    %c0_i32_0 = arith.constant 0 : i32
    %c0_i32_1 = arith.constant 0 : i32
    return %c0_i32, %c0_i32_0 : i32, i32
  }
  func.func @transform_1(%arg0: i32) -> (i32, i32) {
    %c0_i32 = arith.constant 0 : i32
    %c0_i32_0 = arith.constant 0 : i32
    %c0_i32_1 = arith.constant 0 : i32
    return %c0_i32, %c0_i32_0 : i32, i32
  }
  func.func @transform_2(%arg0: i32) -> (i32, i32) {
    %c0_i32 = arith.constant 0 : i32
    %c0_i32_0 = arith.constant 0 : i32
    %c0_i32_1 = arith.constant 0 : i32
    return %c0_i32, %c0_i32_0 : i32, i32
  }
  func.func @transform_3(%arg0: i32) -> (i32, i32, i32) {
    %c0_i32 = arith.constant 0 : i32
    %c0_i32_0 = arith.constant 0 : i32
    %c0_i32_1 = arith.constant 0 : i32
    return %arg0, %c0_i32, %c0_i32_0 : i32, i32, i32
  }
  func.func @transform_4(%arg0: i32) -> (i32, i32, i32) {
    %c0_i32 = arith.constant 0 : i32
    %c0_i32_0 = arith.constant 0 : i32
    %c0_i32_1 = arith.constant 0 : i32
    return %arg0, %c0_i32, %c0_i32_0 : i32, i32, i32
  }
  func.func @transform_5(%arg0: i32) -> (i32, i32, i32) {
    %c0_i32 = arith.constant 0 : i32
    %c0_i32_0 = arith.constant 0 : i32
    %c0_i32_1 = arith.constant 0 : i32
    return %arg0, %c0_i32, %c0_i32_0 : i32, i32, i32
  }
  func.func @transform_6(%arg0: i32) -> (i32, i32, i32) {
    %c0_i32 = arith.constant 0 : i32
    %c0_i32_0 = arith.constant 0 : i32
    %c0_i32_1 = arith.constant 0 : i32
    return %arg0, %c0_i32, %c0_i32_0 : i32, i32, i32
  }
  func.func @transform_7(%arg0: i32) -> (i32, i32, i32) {
    %c0_i32 = arith.constant 0 : i32
    %c0_i32_0 = arith.constant 0 : i32
    %c0_i32_1 = arith.constant 0 : i32
    return %arg0, %c0_i32, %c0_i32_0 : i32, i32, i32
  }
  func.func @transform_8(%arg0: i32) -> (i32, i32, i32) {
    %c0_i32 = arith.constant 0 : i32
    %c0_i32_0 = arith.constant 0 : i32
    %c0_i32_1 = arith.constant 0 : i32
    return %arg0, %c0_i32, %c0_i32_0 : i32, i32, i32
  }
  func.func @transform_9(%arg0: i32) -> (i32, i32, i32) {
    %c0_i32 = arith.constant 0 : i32
    %c0_i32_0 = arith.constant 0 : i32
    %c0_i32_1 = arith.constant 0 : i32
    return %arg0, %c0_i32, %c0_i32_0 : i32, i32, i32
  }
  func.func @transform_10(%arg0: i32) -> (i32, i32, i32) {
    %c0_i32 = arith.constant 0 : i32
    %c0_i32_0 = arith.constant 0 : i32
    %c0_i32_1 = arith.constant 0 : i32
    return %arg0, %c0_i32, %c0_i32_0 : i32, i32, i32
  }
  func.func @transform_11(%arg0: i32) -> (i32, i32) {
    %c0_i32 = arith.constant 0 : i32
    %c0_i32_0 = arith.constant 0 : i32
    %c0_i32_1 = arith.constant 0 : i32
    return %c0_i32, %c0_i32_0 : i32, i32
  }
}

module attributes {stable_mosaic.version = 11 : i64} {
  func.func @_heads_kernel(%arg0: i32, %arg1: memref<24x256xf32, #tpu.memory_space<vmem>>, %arg2: memref<1x256x128xbf16, #tpu.memory_space<vmem>>, %arg3: memref<1x1x128xf32, #tpu.memory_space<vmem>>, %arg4: memref<1x128x128xbf16, #tpu.memory_space<vmem>>, %arg5: memref<1x1x128xf32, #tpu.memory_space<vmem>>, %arg6: memref<24x128xf32, #tpu.memory_space<vmem>>) attributes {dimension_semantics = [#tpu.dimension_semantics<parallel>], iteration_bounds = array<i64: 8>, scalar_prefetch = 0 : i64, scratch_operands = 0 : i64, tpu.core_type = #tpu.core_type<tc>, window_params = [{pipeline_mode = #tpu.pipeline_mode<synchronous>, transform_indices = @transform_0, window_bounds = array<i64: 24, 256>}, {transform_indices = @transform_1, window_bounds = array<i64: 1, 256, 128>}, {transform_indices = @transform_2, window_bounds = array<i64: 1, 1, 128>}, {transform_indices = @transform_3, window_bounds = array<i64: 1, 128, 128>}, {transform_indices = @transform_4, window_bounds = array<i64: 1, 1, 128>}, {transform_indices = @transform_5, window_bounds = array<i64: 24, 128>}]} {
    %c0 = arith.constant 0 : index
    %c0_0 = arith.constant 0 : index
    %0 = vector.load %arg1[%c0, %c0_0] : memref<24x256xf32, #tpu.memory_space<vmem>>, vector<24x256xf32>
    %cst = arith.constant dense<0.000000e+00> : vector<24xf32>
    %1 = vector.multi_reduction <add>, %0, %cst [1] : vector<24x256xf32> to vector<24xf32>
    %2 = vector.shape_cast %1 : vector<24xf32> to vector<24x1xf32>
    %cst_1 = arith.constant 2.560000e+02 : f32
    %3 = vector.broadcast %cst_1 : f32 to vector<24x1xf32>
    %4 = arith.divf %2, %3 : vector<24x1xf32>
    %5 = vector.broadcast %4 : vector<24x1xf32> to vector<24x256xf32>
    %6 = arith.subf %0, %5 : vector<24x256xf32>
    %7 = arith.mulf %6, %6 : vector<24x256xf32>
    %cst_2 = arith.constant dense<0.000000e+00> : vector<24xf32>
    %8 = vector.multi_reduction <add>, %7, %cst_2 [1] : vector<24x256xf32> to vector<24xf32>
    %9 = vector.shape_cast %8 : vector<24xf32> to vector<24x1xf32>
    %cst_3 = arith.constant 2.560000e+02 : f32
    %10 = vector.broadcast %cst_3 : f32 to vector<24x1xf32>
    %11 = arith.divf %9, %10 : vector<24x1xf32>
    %12 = vector.broadcast %4 : vector<24x1xf32> to vector<24x256xf32>
    %13 = arith.subf %0, %12 : vector<24x256xf32>
    %cst_4 = arith.constant 9.99999974E-6 : f32
    %14 = vector.broadcast %cst_4 : f32 to vector<24x1xf32>
    %15 = arith.addf %11, %14 : vector<24x1xf32>
    %16 = math.rsqrt %15 : vector<24x1xf32>
    %17 = vector.broadcast %16 : vector<24x1xf32> to vector<24x256xf32>
    %18 = arith.mulf %13, %17 : vector<24x256xf32>
    %19 = arith.truncf %18 : vector<24x256xf32> to vector<24x256xbf16>
    %c0_5 = arith.constant 0 : index
    %c0_6 = arith.constant 0 : index
    %c0_7 = arith.constant 0 : index
    %20 = vector.load %arg2[%c0_5, %c0_6, %c0_7] : memref<1x256x128xbf16, #tpu.memory_space<vmem>>, vector<1x256x128xbf16>
    %21 = vector.shape_cast %20 : vector<1x256x128xbf16> to vector<256x128xbf16>
    %cst_8 = arith.constant dense<0.000000e+00> : vector<24x128xf32>
    %22 = tpu.matmul %19, %21, %cst_8 {dimension_numbers = #tpu.dot_dimension_numbers<[1], [0], [0], [1], [0, 0, 1, 1], [], []>} : vector<24x256xbf16>, vector<256x128xbf16>, vector<24x128xf32> -> vector<24x128xf32>
    %c0_9 = arith.constant 0 : index
    %c0_10 = arith.constant 0 : index
    %c0_11 = arith.constant 0 : index
    %23 = vector.load %arg3[%c0_9, %c0_10, %c0_11] : memref<1x1x128xf32, #tpu.memory_space<vmem>>, vector<1x1x128xf32>
    %24 = vector.shape_cast %23 : vector<1x1x128xf32> to vector<1x128xf32>
    %25 = vector.broadcast %24 : vector<1x128xf32> to vector<24x128xf32>
    %26 = arith.addf %22, %25 : vector<24x128xf32>
    %cst_12 = arith.constant 5.000000e-01 : f32
    %27 = vector.broadcast %cst_12 : f32 to vector<24x128xf32>
    %28 = arith.mulf %27, %26 : vector<24x128xf32>
    %cst_13 = arith.constant 4.471500e-02 : f32
    %29 = vector.broadcast %cst_13 : f32 to vector<24x128xf32>
    %30 = arith.mulf %29, %26 : vector<24x128xf32>
    %31 = arith.mulf %30, %26 : vector<24x128xf32>
    %32 = arith.mulf %31, %26 : vector<24x128xf32>
    %33 = arith.addf %26, %32 : vector<24x128xf32>
    %cst_14 = arith.constant 0.797884583 : f32
    %34 = vector.broadcast %cst_14 : f32 to vector<24x128xf32>
    %35 = arith.mulf %34, %33 : vector<24x128xf32>
    %36 = math.tanh %35 : vector<24x128xf32>
    %cst_15 = arith.constant 1.000000e+00 : f32
    %37 = vector.broadcast %cst_15 : f32 to vector<24x128xf32>
    %38 = arith.addf %37, %36 : vector<24x128xf32>
    %39 = arith.mulf %28, %38 : vector<24x128xf32>
    %40 = arith.truncf %39 : vector<24x128xf32> to vector<24x128xbf16>
    %c0_16 = arith.constant 0 : index
    %c0_17 = arith.constant 0 : index
    %c0_18 = arith.constant 0 : index
    %41 = vector.load %arg4[%c0_16, %c0_17, %c0_18] : memref<1x128x128xbf16, #tpu.memory_space<vmem>>, vector<1x128x128xbf16>
    %42 = vector.shape_cast %41 : vector<1x128x128xbf16> to vector<128x128xbf16>
    %cst_19 = arith.constant dense<0.000000e+00> : vector<24x128xf32>
    %43 = tpu.matmul %40, %42, %cst_19 {dimension_numbers = #tpu.dot_dimension_numbers<[1], [0], [0], [1], [0, 0, 1, 1], [], []>} : vector<24x128xbf16>, vector<128x128xbf16>, vector<24x128xf32> -> vector<24x128xf32>
    %c0_20 = arith.constant 0 : index
    %c0_21 = arith.constant 0 : index
    %c0_22 = arith.constant 0 : index
    %44 = vector.load %arg5[%c0_20, %c0_21, %c0_22] : memref<1x1x128xf32, #tpu.memory_space<vmem>>, vector<1x1x128xf32>
    %45 = vector.shape_cast %44 : vector<1x1x128xf32> to vector<1x128xf32>
    %46 = vector.broadcast %45 : vector<1x128xf32> to vector<24x128xf32>
    %47 = arith.addf %43, %46 : vector<24x128xf32>
    %c0_23 = arith.constant 0 : index
    %c0_24 = arith.constant 0 : index
    %48 = vector.load %arg6[%c0_23, %c0_24] : memref<24x128xf32, #tpu.memory_space<vmem>>, vector<24x128xf32>
    tpu.vector_store %arg6[%c0_23, %c0_24], %47 {strides = array<i32>} : memref<24x128xf32, #tpu.memory_space<vmem>>, vector<24x128xf32>,
    return
  }
  func.func @transform_0(%arg0: i32) -> (i32, i32) {
    %c0_i32 = arith.constant 0 : i32
    %c0_i32_0 = arith.constant 0 : i32
    %c0_i32_1 = arith.constant 0 : i32
    return %c0_i32, %c0_i32_0 : i32, i32
  }
  func.func @transform_1(%arg0: i32) -> (i32, i32, i32) {
    %c0_i32 = arith.constant 0 : i32
    %c0_i32_0 = arith.constant 0 : i32
    %c0_i32_1 = arith.constant 0 : i32
    return %arg0, %c0_i32, %c0_i32_0 : i32, i32, i32
  }
  func.func @transform_2(%arg0: i32) -> (i32, i32, i32) {
    %c0_i32 = arith.constant 0 : i32
    %c0_i32_0 = arith.constant 0 : i32
    %c0_i32_1 = arith.constant 0 : i32
    return %arg0, %c0_i32, %c0_i32_0 : i32, i32, i32
  }
  func.func @transform_3(%arg0: i32) -> (i32, i32, i32) {
    %c0_i32 = arith.constant 0 : i32
    %c0_i32_0 = arith.constant 0 : i32
    %c0_i32_1 = arith.constant 0 : i32
    return %arg0, %c0_i32, %c0_i32_0 : i32, i32, i32
  }
  func.func @transform_4(%arg0: i32) -> (i32, i32, i32) {
    %c0_i32 = arith.constant 0 : i32
    %c0_i32_0 = arith.constant 0 : i32
    %c0_i32_1 = arith.constant 0 : i32
    return %arg0, %c0_i32, %c0_i32_0 : i32, i32, i32
  }
  func.func @transform_5(%arg0: i32) -> (i32, i32) {
    %c0_i32 = arith.constant 0 : i32
    %c0_i32_0 = arith.constant 0 : i32
    return %c0_i32, %arg0 : i32, i32
  }
}

</mosaic_0001>

<bundles_post_ra>
// kernel: forward.5
= control target key start
LH: loop header
LB: loop body
LE: loop exit
PB: predicated region body
PF: predicated region fallthrough
CT: control target
= control target key end

     0   :  { %9 = vsyncpa [#allocation3], 0  ;;  %s1112_s18 = smov [#allocation2]   ;;  %s1113_s20 = smov 32   ;;  %s2357_s0 = inlined_call_operand.vmem [shape: f32[8,24,256], index: 0, kind: input, shape index: {}]   ;;  %s2358_s1 = inlined_call_operand.vmem [shape: f32[8,1,256], index: 1, kind: input, shape index: {}]   ;;  %s2359_s2 = inlined_call_operand.hbm [shape: f32[8,1,256], index: 2, kind: input, shape index: {}]   ;;  %s2360_s3 = inlined_call_operand.vmem [shape: f32[2,256], index: 3, kind: input, shape index: {}]   ;;  %s2361_s4 = inlined_call_operand.vmem [shape: f32[24,256], index: 4, kind: output, shape index: {}]  }
   0x1   :  { %s18_s17 = sshll.u32 %s2359_s2, 4  ;;  %s20_s19 = sshll.u32 %s1112_s18, 4  ;;  %s19_s17 = int_to_ptr.hbm [resolvable:$true] %s18_s17  ;;  %s21_s19 = int_to_ptr.vmem [resolvable:$true] %s20_s19 }
   0x2   :  { %s1114_s21 = smov 2  }
   0x3   :  { %26 = dma.hbm_to_vmem [thread:$0]  %s19_s17, 256, %s21_s19, [#allocation3], %s1113_s20, %s1113_s20, %s1114_s21  }
   0x4   :  { %1110 = dma.done.wait [#allocation3], 256  }
   0x5   :  { %1111 = vsyncadd [#allocation3], 4294967040  ;;  %v1147_v0 = vld [vmem:[%s2357_s0 + $0x30] sm:$0xff]  ;;  %v1152_v1 = vld [vmem:[%s2357_s0 + $0x38] sm:$0xff] }
   0x6   :  { %v1157_v2 = vld [vmem:[%s2357_s0 + $0x20] sm:$0xff]  ;;  %v156_v3 = vadd.f32 %v1152_v1, %v1147_v0  ;;  %v1164_v4 = vld [vmem:[%s2357_s0 + $0x28] sm:$0xff]  ;;  %v1203_v13 = vld [vmem:[%s2357_s0 + $0x10] sm:$0xff] }
   0x7   :  { %v1169_v5 = vld [vmem:[%s2357_s0] sm:$0xff]  ;;  %v1174_v6 = vld [vmem:[%s2357_s0 + $0x8] sm:$0xff]  ;;  %v47_v7 = vadd.f32 %v1164_v4, %v1157_v2  ;;  %v1208_v14 = vld [vmem:[%s2357_s0 + $0x18] sm:$0xff] }
   0x8   :  { %v41_v8 = vadd.f32 %v1174_v6, %v1169_v5  ;;  %157 = vadd.xlane.f32.xlu2 %v156_v3  ;;  %v1183_v9 = vld [vmem:[%s2357_s0 + $0x60] sm:$0xff]  ;;  %v1193_v11 = vld [vmem:[%s2357_s0 + $0x48] sm:$0xff]  ;;  %v44_v17 = vadd.f32 %v1208_v14, %v1203_v13  ;;  %v1219_v18 = vld [vmem:[%s2357_s0 + $0x90] sm:$0xff] }
   0x9   :  { %48 = vadd.xlane.f32.xlu1 %v47_v7  ;;  %v1188_v10 = vld [vmem:[%s2357_s0 + $0x40] sm:$0xff]  ;;  %v1198_v12 = vld [vmem:[%s2357_s0 + $0x68] sm:$0xff]  ;;  %v1224_v19 = vld [vmem:[%s2357_s0 + $0x70] sm:$0xff] }
   0xa   :  { %42 = vadd.xlane.f32.xlu0 %v41_v8  ;;  %v159_v15 = vadd.f32 %v1193_v11, %v1188_v10  ;;  %v270_v16 = vadd.f32 %v1198_v12, %v1183_v9  ;;  %v1229_v20 = vld [vmem:[%s2357_s0 + $0x78] sm:$0xff]  ;;  %v1239_v22 = vld [vmem:[%s2357_s0 + $0x50] sm:$0xff]  ;;  %v1255_v27 = vld [vmem:[%s2357_s0 + $0xc0] sm:$0xff] }
   0xb   :  { %v1234_v21 = vld [vmem:[%s2357_s0 + $0x98] sm:$0xff]  ;;  %v273_v24 = vadd.f32 %v1229_v20, %v1224_v19  ;;  %v1260_v28 = vld [vmem:[%s2357_s0 + $0xa0] sm:$0xff]  ;;  %v1265_v29 = vld [vmem:[%s2357_s0 + $0xa8] sm:$0xff] }
   0xc   :  { %v1244_v23 = vld [vmem:[%s2357_s0 + $0x58] sm:$0xff]  ;;  %v384_v25 = vadd.f32 %v1234_v21, %v1219_v18  ;;  %v1270_v30 = vld [vmem:[%s2357_s0 + $0xc8] sm:$0xff]  ;;  %v1275_v31 = vld [vmem:[%s2357_s0 + $0x80] sm:$0xff]  ;;  %v387_v33 = vadd.f32 %v1265_v29, %v1260_v28 }
   0xd   :  { %v162_v26 = vadd.f32 %v1244_v23, %v1239_v22  ;;  %v1280_v32 = vld [vmem:[%s2357_s0 + $0x88] sm:$0xff]  ;;  %v498_v34 = vadd.f32 %v1270_v30, %v1255_v27  ;;  %v1291_v36 = vld [vmem:[%s2357_s0 + $0xf0] sm:$0xff]  ;;  %v1301_v38 = vld [vmem:[%s2357_s0 + $0xd8] sm:$0xff] }
   0xe   :  { %v276_v35 = vadd.f32 %v1280_v32, %v1275_v31  ;;  %v1296_v37 = vld [vmem:[%s2357_s0 + $0xd0] sm:$0xff]  ;;  %v1306_v39 = vld [vmem:[%s2357_s0 + $0xf8] sm:$0xff]  ;;  %v1327_v45 = vld [vmem:[%s2357_s0 + $0x120] sm:$0xff] }
   0xf   :  { %v1311_v40 = vld [vmem:[%s2357_s0 + $0xb0] sm:$0xff]  ;;  %v1316_v41 = vld [vmem:[%s2357_s0 + $0xb8] sm:$0xff]  ;;  %v501_v42 = vadd.f32 %v1301_v38, %v1296_v37  ;;  %v612_v43 = vadd.f32 %v1306_v39, %v1291_v36  ;;  %v1332_v46 = vld [vmem:[%s2357_s0 + $0x100] sm:$0xff] }
  0x10   :  { %160 = vadd.xlane.f32.xlu2 %v159_v15  ;;  %v390_v44 = vadd.f32 %v1316_v41, %v1311_v40  ;;  %v1337_v47 = vld [vmem:[%s2357_s0 + $0x108] sm:$0xff]  ;;  %v1347_v49 = vld [vmem:[%s2357_s0 + $0xe0] sm:$0xff]  ;;  %v1363_v54 = vld [vmem:[%s2357_s0 + $0x150] sm:$0xff] }
  0x11   :  { %271 = vadd.xlane.f32.xlu1 %v270_v16  ;;  %v1342_v48 = vld [vmem:[%s2357_s0 + $0x128] sm:$0xff]  ;;  %v615_v51 = vadd.f32 %v1337_v47, %v1332_v46  ;;  %v1368_v55 = vld [vmem:[%s2357_s0 + $0x130] sm:$0xff]  ;;  %v1373_v56 = vld [vmem:[%s2357_s0 + $0x138] sm:$0xff] }
  0x12   :  { %45 = vadd.xlane.f32.xlu0 %v44_v17  ;;  %v1352_v50 = vld [vmem:[%s2357_s0 + $0xe8] sm:$0xff]  ;;  %v726_v52 = vadd.f32 %v1342_v48, %v1327_v45  ;;  %v1378_v57 = vld [vmem:[%s2357_s0 + $0x158] sm:$0xff]  ;;  %v1383_v58 = vld [vmem:[%s2357_s0 + $0x110] sm:$0xff]  ;;  %v729_v60 = vadd.f32 %v1373_v56, %v1368_v55 }
  0x13   :  { %v504_v53 = vadd.f32 %v1352_v50, %v1347_v49  ;;  %v1388_v59 = vld [vmem:[%s2357_s0 + $0x118] sm:$0xff]  ;;  %v840_v61 = vadd.f32 %v1378_v57, %v1363_v54  ;;  %v1399_v63 = vld [vmem:[%s2357_s0 + $0x160] sm:$0xff]  ;;  %v1404_v3 = vld [vmem:[%s2357_s0 + $0x168] sm:$0xff] }
  0x14   :  { %v618_v62 = vadd.f32 %v1388_v59, %v1383_v58  ;;  %v1409_v7 = vld [vmem:[%s2357_s0 + $0x140] sm:$0xff]  ;;  %v1414_v8 = vld [vmem:[%s2357_s0 + $0x148] sm:$0xff]  ;;  %v843_v15 = vadd.f32 %v1404_v3, %v1399_v63  ;;  %v1423_v17 = vld [vmem:[%s2357_s0 + $0x170] sm:$0xff] }
  0x15   :  { %v732_v16 = vadd.f32 %v1414_v8, %v1409_v7 }
  0x18   :  { %274 = vadd.xlane.f32.xlu2 %v273_v24  ;;  %v1428_v24 = vld [vmem:[%s2357_s0 + $0x178] sm:$0xff] }
  0x19   :  { %385 = vadd.xlane.f32.xlu1 %v384_v25  ;;  %v846_v25 = vadd.f32 %v1428_v24, %v1423_v17 }
  0x1a   :  { %163 = vadd.xlane.f32.xlu0 %v162_v26  ;;  %v1115_v26 = vmov 256.0  }
  0x1b   :  { %1036 = vrcp.f32 %v1115_v26 }
  0x20   :  { %388 = vadd.xlane.f32.xlu2 %v387_v33 }
  0x21   :  { %499 = vadd.xlane.f32.xlu1 %v498_v34  ;;  %v1037_v33 = vpop.eup %1036 }
  0x22   :  { %277 = vadd.xlane.f32.xlu0 %v276_v35  ;;  %v51_v34 = vmul.f32 256.0, %v1037_v33  ;;  %vm55_vm0 = vweird.f32 %v1037_v33 }
  0x24   :  { %v52_v35 = vsub.f32 1.0, %v51_v34 }
  0x28   :  { %502 = vadd.xlane.f32.xlu2 %v501_v42  ;;  %v53_v42 = vmul.f32 %v1037_v33, %v52_v35 }
  0x29   :  { %613 = vadd.xlane.f32.xlu1 %v612_v43 }
  0x2a   :  { %391 = vadd.xlane.f32.xlu0 %v390_v44  ;;  %v54_v43 = vadd.f32 %v1037_v33, %v53_v42 }
  0x2c   :  { %v1432_v44 = vsel %vm55_vm0, %v1037_v33, %v54_v43 }
  0x30   :  { %616 = vadd.xlane.f32.xlu2 %v615_v51 }
  0x31   :  { %727 = vadd.xlane.f32.xlu1 %v726_v52 }
  0x32   :  { %505 = vadd.xlane.f32.xlu0 %v504_v53 }
  0x38   :  { %730 = vadd.xlane.f32.xlu2 %v729_v60 }
  0x39   :  { %841 = vadd.xlane.f32.xlu1 %v840_v61 }
  0x3a   :  { %619 = vadd.xlane.f32.xlu0 %v618_v62 }
  0x40   :  { %844 = vadd.xlane.f32.xlu2 %v843_v15 }
  0x42   :  { %733 = vadd.xlane.f32.xlu0 %v732_v16 }
  0x4a   :  { %847 = vadd.xlane.f32.xlu0 %v846_v25 }
  0x7b   :  { %v158_v51 = vpop.xlane.xlu2 %157 }
  0x7c   :  { %v165_v52 = vmul.f32 %v158_v51, %v1432_v44  ;;  %v49_v53 = vpop.xlane.xlu1 %48 }
  0x7d   :  { %v43_v60 = vpop.xlane.xlu0 %42  ;;  %v59_v61 = vmul.f32 %v1432_v44, %v49_v53 }
  0x7e   :  { %v57_v62 = vmul.f32 %v1432_v44, %v43_v60  ;;  %v1438_v15 = vsub.f32 %v1147_v0, %v165_v52  ;;  %v1441_v16 = vsub.f32 %v1152_v1, %v165_v52 }
  0x7f   :  { %v1444_v25 = vsub.f32 %v1157_v2, %v59_v61  ;;  %v1447_v26 = vsub.f32 %v1164_v4, %v59_v61 }
  0x80   :  { %v1450_v33 = vsub.f32 %v1169_v5, %v57_v62  ;;  %v1453_v34 = vsub.f32 %v1174_v6, %v57_v62  ;;  %v174_v35 = vmul.f32 %v1438_v15, %v1438_v15  ;;  %v175_v0 = vmul.f32 %v1441_v16, %v1441_v16 }
  0x81   :  { %2394 = vst [vmem:[#allocation5_spill] sm:$0xff] %v1447_v26  ;;  %v70_v1 = vmul.f32 %v1444_v25, %v1444_v25  ;;  %v71_v2 = vmul.f32 %v1447_v26, %v1447_v26 }
  0x82   :  { %2395 = vst [vmem:[#allocation6_spill] sm:$0xff] %v1453_v34  ;;  %v66_v4 = vmul.f32 %v1450_v33, %v1450_v33  ;;  %v67_v5 = vmul.f32 %v1453_v34, %v1453_v34  ;;  %v180_v6 = vadd.f32 %v175_v0, %v174_v35 }
  0x83   :  { %v78_v42 = vadd.f32 %v71_v2, %v70_v1  ;;  %v161_v51 = vpop.xlane.xlu2 %160 }
  0x84   :  { %v72_v43 = vadd.f32 %v67_v5, %v66_v4  ;;  %v272_v52 = vpop.xlane.xlu1 %271  ;;  %181 = vadd.xlane.f32.xlu0 %v180_v6  ;;  %v166_v60 = vmul.f32 %v161_v51, %v1432_v44 }
  0x85   :  { %v46_v53 = vpop.xlane.xlu0 %45  ;;  %v279_v61 = vmul.f32 %v272_v52, %v1432_v44  ;;  %79 = vadd.xlane.f32.xlu2 %v78_v42 }
  0x86   :  { %v58_v62 = vmul.f32 %v1432_v44, %v46_v53  ;;  %73 = vadd.xlane.f32.xlu1 %v72_v43  ;;  %v1483_v1 = vsub.f32 %v1188_v10, %v166_v60  ;;  %v1486_v2 = vsub.f32 %v1193_v11, %v166_v60 }
  0x87   :  { %v1471_v26 = vsub.f32 %v1183_v9, %v279_v61  ;;  %v1474_v34 = vsub.f32 %v1198_v12, %v279_v61 }
  0x88   :  { %v1477_v35 = vsub.f32 %v1203_v13, %v58_v62  ;;  %v1480_v0 = vsub.f32 %v1208_v14, %v58_v62  ;;  %v176_v43 = vmul.f32 %v1483_v1, %v1483_v1  ;;  %v177_v51 = vmul.f32 %v1486_v2, %v1486_v2 }
  0x89   :  { %v288_v4 = vmul.f32 %v1471_v26, %v1471_v26  ;;  %v289_v9 = vmul.f32 %v1474_v34, %v1474_v34 }
  0x8a   :  { %v68_v12 = vmul.f32 %v1477_v35, %v1477_v35  ;;  %v69_v13 = vmul.f32 %v1480_v0, %v1480_v0 }
  0x8b   :  { %v294_v14 = vadd.f32 %v289_v9, %v288_v4  ;;  %v275_v6 = vpop.xlane.xlu2 %274 }
  0x8c   :  { %v75_v5 = vadd.f32 %v69_v13, %v68_v12  ;;  %v386_v10 = vpop.xlane.xlu1 %385  ;;  %v280_v11 = vmul.f32 %v275_v6, %v1432_v44  ;;  %v183_v13 = vadd.f32 %v177_v51, %v176_v43 }
  0x8d   :  { %v164_v42 = vpop.xlane.xlu0 %163  ;;  %v393_v52 = vmul.f32 %v386_v10, %v1432_v44  ;;  %295 = vadd.xlane.f32.xlu0 %v294_v14 }
  0x8e   :  { %v167_v53 = vmul.f32 %v164_v42, %v1432_v44  ;;  %76 = vadd.xlane.f32.xlu1 %v75_v5  ;;  %v1516_v9 = vsub.f32 %v1224_v19, %v280_v11  ;;  %v1519_v12 = vsub.f32 %v1229_v20, %v280_v11 }
  0x8f   :  { %v1504_v60 = vsub.f32 %v1219_v18, %v393_v52  ;;  %v1507_v61 = vsub.f32 %v1234_v21, %v393_v52 }
  0x90   :  { %v1510_v62 = vsub.f32 %v1239_v22, %v167_v53  ;;  %v1513_v4 = vsub.f32 %v1244_v23, %v167_v53  ;;  %v290_v42 = vmul.f32 %v1516_v9, %v1516_v9  ;;  %v291_v11 = vmul.f32 %v1519_v12, %v1519_v12 }
  0x91   :  { %v402_v18 = vmul.f32 %v1504_v60, %v1504_v60  ;;  %v403_v21 = vmul.f32 %v1507_v61, %v1507_v61 }
  0x92   :  { %v178_v22 = vmul.f32 %v1510_v62, %v1510_v62  ;;  %v179_v23 = vmul.f32 %v1513_v4, %v1513_v4 }
  0x93   :  { %v408_v14 = vadd.f32 %v403_v21, %v402_v18  ;;  %v389_v19 = vpop.xlane.xlu2 %388 }
  0x94   :  { %v186_v5 = vadd.f32 %v179_v23, %v178_v22  ;;  %v500_v6 = vpop.xlane.xlu1 %499  ;;  %v394_v20 = vmul.f32 %v389_v19, %v1432_v44 }
  0x95   :  { %v278_v10 = vpop.xlane.xlu0 %277  ;;  %v507_v43 = vmul.f32 %v500_v6, %v1432_v44  ;;  %409 = vadd.xlane.f32.xlu0 %v408_v14 }
  0x96   :  { %v281_v51 = vmul.f32 %v278_v10, %v1432_v44  ;;  %184 = vadd.xlane.f32.xlu1 %v183_v13  ;;  %187 = vadd.xlane.f32.xlu2 %v186_v5  ;;  %v1549_v22 = vsub.f32 %v1260_v28, %v394_v20  ;;  %v1552_v23 = vsub.f32 %v1265_v29, %v394_v20 }
  0x97   :  { %v1537_v52 = vsub.f32 %v1255_v27, %v507_v43  ;;  %v1540_v53 = vsub.f32 %v1270_v30, %v507_v43  ;;  %v297_v13 = vadd.f32 %v291_v11, %v290_v42 }
  0x98   :  { %v1543_v18 = vsub.f32 %v1275_v31, %v281_v51  ;;  %v1546_v21 = vsub.f32 %v1280_v32, %v281_v51  ;;  %2399 = vst [vmem:[#allocation10_spill] sm:$0xff] %v1549_v22  ;;  %v404_v10 = vmul.f32 %v1549_v22, %v1549_v22  ;;  %v405_v20 = vmul.f32 %v1552_v23, %v1552_v23 }
  0x99   :  { %2396 = vst [vmem:[#allocation7_spill] sm:$0xff] %v1537_v52  ;;  %v516_v27 = vmul.f32 %v1537_v52, %v1537_v52  ;;  %v517_v30 = vmul.f32 %v1540_v53, %v1540_v53 }
  0x9a   :  { %2397 = vst [vmem:[#allocation8_spill] sm:$0xff] %v1540_v53  ;;  %v292_v31 = vmul.f32 %v1543_v18, %v1543_v18  ;;  %v293_v32 = vmul.f32 %v1546_v21, %v1546_v21 }
  0x9b   :  { %2398 = vst [vmem:[#allocation9_spill] sm:$0xff] %v1546_v21  ;;  %v522_v14 = vadd.f32 %v517_v30, %v516_v27  ;;  %v503_v28 = vpop.xlane.xlu2 %502 }
  0x9c   :  { %2400 = vst [vmem:[#allocation11_spill] sm:$0xff] %v1552_v23  ;;  %v300_v5 = vadd.f32 %v293_v32, %v292_v31  ;;  %v614_v19 = vpop.xlane.xlu1 %613  ;;  %v508_v29 = vmul.f32 %v503_v28, %v1432_v44 }
  0x9d   :  { %v392_v6 = vpop.xlane.xlu0 %391  ;;  %v621_v42 = vmul.f32 %v614_v19, %v1432_v44  ;;  %523 = vadd.xlane.f32.xlu0 %v522_v14 }
  0x9e   :  { %v395_v11 = vmul.f32 %v392_v6, %v1432_v44  ;;  %298 = vadd.xlane.f32.xlu1 %v297_v13  ;;  %301 = vadd.xlane.f32.xlu2 %v300_v5  ;;  %v1582_v31 = vsub.f32 %v1296_v37, %v508_v29  ;;  %v1585_v32 = vsub.f32 %v1301_v38, %v508_v29 }
  0x9f   :  { %v1570_v43 = vsub.f32 %v1291_v36, %v621_v42  ;;  %v1573_v51 = vsub.f32 %v1306_v39, %v621_v42  ;;  %v411_v13 = vadd.f32 %v405_v20, %v404_v10 }
  0xa0   :  { %v1576_v27 = vsub.f32 %v1311_v40, %v395_v11  ;;  %v1579_v30 = vsub.f32 %v1316_v41, %v395_v11  ;;  %2405 = vst [vmem:[#allocation16_spill] sm:$0xff] %v1582_v31  ;;  %v518_v6 = vmul.f32 %v1582_v31, %v1582_v31  ;;  %v519_v29 = vmul.f32 %v1585_v32, %v1585_v32 }
  0xa1   :  { %2401 = vst [vmem:[#allocation12_spill] sm:$0xff] %v1570_v43  ;;  %v630_v36 = vmul.f32 %v1570_v43, %v1570_v43  ;;  %v631_v39 = vmul.f32 %v1573_v51, %v1573_v51 }
  0xa2   :  { %2402 = vst [vmem:[#allocation13_spill] sm:$0xff] %v1573_v51  ;;  %v406_v40 = vmul.f32 %v1576_v27, %v1576_v27  ;;  %v407_v41 = vmul.f32 %v1579_v30, %v1579_v30 }
  0xa3   :  { %2403 = vst [vmem:[#allocation14_spill] sm:$0xff] %v1576_v27  ;;  %v636_v14 = vadd.f32 %v631_v39, %v630_v36  ;;  %v617_v37 = vpop.xlane.xlu2 %616  ;;  %v2427_v27 = vld [vmem:[#allocation6_spill] sm:$0xff] }
  0xa4   :  { %2404 = vst [vmem:[#allocation15_spill] sm:$0xff] %v1579_v30  ;;  %v414_v5 = vadd.f32 %v407_v41, %v406_v40  ;;  %v728_v28 = vpop.xlane.xlu1 %727  ;;  %v622_v38 = vmul.f32 %v617_v37, %v1432_v44 }
  0xa5   :  { %2406 = vst [vmem:[#allocation17_spill] sm:$0xff] %v1585_v32  ;;  %v506_v19 = vpop.xlane.xlu0 %505  ;;  %v735_v10 = vmul.f32 %v728_v28, %v1432_v44  ;;  %637 = vadd.xlane.f32.xlu0 %v636_v14  ;;  %v383_v32 = vld [vmem:[#allocation2 + $0x6] sm:$0x3] }
  0xa6   :  { %v509_v20 = vmul.f32 %v506_v19, %v1432_v44  ;;  %412 = vadd.xlane.f32.xlu1 %v411_v13  ;;  %415 = vadd.xlane.f32.xlu2 %v414_v5  ;;  %v1615_v40 = vsub.f32 %v1332_v46, %v622_v38  ;;  %v1618_v41 = vsub.f32 %v1337_v47, %v622_v38  ;;  %v1820_v43 = vperm.slane %v383_v32, 0 }
  0xa7   :  { %v1603_v42 = vsub.f32 %v1327_v45, %v735_v10  ;;  %v1606_v11 = vsub.f32 %v1342_v48, %v735_v10  ;;  %v525_v13 = vadd.f32 %v519_v29, %v518_v6  ;;  %v1861_v52 = vperm.slane %v383_v32, 1 }
  0xa8   :  { %v1609_v36 = vsub.f32 %v1347_v49, %v509_v20  ;;  %v1612_v39 = vsub.f32 %v1352_v50, %v509_v20  ;;  %2411 = vst [vmem:[#allocation22_spill] sm:$0xff] %v1615_v40  ;;  %v632_v19 = vmul.f32 %v1615_v40, %v1615_v40  ;;  %v633_v38 = vmul.f32 %v1618_v41, %v1618_v41  ;;  %v155_v40 = vld [vmem:[#allocation2 + $0x2] sm:$0x3] }
  0xa9   :  { %2407 = vst [vmem:[#allocation18_spill] sm:$0xff] %v1603_v42  ;;  %v744_v45 = vmul.f32 %v1603_v42, %v1603_v42  ;;  %v745_v48 = vmul.f32 %v1606_v11, %v1606_v11 }
  0xaa   :  { %2408 = vst [vmem:[#allocation19_spill] sm:$0xff] %v1606_v11  ;;  %v520_v49 = vmul.f32 %v1609_v36, %v1609_v36  ;;  %v521_v50 = vmul.f32 %v1612_v39, %v1612_v39 }
  0xab   :  { %2409 = vst [vmem:[#allocation20_spill] sm:$0xff] %v1609_v36  ;;  %v750_v14 = vadd.f32 %v745_v48, %v744_v45  ;;  %v731_v46 = vpop.xlane.xlu2 %730  ;;  %v1783_v36 = vperm.slane %v155_v40, 1 }
  0xac   :  { %2410 = vst [vmem:[#allocation21_spill] sm:$0xff] %v1612_v39  ;;  %v528_v5 = vadd.f32 %v521_v50, %v520_v49  ;;  %v842_v37 = vpop.xlane.xlu1 %841  ;;  %v736_v47 = vmul.f32 %v731_v46, %v1432_v44  ;;  %v269_v39 = vld [vmem:[#allocation2 + $0x4] sm:$0x3] }
  0xad   :  { %2412 = vst [vmem:[#allocation23_spill] sm:$0xff] %v1618_v41  ;;  %v620_v28 = vpop.xlane.xlu0 %619  ;;  %v849_v6 = vmul.f32 %v842_v37, %v1432_v44  ;;  %751 = vadd.xlane.f32.xlu0 %v750_v14 }
  0xae   :  { %v623_v29 = vmul.f32 %v620_v28, %v1432_v44  ;;  %526 = vadd.xlane.f32.xlu1 %v525_v13  ;;  %529 = vadd.xlane.f32.xlu2 %v528_v5  ;;  %v1648_v49 = vsub.f32 %v1368_v55, %v736_v47  ;;  %v1651_v50 = vsub.f32 %v1373_v56, %v736_v47 }
  0xaf   :  { %v1636_v10 = vsub.f32 %v1363_v54, %v849_v6  ;;  %v1639_v20 = vsub.f32 %v1378_v57, %v849_v6  ;;  %v639_v13 = vadd.f32 %v633_v38, %v632_v19  ;;  %2425 = vst [vmem:[#allocation36_spill] sm:$0xff] %v1820_v43 }
  0xb0   :  { %v1642_v45 = vsub.f32 %v1383_v58, %v623_v29  ;;  %v1645_v48 = vsub.f32 %v1388_v59, %v623_v29  ;;  %2417 = vst [vmem:[#allocation28_spill] sm:$0xff] %v1648_v49  ;;  %v746_v56 = vmul.f32 %v1648_v49, %v1648_v49  ;;  %v747_v37 = vmul.f32 %v1651_v50, %v1651_v50 }
  0xb1   :  { %2413 = vst [vmem:[#allocation24_spill] sm:$0xff] %v1636_v10  ;;  %v858_v54 = vmul.f32 %v1636_v10, %v1636_v10  ;;  %v859_v57 = vmul.f32 %v1639_v20, %v1639_v20 }
  0xb2   :  { %2414 = vst [vmem:[#allocation25_spill] sm:$0xff] %v1639_v20  ;;  %v634_v58 = vmul.f32 %v1642_v45, %v1642_v45  ;;  %v635_v59 = vmul.f32 %v1645_v48, %v1645_v48  ;;  %v753_v6 = vadd.f32 %v747_v37, %v746_v56 }
  0xb3   :  { %2415 = vst [vmem:[#allocation26_spill] sm:$0xff] %v1642_v45  ;;  %v864_v14 = vadd.f32 %v859_v57, %v858_v54  ;;  %v845_v55 = vpop.xlane.xlu2 %844 }
  0xb4   :  { %2416 = vst [vmem:[#allocation27_spill] sm:$0xff] %v1645_v48  ;;  %v642_v5 = vadd.f32 %v635_v59, %v634_v58  ;;  %v850_v47 = vmul.f32 %v845_v55, %v1432_v44 }
  0xb5   :  { %2418 = vst [vmem:[#allocation29_spill] sm:$0xff] %v1651_v50  ;;  %v734_v46 = vpop.xlane.xlu0 %733  ;;  %865 = vadd.xlane.f32.xlu0 %v864_v14 }
  0xb6   :  { %v737_v28 = vmul.f32 %v734_v46, %v1432_v44  ;;  %640 = vadd.xlane.f32.xlu1 %v639_v13  ;;  %643 = vadd.xlane.f32.xlu2 %v642_v5  ;;  %v1674_v29 = vsub.f32 %v1399_v63, %v850_v47  ;;  %v1677_v54 = vsub.f32 %v1404_v3, %v850_v47 }
  0xb8   :  { %v1668_v19 = vsub.f32 %v1409_v7, %v737_v28  ;;  %v1671_v38 = vsub.f32 %v1414_v8, %v737_v28  ;;  %2421 = vst [vmem:[#allocation32_spill] sm:$0xff] %v1674_v29  ;;  %v860_v8 = vmul.f32 %v1674_v29, %v1674_v29  ;;  %v861_v63 = vmul.f32 %v1677_v54, %v1677_v54 }
  0xb9   :  { %2422 = vst [vmem:[#allocation33_spill] sm:$0xff] %v1677_v54  ;;  %v39_v54 = vld [vmem:[%s2358_s1] sm:$0x3] }
  0xba   :  { %2419 = vst [vmem:[#allocation30_spill] sm:$0xff] %v1668_v19  ;;  %v748_v57 = vmul.f32 %v1668_v19, %v1668_v19  ;;  %v749_v13 = vmul.f32 %v1671_v38, %v1671_v38  ;;  %v867_v5 = vadd.f32 %v861_v63, %v860_v8  ;;  %v40_v19 = vld [vmem:[#allocation2] sm:$0x3]  ;;  %v1747_v49 = vperm.slane %v39_v54, 0 }
  0xbb   :  { %2420 = vst [vmem:[#allocation31_spill] sm:$0xff] %v1671_v38  ;;  %v1750_v10 = vperm.slane %v39_v54, 1  ;;  %v1752_v48 = vperm.slane %v40_v19, 0  ;;  %v1756_v41 = vperm.slane %v40_v19, 1 }
  0xbc   :  { %v756_v58 = vadd.f32 %v749_v13, %v748_v57 }
  0xbd   :  { %v848_v59 = vpop.xlane.xlu0 %847 }
  0xbe   :  { %v851_v7 = vmul.f32 %v848_v59, %v1432_v44  ;;  %754 = vadd.xlane.f32.xlu1 %v753_v6  ;;  %757 = vadd.xlane.f32.xlu2 %v756_v58 }
  0xc0   :  { %v1689_v3 = vsub.f32 %v1423_v17, %v851_v7  ;;  %v1692_v14 = vsub.f32 %v1428_v24, %v851_v7 }
  0xc2   :  { %2423 = vst [vmem:[#allocation34_spill] sm:$0xff] %v1689_v3  ;;  %v862_v55 = vmul.f32 %v1689_v3, %v1689_v3  ;;  %v863_v46 = vmul.f32 %v1692_v14, %v1692_v14 }
  0xc3   :  { %2424 = vst [vmem:[#allocation35_spill] sm:$0xff] %v1692_v14 }
  0xc4   :  { %v870_v56 = vadd.f32 %v863_v46, %v862_v55 }
  0xc6   :  { %868 = vadd.xlane.f32.xlu1 %v867_v5  ;;  %871 = vadd.xlane.f32.xlu2 %v870_v56 }
  0xf7   :  { %v182_v37 = vpop.xlane.xlu0 %181 }
  0xf8   :  { %v80_v28 = vpop.xlane.xlu2 %79  ;;  %v189_v6 = vmul.f32 %v182_v37, %v1432_v44 }
  0xf9   :  { %v74_v47 = vpop.xlane.xlu1 %73  ;;  %v83_v17 = vmul.f32 %v80_v28, %v1432_v44 }
  0xfa   :  { %v81_v24 = vmul.f32 %v74_v47, %v1432_v44  ;;  %v1701_v57 = vadd.f32 1e-05, %v189_v6 }
  0xfb   :  { %v1703_v13 = vadd.f32 1e-05, %v83_v17 }
  0xfc   :  { %v1705_v58 = vadd.f32 1e-05, %v81_v24  ;;  %1038 = vrsqrt.f32 %v1701_v57  ;;  %vm201_vm1 = vweird.f32 %v1701_v57 }
  0xfd   :  { %1040 = vrsqrt.f32 %v1703_v13  ;;  %vm113_vm3 = vweird.f32 %v1703_v13 }
  0xfe   :  { %1042 = vrsqrt.f32 %v1705_v58  ;;  %vm93_vm8 = vweird.f32 %v1705_v58 }
 0x100   :  { %v296_v7 = vpop.xlane.xlu0 %295 }
 0x101   :  { %v77_v59 = vpop.xlane.xlu1 %76  ;;  %v303_v63 = vmul.f32 %v296_v7, %v1432_v44 }
 0x102   :  { %v82_v8 = vmul.f32 %v77_v59, %v1432_v44  ;;  %v1712_v5 = vpop.eup %1038 }
 0x103   :  { %v1714_v55 = vpop.eup %1040  ;;  %v196_v46 = vmul.f32 %v1712_v5, %v1701_v57  ;;  %v1720_v37 = vadd.f32 1e-05, %v303_v63  ;;  %vm202_vm2 = vweird.f32 %v1712_v5 }
 0x104   :  { %v1718_v56 = vadd.f32 1e-05, %v82_v8  ;;  %v1722_v28 = vpop.eup %1042  ;;  %v108_v47 = vmul.f32 %v1714_v55, %v1703_v13  ;;  %vm114_vm4 = vweird.f32 %v1714_v55  ;;  %vm203_vm6 = vmor %vm201_vm1, %vm202_vm2  ;;  %v1805_v13 = vperm.slane %v269_v39, 0 }
 0x105   :  { %v88_v6 = vmul.f32 %v1722_v28, %v1705_v58  ;;  %v197_v17 = vmul.f32 %v1712_v5, %v196_v46  ;;  %vm94_vm5 = vweird.f32 %v1722_v28  ;;  %vm115_vm7 = vmor %vm113_vm3, %vm114_vm4  ;;  %vm315_vm10 = vweird.f32 %v1720_v37 }
 0x106   :  { %1044 = vrsqrt.f32 %v1718_v56  ;;  %v109_v24 = vmul.f32 %v1714_v55, %v108_v47  ;;  %vm95_vm9 = vmor %vm93_vm8, %vm94_vm5  ;;  %vm103_vm11 = vweird.f32 %v1718_v56 }
 0x107   :  { %1046 = vrsqrt.f32 %v1720_v37  ;;  %v89_v59 = vmul.f32 %v1722_v28, %v88_v6  ;;  %v198_v7 = vmul.f32 0.5, %v197_v17  ;;  %v989_v6 = vld [vmem:[%s2358_s1 + $0x2] sm:$0x3] }
 0x108   :  { %v110_v63 = vmul.f32 0.5, %v109_v24  ;;  %v410_v46 = vpop.xlane.xlu0 %409  ;;  %v1778_v11 = vperm.slane %v989_v6, 1 }
 0x109   :  { %v185_v8 = vpop.xlane.xlu1 %184  ;;  %v188_v14 = vpop.xlane.xlu2 %187  ;;  %v90_v29 = vmul.f32 0.5, %v89_v59  ;;  %v199_v17 = vsub.f32 1.5, %v198_v7  ;;  %v417_v59 = vmul.f32 %v410_v46, %v1432_v44  ;;  %v1758_v7 = vperm.slane %v989_v6, 0 }
 0x10a   :  { %v190_v47 = vmul.f32 %v185_v8, %v1432_v44  ;;  %v191_v50 = vmul.f32 %v188_v14, %v1432_v44  ;;  %v111_v20 = vsub.f32 1.5, %v110_v63 }
 0x10b   :  { %v91_v8 = vsub.f32 1.5, %v90_v29  ;;  %v200_v63 = vmul.f32 %v1712_v5, %v199_v17  ;;  %v996_v29 = vld [vmem:[%s2358_s1 + $0x4] sm:$0x3] }
 0x10c   :  { %v1733_v3 = vpop.eup %1044  ;;  %v1761_v14 = vadd.f32 1e-05, %v190_v47  ;;  %v1769_v46 = vadd.f32 1e-05, %v191_v50  ;;  %v112_v19 = vmul.f32 %v1714_v55, %v111_v20  ;;  %v1774_v47 = vadd.f32 1e-05, %v417_v59 }
 0x10d   :  { %v1738_v38 = vpop.eup %1046  ;;  %v98_v45 = vmul.f32 %v1733_v3, %v1718_v56  ;;  %v92_v17 = vmul.f32 %v1722_v28, %v91_v8  ;;  %v1781_v50 = vperm.slane %v155_v40, 0  ;;  %v1789_v20 = vperm.slane %v996_v29, 0  ;;  %v1003_v40 = vld [vmem:[%s2358_s1 + $0x6] sm:$0x3] }
 0x10e   :  { %v310_v24 = vmul.f32 %v1738_v38, %v1720_v37  ;;  %1048 = vrsqrt.f32 %v1761_v14  ;;  %v116_v57 = vsel %vm115_vm7, %v1714_v55, %v112_v19  ;;  %v1803_v8 = vperm.slane %v996_v29, 1 }
 0x10f   :  { %v99_v42 = vmul.f32 %v1733_v3, %v98_v45  ;;  %v204_v45 = vsel %vm203_vm6, %v1712_v5, %v200_v63  ;;  %1050 = vrsqrt.f32 %v1769_v46  ;;  %v96_v58 = vsel %vm95_vm9, %v1722_v28, %v92_v17 }
 0x110   :  { %v311_v54 = vmul.f32 %v1738_v38, %v310_v24  ;;  %1052 = vrsqrt.f32 %v1774_v47  ;;  %v225_v31 = vmul.f32 %v204_v45, %v1438_v15  ;;  %v1812_v55 = vperm.slane %v269_v39, 1  ;;  %v524_v22 = vpop.xlane.xlu0 %523 }
 0x111   :  { %v299_v24 = vpop.xlane.xlu1 %298  ;;  %v302_v59 = vpop.xlane.xlu2 %301  ;;  %v100_v5 = vmul.f32 0.5, %v99_v42  ;;  %v1815_v29 = vperm.slane %v1003_v40, 0  ;;  %v1818_v51 = vperm.slane %v1003_v40, 1  ;;  %v121_v17 = vmul.f32 %v116_v57, %v1444_v25 }
 0x112   :  { %v312_v6 = vmul.f32 0.5, %v311_v54  ;;  %v304_v63 = vmul.f32 %v299_v24, %v1432_v44  ;;  %v305_v54 = vmul.f32 %v302_v59, %v1432_v44  ;;  %v117_v15 = vmul.f32 %v96_v58, %v1450_v33 }
 0x113   :  { %v226_v39 = vmul.f32 %v204_v45, %v1441_v16  ;;  %v101_v30 = vsub.f32 1.5, %v100_v5  ;;  %vm316_vm12 = vweird.f32 %v1738_v38  ;;  %v118_v33 = vmul.f32 %v96_v58, %v2427_v27 }
 0x114   :  { %v313_v19 = vsub.f32 1.5, %v312_v6  ;;  %v1822_v42 = vadd.f32 1e-05, %v304_v63  ;;  %v1824_v28 = vpop.eup %1048  ;;  %v1829_v24 = vadd.f32 1e-05, %v305_v54  ;;  %v2426_v63 = vld [vmem:[#allocation5_spill] sm:$0xff]  ;;  %v236_v16 = vmul.f32 %v1758_v7, %v225_v31  ;;  %vm317_vm14 = vmor %vm315_vm10, %vm316_vm12 }
 0x115   :  { %v1831_v59 = vpop.eup %1050  ;;  %v206_v6 = vmul.f32 %v1824_v28, %v1761_v14  ;;  %v122_v25 = vmul.f32 %v116_v57, %v2426_v63  ;;  %vm104_vm13 = vweird.f32 %v1733_v3  ;;  %v132_v57 = vmul.f32 %v1747_v49, %v121_v17 }
 0x116   :  { %1054 = vrsqrt.f32 %v1822_v42  ;;  %v1837_v40 = vpop.eup %1052  ;;  %v314_v45 = vmul.f32 %v1738_v38, %v313_v19  ;;  %v216_v54 = vmul.f32 %v1831_v59, %v1769_v46  ;;  %v128_v27 = vmul.f32 %v1747_v49, %v117_v15  ;;  %vm105_vm15 = vmor %vm103_vm11, %vm104_vm13 }
 0x117   :  { %v207_v5 = vmul.f32 %v1824_v28, %v206_v6  ;;  %v424_v23 = vmul.f32 %v1837_v40, %v1774_v47  ;;  %v237_v31 = vmul.f32 %v1778_v11, %v226_v39  ;;  %1056 = vrsqrt.f32 %v1829_v24 }
 0x118   :  { %v102_v58 = vmul.f32 %v1733_v3, %v101_v30  ;;  %v217_v6 = vmul.f32 %v1831_v59, %v216_v54  ;;  %v133_v17 = vmul.f32 %v1750_v10, %v122_v25  ;;  %v531_v15 = vmul.f32 %v524_v22, %v1432_v44 }
 0x119   :  { %v413_v53 = vpop.xlane.xlu1 %412  ;;  %v208_v19 = vmul.f32 0.5, %v207_v5  ;;  %v425_v63 = vmul.f32 %v1837_v40, %v424_v23  ;;  %v129_v37 = vmul.f32 %v1750_v10, %v118_v33  ;;  %v318_v21 = vsel %vm317_vm14, %v1738_v38, %v314_v45 }
 0x11a   :  { %v418_v39 = vmul.f32 %v413_v53, %v1432_v44  ;;  %v218_v5 = vmul.f32 0.5, %v217_v6  ;;  %v247_v54 = vadd.f32 %v1781_v50, %v236_v16  ;;  %v248_v23 = vadd.f32 %v1783_v36, %v237_v31 }
 0x11b   :  { %v209_v30 = vsub.f32 1.5, %v208_v19  ;;  %v1877_v22 = vadd.f32 1e-05, %v531_v15  ;;  %v1880_v32 = vadd.f32 %v1752_v48, %v132_v57  ;;  %v139_v38 = vadd.f32 %v1752_v48, %v128_v27 }
 0x11c   :  { %v1865_v43 = vpop.eup %1054  ;;  %v106_v25 = vsel %vm105_vm15, %v1733_v3, %v102_v58  ;;  %v426_v33 = vmul.f32 0.5, %v425_v63  ;;  %v339_v45 = vmul.f32 %v318_v21, %v1471_v26  ;;  %v340_v56 = vmul.f32 %v318_v21, %v1474_v34  ;;  %v416_v63 = vpop.xlane.xlu2 %415 }
 0x11d   :  { %v320_v53 = vmul.f32 %v1865_v43, %v1822_v42  ;;  %v1884_v16 = vpop.eup %1056  ;;  %v1889_v19 = vadd.f32 1e-05, %v418_v39  ;;  %v210_v6 = vmul.f32 %v1824_v28, %v209_v30  ;;  %vm212_vm0 = vweird.f32 %v1824_v28  ;;  %v1010_v30 = vld [vmem:[%s2358_s1 + $0x8] sm:$0x3] }
 0x11e   :  { %v219_v57 = vsub.f32 1.5, %v218_v5  ;;  %v330_v27 = vmul.f32 %v1884_v16, %v1829_v24  ;;  %v140_v3 = vadd.f32 %v1756_v41, %v129_v37  ;;  %vm211_vm1 = vweird.f32 %v1761_v14 }
 0x11f   :  { %v321_v31 = vmul.f32 %v1865_v43, %v320_v53  ;;  %vm429_vm2 = vweird.f32 %v1774_v47  ;;  %1058 = vrsqrt.f32 %v1877_v22  ;;  %v119_v26 = vmul.f32 %v106_v25, %v1477_v35  ;;  %vm213_vm3 = vmor %vm211_vm1, %vm212_vm0 }
 0x120   :  { %v427_v34 = vsub.f32 1.5, %v426_v33  ;;  %v331_v58 = vmul.f32 %v1884_v16, %v330_v27  ;;  %v120_v15 = vmul.f32 %v106_v25, %v1480_v0  ;;  %v350_v39 = vmul.f32 %v1789_v20, %v339_v45 }
 0x121   :  { %v322_v21 = vmul.f32 0.5, %v321_v31  ;;  %vm222_vm4 = vweird.f32 %v1831_v59  ;;  %1060 = vrsqrt.f32 %v1889_v19  ;;  %v351_v14 = vmul.f32 %v1803_v8, %v340_v56 }
 0x122   :  { %v214_v37 = vsel %vm213_vm3, %v1824_v28, %v210_v6  ;;  %v220_v35 = vmul.f32 %v1831_v59, %v219_v57  ;;  %vm430_vm5 = vweird.f32 %v1837_v40  ;;  %v1913_v0 = vadd.f32 %v1756_v41, %v133_v17 }
 0x123   :  { %v253_v5 = vadd.f32 %v247_v54, %v139_v38  ;;  %vm221_vm6 = vweird.f32 %v1769_v46  ;;  %v419_v53 = vmul.f32 %v416_v63, %v1432_v44  ;;  %v254_v25 = vadd.f32 %v248_v23, %v140_v3  ;;  %vm431_vm8 = vmor %vm429_vm2, %vm430_vm5 }
 0x124   :  { %vm223_vm7 = vmor %vm221_vm6, %vm222_vm4  ;;  %v428_v28 = vmul.f32 %v1837_v40, %v427_v34  ;;  %v323_v33 = vsub.f32 1.5, %v322_v21  ;;  %v332_v45 = vmul.f32 0.5, %v331_v58  ;;  %v130_v31 = vmul.f32 %v1747_v49, %v119_v26 }
 0x125   :  { %v1918_v56 = vpop.eup %1058  ;;  %v227_v6 = vmul.f32 %v214_v37, %v1483_v1  ;;  %v228_v17 = vmul.f32 %v214_v37, %v1486_v2  ;;  %v1927_v46 = vperm.slane %v1010_v30, 0  ;;  %v131_v54 = vmul.f32 %v1750_v10, %v120_v15 }
 0x126   :  { %v361_v23 = vadd.f32 %v1805_v13, %v350_v39  ;;  %v362_v38 = vadd.f32 %v1812_v55, %v351_v14  ;;  %v224_v57 = vsel %vm223_vm7, %v1831_v59, %v220_v35  ;;  %vm325_vm9 = vweird.f32 %v1822_v42 }
 0x127   :  { %v1933_v49 = vpop.eup %1060  ;;  %vm326_vm10 = vweird.f32 %v1865_v43  ;;  %v1937_v1 = vperm.slane %v1010_v30, 1  ;;  %v1939_v2 = vadd.f32 1e-05, %v419_v53  ;;  %v432_v47 = vsel %vm431_vm8, %v1837_v40, %v428_v28  ;;  %v527_v53 = vpop.xlane.xlu1 %526 }
 0x128   :  { %v324_v10 = vmul.f32 %v1865_v43, %v323_v33  ;;  %v333_v27 = vsub.f32 1.5, %v332_v45  ;;  %v538_v3 = vmul.f32 %v1918_v56, %v1877_v22  ;;  %v141_v59 = vadd.f32 %v1752_v48, %v130_v31  ;;  %vm327_vm11 = vmor %vm325_vm9, %vm326_vm10  ;;  %v638_v48 = vpop.xlane.xlu0 %637 }
 0x129   :  { %v238_v26 = vmul.f32 %v1758_v7, %v227_v6  ;;  %v239_v34 = vmul.f32 %v1778_v11, %v228_v17  ;;  %v229_v21 = vmul.f32 %v224_v57, %v1510_v62  ;;  %v142_v58 = vadd.f32 %v1756_v41, %v131_v54  ;;  %v497_v62 = vld [vmem:[#allocation2 + $0x8] sm:$0x3] }
 0x12a   :  { %v1950_v63 = vadd.f32 %v361_v23, %v253_v5  ;;  %v1952_v15 = vadd.f32 %v362_v38, %v254_v25  ;;  %v434_v40 = vmul.f32 %v1933_v49, %v1889_v19  ;;  %v230_v39 = vmul.f32 %v224_v57, %v1513_v4  ;;  %v530_v25 = vpop.xlane.xlu2 %529 }
 0x12b   :  { %v453_v14 = vmul.f32 %v432_v47, %v1504_v60  ;;  %vm336_vm12 = vweird.f32 %v1884_v16  ;;  %v539_v41 = vmul.f32 %v1918_v56, %v538_v3  ;;  %v328_v37 = vsel %vm327_vm11, %v1865_v43, %v324_v10 }
 0x12c   :  { %v334_v35 = vmul.f32 %v1884_v16, %v333_v27  ;;  %v435_v30 = vmul.f32 %v1933_v49, %v434_v40  ;;  %1062 = vrsqrt.f32 %v1939_v2  ;;  %v249_v60 = vadd.f32 %v1781_v50, %v238_v26  ;;  %v2429_v40 = vld [vmem:[#allocation36_spill] sm:$0xff] }
 0x12d   :  { %v250_v4 = vadd.f32 %v1783_v36, %v239_v34  ;;  %v240_v42 = vmul.f32 %v1758_v7, %v229_v21  ;;  %v454_v5 = vmul.f32 %v432_v47, %v1507_v61  ;;  %vm335_vm13 = vweird.f32 %v1829_v24  ;;  %v2428_v34 = vld [vmem:[#allocation9_spill] sm:$0xff] }
 0x12e   :  { %v1973_v28 = vperm.slane %v497_v62, 0  ;;  %v1975_v43 = vperm.slane %v497_v62, 1  ;;  %vm543_vm14 = vweird.f32 %v1877_v22  ;;  %v241_v33 = vmul.f32 %v1778_v11, %v230_v39  ;;  %vm337_vm15 = vmor %vm335_vm13, %vm336_vm12 }
 0x12f   :  { %v464_v45 = vmul.f32 %v1815_v29, %v453_v14  ;;  %v341_v31 = vmul.f32 %v328_v37, %v1516_v9  ;;  %v540_v61 = vmul.f32 0.5, %v539_v41  ;;  %v338_v7 = vsel %vm337_vm15, %v1884_v16, %v334_v35  ;;  %v641_v35 = vpop.xlane.xlu1 %640 }
 0x130   :  { %v436_v6 = vmul.f32 0.5, %v435_v30  ;;  %v645_v24 = vmul.f32 %v638_v48, %v1432_v44  ;;  %v532_v17 = vmul.f32 %v527_v53, %v1432_v44  ;;  %v255_v54 = vadd.f32 %v249_v60, %v141_v59 }
 0x131   :  { %v1986_v23 = vadd.f32 %v250_v4, %v142_v58  ;;  %v251_v11 = vadd.f32 %v1781_v50, %v240_v42  ;;  %v465_v38 = vmul.f32 %v1818_v51, %v454_v5  ;;  %v342_v9 = vmul.f32 %v328_v37, %v1519_v12 }
 0x132   :  { %v1990_v57 = vpop.eup %1062  ;;  %vm439_vm0 = vweird.f32 %v1889_v19  ;;  %v1994_v47 = vadd.f32 1e-05, %v645_v24  ;;  %v1996_v16 = vadd.f32 1e-05, %v532_v17  ;;  %v533_v10 = vmul.f32 %v530_v25, %v1432_v44  ;;  %v644_v30 = vpop.xlane.xlu2 %643 }
 0x133   :  { %v352_v27 = vmul.f32 %v1789_v20, %v341_v31  ;;  %v343_v3 = vmul.f32 %v338_v7, %v1543_v18  ;;  %v541_v59 = vsub.f32 1.5, %v540_v61  ;;  %v444_v50 = vmul.f32 %v1990_v57, %v1939_v2  ;;  %v752_v18 = vpop.xlane.xlu0 %751 }
 0x134   :  { %v252_v26 = vadd.f32 %v1783_v36, %v241_v33  ;;  %v344_v12 = vmul.f32 %v338_v7, %v2428_v34  ;;  %v437_v21 = vsub.f32 1.5, %v436_v6  ;;  %1064 = vrsqrt.f32 %v1994_v47  ;;  %v2431_v34 = vld [vmem:[#allocation8_spill] sm:$0xff] }
 0x135   :  { %v257_v58 = vadd.f32 %v251_v11, %v1880_v32  ;;  %v475_v39 = vadd.f32 %v2429_v40, %v464_v45  ;;  %v476_v14 = vadd.f32 %v1861_v52, %v465_v38  ;;  %vm544_vm1 = vweird.f32 %v1918_v56 }
 0x136   :  { %v353_v62 = vmul.f32 %v1803_v8, %v342_v9  ;;  %v445_v41 = vmul.f32 %v1990_v57, %v444_v50  ;;  %1066 = vrsqrt.f32 %v1996_v16  ;;  %v2013_v36 = vadd.f32 1e-05, %v533_v10  ;;  %vm545_vm3 = vmor %vm543_vm14, %vm544_vm1 }
 0x137   :  { %v363_v48 = vadd.f32 %v1805_v13, %v352_v27  ;;  %v354_v37 = vmul.f32 %v1789_v20, %v343_v3  ;;  %v542_v32 = vmul.f32 %v1918_v56, %v541_v59  ;;  %vm440_vm2 = vweird.f32 %v1933_v49  ;;  %v611_v3 = vld [vmem:[#allocation2 + $0xa] sm:$0x3] }
 0x138   :  { %v355_v60 = vmul.f32 %v1803_v8, %v344_v12  ;;  %v438_v4 = vmul.f32 %v1933_v49, %v437_v21  ;;  %1068 = vrsqrt.f32 %v2013_v36  ;;  %v759_v42 = vmul.f32 %v752_v18, %v1432_v44  ;;  %vm441_vm4 = vmor %vm439_vm0, %vm440_vm2  ;;  %v2432_v21 = vld [vmem:[#allocation10_spill] sm:$0xff] }
 0x139   :  { %v258_v5 = vadd.f32 %v252_v26, %v1913_v0  ;;  %v2027_v20 = vadd.f32 %v475_v39, %v1950_v63  ;;  %v2030_v53 = vadd.f32 %v476_v14, %v1952_v15  ;;  %v446_v25 = vmul.f32 0.5, %v445_v41  ;;  %v1017_v15 = vld [vmem:[%s2358_s1 + $0xa] sm:$0x3]  ;;  %v1024_v14 = vld [vmem:[%s2358_s1 + $0xc] sm:$0x3] }
 0x13a   :  { %v2032_v33 = vpop.eup %1064  ;;  %v364_v8 = vadd.f32 %v1812_v55, %v353_v62  ;;  %v2035_v22 = vadd.f32 1e-05, %v759_v42  ;;  %v646_v45 = vmul.f32 %v641_v35, %v1432_v44  ;;  %v647_v31 = vmul.f32 %v644_v30, %v1432_v44  ;;  %v2433_v30 = vld [vmem:[#allocation11_spill] sm:$0xff]  ;;  %v725_v42 = vld [vmem:[#allocation2 + $0xc] sm:$0x3] }
 0x13b   :  { %v2039_v61 = vadd.f32 %v363_v48, %v255_v54  ;;  %v365_v0 = vadd.f32 %v1805_v13, %v354_v37  ;;  %v546_v63 = vsel %vm545_vm3, %v1918_v56, %v542_v32  ;;  %vm449_vm5 = vweird.f32 %v1939_v2 }
 0x13c   :  { %v652_v7 = vmul.f32 %v2032_v33, %v1994_v47  ;;  %v2053_v6 = vpop.eup %1066  ;;  %v366_v13 = vadd.f32 %v1812_v55, %v355_v60  ;;  %v442_v56 = vsel %vm441_vm4, %v1933_v49, %v438_v4  ;;  %1070 = vrsqrt.f32 %v2035_v22  ;;  %v2430_v55 = vld [vmem:[#allocation7_spill] sm:$0xff] }
 0x13d   :  { %v2058_v24 = vadd.f32 1e-05, %v646_v45  ;;  %v447_v19 = vsub.f32 1.5, %v446_v25  ;;  %v548_v54 = vmul.f32 %v2053_v6, %v1996_v16  ;;  %v2063_v11 = vadd.f32 1e-05, %v647_v31 }
 0x13e   :  { %v653_v17 = vmul.f32 %v2032_v33, %v652_v7  ;;  %v2065_v38 = vpop.eup %1068  ;;  %v2068_v9 = vadd.f32 %v364_v8, %v1986_v23  ;;  %v567_v10 = vmul.f32 %v546_v63, %v2430_v55  ;;  %v2071_v49 = vperm.slane %v1017_v15, 0 }
 0x13f   :  { %1072 = vrsqrt.f32 %v2058_v24  ;;  %v2074_v27 = vadd.f32 %v365_v0, %v257_v58  ;;  %v2076_v59 = vperm.slane %v1017_v15, 1  ;;  %v549_v26 = vmul.f32 %v2053_v6, %v548_v54 }
 0x140   :  { %v654_v50 = vmul.f32 0.5, %v653_v17  ;;  %v568_v12 = vmul.f32 %v546_v63, %v2431_v34  ;;  %v455_v39 = vmul.f32 %v442_v56, %v2432_v21  ;;  %v558_v23 = vmul.f32 %v2065_v38, %v2013_v36 }
 0x141   :  { %1074 = vrsqrt.f32 %v2063_v11  ;;  %v2087_v58 = vadd.f32 %v366_v13, %v258_v5  ;;  %v448_v18 = vmul.f32 %v1990_v57, %v447_v19  ;;  %vm450_vm6 = vweird.f32 %v1990_v57 }
 0x142   :  { %v550_v62 = vmul.f32 0.5, %v549_v26  ;;  %v2091_v41 = vpop.eup %1070  ;;  %v578_v48 = vmul.f32 %v1927_v46, %v567_v10  ;;  %v2094_v37 = vperm.slane %v611_v3, 0  ;;  %v655_v32 = vsub.f32 1.5, %v654_v50  ;;  %vm451_vm8 = vmor %vm449_vm5, %vm450_vm6  ;;  %v2434_v50 = vld [vmem:[#allocation14_spill] sm:$0xff] }
 0x143   :  { %v559_v35 = vmul.f32 %v2065_v38, %v558_v23  ;;  %v456_v60 = vmul.f32 %v442_v56, %v2433_v30  ;;  %v2098_v4 = vperm.slane %v611_v3, 1  ;;  %vm657_vm7 = vweird.f32 %v1994_v47 }
 0x144   :  { %v2101_v5 = vperm.slane %v1024_v14, 0  ;;  %v579_v8 = vmul.f32 %v1937_v1, %v568_v12  ;;  %v466_v45 = vmul.f32 %v1815_v29, %v455_v39  ;;  %vm658_vm9 = vweird.f32 %v2032_v33 }
 0x145   :  { %v2103_v25 = vpop.eup %1072  ;;  %v766_v31 = vmul.f32 %v2091_v41, %v2035_v22  ;;  %v452_v0 = vsel %vm451_vm8, %v1990_v57, %v448_v18  ;;  %v551_v63 = vsub.f32 1.5, %v550_v62  ;;  %v560_v15 = vmul.f32 0.5, %v559_v35  ;;  %vm659_vm10 = vmor %vm657_vm7, %vm658_vm9  ;;  %v2435_v62 = vld [vmem:[#allocation15_spill] sm:$0xff] }
 0x146   :  { %v2115_v7 = vperm.slane %v1024_v14, 1  ;;  %v589_v56 = vadd.f32 %v1973_v28, %v578_v48  ;;  %v656_v19 = vmul.f32 %v2032_v33, %v655_v32  ;;  %v2121_v17 = vperm.slane %v725_v42, 0 }
 0x147   :  { %v2117_v13 = vpop.eup %1074  ;;  %v767_v2 = vmul.f32 %v2091_v41, %v766_v31  ;;  %v467_v54 = vmul.f32 %v1818_v51, %v456_v60  ;;  %vm553_vm11 = vweird.f32 %v1996_v16  ;;  %v662_v57 = vmul.f32 %v2103_v25, %v2058_v24 }
 0x148   :  { %v672_v55 = vmul.f32 %v2117_v13, %v2063_v11  ;;  %v590_v10 = vadd.f32 %v1975_v43, %v579_v8  ;;  %v477_v3 = vadd.f32 %v2429_v40, %v466_v45  ;;  %v457_v26 = vmul.f32 %v452_v0, %v2434_v50 }
 0x149   :  { %vm554_vm12 = vweird.f32 %v2053_v6  ;;  %v552_v34 = vmul.f32 %v2053_v6, %v551_v63  ;;  %v561_v47 = vsub.f32 1.5, %v560_v15  ;;  %v768_v12 = vmul.f32 0.5, %v767_v2  ;;  %v839_v15 = vld [vmem:[#allocation2 + $0xe] sm:$0x3] }
 0x14a   :  { %v663_v21 = vmul.f32 %v2103_v25, %v662_v57  ;;  %v2139_v39 = vadd.f32 %v589_v56, %v2027_v20  ;;  %v660_v23 = vsel %vm659_vm10, %v2032_v33, %v656_v19  ;;  %vm563_vm13 = vweird.f32 %v2013_v36  ;;  %vm555_vm14 = vmor %vm553_vm11, %vm554_vm12  ;;  %v755_v56 = vpop.xlane.xlu1 %754  ;;  %v2438_v2 = vld [vmem:[#allocation16_spill] sm:$0xff] }
 0x14b   :  { %v2143_v14 = vperm.slane %v725_v42, 1  ;;  %v478_v18 = vadd.f32 %v1861_v52, %v467_v54  ;;  %v458_v48 = vmul.f32 %v452_v0, %v2435_v62  ;;  %v673_v35 = vmul.f32 %v2117_v13, %v672_v55  ;;  %v2436_v42 = vld [vmem:[#allocation12_spill] sm:$0xff] }
 0x14c   :  { %v664_v32 = vmul.f32 0.5, %v663_v21  ;;  %v2149_v30 = vadd.f32 %v590_v10, %v2030_v53  ;;  %v2152_v60 = vadd.f32 %v477_v3, %v2039_v61  ;;  %v468_v20 = vmul.f32 %v1815_v29, %v457_v26  ;;  %v1031_v53 = vld [vmem:[%s2358_s1 + $0xe] sm:$0x3]  ;;  %v2437_v61 = vld [vmem:[#allocation13_spill] sm:$0xff] }
 0x14d   :  { %v769_v33 = vsub.f32 1.5, %v768_v12  ;;  %v681_v8 = vmul.f32 %v660_v23, %v2436_v42  ;;  %v556_v45 = vsel %vm555_vm14, %v2053_v6, %v552_v34  ;;  %v562_v31 = vmul.f32 %v2065_v38, %v561_v47  ;;  %v2439_v3 = vld [vmem:[#allocation17_spill] sm:$0xff]  ;;  %v866_v12 = vpop.xlane.xlu0 %865 }
 0x14e   :  { %vm564_vm15 = vweird.f32 %v2065_v38  ;;  %v682_v29 = vmul.f32 %v660_v23, %v2437_v61  ;;  %vm771_vm0 = vweird.f32 %v2035_v22  ;;  %vm772_vm1 = vweird.f32 %v2091_v41 }
 0x14f   :  { %v665_v16 = vsub.f32 1.5, %v664_v32  ;;  %v2170_v0 = vadd.f32 %v478_v18, %v2068_v9  ;;  %v469_v6 = vmul.f32 %v1818_v51, %v458_v48  ;;  %vm667_vm2 = vweird.f32 %v2058_v24  ;;  %vm565_vm3 = vmor %vm563_vm13, %vm564_vm15  ;;  %v2184_v51 = vld [vmem:[%s2360_s3] sm:$0xf]  ;;  %v758_v9 = vpop.xlane.xlu2 %757  ;;  %v2440_v48 = vld [vmem:[#allocation20_spill] sm:$0xff] }
 0x150   :  { %v674_v63 = vmul.f32 0.5, %v673_v35  ;;  %v479_v19 = vadd.f32 %v2429_v40, %v468_v20  ;;  %v569_v54 = vmul.f32 %v556_v45, %v2438_v2  ;;  %v770_v57 = vmul.f32 %v2091_v41, %v769_v33  ;;  %vm773_vm4 = vmor %vm771_vm0, %vm772_vm1  ;;  %v2444_v2 = vld [vmem:[#allocation22_spill] sm:$0xff] }
 0x151   :  { %v2179_v55 = vperm.slane %v1031_v53, 0  ;;  %v692_v10 = vmul.f32 %v2071_v49, %v681_v8  ;;  %v570_v50 = vmul.f32 %v556_v45, %v2439_v3  ;;  %v566_v40 = vsel %vm565_vm3, %v2065_v38, %v562_v31  ;;  %v2445_v3 = vld [vmem:[#allocation23_spill] sm:$0xff] }
 0x152   :  { %vm677_vm5 = vweird.f32 %v2063_v11  ;;  %v2194_v36 = vperm.slane %v1031_v53, 1  ;;  %v693_v26 = vmul.f32 %v2076_v59, %v682_v29  ;;  %v666_v34 = vmul.f32 %v2103_v25, %v665_v16 }
 0x153   :  { %vm668_vm6 = vweird.f32 %v2103_v25  ;;  %v2199_v47 = vperm.slane %v839_v15, 0  ;;  %v480_v38 = vadd.f32 %v1861_v52, %v469_v6  ;;  %v675_v21 = vsub.f32 1.5, %v674_v63 }
 0x154   :  { %v2202_v23 = vperm.slane %v839_v15, 1  ;;  %v951_v22 = vperm.slane %v2184_v51, 0  ;;  %v485_v18 = vadd.f32 %v479_v19, %v2074_v27  ;;  %v580_v62 = vmul.f32 %v1927_v46, %v569_v54  ;;  %vm669_vm7 = vmor %vm667_vm2, %vm668_vm6  ;;  %v2441_v27 = vld [vmem:[#allocation21_spill] sm:$0xff] }
 0x155   :  { %v571_v32 = vmul.f32 %v566_v40, %v2440_v48  ;;  %v774_v35 = vsel %vm773_vm4, %v2091_v41, %v770_v57  ;;  %v703_v20 = vadd.f32 %v2094_v37, %v692_v10  ;;  %v581_v33 = vmul.f32 %v1937_v1, %v570_v50  ;;  %v2442_v41 = vld [vmem:[#allocation18_spill] sm:$0xff]  ;;  %v869_v57 = vpop.xlane.xlu1 %868 }
 0x156   :  { %v873_v52 = vmul.f32 %v866_v12, %v1432_v44  ;;  %v760_v42 = vmul.f32 %v755_v56, %v1432_v44  ;;  %v704_v8 = vadd.f32 %v2098_v4, %v693_v26  ;;  %v572_v45 = vmul.f32 %v566_v40, %v2441_v27  ;;  %v2443_v56 = vld [vmem:[#allocation19_spill] sm:$0xff]  ;;  %v2446_v48 = vld [vmem:[#allocation26_spill] sm:$0xff] }
 0x157   :  { %v670_v31 = vsel %vm669_vm7, %v2103_v25, %v666_v34  ;;  %vm678_vm8 = vweird.f32 %v2117_v13  ;;  %v795_v53 = vmul.f32 %v774_v35, %v2442_v41  ;;  %v676_v61 = vmul.f32 %v2117_v13, %v675_v21 }
 0x158   :  { %v2221_v29 = vadd.f32 1e-05, %v873_v52  ;;  %v2223_v24 = vadd.f32 1e-05, %v760_v42  ;;  %v486_v16 = vadd.f32 %v480_v38, %v2087_v58  ;;  %v591_v6 = vadd.f32 %v1973_v28, %v580_v62  ;;  %vm679_vm9 = vmor %vm677_vm5, %vm678_vm8  ;;  %v872_v58 = vpop.xlane.xlu2 %871 }
 0x159   :  { %v582_v63 = vmul.f32 %v1927_v46, %v571_v32  ;;  %v761_v15 = vmul.f32 %v758_v9, %v1432_v44  ;;  %v592_v25 = vadd.f32 %v1975_v43, %v581_v33  ;;  %v796_v19 = vmul.f32 %v774_v35, %v2443_v56 }
 0x15a   :  { %v683_v54 = vmul.f32 %v670_v31, %v2444_v2  ;;  %1076 = vrsqrt.f32 %v2221_v29  ;;  %v583_v10 = vmul.f32 %v1937_v1, %v572_v45  ;;  %v684_v50 = vmul.f32 %v670_v31, %v2445_v3 }
 0x15b   :  { %1078 = vrsqrt.f32 %v2223_v24  ;;  %v2240_v46 = vadd.f32 1e-05, %v761_v15  ;;  %v709_v9 = vadd.f32 %v703_v20, %v2139_v39  ;;  %v710_v40 = vadd.f32 %v704_v8, %v2149_v30 }
 0x15c   :  { %v806_v26 = vmul.f32 %v2101_v5, %v795_v53  ;;  %v680_v1 = vsel %vm679_vm9, %v2117_v13, %v676_v61  ;;  %v597_v34 = vadd.f32 %v591_v6, %v2152_v60  ;;  %v593_v12 = vadd.f32 %v1973_v28, %v582_v63 }
 0x15d   :  { %1080 = vrsqrt.f32 %v2240_v46  ;;  %v874_v11 = vmul.f32 %v869_v57, %v1432_v44  ;;  %v598_v38 = vadd.f32 %v592_v25, %v2170_v0  ;;  %v807_v21 = vmul.f32 %v2115_v7, %v796_v19 }
 0x15e   :  { %v694_v39 = vmul.f32 %v2071_v49, %v683_v54  ;;  %v875_v30 = vmul.f32 %v872_v58, %v1432_v44  ;;  %v594_v62 = vadd.f32 %v1975_v43, %v583_v10  ;;  %v695_v13 = vmul.f32 %v2076_v59, %v684_v50  ;;  %v2447_v44 = vld [vmem:[#allocation27_spill] sm:$0xff] }
 0x15f   :  { %v685_v60 = vmul.f32 %v680_v1, %v2446_v48  ;;  %v2257_v32 = vadd.f32 1e-05, %v874_v11  ;;  %v817_v35 = vadd.f32 %v2121_v17, %v806_v26  ;;  %v952_v20 = vperm.slane %v2184_v51, 2 }
 0x160   :  { %v1077_v28 = vpop.eup %1076  ;;  %v2261_v0 = vperm.slane %v951_v22, 0  ;;  %v2263_v33 = vadd.f32 1e-05, %v875_v30  ;;  %v2265_v42 = vadd.f32 %v593_v12, %v485_v18  ;;  %v686_v43 = vmul.f32 %v680_v1, %v2447_v44 }
 0x161   :  { %v1079_v52 = vpop.eup %1078  ;;  %v880_v8 = vmul.f32 %v1077_v28, %v2221_v29  ;;  %1082 = vrsqrt.f32 %v2257_v32  ;;  %v818_v27 = vadd.f32 %v2143_v14, %v807_v21  ;;  %v705_v45 = vadd.f32 %v2094_v37, %v694_v39  ;;  %v2448_v39 = vld [vmem:[#allocation24_spill] sm:$0xff] }
 0x162   :  { %v776_v31 = vmul.f32 %v1079_v52, %v2223_v24  ;;  %1084 = vrsqrt.f32 %v2263_v33  ;;  %v2274_v41 = vadd.f32 %v594_v62, %v486_v16  ;;  %v706_v18 = vadd.f32 %v2098_v4, %v695_v13  ;;  %v2449_v62 = vld [vmem:[#allocation25_spill] sm:$0xff] }
 0x163   :  { %v1081_v22 = vpop.eup %1080  ;;  %v696_v53 = vmul.f32 %v2071_v49, %v685_v60  ;;  %v881_v61 = vmul.f32 %v1077_v28, %v880_v8  ;;  %v823_v6 = vadd.f32 %v817_v35, %v709_v9  ;;  %v2278_v63 = vperm.slane %v952_v20, 0  ;;  %v2450_v60 = vld [vmem:[#allocation28_spill] sm:$0xff]  ;;  %v2451_v35 = vld [vmem:[#allocation29_spill] sm:$0xff] }
 0x164   :  { %v777_v15 = vmul.f32 %v1079_v52, %v776_v31  ;;  %v786_v25 = vmul.f32 %v1081_v22, %v2240_v46  ;;  %v697_v56 = vmul.f32 %v2076_v59, %v686_v43  ;;  %vm885_vm10 = vweird.f32 %v2221_v29  ;;  %v2452_v31 = vld [vmem:[#allocation30_spill] sm:$0xff] }
 0x165   :  { %v882_v19 = vmul.f32 0.5, %v881_v61  ;;  %vm886_vm11 = vweird.f32 %v1077_v28  ;;  %v824_v2 = vadd.f32 %v818_v27, %v710_v40  ;;  %v2283_v16 = vadd.f32 %v705_v45, %v597_v34 }
 0x166   :  { %v778_v54 = vmul.f32 0.5, %v777_v15  ;;  %v787_v57 = vmul.f32 %v1081_v22, %v786_v25  ;;  %v2285_v49 = vadd.f32 %v706_v18, %v598_v38  ;;  %v707_v3 = vadd.f32 %v2094_v37, %v696_v53  ;;  %vm887_vm12 = vmor %vm885_vm10, %vm886_vm11  ;;  %v2453_v18 = vld [vmem:[#allocation31_spill] sm:$0xff] }
 0x167   :  { %v1083_v10 = vpop.eup %1082  ;;  %v883_v50 = vsub.f32 1.5, %v882_v19  ;;  %v957_v58 = vperm.slane %v2184_v51, 1  ;;  %vm782_vm13 = vweird.f32 %v1079_v52  ;;  %v708_v40 = vadd.f32 %v2098_v4, %v697_v56 }
 0x168   :  { %v1085_v9 = vpop.eup %1084  ;;  %v779_v59 = vsub.f32 1.5, %v778_v54  ;;  %v788_v26 = vmul.f32 0.5, %v787_v57  ;;  %v890_v29 = vmul.f32 %v1083_v10, %v2257_v32  ;;  %vm781_vm14 = vweird.f32 %v2223_v24 }
 0x169   :  { %v884_v1 = vmul.f32 %v1077_v28, %v883_v50  ;;  %v900_v34 = vmul.f32 %v1085_v9, %v2263_v33  ;;  %vm792_vm15 = vweird.f32 %v1081_v22  ;;  %vm783_vm0 = vmor %vm781_vm14, %vm782_vm13  ;;  %vm791_vm1 = vweird.f32 %v2240_v46 }
 0x16a   :  { %v780_v12 = vmul.f32 %v1079_v52, %v779_v59  ;;  %v789_v11 = vsub.f32 1.5, %v788_v26  ;;  %v891_v37 = vmul.f32 %v1083_v10, %v890_v29  ;;  %vm896_vm2 = vweird.f32 %v1083_v10  ;;  %vm793_vm3 = vmor %vm791_vm1, %vm792_vm15 }
 0x16b   :  { %v888_v38 = vsel %vm887_vm12, %v1077_v28, %v884_v1  ;;  %v901_v21 = vmul.f32 %v1085_v9, %v900_v34  ;;  %vm906_vm4 = vweird.f32 %v1085_v9  ;;  %vm895_vm5 = vweird.f32 %v2257_v32 }
 0x16c   :  { %v909_v30 = vmul.f32 %v888_v38, %v2448_v39  ;;  %v910_v13 = vmul.f32 %v888_v38, %v2449_v62  ;;  %v784_v4 = vsel %vm783_vm0, %v1079_v52, %v780_v12  ;;  %v790_v48 = vmul.f32 %v1081_v22, %v789_v11  ;;  %vm897_vm7 = vmor %vm895_vm5, %vm896_vm2  ;;  %v2454_v12 = vld [vmem:[#allocation32_spill] sm:$0xff] }
 0x16d   :  { %v797_v24 = vmul.f32 %v784_v4, %v2450_v60  ;;  %v798_v20 = vmul.f32 %v784_v4, %v2451_v35  ;;  %v892_v44 = vmul.f32 0.5, %v891_v37  ;;  %v902_v43 = vmul.f32 0.5, %v901_v21  ;;  %v2455_v37 = vld [vmem:[#allocation33_spill] sm:$0xff]  ;;  %v2456_v21 = vld [vmem:[#allocation34_spill] sm:$0xff] }
 0x16e   :  { %v920_v28 = vmul.f32 %v2179_v55, %v909_v30  ;;  %v921_v8 = vmul.f32 %v2194_v36, %v910_v13  ;;  %v794_v46 = vsel %vm793_vm3, %v1081_v22, %v790_v48  ;;  %vm905_vm6 = vweird.f32 %v2263_v33  ;;  %v2457_v30 = vld [vmem:[#allocation35_spill] sm:$0xff] }
 0x16f   :  { %v808_v27 = vmul.f32 %v2101_v5, %v797_v24  ;;  %v809_v45 = vmul.f32 %v2115_v7, %v798_v20  ;;  %v799_v52 = vmul.f32 %v794_v46, %v2452_v31  ;;  %v800_v53 = vmul.f32 %v794_v46, %v2453_v18  ;;  %vm907_vm8 = vmor %vm905_vm6, %vm906_vm4 }
 0x170   :  { %v931_v61 = vadd.f32 %v2199_v47, %v920_v28  ;;  %v932_v15 = vadd.f32 %v2202_v23, %v921_v8  ;;  %v893_v25 = vsub.f32 1.5, %v892_v44  ;;  %v903_v56 = vsub.f32 1.5, %v902_v43 }
 0x171   :  { %v810_v19 = vmul.f32 %v2101_v5, %v799_v52  ;;  %v811_v54 = vmul.f32 %v2115_v7, %v800_v53  ;;  %v713_v26 = vadd.f32 %v707_v3, %v2265_v42  ;;  %v819_v29 = vadd.f32 %v2121_v17, %v808_v27 }
 0x172   :  { %v937_v22 = vadd.f32 %v931_v61, %v823_v6  ;;  %v938_v57 = vadd.f32 %v932_v15, %v824_v2  ;;  %v894_v50 = vmul.f32 %v1083_v10, %v893_v25  ;;  %v904_v59 = vmul.f32 %v1085_v9, %v903_v56 }
 0x173   :  { %v820_v1 = vadd.f32 %v2143_v14, %v809_v45  ;;  %v958_v5 = vperm.slane %v2184_v51, 3  ;;  %v821_v6 = vadd.f32 %v2121_v17, %v810_v19  ;;  %v822_v2 = vadd.f32 %v2143_v14, %v811_v54 }
 0x174   :  { %v943_v7 = vmul.f32 0.125, %v937_v22  ;;  %v944_v32 = vmul.f32 0.125, %v938_v57  ;;  %v898_v34 = vsel %vm897_vm7, %v1083_v10, %v894_v50  ;;  %v908_v33 = vsel %vm907_vm8, %v1085_v9, %v904_v59 }
 0x175   :  { %v911_v11 = vmul.f32 %v898_v34, %v2454_v12  ;;  %v912_v42 = vmul.f32 %v898_v34, %v2455_v37  ;;  %v913_v39 = vmul.f32 %v908_v33, %v2456_v21  ;;  %v914_v62 = vmul.f32 %v908_v33, %v2457_v30 }
 0x176   :  { %v966_v3 = vadd.f32 %v2261_v0, %v943_v7  ;;  %v967_v38 = vadd.f32 %v2278_v63, %v944_v32  ;;  %v714_v13 = vadd.f32 %v708_v40, %v2274_v41  ;;  %v961_v10 = vperm.slane %v957_v58, 1 }
 0x177   :  { %v922_v17 = vmul.f32 %v2179_v55, %v911_v11  ;;  %v923_v14 = vmul.f32 %v2194_v36, %v912_v42  ;;  %v962_v9 = vperm.slane %v958_v5, 1  ;;  %vm963_vm9 = vcmask 1043456  }
 0x178   :  { %972 = vst [vmem:[%s2361_s4] sm:$0xff] %v966_v3  ;;  %v924_v4 = vmul.f32 %v2179_v55, %v913_v39  ;;  %v925_v48 = vmul.f32 %v2194_v36, %v914_v62  ;;  %v825_v51 = vadd.f32 %v819_v29, %v2283_v16  ;;  %v826_v41 = vadd.f32 %v820_v1, %v2285_v49 }
 0x179   :  { %973 = vst [vmem:[%s2361_s4 + $0x8] sm:$0xff] %v967_v38  ;;  %v933_v58 = vadd.f32 %v2199_v47, %v922_v17  ;;  %v934_v40 = vadd.f32 %v2202_v23, %v923_v14  ;;  %v827_v60 = vadd.f32 %v821_v6, %v713_v26  ;;  %v828_v24 = vadd.f32 %v822_v2, %v714_v13 }
 0x17a   :  { %v935_v35 = vadd.f32 %v2199_v47, %v924_v4  ;;  %v936_v55 = vadd.f32 %v2202_v23, %v925_v48  ;;  %v964_v44 = vsel %vm963_vm9, %v2261_v0, %v961_v10  ;;  %v965_v43 = vsel %vm963_vm9, %v2278_v63, %v962_v9 }
 0x17b   :  { %v939_v20 = vadd.f32 %v933_v58, %v825_v51  ;;  %v940_v36 = vadd.f32 %v934_v40, %v826_v41 }
 0x17c   :  { %v941_v28 = vadd.f32 %v935_v35, %v827_v60  ;;  %v942_v16 = vadd.f32 %v936_v55, %v828_v24 }
 0x17d   :  { %v945_v8 = vmul.f32 0.125, %v939_v20  ;;  %v946_v49 = vmul.f32 0.125, %v940_v36 }
 0x17e   :  { %v947_v46 = vmul.f32 0.125, %v941_v28  ;;  %v948_v27 = vmul.f32 0.125, %v942_v16 }
 0x17f   :  { %v968_v45 = vadd.f32 %v964_v44, %v945_v8  ;;  %v969_v31 = vadd.f32 %v965_v43, %v946_v49 }
 0x180   :  { %v970_v52 = vadd.f32 %v961_v10, %v947_v46  ;;  %v971_v18 = vadd.f32 %v962_v9, %v948_v27 }
 0x181   :  { %974 = vst [vmem:[%s2361_s4 + $0x10] sm:$0xff] %v968_v45 }
 0x182   :  { %975 = vst [vmem:[%s2361_s4 + $0x18] sm:$0xff] %v969_v31 }
 0x183   :  { %976 = vst [vmem:[%s2361_s4 + $0x20] sm:$0xff] %v970_v52 }
 0x184   :  { %977 = vst [vmem:[%s2361_s4 + $0x28] sm:$0xff] %v971_v18 }
 0x185   :  { %982 = vsyncpa [#allocation3], 1 }

// kernel: forward.7
= control target key start
LH: loop header
LB: loop body
LE: loop exit
PB: predicated region body
PF: predicated region fallthrough
CT: control target
= control target key end

     0   :  { %s1577_s0 = inlined_call_operand.vmem [shape: f32[24,256], index: 0, kind: input, shape index: {}]   ;;  %s1578_s1 = inlined_call_operand.hbm [shape: bf16[8,256,128], index: 1, kind: input, shape index: {}]   ;;  %s1579_s2 = inlined_call_operand.hbm [shape: f32[8,1,128], index: 2, kind: input, shape index: {}]   ;;  %s1580_s3 = inlined_call_operand.hbm [shape: bf16[8,128,128], index: 3, kind: input, shape index: {}]   ;;  %s1581_s4 = inlined_call_operand.hbm [shape: f32[8,1,128], index: 4, kind: input, shape index: {}]   ;;  %s1582_s5 = inlined_call_operand.vmem [shape: f32[24,1024], index: 5, kind: output, shape index: {}]  }
   0x1   :  { %1583 = sst [smem:[#allocation14_spill]] %s1578_s1 }
   0x2   :  { %1584 = sst [smem:[#allocation15_spill]] %s1579_s2 }
   0x3   :  { %10 = vsyncpa [#allocation3], 0 }
   0x4   :  { %12 = vsyncpa [#allocation3 + $0x1], 0 }
   0x5   :  { %13 = vsyncpa [#allocation5], 0 }
   0x6   :  { %15 = vsyncpa [#allocation5 + $0x1], 0 }
   0x7   :  { %16 = vsyncpa [#allocation8], 0 }
   0x8   :  { %18 = vsyncpa [#allocation8 + $0x1], 0  ;;  %s1314_s18 = smov 0   ;;  %s1316_s19 = smov 0  }
   0x9   :  { %s1318_s20 = smov 0   ;;  %s1320_s21 = smov 0  }
   0xa LB: > { %s1333_s22 = sadd.s32 4294967295, %s1279_s21   ;;  %s1336_s23 = sadd.s32 1, %s1279_s21   ;;  %s1279_s21 = sphi %s1320_s21, %s1596_s21   ;;  %s1275_s20 = sphi %s1318_s20, %s1595_s20   ;;  %s1271_s19 = sphi %s1316_s19, %s1594_s19   ;;  %s1267_s18 = sphi %s1314_s18, %s1593_s18  }
   0xb   : > { %s49_s24 = ssub.s32 %s1279_s21, %s1336_s23  ;;  %s52_s25 = sadd.s32 1, %s1275_s20 }
   0xc   : > { %p50_p0 = scmp.eq.s32.totalorder %s49_s24, 0  ;;  %p59_p1 = scmp.ne.s32.totalorder %s1275_s20, %s1271_s19 }
   0xd   : > { %p60_p2 = scmp.eq.s32.totalorder %s1279_s21, 0  ;;  %p65_p3 = scmp.ne.s32.totalorder %s1271_s19, %s1267_s18 }
   0xe   : > { %s1346_s26 = scalar_select %p50_p0, %s1275_s20, %s52_s25  }
   0xf   : > { %p61_p4 = por %p60_p2, %p59_p1  ;;  %p66_p5 = scmp.eq.s32.totalorder %s1333_s22, 0 }
  0x10   : > { %1585 = sst [smem:[#allocation13_spill]] %s1346_s26  ;;  %p167_p6 = scmp.eq.s32.totalorder %s1333_s22, 7 }
  0x11   : > { %p1350_p7 = por %p66_p5, %p65_p3  ;;  %p1065_p8 = scmp.lt.s32.totalorder %s1279_s21, 8 }
  0x12   : > { %p1355_p9 = por %p167_p6, %p59_p1  ;;  %s1360_s29 = sand.u32 1, %s1275_s20  }
  0x13   : > { %p1362_p10 = pnand %p1065_p8, %p61_p4  ;;  %s218_s6 = sand.u32 1, %s1279_s21  }
  0x14   : > { %s1589_s2 = sld [smem:[#allocation15_spill]]  ;;  %s221_s11 = scalar_lea.vmem [#allocation4], %s1360_s29 }
  0x15   : > { %s228_s12 = sshll.u32 %s221_s11, 4  ;;  %s1372_s13 = scalar_lea.sflag [#allocation5], %s218_s6  ;;  %s229_s12 = int_to_ptr.vmem [resolvable:$true] %s228_s12 }
  0x16   : > { %p1121_p12 = pneg %p1362_p10 }
  0x1a   : > { %s224_s9 = scalar_lea.hbm %s1589_s2, %s1279_s21  ;;  %s1124_s18 = scalar_lea.hbm %s1589_s2, 8 }
  0x1b   : > { %s226_s10 = sshll.u32 %s224_s9, 4  ;;  %s227_s10 = int_to_ptr.hbm [resolvable:$true] %s226_s10 }
  0x1c   : > { %s1117_s14 = sshra.s32 %s227_s10, 4  ;;  %s1118_s14 = int_to_ptr.hbm [resolvable:$true] %s1117_s14 }
  0x1d   : > { %s1119_s15 = scalar_lea.hbm %s1118_s14, 1  ;;  %p1125_p1 = scmp.lt.s32.totalorder %s1118_s14, %s1589_s2 }
  0x1e   : > { %p1120_p11 = scmp.ne.s32.totalorder %s1118_s14, %s1119_s15  ;;  %p1126_p2 = scmp.lt.s32.totalorder %s1124_s18, %s1119_s15 }
  0x20   : > { %p1122_p13 = pnand %p1121_p12, %p1120_p11  ;;  %p1127_p3 = por %p1126_p2, %p1125_p1 }
  0x22   : > { %p1123_p0 = pneg %p1122_p13 }
  0x24   : > { %p1128_p4 = pnand %p1127_p3, %p1123_p0 }
  0x26   : > { %1131 = shalt.err (!%p1128_p4)
}
  0x27   : > { %1058 = dma.hbm_to_vmem [thread:$0]  (!%p1362_p10), %s227_s10, 16, %s229_s12, %s1372_s13  }
  0x28   : > { %p907_p5 = scmp.ge.s32.totalorder %s1279_s21, 1  ;;  %p272_p6 = scmp.lt.s32.totalorder %s1279_s21, 9 }
  0x29   : > { %s901_s6 = sshll.u32 %s1360_s29, 7  ;;  %s1009_s8 = sshll.u32 %s1279_s21, 7 }
  0x2a   : > { %p1391_p8 = pnand %p907_p5, %p272_p6  ;;  %s200_s9 = scalar_lea.vmem [#allocation2], %s901_s6 }
  0x2b   : > { %s208_s11 = sshll.u32 %s200_s9, 4  ;;  %s1591_s1 = sld [smem:[#allocation14_spill]]  ;;  %s209_s11 = int_to_ptr.vmem [resolvable:$true] %s208_s11 }
  0x2c   : > { %s197_s18 = scalar_lea.sflag [#allocation3], %s1360_s29 }
  0x31   : > { %s205_s16 = scalar_lea.hbm %s1591_s1, %s1009_s8  ;;  %s1154_s6 = scalar_lea.hbm %s1591_s1, 1024 }
  0x32   : > { %s206_s17 = sshll.u32 %s205_s16, 4  ;;  %s207_s17 = int_to_ptr.hbm [resolvable:$true] %s206_s17 }
  0x33   : > { %s1147_s10 = sshra.s32 %s207_s17, 4  ;;  %s1148_s10 = int_to_ptr.hbm [resolvable:$true] %s1147_s10 }
  0x34   : > { %s1149_s12 = scalar_lea.hbm %s1148_s10, 128  ;;  %p1155_p1 = scmp.lt.s32.totalorder %s1148_s10, %s1591_s1 }
  0x35   : > { %p1150_p11 = scmp.ne.s32.totalorder %s1148_s10, %s1149_s12  ;;  %p1156_p2 = scmp.lt.s32.totalorder %s1154_s6, %s1149_s12 }
  0x37   : > { %p1152_p13 = pnand %p1150_p11, %p1121_p12  ;;  %p1157_p3 = por %p1156_p2, %p1155_p1 }
  0x39   : > { %p1153_p0 = pneg %p1152_p13 }
  0x3b   : > { %p1158_p4 = pnand %p1157_p3, %p1153_p0 }
  0x3d   : > { %1161 = shalt.err (!%p1158_p4)
}
  0x3e   : > { %s1281_s8 = smov 64   ;;  %s1282_s14 = smov 4  }
  0x3f   : > { %1055 = dma.hbm_to_vmem [thread:$0]  (!%p1362_p10), %s207_s17, 2048, %s209_s11, %s197_s18, %s1281_s8, %s1281_s8, %s1282_s14  }
  0x40   : > { %s904_s15 = sshll.u32 %s1360_s29, 6  ;;  %s1010_s16 = sshll.u32 %s1279_s21, 6 }
  0x41   : > { %s244_s26 = scalar_lea.hbm %s1580_s3, %s1010_s16  ;;  %s239_s10 = scalar_lea.vmem [#allocation6], %s904_s15 }
  0x42   : > { %s245_s2 = sshll.u32 %s244_s26, 4  ;;  %s247_s12 = sshll.u32 %s239_s10, 4  ;;  %s246_s2 = int_to_ptr.hbm [resolvable:$true] %s245_s2  ;;  %s248_s12 = int_to_ptr.vmem [resolvable:$true] %s247_s12 }
  0x43   : > { %s1177_s6 = sshra.s32 %s246_s2, 4  ;;  %s1184_s18 = scalar_lea.hbm %s1580_s3, 512  ;;  %s1178_s6 = int_to_ptr.hbm [resolvable:$true] %s1177_s6 }
  0x44   : > { %s1179_s9 = scalar_lea.hbm %s1178_s6, 64  ;;  %p1185_p13 = scmp.lt.s32.totalorder %s1178_s6, %s1580_s3 }
  0x45   : > { %p1180_p5 = scmp.ne.s32.totalorder %s1178_s6, %s1179_s9  ;;  %p1186_p0 = scmp.lt.s32.totalorder %s1184_s18, %s1179_s9 }
  0x47   : > { %p1182_p6 = pnand %p1180_p5, %p1121_p12  ;;  %p1187_p1 = por %p1186_p0, %p1185_p13 }
  0x49   : > { %p1183_p11 = pneg %p1182_p6 }
  0x4b   : > { %p1188_p2 = pnand %p1187_p1, %p1183_p11 }
  0x4d   : > { %1191 = shalt.err (!%p1188_p2)
}
  0x4e   : > { %1061 = dma.hbm_to_vmem [thread:$0]  (!%p1362_p10), %s246_s2, 1024, %s248_s12, %s1372_s13, %s1281_s8, %s1281_s8, %s1282_s14  }
  0x4f   : > { %s263_s16 = scalar_lea.hbm %s1581_s4, %s1279_s21  ;;  %s260_s25 = scalar_lea.vmem [#allocation7], %s1360_s29 }
  0x50   : > { %s267_s10 = sshll.u32 %s260_s25, 4  ;;  %s265_s1 = sshll.u32 %s263_s16, 4  ;;  %s268_s10 = int_to_ptr.vmem [resolvable:$true] %s267_s10  ;;  %s266_s1 = int_to_ptr.hbm [resolvable:$true] %s265_s1 }
  0x51   : > { %s258_s6 = scalar_lea.sflag [#allocation8], %s1360_s29  ;;  %s1207_s9 = sshra.s32 %s266_s1, 4  ;;  %s1208_s9 = int_to_ptr.hbm [resolvable:$true] %s1207_s9 }
  0x52   : > { %s1209_s11 = scalar_lea.hbm %s1208_s9, 1  ;;  %s1214_s8 = scalar_lea.hbm %s1581_s4, 8 }
  0x53   : > { %p1210_p3 = scmp.ne.s32.totalorder %s1208_s9, %s1209_s11  ;;  %p1215_p6 = scmp.lt.s32.totalorder %s1208_s9, %s1581_s4 }
  0x54   : > { %p1216_p11 = scmp.lt.s32.totalorder %s1214_s8, %s1209_s11 }
  0x55   : > { %p1212_p4 = pnand %p1210_p3, %p1121_p12 }
  0x56   : > { %p1217_p13 = por %p1216_p11, %p1215_p6 }
  0x57   : > { %p1213_p5 = pneg %p1212_p4 }
  0x59   : > { %p1218_p0 = pnand %p1217_p13, %p1213_p5 }
  0x5b   : > { %1221 = shalt.err (!%p1218_p0)
}
  0x5c   : > { %1064 = dma.hbm_to_vmem [thread:$0]  (!%p1362_p10), %s266_s1, 16, %s268_s10, %s258_s6  }
  0x5d   : > { %276 = sbr.rel (%p1391_p8) target bundleno = 702 (0x2be), region = 40  ;;  %s1448_s29 = sand.u32 (!%p1391_p8), 1, %s1271_s19  }
  0x5e   : > { %s908_s2 = sshll.u32 (!%p1391_p8), %s1448_s29, 7  ;;  %s279_s12 = scalar_lea.sflag (!%p1391_p8), [#allocation3], %s1448_s29 }
  0x5f   : > { %s1452_s18 = scalar_lea.vmem (!%p1391_p8), [#allocation2], %s908_s2 }
  0x62   : > { %1254 = dma.done.wait (%p1350_p7), %s279_s12, 2048  }
  0x63   : > { %1256 = vsyncadd (%p1350_p7), %s279_s12, 4294965248  ;;  %s288_s30 = sand.u32 1, %s1333_s22   ;;  %s291_s24 = scalar_lea.vmem [#allocation4], %s1448_s29 }
  0x64   : > { %s289_s7 = scalar_lea.sflag [#allocation5], %s288_s30 }
  0x65   : > { %1258 = dma.done.wait (%p1350_p7), %s289_s7, 1040  }
  0x66   : > { %1260 = vsyncadd (%p1350_p7), %s289_s7, 4294966256  ;;  %s909_s26 = sshll.u32 %s1448_s29, 6  ;;  %s308_s16 = scalar_lea.sflag [#allocation8], %s1448_s29 }
  0x67   : > { %s1465_s15 = scalar_lea.vmem [#allocation6], %s909_s26  ;;  %s310_s25 = scalar_lea.vmem [#allocation7], %s1448_s29 }
  0x68   : > { %1262 = dma.done.wait (%p1350_p7), %s308_s16, 16  }
  0x69   : > { %1264 = vsyncadd (%p1350_p7), %s308_s16, 4294967280  ;;  %v350_v0 = vld [vmem:[%s1577_s0] sm:$0xff]  ;;  %v351_v1 = vld [vmem:[%s1577_s0 + $0x8] sm:$0xff]  ;;  %v1283_v9 = vmov 256.0   ;;  %s1043_s12 = smul.u32 24, %s1448_s29  ;;  %s1006_s30 = sshll.u32 (%p1355_p9), %s1333_s22, 3 }
  0x6a   : > { %v356_v2 = vadd.f32 %v351_v1, %v350_v0  ;;  %v354_v3 = vld [vmem:[%s1577_s0 + $0x20] sm:$0xff]  ;;  %v355_v4 = vld [vmem:[%s1577_s0 + $0x28] sm:$0xff]  ;;  %v352_v6 = vld [vmem:[%s1577_s0 + $0x10] sm:$0xff]  ;;  %1103 = vrcp.f32 %v1283_v9 }
  0x6b   : > { %v362_v5 = vadd.f32 %v355_v4, %v354_v3  ;;  %v353_v7 = vld [vmem:[%s1577_s0 + $0x18] sm:$0xff]  ;;  %v1017_v39 = vld [vmem:[%s1452_s18 + $0x30] sm:$0xff]  ;;  %v1016_v41 = vld [vmem:[%s1452_s18 + $0x28] sm:$0xff] }
  0x6c   : > { %357 = vadd.xlane.f32.xlu0 %v356_v2  ;;  %v359_v8 = vadd.f32 %v353_v7, %v352_v6  ;;  %v1018_v37 = vld [vmem:[%s1452_s18 + $0x38] sm:$0xff]  ;;  %v1025_v40 = vld [vmem:[%s1452_s18 + $0x70] sm:$0xff]  ;;  %v1024_v42 = vld [vmem:[%s1452_s18 + $0x68] sm:$0xff] }
  0x6d   : > { %363 = vadd.xlane.f32.xlu1 %v362_v5  ;;  %v1026_v38 = vld [vmem:[%s1452_s18 + $0x78] sm:$0xff]  ;;  %574 = vmatpush.bf16.msra.mxu0 %v1018_v37  ;;  %v1015_v43 = vld [vmem:[%s1452_s18 + $0x20] sm:$0xff]  ;;  %v1013_v47 = vld [vmem:[%s1452_s18 + $0x10] sm:$0xff] }
  0x6e   : > { %592 = vmatpush.bf16.msra.mxu1 %v1026_v38  ;;  %1035 = vmatpush.bf16.msra.mxu3 %v1018_v37  ;;  %v1023_v44 = vld [vmem:[%s1452_s18 + $0x60] sm:$0xff]  ;;  %v1014_v45 = vld [vmem:[%s1452_s18 + $0x18] sm:$0xff]  ;;  %v1021_v48 = vld [vmem:[%s1452_s18 + $0x50] sm:$0xff] }
  0x6f   : > { %v1022_v46 = vld [vmem:[%s1452_s18 + $0x58] sm:$0xff]  ;;  %v1012_v49 = vld [vmem:[%s1452_s18 + $0x8] sm:$0xff]  ;;  %v1011_v51 = vld [vmem:[%s1452_s18] sm:$0xff] }
  0x70   : > { %v1104_v10 = vpop.eup %1103  ;;  %v1020_v50 = vld [vmem:[%s1452_s18 + $0x48] sm:$0xff]  ;;  %v1019_v52 = vld [vmem:[%s1452_s18 + $0x40] sm:$0xff]  ;;  %s349_s18 = scalar_lea.vmem [#allocation9], %s1043_s12 }
  0x71   : > { %v366_v11 = vmul.f32 256.0, %v1104_v10  ;;  %vm370_vm0 = vweird.f32 %v1104_v10  ;;  %575 = vmatpush.bf16.msra.mxu0 %v1017_v39  ;;  %v1101_v37 = vld [vmem:[%s291_s24] ss:$0 sm:$0xff]  ;;  %s736_s24 = scalar_lea.vmem (%p1355_p9), %s1582_s5, %s1006_s30 }
  0x72   : > { %593 = vmatpush.bf16.msra.mxu1 %v1025_v40  ;;  %1036 = vmatpush.bf16.msra.mxu3 %v1017_v39 }
  0x73   : > { %v367_v12 = vsub.f32 1.0, %v366_v11 }
  0x74   : > { %360 = vadd.xlane.f32.xlu0 %v359_v8 }
  0x75   : > { %v368_v13 = vmul.f32 %v1104_v10, %v367_v12  ;;  %576 = vmatpush.bf16.msra.mxu0 %v1016_v41 }
  0x76   : > { %594 = vmatpush.bf16.msra.mxu1 %v1024_v42  ;;  %1037 = vmatpush.bf16.msra.mxu3 %v1016_v41 }
  0x77   : > { %v369_v14 = vadd.f32 %v1104_v10, %v368_v13 }
  0x79   : > { %v1491_v15 = vsel %vm370_vm0, %v1104_v10, %v369_v14  ;;  %577 = vmatpush.bf16.msra.mxu0 %v1015_v43 }
  0x7a   : > { %595 = vmatpush.bf16.msra.mxu1 %v1023_v44  ;;  %1038 = vmatpush.bf16.msra.mxu3 %v1015_v43 }
  0x7d   : > { %578 = vmatpush.bf16.msra.mxu0 %v1014_v45 }
  0x7e   : > { %596 = vmatpush.bf16.msra.mxu1 %v1022_v46  ;;  %1039 = vmatpush.bf16.msra.mxu3 %v1014_v45 }
  0x81   : > { %579 = vmatpush.bf16.msra.mxu0 %v1013_v47 }
  0x82   : > { %597 = vmatpush.bf16.msra.mxu1 %v1021_v48  ;;  %1040 = vmatpush.bf16.msra.mxu3 %v1013_v47 }
  0x85   : > { %580 = vmatpush.bf16.msra.mxu0 %v1012_v49 }
  0x86   : > { %598 = vmatpush.bf16.msra.mxu1 %v1020_v50  ;;  %1041 = vmatpush.bf16.msra.mxu3 %v1012_v49 }
  0x89   : > { %581 = vmatpush.bf16.msra.mxu0 %v1011_v51 }
  0x8a   : > { %599 = vmatpush.bf16.msra.mxu1 %v1019_v52  ;;  %1042 = vmatpush.bf16.msra.mxu3 %v1011_v51 }
  0xdf   : > { %v358_v16 = vpop.xlane.xlu0 %357 }
  0xe0   : > { %v372_v17 = vmul.f32 %v1491_v15, %v358_v16  ;;  %v364_v22 = vpop.xlane.xlu1 %363 }
  0xe1   : > { %v374_v26 = vmul.f32 %v1491_v15, %v364_v22 }
  0xe2   : > { %v1494_v18 = vsub.f32 %v350_v0, %v372_v17  ;;  %v1496_v19 = vsub.f32 %v351_v1, %v372_v17 }
  0xe3   : > { %v1508_v29 = vsub.f32 %v354_v3, %v374_v26  ;;  %v1510_v30 = vsub.f32 %v355_v4, %v374_v26 }
  0xe4   : > { %v381_v20 = vmul.f32 %v1494_v18, %v1494_v18  ;;  %v382_v21 = vmul.f32 %v1496_v19, %v1496_v19 }
  0xe5   : > { %v385_v34 = vmul.f32 %v1508_v29, %v1508_v29  ;;  %v386_v35 = vmul.f32 %v1510_v30, %v1510_v30 }
  0xe6   : > { %v387_v23 = vadd.f32 %v382_v21, %v381_v20 }
  0xe7   : > { %v361_v24 = vpop.xlane.xlu0 %360  ;;  %v393_v36 = vadd.f32 %v386_v35, %v385_v34  ;;  %v1031_v34 = vld [vmem:[%s1465_s15 + $0x20] sm:$0xff]  ;;  %v1030_v35 = vld [vmem:[%s1465_s15 + $0x18] sm:$0xff] }
  0xe8   : > { %v373_v25 = vmul.f32 %v1491_v15, %v361_v24  ;;  %388 = vadd.xlane.f32.xlu1 %v387_v23 }
  0xea   : > { %v1504_v27 = vsub.f32 %v352_v6, %v373_v25  ;;  %v1506_v28 = vsub.f32 %v353_v7, %v373_v25 }
  0xec   : > { %v383_v31 = vmul.f32 %v1504_v27, %v1504_v27  ;;  %v384_v32 = vmul.f32 %v1506_v28, %v1506_v28 }
  0xee   : > { %v390_v33 = vadd.f32 %v384_v32, %v383_v31  ;;  %v1034_v31 = vld [vmem:[%s1465_s15 + $0x38] sm:$0xff]  ;;  %v1033_v32 = vld [vmem:[%s1465_s15 + $0x30] sm:$0xff] }
  0xef   : > { %707 = vmatpush.bf16.msra.mxu2 %v1034_v31 }
  0xf0   : > { %391 = vadd.xlane.f32.xlu2 %v390_v33  ;;  %v1032_v33 = vld [vmem:[%s1465_s15 + $0x28] sm:$0xff] }
  0xf3   : > { %708 = vmatpush.bf16.msra.mxu2 %v1033_v32 }
  0xf7   : > { %709 = vmatpush.bf16.msra.mxu2 %v1032_v33 }
  0xf8   : > { %394 = vadd.xlane.f32.xlu2 %v393_v36  ;;  %v1028_v36 = vld [vmem:[%s1465_s15 + $0x8] sm:$0xff] }
  0xfb   : > { %710 = vmatpush.bf16.msra.mxu2 %v1031_v34 }
  0xff   : > { %711 = vmatpush.bf16.msra.mxu2 %v1030_v35 }
 0x15b   : > { %v389_v53 = vpop.xlane.xlu1 %388 }
 0x15c   : > { %v396_v54 = vmul.f32 %v389_v53, %v1491_v15 }
 0x15e   : > { %v399_v55 = vadd.f32 1e-05, %v396_v54 }
 0x160   : > { %1105 = vrsqrt.f32 %v399_v55  ;;  %vm408_vm2 = vweird.f32 %v399_v55 }
 0x163   : > { %v392_v56 = vpop.xlane.xlu2 %391 }
 0x164   : > { %v397_v57 = vmul.f32 %v392_v56, %v1491_v15 }
 0x166   : > { %v1106_v58 = vpop.eup %1105  ;;  %v400_v59 = vadd.f32 1e-05, %v397_v57 }
 0x167   : > { %v403_v60 = vmul.f32 %v1106_v58, %v399_v55  ;;  %vm409_vm1 = vweird.f32 %v1106_v58 }
 0x168   : > { %1107 = vrsqrt.f32 %v400_v59  ;;  %vm410_vm4 = vmor %vm408_vm2, %vm409_vm1  ;;  %vm418_vm5 = vweird.f32 %v400_v59 }
 0x169   : > { %v404_v61 = vmul.f32 %v1106_v58, %v403_v60 }
 0x16b   : > { %v405_v62 = vmul.f32 0.5, %v404_v61  ;;  %v395_v63 = vpop.xlane.xlu2 %394 }
 0x16c   : > { %v398_v0 = vmul.f32 %v395_v63, %v1491_v15 }
 0x16d   : > { %v406_v3 = vsub.f32 1.5, %v405_v62 }
 0x16e   : > { %v1108_v1 = vpop.eup %1107  ;;  %v401_v2 = vadd.f32 1e-05, %v398_v0 }
 0x16f   : > { %v413_v4 = vmul.f32 %v1108_v1, %v400_v59  ;;  %v407_v7 = vmul.f32 %v1106_v58, %v406_v3  ;;  %vm419_vm3 = vweird.f32 %v1108_v1 }
 0x170   : > { %1109 = vrsqrt.f32 %v401_v2  ;;  %vm420_vm6 = vmor %vm418_vm5, %vm419_vm3  ;;  %vm428_vm7 = vweird.f32 %v401_v2 }
 0x171   : > { %v414_v5 = vmul.f32 %v1108_v1, %v413_v4  ;;  %v411_v11 = vsel %vm410_vm4, %v1106_v58, %v407_v7 }
 0x172   : > { %v432_v15 = vmul.f32 %v411_v11, %v1494_v18  ;;  %v433_v17 = vmul.f32 %v411_v11, %v1496_v19 }
 0x173   : > { %v415_v6 = vmul.f32 0.5, %v414_v5 }
 0x175   : > { %v416_v8 = vsub.f32 1.5, %v415_v6 }
 0x176   : > { %v1110_v9 = vpop.eup %1109 }
 0x177   : > { %v423_v10 = vmul.f32 %v1110_v9, %v401_v2  ;;  %v417_v12 = vmul.f32 %v1108_v1, %v416_v8  ;;  %vm429_vm8 = vweird.f32 %v1110_v9 }
 0x178   : > { %vm430_vm9 = vmor %vm428_vm7, %vm429_vm8 }
 0x179   : > { %v424_v13 = vmul.f32 %v1110_v9, %v423_v10  ;;  %v421_v14 = vsel %vm420_vm6, %v1108_v1, %v417_v12 }
 0x17a   : > { %v434_v16 = vmul.f32 %v421_v14, %v1504_v27  ;;  %v435_v20 = vmul.f32 %v421_v14, %v1506_v28 }
 0x17b   : > { %v425_v21 = vmul.f32 0.5, %v424_v13 }
 0x17c   : > { %v438_v22 = vpack.c.bf16 %v434_v16, %v432_v15  ;;  %v439_v23 = vpack.c.bf16 %v435_v20, %v433_v17  ;;  %v1102_v17 = vld [vmem:[%s310_s25] ss:$0 sm:$0xff] }
 0x17d   : > { %v426_v24 = vsub.f32 1.5, %v425_v21 }
 0x17e   : > { %582 = vmatmul.bf16.vlgmr.msra.gmra.mxu0 %v438_v22  ;;  %600 = vmatmul.bf16.vlgmr.msra.gmra.mxu1 %v439_v23 }
 0x17f   : > { %v427_v25 = vmul.f32 %v1110_v9, %v426_v24 }
 0x181   : > { %v431_v18 = vsel %vm430_vm9, %v1110_v9, %v427_v25 }
 0x182   : > { %v436_v19 = vmul.f32 %v431_v18, %v1508_v29  ;;  %v437_v27 = vmul.f32 %v431_v18, %v1510_v30  ;;  %v1029_v29 = vld [vmem:[%s1465_s15 + $0x10] sm:$0xff]  ;;  %v1027_v30 = vld [vmem:[%s1465_s15] sm:$0xff] }
 0x183   : > { %712 = vmatpush.bf16.msra.mxu2 %v1029_v29 }
 0x184   : > { %v440_v26 = vpack.c.bf16 %v436_v19, %v436_v19  ;;  %v441_v28 = vpack.c.bf16 %v437_v27, %v437_v27 }
 0x186   : > { %587 = vmatmul.bf16.vlgmr.msra.gmra.mxu3 %v440_v26 }
 0x187   : > { %713 = vmatpush.bf16.msra.mxu2 %v1028_v36 }
 0x18b   : > { %714 = vmatpush.bf16.msra.mxu2 %v1027_v30 }
 0x18e   : > { %605 = vmatmul.bf16.gmra.mxu1 %v441_v28 }
 0x1fb   : > { %v583_v38 = vpop.f32.mrf.mxu0  ;;  %v601_v39 = vpop.f32.mrf.mxu1 }
 0x1fc   : > { %v584_v40 = vadd.f32 %v1101_v37, %v583_v38 }
 0x1fe   : > { %v602_v41 = vadd.f32 %v601_v39, %v584_v40 }
 0x200   : > { %v613_v42 = vmul.f32 0.044715, %v602_v41  ;;  %v610_v6 = vmul.f32 0.5, %v602_v41 }
 0x202   : > { %v616_v43 = vmul.f32 %v613_v42, %v602_v41 }
 0x203   : > { %v585_v44 = vpop.f32.mrf.mxu0  ;;  %v603_v45 = vpop.f32.mrf.mxu1 }
 0x204   : > { %v586_v46 = vadd.f32 %v1101_v37, %v585_v44  ;;  %v619_v47 = vmul.f32 %v616_v43, %v602_v41 }
 0x206   : > { %v604_v48 = vadd.f32 %v603_v45, %v586_v46  ;;  %v622_v49 = vadd.f32 %v619_v47, %v602_v41 }
 0x208   : > { %v614_v50 = vmul.f32 0.044715, %v604_v48  ;;  %v625_v54 = vmul.f32 0.7978846, %v622_v49  ;;  %v611_v7 = vmul.f32 0.5, %v604_v48 }
 0x209   : > { %v588_v51 = vpop.f32.mrf.mxu3 }
 0x20a   : > { %v589_v52 = vadd.f32 %v1101_v37, %v588_v51  ;;  %v617_v53 = vmul.f32 %v614_v50, %v604_v48  ;;  %1111 = vtanh.f32 %v625_v54 }
 0x20b   : > { %v606_v55 = vpop.f32.mrf.mxu1 }
 0x20c   : > { %v607_v56 = vadd.f32 %v606_v55, %v589_v52  ;;  %v620_v57 = vmul.f32 %v617_v53, %v604_v48 }
 0x20e   : > { %v623_v58 = vadd.f32 %v620_v57, %v604_v48  ;;  %v615_v59 = vmul.f32 0.044715, %v607_v56  ;;  %v612_v14 = vmul.f32 0.5, %v607_v56 }
 0x210   : > { %v626_v60 = vmul.f32 0.7978846, %v623_v58  ;;  %v618_v61 = vmul.f32 %v615_v59, %v607_v56  ;;  %v1112_v1 = vpop.eup %1111 }
 0x211   : > { %v590_v62 = vpop.f32.mrf.mxu3  ;;  %v631_v3 = vadd.f32 1.0, %v1112_v1 }
 0x212   : > { %1113 = vtanh.f32 %v626_v60  ;;  %v621_v63 = vmul.f32 %v618_v61, %v607_v56 }
 0x213   : > { %v608_v0 = vpop.f32.mrf.mxu1  ;;  %v634_v9 = vmul.f32 %v631_v3, %v610_v6 }
 0x214   : > { %v624_v2 = vadd.f32 %v621_v63, %v607_v56 }
 0x216   : > { %v627_v5 = vmul.f32 0.7978846, %v624_v2 }
 0x218   : > { %v1114_v4 = vpop.eup %1113  ;;  %1115 = vtanh.f32 %v627_v5 }
 0x219   : > { %v632_v8 = vadd.f32 1.0, %v1114_v4 }
 0x21b   : > { %v635_v10 = vmul.f32 %v632_v8, %v611_v7 }
 0x21d   : > { %v637_v11 = vpack.c.bf16 %v635_v10, %v634_v9 }
 0x21e   : > { %v1116_v12 = vpop.eup %1115 }
 0x21f   : > { %715 = vmatmul.bf16.vlgmr.msra.gmra.mxu2 %v637_v11  ;;  %v633_v13 = vadd.f32 1.0, %v1116_v12 }
 0x221   : > { %v636_v15 = vmul.f32 %v633_v13, %v612_v14 }
 0x223   : > { %v638_v16 = vpack.c.bf16 %v636_v15, %v636_v15 }
 0x22f   : > { %720 = vmatmul.bf16.gmra.mxu2 %v638_v16 }
 0x2a2   : > { %v716_v20 = vpop.f32.mrf.mxu2 }
 0x2a3   : > { %v717_v21 = vadd.f32 %v1102_v17, %v716_v20 }
 0x2a5   : > { %725 = vst [vmem:[%s349_s18] sm:$0xff] %v717_v21 }
 0x2aa   : > { %v718_v22 = vpop.f32.mrf.mxu2 }
 0x2ab   : > { %v719_v23 = vadd.f32 %v1102_v17, %v718_v22 }
 0x2ac   : > { %v769_v19 = vld [vmem:[%s349_s18] sm:$0xff] (%p1355_p9) }
 0x2ad   : > { %726 = vst [vmem:[%s349_s18 + $0x8] sm:$0xff] %v719_v23 }
 0x2ae   : > { %770 = vst [vmem:[%s736_s24] sm:$0xff] (%p1355_p9), %v769_v19 }
 0x2b2   : > { %v721_v24 = vpop.f32.mrf.mxu2 }
 0x2b3   : > { %v722_v25 = vadd.f32 %v1102_v17, %v721_v24 }
 0x2b4   : > { %v771_v26 = vld [vmem:[%s349_s18 + $0x8] sm:$0xff] (%p1355_p9) }
 0x2b5   : > { %727 = vst [vmem:[%s349_s18 + $0x10] sm:$0xff] %v722_v25 }
 0x2b6   : > { %734 = sbr.rel (!%p1355_p9) target bundleno = 702 (0x2be), region = 60  ;;  %772 = vst [vmem:[%s736_s24 + $0x40] sm:$0xff] (%p1355_p9), %v771_v26 }
 0x2ba   : > { %v723_v18 = vpop.f32.mrf.mxu2 }
 0x2bc   : > { %v773_v27 = vld [vmem:[%s349_s18 + $0x10] sm:$0xff] }
 0x2bd   : > { %774 = vst [vmem:[%s736_s24 + $0x80] sm:$0xff] %v773_v27 }
 0x2be PF: > { %s1592_s26 = sld [smem:[#allocation13_spill]]  ;;  %p21_p7 = scmp.ge.s32.totalorder %s1336_s23, 10  }
 0x2bf   : > { %s1593_s18 = smov %s1271_s19  ;;  %s1594_s19 = smov %s1275_s20 }
 0x2c0   : > { %s1596_s21 = smov %s1336_s23  ;;  %23 = sbr.rel (!%p21_p7) target bundleno = 10 (0xa), region = 155 }
 0x2c4   : > { %s1595_s20 = smov %s1592_s26 }
 0x2c5   :  { %790 = vsyncpa [#allocation3], 1 }
 0x2c6   :  { %792 = vsyncpa [#allocation3 + $0x1], 1 }
 0x2c7   :  { %793 = vsyncpa [#allocation5], 1 }
 0x2c8   :  { %795 = vsyncpa [#allocation5 + $0x1], 1 }
 0x2c9   :  { %796 = vsyncpa [#allocation8], 1 }
 0x2ca   :  { %798 = vsyncpa [#allocation8 + $0x1], 1 }

// kernel: forward.6
= control target key start
LH: loop header
LB: loop body
LE: loop exit
PB: predicated region body
PF: predicated region fallthrough
CT: control target
= control target key end

     0   :  { %s6263_s0 = inlined_call_operand.vmem [shape: f32[24,256], index: 0, kind: input, shape index: {}]   ;;  %s6264_s1 = inlined_call_operand.vmem [shape: f32[24,1], index: 1, kind: input, shape index: {}]   ;;  %s6265_s2 = inlined_call_operand.vmem [shape: f32[24,1], index: 2, kind: input, shape index: {}]   ;;  %s6266_s3 = inlined_call_operand.hbm [shape: f32[4,1,256], index: 3, kind: input, shape index: {}]   ;;  %s6267_s4 = inlined_call_operand.hbm [shape: f32[4,1,256], index: 4, kind: input, shape index: {}]   ;;  %s6268_s5 = inlined_call_operand.vmem [shape: bf16[4,256,768], index: 5, kind: input, shape index: {}]   ;;  %s6269_s6 = inlined_call_operand.vmem [shape: f32[4,3,384], index: 6, kind: input, shape index: {}]   ;;  %s6270_s7 = inlined_call_operand.hbm [shape: bf16[4,384,384], index: 7, kind: input, shape index: {}]   ;;  %s6271_s8 = inlined_call_operand.hbm [shape: f32[4,1,384], index: 8, kind: input, shape index: {}]   ;;  %s6272_s9 = inlined_call_operand.vmem [shape: bf16[4,384,256], index: 9, kind: input, shape index: {}]   ;;  %s6273_s10 = inlined_call_operand.hbm [shape: f32[4,1,256], index: 10, kind: input, shape index: {}]   ;;  %s6274_s11 = inlined_call_operand.vmem [shape: f32[24,256], index: 11, kind: output, shape index: {}]  }
   0x1   :  { %6283 = sst [smem:[#allocation17_spill]] %s6263_s0 }
   0x2   :  { %6284 = sst [smem:[#allocation18_spill]] %s6264_s1 }
   0x3   :  { %6285 = sst [smem:[#allocation19_spill]] %s6265_s2 }
   0x4   :  { %6286 = sst [smem:[#allocation20_spill]] %s6267_s4 }
   0x5   :  { %6287 = sst [smem:[#allocation21_spill]] %s6269_s6 }
   0x6   :  { %6288 = sst [smem:[#allocation22_spill]] %s6271_s8 }
   0x7   :  { %6289 = sst [smem:[#allocation23_spill]] %s6272_s9 }
   0x8   :  { %6290 = sst [smem:[#allocation24_spill]] %s6274_s11 }
   0x9   :  { %16 = vsyncpa [#allocation4], 0 }
   0xa   :  { %18 = vsyncpa [#allocation4 + $0x1], 0 }
   0xb   :  { %19 = vsyncpa [#allocation6], 0 }
   0xc   :  { %21 = vsyncpa [#allocation6 + $0x1], 0 }
   0xd   :  { %22 = vsyncpa [#allocation9], 0 }
   0xe   :  { %24 = vsyncpa [#allocation9 + $0x1], 0  ;;  %s4845_s17 = smov 0   ;;  %s4847_s18 = smov 0  }
   0xf   :  { %s4849_s19 = smov 0   ;;  %s4851_s20 = smov 0  }
  0x10 LB: > { %6291 = sst [smem:[#allocation14_spill]] %s4775_s19  ;;  %s4864_s21 = sadd.s32 4294967295, %s4779_s20   ;;  %s4779_s20 = sphi %s4851_s20, %s6324_s20   ;;  %s4775_s19 = sphi %s4849_s19, %s6326_s19   ;;  %s4771_s18 = sphi %s4847_s18, %s6328_s18   ;;  %s4767_s17 = sphi %s4845_s17, %s6327_s17  }
  0x11   : > { %s4867_s22 = sadd.s32 1, %s4779_s20   ;;  %s100_s24 = sadd.s32 1, %s4775_s19 }
  0x12   : > { %6292 = sst [smem:[#allocation15_spill]] %s4867_s22  ;;  %s97_s23 = ssub.s32 %s4779_s20, %s4867_s22 }
  0x13   : > { %p98_p0 = scmp.eq.s32.totalorder %s97_s23, 0  ;;  %p107_p1 = scmp.ne.s32.totalorder %s4775_s19, %s4771_s18 }
  0x14   : > { %p108_p2 = scmp.eq.s32.totalorder %s4779_s20, 0  ;;  %p113_p3 = scmp.ne.s32.totalorder %s4771_s18, %s4767_s17 }
  0x15   : > { %s4877_s25 = scalar_select %p98_p0, %s4775_s19, %s100_s24  }
  0x16   : > { %p109_p4 = por %p108_p2, %p107_p1  ;;  %p114_p5 = scmp.eq.s32.totalorder %s4864_s21, 0 }
  0x17   : > { %6293 = sst [smem:[#allocation16_spill]] %s4877_s25  ;;  %p4389_p6 = scmp.lt.s32.totalorder %s4779_s20, 4 }
  0x18   : > { %p4881_p7 = por %p114_p5, %p113_p3  ;;  %s4886_s27 = sand.u32 1, %s4775_s19  }
  0x19   : > { %s4889_s28 = sshll.u32 %s4886_s27, 1  ;;  %s4892_s29 = sshll.u32 %s4779_s20, 1 }
  0x1a   : > { %p4894_p8 = pnand %p4389_p6, %p109_p4  ;;  %s6278_s12 = sand.u32 1, %s4779_s20  }
  0x1b   : > { %s6296_s4 = sld [smem:[#allocation20_spill]]  ;;  %s372_s17 = scalar_lea.vmem [#allocation5], %s4889_s28 }
  0x1c   : > { %s380_s23 = sshll.u32 %s372_s17, 4  ;;  %s4906_s24 = scalar_lea.sflag [#allocation6], %s6278_s12  ;;  %s381_s23 = int_to_ptr.vmem [resolvable:$true] %s380_s23 }
  0x1d   : > { %p4910_p10 = pneg %p4894_p8 }
  0x21   : > { %s376_s15 = scalar_lea.hbm %s6296_s4, %s4892_s29 }
  0x22   : > { %s378_s16 = sshll.u32 %s376_s15, 4  ;;  %s4594_s15 = scalar_lea.hbm %s6296_s4, 8  ;;  %s379_s16 = int_to_ptr.hbm [resolvable:$true] %s378_s16 }
  0x23   : > { %s4587_s25 = sshra.s32 %s379_s16, 4  ;;  %s4588_s25 = int_to_ptr.hbm [resolvable:$true] %s4587_s25 }
  0x24   : > { %s4589_s19 = scalar_lea.hbm %s4588_s25, 2  ;;  %p4595_p13 = scmp.lt.s32.totalorder %s4588_s25, %s6296_s4 }
  0x25   : > { %p4590_p9 = scmp.ne.s32.totalorder %s4588_s25, %s4589_s19  ;;  %p4596_p0 = scmp.lt.s32.totalorder %s4594_s15, %s4589_s19 }
  0x27   : > { %p4592_p11 = pnand %p4910_p10, %p4590_p9  ;;  %p4597_p1 = por %p4596_p0, %p4595_p13 }
  0x29   : > { %p4593_p12 = pneg %p4592_p11 }
  0x2b   : > { %p4598_p2 = pnand %p4597_p1, %p4593_p12 }
  0x2d   : > { %4601 = shalt.err (!%p4598_p2)
}
  0x2e   : > { %4379 = dma.hbm_to_vmem [thread:$0]  (!%p4894_p8), %s379_s16, 32, %s381_s23, %s4906_s24  }
  0x2f   : > { %p3255_p3 = scmp.ge.s32.totalorder %s4779_s20, 1  ;;  %p469_p4 = scmp.lt.s32.totalorder %s4779_s20, 5 }
  0x30   : > { %s4356_s13 = smul.u32 3, %s4886_s27  ;;  %s6299_s8 = sld [smem:[#allocation22_spill]] }
  0x31   : > { %p4928_p5 = pnand %p3255_p3, %p469_p4  ;;  %s4357_s19 = smul.u32 3, %s4779_s20 }
  0x32   : > { %s429_s17 = scalar_lea.vmem [#allocation8], %s4356_s13  ;;  %s6300_s2 = sand.u32 1, %s4779_s20  }
  0x33   : > { %s437_s4 = sshll.u32 %s429_s17, 4  ;;  %s4938_s16 = scalar_lea.sflag [#allocation9], %s6300_s2  ;;  %s438_s4 = int_to_ptr.vmem [resolvable:$true] %s437_s4 }
  0x36   : > { %s433_s15 = scalar_lea.hbm %s6299_s8, %s4357_s19  ;;  %s4624_s25 = scalar_lea.hbm %s6299_s8, 12 }
  0x37   : > { %s435_s11 = sshll.u32 %s433_s15, 4  ;;  %s436_s11 = int_to_ptr.hbm [resolvable:$true] %s435_s11 }
  0x38   : > { %s4617_s23 = sshra.s32 %s436_s11, 4  ;;  %s4618_s23 = int_to_ptr.hbm [resolvable:$true] %s4617_s23 }
  0x39   : > { %s4619_s1 = scalar_lea.hbm %s4618_s23, 3  ;;  %p4625_p12 = scmp.lt.s32.totalorder %s4618_s23, %s6299_s8 }
  0x3a   : > { %p4620_p6 = scmp.ne.s32.totalorder %s4618_s23, %s4619_s1  ;;  %p4626_p13 = scmp.lt.s32.totalorder %s4624_s25, %s4619_s1 }
  0x3c   : > { %p4622_p9 = pnand %p4620_p6, %p4910_p10  ;;  %p4627_p0 = por %p4626_p13, %p4625_p12 }
  0x3e   : > { %p4623_p11 = pneg %p4622_p9 }
  0x40   : > { %p4628_p1 = pnand %p4627_p0, %p4623_p11 }
  0x42   : > { %4631 = shalt.err (!%p4628_p1)
}
  0x43   : > { %4385 = dma.hbm_to_vmem [thread:$0]  (!%p4894_p8), %s436_s11, 48, %s438_s4, %s4938_s16  }
  0x44   : > { %s357_s9 = scalar_lea.hbm %s6266_s3, %s4892_s29  ;;  %s353_s14 = scalar_lea.vmem [#allocation3], %s4889_s28 }
  0x45   : > { %s361_s15 = sshll.u32 %s353_s14, 4  ;;  %s359_s17 = sshll.u32 %s357_s9, 4  ;;  %s362_s15 = int_to_ptr.vmem [resolvable:$true] %s361_s15  ;;  %s360_s17 = int_to_ptr.hbm [resolvable:$true] %s359_s17 }
  0x46   : > { %s4354_s1 = smul.u32 576, %s4886_s27  ;;  %s350_s23 = scalar_lea.sflag [#allocation4], %s4886_s27 }
  0x47   : > { %s4647_s25 = sshra.s32 %s360_s17, 4  ;;  %s4654_s11 = scalar_lea.hbm %s6266_s3, 8  ;;  %s4648_s25 = int_to_ptr.hbm [resolvable:$true] %s4647_s25 }
  0x48   : > { %s4649_s19 = scalar_lea.hbm %s4648_s25, 2  ;;  %p4655_p6 = scmp.lt.s32.totalorder %s4648_s25, %s6266_s3 }
  0x49   : > { %p4650_p2 = scmp.ne.s32.totalorder %s4648_s25, %s4649_s19  ;;  %p4656_p9 = scmp.lt.s32.totalorder %s4654_s11, %s4649_s19 }
  0x4b   : > { %p4652_p3 = pnand %p4650_p2, %p4910_p10  ;;  %p4657_p11 = por %p4656_p9, %p4655_p6 }
  0x4d   : > { %p4653_p4 = pneg %p4652_p3 }
  0x4f   : > { %p4658_p12 = pnand %p4657_p11, %p4653_p4 }
  0x51   : > { %4661 = shalt.err (!%p4658_p12)
}
  0x52   : > { %4376 = dma.hbm_to_vmem [thread:$0]  (!%p4894_p8), %s360_s17, 32, %s362_s15, %s350_s23  }
  0x53   : > { %s4355_s27 = smul.u32 576, %s4779_s20  ;;  %s407_s9 = scalar_lea.vmem [#allocation7], %s4354_s1 }
  0x54   : > { %s415_s14 = sshll.u32 %s407_s9, 4  ;;  %s4684_s20 = scalar_lea.hbm %s6270_s7, 2304  ;;  %s416_s14 = int_to_ptr.vmem [resolvable:$true] %s415_s14 }
  0x55   : > { %s412_s13 = scalar_lea.hbm %s6270_s7, %s4355_s27 }
  0x56   : > { %s413_s4 = sshll.u32 %s412_s13, 4  ;;  %s414_s4 = int_to_ptr.hbm [resolvable:$true] %s413_s4 }
  0x57   : > { %s4677_s25 = sshra.s32 %s414_s4, 4  ;;  %s4678_s25 = int_to_ptr.hbm [resolvable:$true] %s4677_s25 }
  0x58   : > { %s4679_s19 = scalar_lea.hbm %s4678_s25, 576  ;;  %p4685_p2 = scmp.lt.s32.totalorder %s4678_s25, %s6270_s7 }
  0x59   : > { %p4680_p13 = scmp.ne.s32.totalorder %s4678_s25, %s4679_s19  ;;  %p4686_p3 = scmp.lt.s32.totalorder %s4684_s20, %s4679_s19 }
  0x5b   : > { %p4682_p0 = pnand %p4680_p13, %p4910_p10  ;;  %p4687_p4 = por %p4686_p3, %p4685_p2 }
  0x5d   : > { %p4683_p1 = pneg %p4682_p0 }
  0x5f   : > { %p4688_p6 = pnand %p4687_p4, %p4683_p1 }
  0x61   : > { %4691 = shalt.err (!%p4688_p6)
}
  0x62   : > { %s4781_s6 = smov 192   ;;  %s4782_s8 = smov 12  }
  0x63   : > { %4382 = dma.hbm_to_vmem [thread:$0]  (!%p4894_p8), %s414_s4, 9216, %s416_s14, %s4906_s24, %s4781_s6, %s4781_s6, %s4782_s8  }
  0x64   : > { %s460_s0 = scalar_lea.hbm %s6273_s10, %s4892_s29  ;;  %s456_s27 = scalar_lea.vmem [#allocation10], %s4889_s28 }
  0x65   : > { %s464_s9 = sshll.u32 %s456_s27, 4  ;;  %s462_s13 = sshll.u32 %s460_s0, 4  ;;  %s465_s9 = int_to_ptr.vmem [resolvable:$true] %s464_s9  ;;  %s463_s13 = int_to_ptr.hbm [resolvable:$true] %s462_s13 }
  0x66   : > { %s4707_s25 = sshra.s32 %s463_s13, 4  ;;  %s4714_s24 = scalar_lea.hbm %s6273_s10, 8  ;;  %s4708_s25 = int_to_ptr.hbm [resolvable:$true] %s4707_s25 }
  0x67   : > { %s4709_s19 = scalar_lea.hbm %s4708_s25, 2  ;;  %p4715_p13 = scmp.lt.s32.totalorder %s4708_s25, %s6273_s10 }
  0x68   : > { %p4710_p9 = scmp.ne.s32.totalorder %s4708_s25, %s4709_s19  ;;  %p4716_p0 = scmp.lt.s32.totalorder %s4714_s24, %s4709_s19 }
  0x6a   : > { %p4712_p11 = pnand %p4710_p9, %p4910_p10  ;;  %p4717_p1 = por %p4716_p0, %p4715_p13 }
  0x6c   : > { %p4713_p12 = pneg %p4712_p11 }
  0x6e   : > { %p4718_p2 = pnand %p4717_p1, %p4713_p12 }
  0x70   : > { %4721 = shalt.err (!%p4718_p2)
}
  0x71   : > { %4388 = dma.hbm_to_vmem [thread:$0]  (!%p4894_p8), %s463_s13, 32, %s465_s9, %s4938_s16  }
  0x72   : > { %473 = sbr.rel (%p4928_p5) target bundleno = 1056 (0x420), region = 64  ;;  %s475_s22 = sand.u32 (!%p4928_p5), 1, %s4771_s18  }
  0x73   : > { %s5002_s28 = sshll.u32 (!%p4928_p5), %s475_s22, 1  ;;  %s476_s29 = scalar_lea.sflag (!%p4928_p5), [#allocation4], %s475_s22 }
  0x74   : > { %s479_s20 = scalar_lea.vmem (!%p4928_p5), [#allocation3], %s5002_s28 }
  0x77   : > { %4754 = dma.done.wait (%p4881_p7), %s476_s29, 32  }
  0x78   : > { %4756 = vsyncadd (%p4881_p7), %s476_s29, 4294967264  ;;  %s485_s30 = sand.u32 1, %s4864_s21   ;;  %s489_s12 = scalar_lea.vmem [#allocation5], %s5002_s28 }
  0x79   : > { %s486_s16 = scalar_lea.sflag [#allocation6], %s485_s30 }
  0x7a   : > { %4758 = dma.done.wait (%p4881_p7), %s486_s16, 9248  }
  0x7b   : > { %4760 = vsyncadd (%p4881_p7), %s486_s16, 4294958048  ;;  %s4358_s15 = smul.u32 576, %s475_s22  ;;  %s506_s8 = scalar_lea.sflag [#allocation9], %s485_s30 }
  0x7c   : > { %s4359_s17 = smul.u32 3, %s475_s22 }
  0x7d   : > { %s5015_s6 = scalar_lea.vmem [#allocation7], %s4358_s15 }
  0x7e   : > { %s5017_s1 = scalar_lea.vmem [#allocation8], %s4359_s17 }
  0x7f   : > { %4762 = dma.done.wait (%p4881_p7), %s506_s8, 80  }
  0x80   : > { %4764 = vsyncadd (%p4881_p7), %s506_s8, 4294967216  ;;  %p589_p8 = scmp.lt.s32.totalorder %s4864_s21, 3  ;;  %s6301_s24 = sld [smem:[#allocation21_spill]] }
  0x81   : > { %s6302_s22 = sld [smem:[#allocation23_spill]]  ;;  %s519_s30 = scalar_lea.vmem [#allocation10], %s5002_s28 }
  0x82   : > { %s590_s23 = scalar_select %p589_p8, %s4864_s21, 3 }
  0x83   : > { %p3262_p7 = scmp.ne.s32.totalorder %s4864_s21, 0 }
  0x84   : > { %s4360_s0 = smul.u32 768, %s590_s23  ;;  %s6303_s17 = sld [smem:[#allocation17_spill]] (!%p3262_p7) }
  0x85   : > { %s4361_s27 = smul.u32 12, %s590_s23 }
  0x86   : > { %s5028_s25 = scalar_lea.vmem %s6268_s5, %s4360_s0  ;;  %s4362_s19 = smul.u32 384, %s590_s23 }
  0x87   : > { %s5033_s14 = scalar_lea.vmem %s6301_s24, %s4361_s27  ;;  %607 = sbr.rel (%p3262_p7) target bundleno = 147 (0x93), region = 88 }
  0x88   : > { %s5038_s29 = scalar_lea.vmem %s6302_s22, %s4362_s19 }
  0x8a   : > { %s6304_s8 = smov (!%p3262_p7), %s6303_s17 }
  0x8c   : > { %v608_v0 = vld [vmem:[%s6303_s17] sm:$0xff]  ;;  %v609_v1 = vld [vmem:[%s6304_s8 + $0x8] sm:$0xff]  ;;  %v610_v2 = vld [vmem:[%s6304_s8 + $0x10] sm:$0xff] }
  0x8d   : > { %614 = vst [vmem:[#allocation2 + $0x28] sm:$0xff] %v608_v0  ;;  %v611_v3 = vld [vmem:[%s6304_s8 + $0x18] sm:$0xff]  ;;  %v612_v4 = vld [vmem:[%s6304_s8 + $0x20] sm:$0xff]  ;;  %v613_v5 = vld [vmem:[%s6304_s8 + $0x28] sm:$0xff] }
  0x8e   : > { %615 = vst [vmem:[#allocation2 + $0x10] sm:$0xff] %v609_v1 }
  0x8f   : > { %616 = vst [vmem:[#allocation2 + $0x8] sm:$0xff] %v610_v2 }
  0x90   : > { %617 = vst [vmem:[#allocation2] sm:$0xff] %v611_v3 }
  0x91   : > { %618 = vst [vmem:[#allocation2 + $0x18] sm:$0xff] %v612_v4 }
  0x92   : > { %619 = vst [vmem:[#allocation2 + $0x20] sm:$0xff] %v613_v5 }
  0x93 PF: > { %v4783_v15 = vmov 256.0   ;;  %v3433_v43 = vld [vmem:[%s5028_s25 + $0x150] sm:$0xf]  ;;  %v4175_v44 = vld [vmem:[%s5028_s25 + $0x164] sm:$0xf0]  ;;  %s6305_s4 = sld [smem:[#allocation18_spill]] }
  0x94   : > { %v620_v6 = vld [vmem:[#allocation2 + $0x28] sm:$0xff]  ;;  %4429 = vrcp.f32 %v4783_v15  ;;  %v3625_v45 = vld [vmem:[%s5028_s25 + $0x2d0] sm:$0xf]  ;;  %v3434_v46 = vor.u32 %v4175_v44, %v3433_v43  ;;  %v4172_v48 = vld [vmem:[%s5028_s25 + $0x154] sm:$0xf]  ;;  %s6306_s9 = sld [smem:[#allocation19_spill]] }
  0x95   : > { %v621_v7 = vld [vmem:[#allocation2 + $0x10] sm:$0xff]  ;;  %v4223_v47 = vld [vmem:[%s5028_s25 + $0x2e4] sm:$0xf0]  ;;  %v3435_v49 = vld [vmem:[%s5028_s25 + $0x168] sm:$0xf0]  ;;  %p4127_p10 = scmp.ne.s32.totalorder %s4864_s21, 3 }
  0x96   : > { %v878_v8 = vadd.f32 %v621_v7, %v620_v6  ;;  %v622_v12 = vld [vmem:[#allocation2 + $0x8] sm:$0xff]  ;;  %v3626_v50 = vor.u32 %v4223_v47, %v3625_v45  ;;  %v3438_v51 = vor.u32 %v4172_v48, %v3435_v49  ;;  %v4220_v52 = vld [vmem:[%s5028_s25 + $0x2d4] sm:$0xf]  ;;  %1466 = vmatpush.bf16.msra.mxu0 %v3434_v46  ;;  %v3409_v55 = vld [vmem:[%s5028_s25 + $0x120] sm:$0xf] }
  0x97   : > { %v623_v13 = vld [vmem:[#allocation2] sm:$0xff]  ;;  %v3627_v53 = vld [vmem:[%s5028_s25 + $0x2e8] sm:$0xf0]  ;;  %v4169_v56 = vld [vmem:[%s5028_s25 + $0x134] sm:$0xf0] }
  0x98   : > { %v624_v9 = vld [vmem:[#allocation2 + $0x18] sm:$0xff]  ;;  %879 = vadd.xlane.f32.xlu0 %v878_v8  ;;  %v881_v14 = vadd.f32 %v623_v13, %v622_v12  ;;  %v3630_v54 = vor.u32 %v4220_v52, %v3627_v53  ;;  %1484 = vmatpush.bf16.msra.mxu1 %v3626_v50  ;;  %v3601_v57 = vld [vmem:[%s5028_s25 + $0x2a0] sm:$0xf]  ;;  %v3410_v58 = vor.u32 %v4169_v56, %v3409_v55  ;;  %v4166_v60 = vld [vmem:[%s5028_s25 + $0x124] sm:$0xf] }
  0x99   : > { %v625_v10 = vld [vmem:[#allocation2 + $0x20] sm:$0xff]  ;;  %1502 = vmatpush.bf16.msra.mxu2 %v3438_v51  ;;  %v4217_v59 = vld [vmem:[%s5028_s25 + $0x2b4] sm:$0xf0]  ;;  %v3411_v61 = vld [vmem:[%s5028_s25 + $0x138] sm:$0xf0] }
  0x9a   : > { %v884_v11 = vadd.f32 %v625_v10, %v624_v9  ;;  %v4430_v16 = vpop.eup %4429  ;;  %1520 = vmatpush.bf16.msra.mxu3 %v3630_v54  ;;  %v3602_v62 = vor.u32 %v4217_v59, %v3601_v57  ;;  %v3414_v63 = vor.u32 %v4166_v60, %v3411_v61  ;;  %v4214_v0 = vld [vmem:[%s5028_s25 + $0x2a4] sm:$0xf]  ;;  %v3603_v1 = vld [vmem:[%s5028_s25 + $0x2b8] sm:$0xf0]  ;;  %1467 = vmatpush.bf16.msra.mxu0 %v3410_v58  ;;  %v3385_v3 = vld [vmem:[%s5028_s25 + $0xf0] sm:$0xf] }
  0x9b   : > { %v888_v17 = vmul.f32 256.0, %v4430_v16  ;;  %vm892_vm0 = vweird.f32 %v4430_v16  ;;  %v3606_v2 = vor.u32 %v4214_v0, %v3603_v1  ;;  %v4163_v4 = vld [vmem:[%s5028_s25 + $0x104] sm:$0xf0]  ;;  %v3577_v5 = vld [vmem:[%s5028_s25 + $0x270] sm:$0xf] }
  0x9c   : > { %885 = vadd.xlane.f32.xlu1 %v884_v11  ;;  %1485 = vmatpush.bf16.msra.mxu1 %v3602_v62  ;;  %v4160_v8 = vld [vmem:[%s5028_s25 + $0xf4] sm:$0xf]  ;;  %v3361_v15 = vld [vmem:[%s5028_s25 + $0xc0] sm:$0xf]  ;;  %v3531_v44 = vld [vmem:[%s5028_s25 + $0x228] sm:$0xf0] }
  0x9d   : > { %v889_v18 = vsub.f32 1.0, %v888_v17  ;;  %1503 = vmatpush.bf16.msra.mxu2 %v3414_v63  ;;  %v3553_v17 = vld [vmem:[%s5028_s25 + $0x240] sm:$0xf]  ;;  %v4196_v43 = vld [vmem:[%s5028_s25 + $0x214] sm:$0xf] }
  0x9e   : > { %1521 = vmatpush.bf16.msra.mxu3 %v3606_v2  ;;  %v3534_v45 = vor.u32 %v4196_v43, %v3531_v44  ;;  %v3313_v46 = vld [vmem:[%s5028_s25 + $0x60] sm:$0xf]  ;;  %v4145_v47 = vld [vmem:[%s5028_s25 + $0x74] sm:$0xf0]  ;;  %v4142_v51 = vld [vmem:[%s5028_s25 + $0x64] sm:$0xf] }
  0x9f   : > { %v890_v19 = vmul.f32 %v4430_v16, %v889_v18  ;;  %v3505_v48 = vld [vmem:[%s5028_s25 + $0x1e0] sm:$0xf]  ;;  %v3314_v49 = vor.u32 %v4145_v47, %v3313_v46  ;;  %v4193_v50 = vld [vmem:[%s5028_s25 + $0x1f4] sm:$0xf0]  ;;  %v3315_v52 = vld [vmem:[%s5028_s25 + $0x78] sm:$0xf0] }
  0xa0   : > { %882 = vadd.xlane.f32.xlu0 %v881_v14  ;;  %v3506_v53 = vor.u32 %v4193_v50, %v3505_v48  ;;  %v3318_v54 = vor.u32 %v4142_v51, %v3315_v52  ;;  %v4190_v55 = vld [vmem:[%s5028_s25 + $0x1e4] sm:$0xf]  ;;  %v3507_v56 = vld [vmem:[%s5028_s25 + $0x1f8] sm:$0xf0]  ;;  %v3289_v58 = vld [vmem:[%s5028_s25 + $0x30] sm:$0xf] }
  0xa1   : > { %v891_v20 = vadd.f32 %v4430_v16, %v890_v19  ;;  %v4205_v19 = vld [vmem:[%s5028_s25 + $0x254] sm:$0xf0]  ;;  %v3510_v57 = vor.u32 %v4190_v55, %v3507_v56  ;;  %v4139_v59 = vld [vmem:[%s5028_s25 + $0x44] sm:$0xf0]  ;;  %v3481_v60 = vld [vmem:[%s5028_s25 + $0x1b0] sm:$0xf] }
  0xa2   : > { %v3290_v61 = vor.u32 %v4139_v59, %v3289_v58  ;;  %v4187_v62 = vld [vmem:[%s5028_s25 + $0x1c4] sm:$0xf0]  ;;  %v4136_v63 = vld [vmem:[%s5028_s25 + $0x34] sm:$0xf]  ;;  %v3291_v0 = vld [vmem:[%s5028_s25 + $0x48] sm:$0xf0] }
  0xa3   : > { %v5060_v21 = vsel %vm892_vm0, %v4430_v16, %v891_v20  ;;  %v4157_v16 = vld [vmem:[%s5028_s25 + $0xd4] sm:$0xf0]  ;;  %v4154_v20 = vld [vmem:[%s5028_s25 + $0xc4] sm:$0xf]  ;;  %v3482_v1 = vor.u32 %v4187_v62, %v3481_v60  ;;  %v3294_v2 = vor.u32 %v4136_v63, %v3291_v0  ;;  %v4170_v43 = vld [vmem:[%s5028_s25 + $0x13c] sm:$0xf0] }
  0xa4   : > { %v3362_v18 = vor.u32 %v4157_v16, %v3361_v15  ;;  %v3609_v44 = vld [vmem:[%s5028_s25 + $0x2a8] sm:$0xf]  ;;  %v4218_v48 = vld [vmem:[%s5028_s25 + $0x2bc] sm:$0xf0]  ;;  %v3419_v52 = vld [vmem:[%s5028_s25 + $0x140] sm:$0xf0] }
  0xa5   : > { %v3610_v51 = vor.u32 %v4218_v48, %v3609_v44  ;;  %v4164_v58 = vld [vmem:[%s5028_s25 + $0x10c] sm:$0xf0]  ;;  %v4161_v63 = vld [vmem:[%s5028_s25 + $0xfc] sm:$0xf] }
  0xa6   : > { %v4212_v62 = vld [vmem:[%s5028_s25 + $0x28c] sm:$0xf0]  ;;  %v4149_v44 = vld [vmem:[%s5028_s25 + $0x9c] sm:$0xf] }
 0x10b   : > { %v880_v22 = vpop.xlane.xlu0 %879 }
 0x10c   : > { %v894_v23 = vmul.f32 %v5060_v21, %v880_v22  ;;  %v3363_v22 = vld [vmem:[%s5028_s25 + $0xd8] sm:$0xf0] }
 0x10e   : > { %v5063_v24 = vsub.f32 %v620_v6, %v894_v23  ;;  %v5065_v25 = vsub.f32 %v621_v7, %v894_v23  ;;  %v3386_v6 = vor.u32 %v4163_v4, %v3385_v3  ;;  %v4211_v7 = vld [vmem:[%s5028_s25 + $0x284] sm:$0xf0]  ;;  %v3554_v23 = vor.u32 %v4205_v19, %v3553_v17  ;;  %v4184_v3 = vld [vmem:[%s5028_s25 + $0x1b4] sm:$0xf]  ;;  %v3483_v4 = vld [vmem:[%s5028_s25 + $0x1c8] sm:$0xf0] }
 0x10f   : > { %v886_v28 = vpop.xlane.xlu1 %885  ;;  %v3459_v19 = vld [vmem:[%s5028_s25 + $0x198] sm:$0xf0] }
 0x110   : > { %v903_v26 = vmul.f32 %v5063_v24, %v5063_v24  ;;  %v904_v27 = vmul.f32 %v5065_v25, %v5065_v25  ;;  %v896_v32 = vmul.f32 %v5060_v21, %v886_v28  ;;  %1468 = vmatpush.bf16.msra.mxu0 %v3386_v6  ;;  %v3555_v28 = vld [vmem:[%s5028_s25 + $0x258] sm:$0xf0]  ;;  %v3486_v6 = vor.u32 %v4184_v3, %v3483_v4  ;;  %v3587_v3 = vld [vmem:[%s5028_s25 + $0x290] sm:$0xf0]  ;;  %v632_v4 = vld [vmem:[%s479_s20] sm:$0x3] }
 0x112   : > { %v909_v29 = vadd.f32 %v904_v27, %v903_v26  ;;  %v5077_v35 = vsub.f32 %v624_v9, %v896_v32  ;;  %v5079_v36 = vsub.f32 %v625_v10, %v896_v32  ;;  %v3387_v9 = vld [vmem:[%s5028_s25 + $0x108] sm:$0xf0]  ;;  %v3578_v10 = vor.u32 %v4211_v7, %v3577_v5  ;;  %v4202_v27 = vld [vmem:[%s5028_s25 + $0x244] sm:$0xf]  ;;  %v3529_v32 = vld [vmem:[%s5028_s25 + $0x210] sm:$0xf] }
 0x113   : > { %v883_v30 = vpop.xlane.xlu0 %882  ;;  %v3390_v11 = vor.u32 %v4160_v8, %v3387_v9  ;;  %v3366_v26 = vor.u32 %v4154_v20, %v3363_v22  ;;  %v3265_v8 = vld [vmem:[%s5028_s25] sm:$0xf]  ;;  %v4133_v9 = vld [vmem:[%s5028_s25 + $0x14] sm:$0xf0] }
 0x114   : > { %v895_v31 = vmul.f32 %v5060_v21, %v883_v30  ;;  %910 = vadd.xlane.f32.xlu1 %v909_v29  ;;  %v907_v40 = vmul.f32 %v5077_v35, %v5077_v35  ;;  %v908_v41 = vmul.f32 %v5079_v36, %v5079_v36  ;;  %1486 = vmatpush.bf16.msra.mxu1 %v3578_v10  ;;  %v3337_v30 = vld [vmem:[%s5028_s25 + $0x90] sm:$0xf]  ;;  %v3457_v10 = vld [vmem:[%s5028_s25 + $0x180] sm:$0xf]  ;;  %v3441_v22 = vld [vmem:[%s5028_s25 + $0x158] sm:$0xf] }
 0x115   : > { %1504 = vmatpush.bf16.msra.mxu2 %v3390_v11  ;;  %1469 = vmatpush.bf16.msra.mxu0 %v3362_v18  ;;  %v3558_v29 = vor.u32 %v4202_v27, %v3555_v28  ;;  %v3266_v11 = vor.u32 %v4133_v9, %v3265_v8  ;;  %v4178_v18 = vld [vmem:[%s5028_s25 + $0x184] sm:$0xf]  ;;  %v4224_v28 = vld [vmem:[%s5028_s25 + $0x2ec] sm:$0xf0] }
 0x116   : > { %v5073_v33 = vsub.f32 %v622_v12, %v895_v31  ;;  %v5075_v34 = vsub.f32 %v623_v13, %v895_v31  ;;  %v915_v42 = vadd.f32 %v908_v41, %v907_v40  ;;  %v4208_v12 = vld [vmem:[%s5028_s25 + $0x274] sm:$0xf]  ;;  %v3579_v13 = vld [vmem:[%s5028_s25 + $0x288] sm:$0xf0]  ;;  %v4151_v31 = vld [vmem:[%s5028_s25 + $0xa4] sm:$0xf0]  ;;  %v3462_v20 = vor.u32 %v4178_v18, %v3459_v19 }
 0x117   : > { %v3582_v14 = vor.u32 %v4208_v12, %v3579_v13  ;;  %v3339_v40 = vld [vmem:[%s5028_s25 + $0xa8] sm:$0xf0]  ;;  %v4181_v12 = vld [vmem:[%s5028_s25 + $0x194] sm:$0xf0]  ;;  %v4130_v13 = vld [vmem:[%s5028_s25 + $0x4] sm:$0xf] }
 0x118   : > { %v905_v37 = vmul.f32 %v5073_v33, %v5073_v33  ;;  %v906_v38 = vmul.f32 %v5075_v34, %v5075_v34  ;;  %1487 = vmatpush.bf16.msra.mxu1 %v3554_v23  ;;  %v3458_v16 = vor.u32 %v4181_v12, %v3457_v10  ;;  %v4176_v23 = vld [vmem:[%s5028_s25 + $0x16c] sm:$0xf0]  ;;  %v3369_v10 = vld [vmem:[%s5028_s25 + $0xc8] sm:$0xf] }
 0x119   : > { %1522 = vmatpush.bf16.msra.mxu3 %v3582_v14  ;;  %1505 = vmatpush.bf16.msra.mxu2 %v3366_v26  ;;  %v3267_v14 = vld [vmem:[%s5028_s25 + $0x18] sm:$0xf0]  ;;  %v3633_v26 = vld [vmem:[%s5028_s25 + $0x2d8] sm:$0xf]  ;;  %v3442_v27 = vor.u32 %v4176_v23, %v3441_v22  ;;  %v4203_v22 = vld [vmem:[%s5028_s25 + $0x24c] sm:$0xf] }
 0x11a   : > { %v912_v39 = vadd.f32 %v906_v38, %v905_v37  ;;  %v3338_v37 = vor.u32 %v4151_v31, %v3337_v30  ;;  %v4199_v38 = vld [vmem:[%s5028_s25 + $0x224] sm:$0xf0]  ;;  %v3270_v17 = vor.u32 %v4130_v13, %v3267_v14  ;;  %v3443_v30 = vld [vmem:[%s5028_s25 + $0x170] sm:$0xf0] }
 0x11b   : > { %v3530_v41 = vor.u32 %v4199_v38, %v3529_v32  ;;  %v3634_v32 = vor.u32 %v4224_v28, %v3633_v26  ;;  %v4221_v38 = vld [vmem:[%s5028_s25 + $0x2dc] sm:$0xf]  ;;  %v3561_v14 = vld [vmem:[%s5028_s25 + $0x248] sm:$0xf] }
 0x11c   : > { %913 = vadd.xlane.f32.xlu2 %v912_v39  ;;  %v4148_v39 = vld [vmem:[%s5028_s25 + $0x94] sm:$0xf]  ;;  %1470 = vmatpush.bf16.msra.mxu0 %v3338_v37 }
 0x11d   : > { %1523 = vmatpush.bf16.msra.mxu3 %v3558_v29  ;;  %1488 = vmatpush.bf16.msra.mxu1 %v3530_v41  ;;  %v4173_v29 = vld [vmem:[%s5028_s25 + $0x15c] sm:$0xf] }
 0x11e   : > { %v3446_v37 = vor.u32 %v4173_v29, %v3443_v30 }
 0x120   : > { %1471 = vmatpush.bf16.msra.mxu0 %v3314_v49  ;;  %v4167_v49 = vld [vmem:[%s5028_s25 + $0x12c] sm:$0xf] }
 0x121   : > { %1524 = vmatpush.bf16.msra.mxu3 %v3534_v45  ;;  %1489 = vmatpush.bf16.msra.mxu1 %v3506_v53  ;;  %v4215_v53 = vld [vmem:[%s5028_s25 + $0x2ac] sm:$0xf]  ;;  %v3422_v55 = vor.u32 %v4167_v49, %v3419_v52 }
 0x124   : > { %916 = vadd.xlane.f32.xlu2 %v915_v42  ;;  %v3342_v42 = vor.u32 %v4148_v39, %v3339_v40  ;;  %1472 = vmatpush.bf16.msra.mxu0 %v3290_v61  ;;  %v3635_v39 = vld [vmem:[%s5028_s25 + $0x2f0] sm:$0xf0]  ;;  %v3585_v61 = vld [vmem:[%s5028_s25 + $0x278] sm:$0xf] }
 0x125   : > { %1525 = vmatpush.bf16.msra.mxu3 %v3510_v57  ;;  %1490 = vmatpush.bf16.msra.mxu1 %v3482_v1  ;;  %v3638_v41 = vor.u32 %v4221_v38, %v3635_v39  ;;  %v3393_v57 = vld [vmem:[%s5028_s25 + $0xf8] sm:$0xf]  ;;  %v3586_v0 = vor.u32 %v4212_v62, %v3585_v61  ;;  %v3395_v1 = vld [vmem:[%s5028_s25 + $0x110] sm:$0xf0]  ;;  %v4194_v61 = vld [vmem:[%s5028_s25 + $0x1fc] sm:$0xf0] }
 0x126   : > { %1506 = vmatpush.bf16.msra.mxu2 %v3342_v42  ;;  %v3417_v42 = vld [vmem:[%s5028_s25 + $0x128] sm:$0xf]  ;;  %v3394_v60 = vor.u32 %v4164_v58, %v3393_v57  ;;  %v3398_v8 = vor.u32 %v4161_v63, %v3395_v1  ;;  %v3345_v39 = vld [vmem:[%s5028_s25 + $0x98] sm:$0xf]  ;;  %v4784_v57 = vmov 0  }
 0x127   : > { %v3418_v47 = vor.u32 %v4170_v43, %v3417_v42  ;;  %v4200_v43 = vld [vmem:[%s5028_s25 + $0x22c] sm:$0xf0]  ;;  %4427 = vset.pattern.permute.xlu1 %v4784_v57  ;;  %v627_v62 = vld [vmem:[%s6305_s4 + $0x8] sm:$0xff]  ;;  %4426 = vset.pattern.permute.xlu0 %v4784_v57 }
 0x128   : > { %1473 = vmatpush.bf16.msra.mxu0 %v3266_v11  ;;  %v4158_v11 = vld [vmem:[%s5028_s25 + $0xdc] sm:$0xf0]  ;;  %v4191_v1 = vld [vmem:[%s5028_s25 + $0x1ec] sm:$0xf]  ;;  %4428 = vset.pattern.permute.xlu2 %v4784_v57 }
 0x129   : > { %1526 = vmatpush.bf16.msra.mxu3 %v3486_v6  ;;  %1491 = vmatpush.bf16.msra.mxu1 %v3458_v16  ;;  %v3370_v13 = vor.u32 %v4158_v11, %v3369_v10  ;;  %v4206_v16 = vld [vmem:[%s5028_s25 + $0x25c] sm:$0xf0] }
 0x12a   : > { %1507 = vmatpush.bf16.msra.mxu2 %v3318_v54  ;;  %v3611_v54 = vld [vmem:[%s5028_s25 + $0x2c0] sm:$0xf0]  ;;  %v3562_v19 = vor.u32 %v4206_v16, %v3561_v14  ;;  %v4137_v14 = vld [vmem:[%s5028_s25 + $0x3c] sm:$0xf] }
 0x12b   : > { %v3614_v56 = vor.u32 %v4215_v53, %v3611_v54  ;;  %v3321_v54 = vld [vmem:[%s5028_s25 + $0x68] sm:$0xf] }
 0x12c   : > { %1538 = vmatpush.bf16.msrb.mxu0 %v3442_v27  ;;  %v3563_v27 = vld [vmem:[%s5028_s25 + $0x260] sm:$0xf0] }
 0x12d   : > { %1527 = vmatpush.bf16.msra.mxu3 %v3462_v20  ;;  %1556 = vmatpush.bf16.msrb.mxu1 %v3634_v32  ;;  %v3371_v20 = vld [vmem:[%s5028_s25 + $0xe0] sm:$0xf0]  ;;  %v3566_v30 = vor.u32 %v4203_v22, %v3563_v27  ;;  %v5216_v32 = vperm.slane %v632_v4, 1  ;;  %v3491_v22 = vld [vmem:[%s5028_s25 + $0x1d0] sm:$0xf0] }
 0x12e   : > { %1508 = vmatpush.bf16.msra.mxu2 %v3294_v2  ;;  %v4209_v2 = vld [vmem:[%s5028_s25 + $0x27c] sm:$0xf]  ;;  %1710 = vperm.xlu1 %4427, %v627_v62  }
 0x12f   : > { %v3590_v9 = vor.u32 %v4209_v2, %v3587_v3  ;;  %v3515_v2 = vld [vmem:[%s5028_s25 + $0x200] sm:$0xf0] }
 0x130   : > { %1539 = vmatpush.bf16.msrb.mxu0 %v3418_v47  ;;  %v3347_v47 = vld [vmem:[%s5028_s25 + $0xb0] sm:$0xf0] }
 0x131   : > { %1592 = vmatpush.bf16.msrb.mxu3 %v3638_v41  ;;  %1557 = vmatpush.bf16.msrb.mxu1 %v3610_v51  ;;  %v3537_v41 = vld [vmem:[%s5028_s25 + $0x218] sm:$0xf]  ;;  %v3539_v51 = vld [vmem:[%s5028_s25 + $0x230] sm:$0xf0] }
 0x132   : > { %1509 = vmatpush.bf16.msra.mxu2 %v3270_v17  ;;  %v4155_v17 = vld [vmem:[%s5028_s25 + $0xcc] sm:$0xf]  ;;  %v3538_v49 = vor.u32 %v4200_v43, %v3537_v41  ;;  %v3275_v43 = vld [vmem:[%s5028_s25 + $0x20] sm:$0xf0] }
 0x134   : > { %1540 = vmatpush.bf16.msrb.mxu0 %v3394_v60 }
 0x135   : > { %1593 = vmatpush.bf16.msrb.mxu3 %v3614_v56  ;;  %1558 = vmatpush.bf16.msrb.mxu1 %v3586_v0  ;;  %v3513_v56 = vld [vmem:[%s5028_s25 + $0x1e8] sm:$0xf]  ;;  %v3323_v0 = vld [vmem:[%s5028_s25 + $0x80] sm:$0xf0] }
 0x136   : > { %1574 = vmatpush.bf16.msrb.mxu2 %v3446_v37 }
 0x138   : > { %1541 = vmatpush.bf16.msrb.mxu0 %v3370_v13  ;;  %v4188_v13 = vld [vmem:[%s5028_s25 + $0x1cc] sm:$0xf0] }
 0x139   : > { %1594 = vmatpush.bf16.msrb.mxu3 %v3590_v9  ;;  %1559 = vmatpush.bf16.msrb.mxu1 %v3562_v19  ;;  %v3489_v9 = vld [vmem:[%s5028_s25 + $0x1b8] sm:$0xf]  ;;  %v3299_v19 = vld [vmem:[%s5028_s25 + $0x50] sm:$0xf0] }
 0x13a   : > { %1575 = vmatpush.bf16.msrb.mxu2 %v3422_v55  ;;  %v4146_v55 = vld [vmem:[%s5028_s25 + $0x7c] sm:$0xf0] }
 0x13b   : > { %v3322_v60 = vor.u32 %v4146_v55, %v3321_v54 }
 0x13d   : > { %1595 = vmatpush.bf16.msrb.mxu3 %v3566_v30  ;;  %1560 = vmatpush.bf16.msrb.mxu1 %v3538_v49  ;;  %v4134_v30 = vld [vmem:[%s5028_s25 + $0x1c] sm:$0xf0]  ;;  %v4179_v49 = vld [vmem:[%s5028_s25 + $0x18c] sm:$0xf] }
 0x13e   : > { %1576 = vmatpush.bf16.msrb.mxu2 %v3398_v8  ;;  %v4140_v8 = vld [vmem:[%s5028_s25 + $0x4c] sm:$0xf0] }
 0x187   : > { %v911_v5 = vpop.xlane.xlu1 %910 }
 0x188   : > { %v918_v7 = vmul.f32 %v911_v5, %v5060_v21  ;;  %v5194_v5 = vld [vmem:[%s489_s12] sm:$0x3] }
 0x189   : > { %v5219_v37 = vperm.slane %v5194_v5, 0  ;;  %v5258_v10 = vperm.slane %v5194_v5, 1 }
 0x18a   : > { %v5152_v15 = vadd.f32 1e-05, %v918_v7 }
 0x18c   : > { %4431 = vrsqrt.f32 %v5152_v15  ;;  %vm930_vm2 = vweird.f32 %v5152_v15 }
 0x18f   : > { %v914_v31 = vpop.xlane.xlu2 %913 }
 0x190   : > { %v919_v40 = vmul.f32 %v914_v31, %v5060_v21  ;;  %v5214_v31 = vperm.slane %v632_v4, 0 }
 0x192   : > { %v5169_v45 = vpop.eup %4431  ;;  %v5171_v46 = vadd.f32 1e-05, %v919_v40  ;;  %v4152_v40 = vld [vmem:[%s5028_s25 + $0xac] sm:$0xf0] }
 0x193   : > { %v925_v50 = vmul.f32 %v5169_v45, %v5152_v15  ;;  %vm931_vm1 = vweird.f32 %v5169_v45  ;;  %v3346_v42 = vor.u32 %v4152_v40, %v3345_v39  ;;  %v4182_v39 = vld [vmem:[%s5028_s25 + $0x19c] sm:$0xf0] }
 0x194   : > { %4433 = vrsqrt.f32 %v5171_v46  ;;  %vm932_vm3 = vmor %vm930_vm2, %vm931_vm1  ;;  %vm940_vm5 = vweird.f32 %v5171_v46  ;;  %v626_v40 = vld [vmem:[%s6305_s4] sm:$0xff] }
 0x195   : > { %v926_v59 = vmul.f32 %v5169_v45, %v925_v50  ;;  %v3350_v50 = vor.u32 %v4149_v44, %v3347_v47  ;;  %1542 = vmatpush.bf16.msrb.mxu0 %v3346_v42  ;;  %v4131_v42 = vld [vmem:[%s5028_s25 + $0xc] sm:$0xf]  ;;  %1705 = vperm.xlu0 %4426, %v626_v40   ;;  %v3377_v40 = vld [vmem:[%s5028_s25 + $0xd0] sm:$0xf] }
 0x196   : > { %v3278_v57 = vor.u32 %v4131_v42, %v3275_v43 }
 0x197   : > { %v927_v6 = vmul.f32 0.5, %v926_v59  ;;  %v917_v7 = vpop.xlane.xlu2 %916 }
 0x198   : > { %v920_v12 = vmul.f32 %v917_v7, %v5060_v21  ;;  %v3374_v21 = vor.u32 %v4155_v17, %v3371_v20  ;;  %v3297_v7 = vld [vmem:[%s5028_s25 + $0x38] sm:$0xf]  ;;  %v4185_v20 = vld [vmem:[%s5028_s25 + $0x1bc] sm:$0xf] }
 0x199   : > { %v928_v18 = vsub.f32 1.5, %v927_v6  ;;  %1543 = vmatpush.bf16.msrb.mxu0 %v3322_v60  ;;  %v3449_v60 = vld [vmem:[%s5028_s25 + $0x160] sm:$0xf] }
 0x19a   : > { %v5205_v23 = vpop.eup %4433  ;;  %v5207_v26 = vadd.f32 1e-05, %v920_v12  ;;  %1577 = vmatpush.bf16.msrb.mxu2 %v3374_v21  ;;  %v3298_v12 = vor.u32 %v4140_v8, %v3297_v7 }
 0x19b   : > { %v929_v28 = vmul.f32 %v5169_v45, %v928_v18  ;;  %v935_v29 = vmul.f32 %v5205_v23, %v5171_v46  ;;  %vm941_vm4 = vweird.f32 %v5205_v23  ;;  %v3518_v46 = vor.u32 %v4191_v1, %v3515_v2  ;;  %v4222_v2 = vld [vmem:[%s5028_s25 + $0x2e4] sm:$0xf] }
 0x19c   : > { %4435 = vrsqrt.f32 %v5207_v26  ;;  %vm942_vm6 = vmor %vm940_vm5, %vm941_vm4  ;;  %v3490_v18 = vor.u32 %v4188_v13, %v3489_v9  ;;  %vm950_vm7 = vweird.f32 %v5207_v26  ;;  %v4171_v9 = vld [vmem:[%s5028_s25 + $0x144] sm:$0xf0] }
 0x19d   : > { %v933_v15 = vsel %vm932_vm3, %v5169_v45, %v929_v28  ;;  %v936_v38 = vmul.f32 %v5205_v23, %v935_v29  ;;  %v4197_v45 = vld [vmem:[%s5028_s25 + $0x21c] sm:$0xf]  ;;  %v3302_v28 = vor.u32 %v4137_v14, %v3299_v19  ;;  %v3273_v29 = vld [vmem:[%s5028_s25 + $0x8] sm:$0xf]  ;;  %1544 = vmatpush.bf16.msrb.mxu0 %v3298_v12  ;;  %v4168_v14 = vld [vmem:[%s5028_s25 + $0x134] sm:$0xf] }
 0x19e   : > { %v954_v52 = vmul.f32 %v933_v15, %v5063_v24  ;;  %v3542_v53 = vor.u32 %v4197_v45, %v3539_v51  ;;  %v955_v58 = vmul.f32 %v933_v15, %v5065_v25  ;;  %v4143_v24 = vld [vmem:[%s5028_s25 + $0x6c] sm:$0xf]  ;;  %1578 = vmatpush.bf16.msrb.mxu2 %v3350_v50  ;;  %v3514_v25 = vor.u32 %v4194_v61, %v3513_v56  ;;  %v3467_v50 = vld [vmem:[%s5028_s25 + $0x1a0] sm:$0xf0]  ;;  %v628_v45 = vld [vmem:[%s6305_s4 + $0x10] sm:$0xff] }
 0x19f   : > { %v937_v48 = vmul.f32 0.5, %v936_v38  ;;  %v3326_v6 = vor.u32 %v4143_v24, %v3323_v0  ;;  %v3494_v38 = vor.u32 %v4185_v20, %v3491_v22  ;;  %v3274_v41 = vor.u32 %v4134_v30, %v3273_v29  ;;  %1715 = vperm.xlu1 %4427, %v628_v45   ;;  %v4177_v61 = vld [vmem:[%s5028_s25 + $0x174] sm:$0xf0]  ;;  %v3641_v24 = vld [vmem:[%s5028_s25 + $0x2e0] sm:$0xf] }
 0x1a0   : > { %1596 = vmatpush.bf16.msrb.mxu3 %v3542_v53  ;;  %v965_v11 = vmul.f32 %v5214_v31, %v954_v52  ;;  %v966_v16 = vmul.f32 %v5216_v32, %v955_v58  ;;  %1561 = vmatpush.bf16.msrb.mxu1 %v3514_v25  ;;  %v3470_v58 = vor.u32 %v4179_v49, %v3467_v50  ;;  %v4174_v25 = vld [vmem:[%s5028_s25 + $0x164] sm:$0xf]  ;;  %v3451_v0 = vld [vmem:[%s5028_s25 + $0x178] sm:$0xf0]  ;;  %v4165_v20 = vld [vmem:[%s5028_s25 + $0x114] sm:$0xf0] }
 0x1a1   : > { %v938_v59 = vsub.f32 1.5, %v937_v48  ;;  %1545 = vmatpush.bf16.msrb.mxu0 %v3274_v41  ;;  %v3450_v62 = vor.u32 %v4177_v61, %v3449_v60  ;;  %v3454_v1 = vor.u32 %v4174_v25, %v3451_v0  ;;  %v3593_v22 = vld [vmem:[%s5028_s25 + $0x280] sm:$0xf]  ;;  %v4162_v29 = vld [vmem:[%s5028_s25 + $0x104] sm:$0xf] }
 0x1a2   : > { %v5245_v63 = vpop.eup %4435  ;;  %1579 = vmatpush.bf16.msrb.mxu2 %v3326_v6  ;;  %v976_v44 = vadd.f32 %v5219_v37, %v965_v11  ;;  %v977_v51 = vadd.f32 %v5258_v10, %v966_v16  ;;  %v3617_v11 = vld [vmem:[%s5028_s25 + $0x2b0] sm:$0xf]  ;;  %v3403_v30 = vld [vmem:[%s5028_s25 + $0x118] sm:$0xf0]  ;;  %v4207_v41 = vld [vmem:[%s5028_s25 + $0x264] sm:$0xf0] }
 0x1a3   : > { %v939_v3 = vmul.f32 %v5205_v23, %v938_v59  ;;  %v945_v4 = vmul.f32 %v5245_v63, %v5207_v26  ;;  %vm951_vm8 = vweird.f32 %v5245_v63  ;;  %v4225_v26 = vld [vmem:[%s5028_s25 + $0x2f4] sm:$0xf0]  ;;  %v3379_v50 = vld [vmem:[%s5028_s25 + $0xe8] sm:$0xf0]  ;;  %v4204_v45 = vld [vmem:[%s5028_s25 + $0x254] sm:$0xf] }
 0x1a4   : > { %1597 = vmatpush.bf16.msrb.mxu3 %v3518_v46  ;;  %1562 = vmatpush.bf16.msrb.mxu1 %v3490_v18  ;;  %vm952_vm9 = vmor %vm950_vm7, %vm951_vm8  ;;  %v4219_v46 = vld [vmem:[%s5028_s25 + $0x2c4] sm:$0xf0]  ;;  %v3401_v18 = vld [vmem:[%s5028_s25 + $0x100] sm:$0xf] }
 0x1a5   : > { %v943_v17 = vsel %vm942_vm6, %v5205_v23, %v939_v3  ;;  %v946_v5 = vmul.f32 %v5245_v63, %v945_v4  ;;  %v3465_v23 = vld [vmem:[%s5028_s25 + $0x188] sm:$0xf]  ;;  %v3643_v3 = vld [vmem:[%s5028_s25 + $0x2f8] sm:$0xf0]  ;;  %v3425_v4 = vld [vmem:[%s5028_s25 + $0x130] sm:$0xf]  ;;  %v3618_v13 = vor.u32 %v4219_v46, %v3617_v11 }
 0x1a6   : > { %v956_v21 = vmul.f32 %v943_v17, %v5073_v33  ;;  %v957_v27 = vmul.f32 %v943_v17, %v5075_v34  ;;  %v3466_v48 = vor.u32 %v4182_v39, %v3465_v23  ;;  %1580 = vmatpush.bf16.msrb.mxu2 %v3302_v28  ;;  %v3646_v8 = vor.u32 %v4222_v2, %v3643_v3  ;;  %v3619_v17 = vld [vmem:[%s5028_s25 + $0x2c8] sm:$0xf0]  ;;  %v4210_v23 = vld [vmem:[%s5028_s25 + $0x284] sm:$0xf]  ;;  %v3595_v39 = vld [vmem:[%s5028_s25 + $0x298] sm:$0xf0] }
 0x1a7   : > { %v947_v15 = vmul.f32 0.5, %v946_v5  ;;  %v3426_v12 = vor.u32 %v4171_v9, %v3425_v4  ;;  %v629_v5 = vld [vmem:[%s6306_s9] sm:$0xff]  ;;  %v4201_v60 = vld [vmem:[%s5028_s25 + $0x234] sm:$0xf0]  ;;  %v3547_v25 = vld [vmem:[%s5028_s25 + $0x238] sm:$0xf0] }
 0x1a8   : > { %v967_v33 = vmul.f32 %v5214_v31, %v956_v21  ;;  %v968_v34 = vmul.f32 %v5216_v32, %v957_v27  ;;  %1598 = vmatpush.bf16.msrb.mxu3 %v3494_v38  ;;  %1563 = vmatpush.bf16.msrb.mxu1 %v3466_v48  ;;  %v4213_v21 = vld [vmem:[%s5028_s25 + $0x294] sm:$0xf0]  ;;  %v4150_v61 = vld [vmem:[%s5028_s25 + $0xa4] sm:$0xf]  ;;  %v3329_v0 = vld [vmem:[%s5028_s25 + $0x70] sm:$0xf] }
 0x1a9   : > { %v948_v47 = vsub.f32 1.5, %v947_v15  ;;  %1748 = vperm.xlu2 %4428, %v629_v5   ;;  %v3402_v15 = vor.u32 %v4165_v20, %v3401_v18  ;;  %v3594_v38 = vor.u32 %v4213_v21, %v3593_v22  ;;  %v4147_v2 = vld [vmem:[%s5028_s25 + $0x84] sm:$0xf0]  ;;  %v3521_v3 = vld [vmem:[%s5028_s25 + $0x1f0] sm:$0xf] }
 0x1aa   : > { %v978_v52 = vadd.f32 %v5219_v37, %v967_v33  ;;  %v979_v53 = vadd.f32 %v5258_v10, %v968_v34  ;;  %1581 = vmatpush.bf16.msrb.mxu2 %v3278_v57  ;;  %v3598_v33 = vor.u32 %v4210_v23, %v3595_v39  ;;  %v4159_v34 = vld [vmem:[%s5028_s25 + $0xe4] sm:$0xf0]  ;;  %v4153_v57 = vld [vmem:[%s5028_s25 + $0xb4] sm:$0xf0]  ;;  %v3331_v9 = vld [vmem:[%s5028_s25 + $0x88] sm:$0xf0] }
 0x1ab   : > { %v949_v54 = vmul.f32 %v5245_v63, %v948_v47  ;;  %v630_v47 = vld [vmem:[%s6306_s9 + $0x8] sm:$0xff]  ;;  %v3378_v48 = vor.u32 %v4159_v34, %v3377_v40  ;;  %v4192_v11 = vld [vmem:[%s5028_s25 + $0x1f4] sm:$0xf]  ;;  %v4138_v5 = vld [vmem:[%s5028_s25 + $0x44] sm:$0xf] }
 0x1ac   : > { %v5296_v55 = vpack.c.bf16 %v978_v52, %v976_v44  ;;  %v5298_v56 = vpack.c.bf16 %v979_v53, %v977_v51  ;;  %1599 = vmatpush.bf16.msrb.mxu3 %v3470_v58  ;;  %v4156_v44 = vld [vmem:[%s5028_s25 + $0xd4] sm:$0xf]  ;;  %v3571_v51 = vld [vmem:[%s5028_s25 + $0x268] sm:$0xf0]  ;;  %v3545_v58 = vld [vmem:[%s5028_s25 + $0x220] sm:$0xf] }
 0x1ad   : > { %v953_v59 = vsel %vm952_vm9, %v5245_v63, %v949_v54  ;;  %v3642_v63 = vor.u32 %v4225_v26, %v3641_v24  ;;  %v3382_v52 = vor.u32 %v4156_v44, %v3379_v50  ;;  %v3574_v53 = vor.u32 %v4204_v45, %v3571_v51  ;;  %v3353_v54 = vld [vmem:[%s5028_s25 + $0xa0] sm:$0xf]  ;;  %v3355_v24 = vld [vmem:[%s5028_s25 + $0xb8] sm:$0xf0]  ;;  %v4198_v26 = vld [vmem:[%s5028_s25 + $0x224] sm:$0xf] }
 0x1ae   : > { %1474 = vmatmul.bf16.vlgmr.msra.gmra.mxu0 %v5296_v55  ;;  %1492 = vmatmul.bf16.vlgmr.msra.gmra.mxu1 %v5298_v56  ;;  %v958_v6 = vmul.f32 %v953_v59, %v5077_v35  ;;  %v959_v7 = vmul.f32 %v953_v59, %v5079_v36  ;;  %v3427_v35 = vld [vmem:[%s5028_s25 + $0x148] sm:$0xf0]  ;;  %v4216_v36 = vld [vmem:[%s5028_s25 + $0x2b4] sm:$0xf]  ;;  %v3354_v59 = vor.u32 %v4153_v57, %v3353_v54  ;;  %v4195_v4 = vld [vmem:[%s5028_s25 + $0x204] sm:$0xf0] }
 0x1af   : > { %1510 = vmatmul.bf16.vlgmr.msra.gmra.mxu2 %v5296_v55  ;;  %1528 = vmatmul.bf16.vlgmr.msra.gmra.mxu3 %v5298_v56  ;;  %v3430_v16 = vor.u32 %v4168_v14, %v3427_v35  ;;  %v3622_v19 = vor.u32 %v4216_v36, %v3619_v17  ;;  %v3523_v46 = vld [vmem:[%s5028_s25 + $0x208] sm:$0xf0]  ;;  %v4141_v14 = vld [vmem:[%s5028_s25 + $0x54] sm:$0xf0]  ;;  %v3497_v35 = vld [vmem:[%s5028_s25 + $0x1c0] sm:$0xf] }
 0x1b0   : > { %1610 = vmatpush.bf16.msra.mxu0 %v3450_v62  ;;  %1628 = vmatpush.bf16.msra.mxu1 %v3642_v63  ;;  %v969_v27 = vmul.f32 %v5214_v31, %v958_v6  ;;  %v970_v28 = vmul.f32 %v5216_v32, %v959_v7  ;;  %v3406_v31 = vor.u32 %v4162_v29, %v3403_v30  ;;  %v3569_v32 = vld [vmem:[%s5028_s25 + $0x250] sm:$0xf]  ;;  %v4189_v36 = vld [vmem:[%s5028_s25 + $0x1d4] sm:$0xf0]  ;;  %v3307_v18 = vld [vmem:[%s5028_s25 + $0x58] sm:$0xf0] }
 0x1b1   : > { %1646 = vmatpush.bf16.msra.mxu2 %v3454_v1  ;;  %1664 = vmatpush.bf16.msra.mxu3 %v3646_v8  ;;  %v3570_v49 = vor.u32 %v4207_v41, %v3569_v32  ;;  %v3546_v62 = vor.u32 %v4201_v60, %v3545_v58  ;;  %v3358_v63 = vor.u32 %v4150_v61, %v3355_v24  ;;  %v4144_v8 = vld [vmem:[%s5028_s25 + $0x74] sm:$0xf]  ;;  %v4186_v22 = vld [vmem:[%s5028_s25 + $0x1c4] sm:$0xf]  ;;  %v3499_v21 = vld [vmem:[%s5028_s25 + $0x1d8] sm:$0xf0] }
 0x1b2   : > { %v980_v42 = vadd.f32 %v5219_v37, %v969_v27  ;;  %v981_v43 = vadd.f32 %v5258_v10, %v970_v28  ;;  %1753 = vperm.xlu2 %4428, %v630_v47   ;;  %v3550_v1 = vor.u32 %v4198_v26, %v3547_v25  ;;  %v3330_v6 = vor.u32 %v4147_v2, %v3329_v0  ;;  %v3281_v27 = vld [vmem:[%s5028_s25 + $0x10] sm:$0xf]  ;;  %v4135_v28 = vld [vmem:[%s5028_s25 + $0x24] sm:$0xf0]  ;;  %v3475_v34 = vld [vmem:[%s5028_s25 + $0x1a8] sm:$0xf0] }
 0x1b3   : > { %v3522_v7 = vor.u32 %v4195_v4, %v3521_v3  ;;  %v3526_v17 = vor.u32 %v4192_v11, %v3523_v46  ;;  %v3498_v20 = vor.u32 %v4189_v36, %v3497_v35  ;;  %v3473_v29 = vld [vmem:[%s5028_s25 + $0x190] sm:$0xf]  ;;  %v4183_v30 = vld [vmem:[%s5028_s25 + $0x1a4] sm:$0xf0]  ;;  %v3310_v23 = vor.u32 %v4138_v5, %v3307_v18  ;;  %v4247_v47 = vld [vmem:[%s5015_s6 + $0xac] sm:$0xf] }
 0x1b4   : > { %1611 = vmatpush.bf16.msra.mxu0 %v3426_v12  ;;  %1629 = vmatpush.bf16.msra.mxu1 %v3618_v13  ;;  %v5353_v37 = vpack.c.bf16 %v980_v42, %v980_v42  ;;  %v5355_v10 = vpack.c.bf16 %v981_v43, %v981_v43  ;;  %v631_v12 = vld [vmem:[%s6306_s9 + $0x10] sm:$0xff]  ;;  %v3305_v13 = vld [vmem:[%s5028_s25 + $0x40] sm:$0xf]  ;;  %v3282_v39 = vor.u32 %v4135_v28, %v3281_v27  ;;  %v4248_v43 = vld [vmem:[%s5015_s6 + $0xb0] sm:$0xf0] }
 0x1b5   : > { %1647 = vmatpush.bf16.msra.mxu2 %v3430_v16  ;;  %1665 = vmatpush.bf16.msra.mxu3 %v3622_v19  ;;  %v3334_v16 = vor.u32 %v4144_v8, %v3331_v9  ;;  %v3306_v19 = vor.u32 %v4141_v14, %v3305_v13  ;;  %v3474_v40 = vor.u32 %v4183_v30, %v3473_v29  ;;  %v3733_v42 = vld [vmem:[%s5015_s6 + $0xa8] sm:$0xf]  ;;  %v4244_v50 = vld [vmem:[%s5015_s6 + $0x94] sm:$0xf]  ;;  %v3723_v51 = vld [vmem:[%s5015_s6 + $0x9c] sm:$0xf0] }
 0x1b6   : > { %v3734_v44 = vor.u32 %v4248_v43, %v3733_v42  ;;  %v3709_v54 = vld [vmem:[%s5015_s6 + $0x78] sm:$0xf]  ;;  %v4242_v57 = vld [vmem:[%s5015_s6 + $0x80] sm:$0xf0]  ;;  %v4241_v58 = vld [vmem:[%s5015_s6 + $0x7c] sm:$0xf] }
 0x1b7   : > { %v3710_v60 = vor.u32 %v4242_v57, %v3709_v54  ;;  %v3711_v61 = vld [vmem:[%s5015_s6 + $0x84] sm:$0xf0]  ;;  %v3817_v25 = vld [vmem:[%s5015_s6 + $0x150] sm:$0xf]  ;;  %v4269_v0 = vld [vmem:[%s5015_s6 + $0x158] sm:$0xf0] }
 0x1b8   : > { %1612 = vmatpush.bf16.msra.mxu0 %v3402_v15  ;;  %1630 = vmatpush.bf16.msra.mxu1 %v3594_v38  ;;  %v3502_v15 = vor.u32 %v4186_v22, %v3499_v21  ;;  %v4132_v38 = vld [vmem:[%s5028_s25 + $0x14] sm:$0xf]  ;;  %v3714_v26 = vor.u32 %v4241_v58, %v3711_v61  ;;  %v3697_v2 = vld [vmem:[%s5015_s6 + $0x60] sm:$0xf]  ;;  %v4239_v3 = vld [vmem:[%s5015_s6 + $0x68] sm:$0xf0] }
 0x1b9   : > { %1648 = vmatpush.bf16.msra.mxu2 %v3406_v31  ;;  %1666 = vmatpush.bf16.msra.mxu3 %v3598_v33  ;;  %v3283_v31 = vld [vmem:[%s5028_s25 + $0x28] sm:$0xf0]  ;;  %v4180_v33 = vld [vmem:[%s5028_s25 + $0x194] sm:$0xf]  ;;  %v4238_v4 = vld [vmem:[%s5015_s6 + $0x64] sm:$0xf] }
 0x1ba   : > { %1758 = vperm.xlu2 %4428, %v631_v12   ;;  %v3286_v32 = vor.u32 %v4132_v38, %v3283_v31  ;;  %v3478_v41 = vor.u32 %v4180_v33, %v3475_v34  ;;  %v3805_v9 = vld [vmem:[%s5015_s6 + $0x138] sm:$0xf]  ;;  %v4266_v11 = vld [vmem:[%s5015_s6 + $0x140] sm:$0xf0]  ;;  %v5437_v46 = vld [vmem:[%s5033_s14] sm:$0x77]  ;;  %v5455_v38 = vpop.permute.xlu1 %1710 }
 0x1bb   : > { %v3806_v13 = vor.u32 %v4266_v11, %v3805_v9  ;;  %v3685_v14 = vld [vmem:[%s5015_s6 + $0x48] sm:$0xf]  ;;  %v4236_v35 = vld [vmem:[%s5015_s6 + $0x50] sm:$0xf0]  ;;  %v4235_v36 = vld [vmem:[%s5015_s6 + $0x4c] sm:$0xf] }
 0x1bc   : > { %1613 = vmatpush.bf16.msra.mxu0 %v3378_v48  ;;  %1631 = vmatpush.bf16.msra.mxu1 %v3570_v49  ;;  %v4245_v49 = vld [vmem:[%s5015_s6 + $0x98] sm:$0xf0]  ;;  %v3686_v5 = vor.u32 %v4236_v35, %v3685_v14  ;;  %v3687_v18 = vld [vmem:[%s5015_s6 + $0x54] sm:$0xf0]  ;;  %v1791_v22 = vperm.slane %v5437_v46, 5  ;;  %v1773_v31 = vperm.slane %v5437_v46, 4 }
 0x1bd   : > { %1649 = vmatpush.bf16.msra.mxu2 %v3382_v52  ;;  %1667 = vmatpush.bf16.msra.mxu3 %v3574_v53  ;;  %v4272_v52 = vld [vmem:[%s5015_s6 + $0x170] sm:$0xf0]  ;;  %v3690_v28 = vor.u32 %v4235_v36, %v3687_v18  ;;  %v3793_v29 = vld [vmem:[%s5015_s6 + $0x120] sm:$0xf]  ;;  %v4263_v30 = vld [vmem:[%s5015_s6 + $0x128] sm:$0xf0] }
 0x1be   : > { %1479 = vmatmul.bf16.gmra.mxu0 %v5353_v37  ;;  %1497 = vmatmul.bf16.gmra.mxu1 %v5355_v10  ;;  %v1817_v33 = vperm.slane %v5437_v46, 2  ;;  %v3673_v34 = vld [vmem:[%s5015_s6 + $0x30] sm:$0xf]  ;;  %v1818_v42 = vperm.slane %v5437_v46, 6  ;;  %v3661_v58 = vld [vmem:[%s5015_s6 + $0x18] sm:$0xf] }
 0x1bf   : > { %1515 = vmatmul.bf16.gmra.mxu2 %v5353_v37  ;;  %1533 = vmatmul.bf16.gmra.mxu3 %v5355_v10  ;;  %v4257_v9 = vld [vmem:[%s5015_s6 + $0xf8] sm:$0xf0] }
 0x1c0   : > { %1614 = vmatpush.bf16.msra.mxu0 %v3354_v59  ;;  %1632 = vmatpush.bf16.msra.mxu1 %v3546_v62 }
 0x1c1   : > { %1650 = vmatpush.bf16.msra.mxu2 %v3358_v63  ;;  %1668 = vmatpush.bf16.msra.mxu3 %v3550_v1  ;;  %v1691_v63 = vlaneseq  ;;  %v3818_v1 = vor.u32 %v4269_v0, %v3817_v25  ;;  %v4229_v0 = vld [vmem:[%s5015_s6 + $0x1c] sm:$0xf] }
 0x1c3   : > { %v5439_v12 = vshrl.u32 %v1691_v63, 7  ;;  %v3663_v63 = vld [vmem:[%s5015_s6 + $0x24] sm:$0xf0] }
 0x1c4   : > { %1615 = vmatpush.bf16.msra.mxu0 %v3330_v6  ;;  %1633 = vmatpush.bf16.msra.mxu1 %v3522_v7  ;;  %v3699_v6 = vld [vmem:[%s5015_s6 + $0x6c] sm:$0xf0]  ;;  %v3698_v7 = vor.u32 %v4239_v3, %v3697_v2 }
 0x1c5   : > { %1651 = vmatpush.bf16.msra.mxu2 %v3334_v16  ;;  %1669 = vmatpush.bf16.msra.mxu3 %v3526_v17  ;;  %v3702_v8 = vor.u32 %v4238_v4, %v3699_v6  ;;  %vm1693_vm10 = vcmp.lt.s32.totalorder %v5439_v12, 1  ;;  %vm1736_vm11 = vcmp.lt.s32.totalorder %v5439_v12, 7  ;;  %v5502_v6 = vperm.slane %v1818_v42, 2  ;;  %v4280_v12 = vld [vmem:[%s5015_s6 + $0x1b4] sm:$0xf] }
 0x1c8   : > { %1616 = vmatpush.bf16.msra.mxu0 %v3306_v19  ;;  %1634 = vmatpush.bf16.msra.mxu1 %v3498_v20  ;;  %v1790_v20 = vperm.slane %v5437_v46, 1 }
 0x1c9   : > { %1652 = vmatpush.bf16.msra.mxu2 %v3310_v23  ;;  %1670 = vmatpush.bf16.msra.mxu3 %v3502_v15  ;;  %v1772_v15 = vperm.slane %v5437_v46, 0 }
 0x1cb   : > { %v5482_v54 = vperm.slane %v1772_v15, 0 }
 0x1cc   : > { %1617 = vmatpush.bf16.msra.mxu0 %v3282_v39  ;;  %1635 = vmatpush.bf16.msra.mxu1 %v3474_v40  ;;  %v3794_v39 = vor.u32 %v4263_v30, %v3793_v29 }
 0x1cd   : > { %1653 = vmatpush.bf16.msra.mxu2 %v3286_v32  ;;  %1671 = vmatpush.bf16.msra.mxu3 %v3478_v41  ;;  %v4233_v32 = vld [vmem:[%s5015_s6 + $0x38] sm:$0xf0] }
 0x1ce   : > { %1546 = vmatmul.bf16.vlgmr.msrb.gmra.mxu0 %v5296_v55  ;;  %1564 = vmatmul.bf16.vlgmr.msrb.gmra.mxu1 %v5298_v56  ;;  %v3674_v43 = vor.u32 %v4233_v32, %v3673_v34  ;;  %v3757_v34 = vld [vmem:[%s5015_s6 + $0xd8] sm:$0xf]  ;;  %v4254_v32 = vld [vmem:[%s5015_s6 + $0xe0] sm:$0xf0] }
 0x1cf   : > { %1582 = vmatmul.bf16.vlgmr.msrb.gmra.mxu2 %v5296_v55  ;;  %1600 = vmatmul.bf16.vlgmr.msrb.gmra.mxu3 %v5298_v56 }
 0x1d0   : > { %2295 = vmatpush.bf16.msrb.mxu0 %v3734_v44  ;;  %v4232_v44 = vld [vmem:[%s5015_s6 + $0x34] sm:$0xf] }
 0x1de   : > { %1551 = vmatmul.bf16.gmra.mxu0 %v5353_v37  ;;  %1569 = vmatmul.bf16.gmra.mxu1 %v5355_v10 }
 0x1df   : > { %1587 = vmatmul.bf16.gmra.mxu2 %v5353_v37  ;;  %1605 = vmatmul.bf16.gmra.mxu3 %v5355_v10 }
 0x1ee   : > { %1618 = vmatmul.bf16.vlgmr.msra.gmra.mxu0 %v5296_v55  ;;  %1636 = vmatmul.bf16.vlgmr.msra.gmra.mxu1 %v5298_v56 }
 0x1ef   : > { %1654 = vmatmul.bf16.vlgmr.msra.gmra.mxu2 %v5296_v55  ;;  %1672 = vmatmul.bf16.vlgmr.msra.gmra.mxu3 %v5298_v56  ;;  %v3735_v55 = vld [vmem:[%s5015_s6 + $0xb4] sm:$0xf0]  ;;  %v3721_v56 = vld [vmem:[%s5015_s6 + $0x90] sm:$0xf] }
 0x1f0   : > { %v3738_v48 = vor.u32 %v4247_v47, %v3735_v55  ;;  %v3722_v45 = vor.u32 %v4245_v49, %v3721_v56  ;;  %v3675_v47 = vld [vmem:[%s5015_s6 + $0x3c] sm:$0xf0]  ;;  %v3781_v49 = vld [vmem:[%s5015_s6 + $0x108] sm:$0xf] }
 0x1f1   : > { %v3678_v56 = vor.u32 %v4232_v44, %v3675_v47 }
 0x1f2   : > { %2349 = vmatpush.bf16.msrb.mxu3 %v3738_v48  ;;  %2296 = vmatpush.bf16.msrb.mxu0 %v3722_v45  ;;  %v5471_v45 = vperm.slane %v1790_v20, 1 }
 0x1f6   : > { %2297 = vmatpush.bf16.msrb.mxu0 %v3710_v60  ;;  %v4230_v60 = vld [vmem:[%s5015_s6 + $0x20] sm:$0xf0] }
 0x1f7   : > { %v3662_v25 = vor.u32 %v4230_v60, %v3661_v58  ;;  %v3758_v60 = vor.u32 %v4254_v32, %v3757_v34 }
 0x1fa   : > { %2298 = vmatpush.bf16.msrb.mxu0 %v3698_v7 }
 0x1fe   : > { %1623 = vmatmul.bf16.gmra.mxu0 %v5353_v37  ;;  %1641 = vmatmul.bf16.gmra.mxu1 %v5355_v10 }
 0x1ff   : > { %1659 = vmatmul.bf16.gmra.mxu2 %v5353_v37  ;;  %1677 = vmatmul.bf16.gmra.mxu3 %v5355_v10  ;;  %v3726_v37 = vor.u32 %v4244_v50, %v3723_v51  ;;  %v3829_v10 = vld [vmem:[%s5015_s6 + $0x168] sm:$0xf]  ;;  %v4260_v50 = vld [vmem:[%s5015_s6 + $0x110] sm:$0xf0]  ;;  %v5473_v51 = vperm.slane %v1791_v22, 1 }
 0x200   : > { %v3830_v53 = vor.u32 %v4272_v52, %v3829_v10  ;;  %2299 = vmatpush.bf16.msrb.mxu0 %v3686_v5  ;;  %v3782_v10 = vor.u32 %v4260_v50, %v3781_v49 }
 0x201   : > { %2350 = vmatpush.bf16.msrb.mxu3 %v3726_v37  ;;  %v5477_v37 = vld [vmem:[%s5033_s14 + $0x8] sm:$0x7] }
 0x202   : > { %2313 = vmatpush.bf16.msrb.mxu1 %v3830_v53  ;;  %v1792_v7 = vperm.slane %v5477_v37, 1 }
 0x203   : > { %v5425_v59 = vpop.permute.xlu2 %1748 }
 0x204   : > { %2300 = vmatpush.bf16.msrb.mxu0 %v3674_v43 }
 0x205   : > { %2351 = vmatpush.bf16.msrb.mxu3 %v3714_v26  ;;  %v5494_v26 = vperm.slane %v1817_v33, 2 }
 0x206   : > { %2314 = vmatpush.bf16.msrb.mxu1 %v3818_v1 }
 0x208   : > { %2301 = vmatpush.bf16.msrb.mxu0 %v3662_v25 }
 0x209   : > { %2352 = vmatpush.bf16.msrb.mxu3 %v3702_v8  ;;  %v3769_v8 = vld [vmem:[%s5015_s6 + $0xf0] sm:$0xf] }
 0x20a   : > { %2315 = vmatpush.bf16.msrb.mxu1 %v3806_v13  ;;  %v3666_v13 = vor.u32 %v4229_v0, %v3663_v63  ;;  %v3770_v14 = vor.u32 %v4257_v9, %v3769_v8 }
 0x20c   : > { %v5457_v40 = vpop.permute.xlu2 %1753 }
 0x20d   : > { %2353 = vmatpush.bf16.msrb.mxu3 %v3690_v28  ;;  %v3651_v28 = vld [vmem:[%s5015_s6 + $0xc] sm:$0xf0] }
 0x20e   : > { %2316 = vmatpush.bf16.msrb.mxu1 %v3794_v39 }
 0x211   : > { %2354 = vmatpush.bf16.msrb.mxu3 %v3678_v56  ;;  %v5514_v22 = vpop.permute.xlu1 %1715 }
 0x212   : > { %2317 = vmatpush.bf16.msrb.mxu1 %v3782_v10 }
 0x214   : > { %v5521_v15 = vpop.permute.xlu2 %1758 }
 0x215   : > { %2355 = vmatpush.bf16.msrb.mxu3 %v3666_v13 }
 0x216   : > { %2318 = vmatpush.bf16.msrb.mxu1 %v3770_v14 }
 0x21a   : > { %2319 = vmatpush.bf16.msrb.mxu1 %v3758_v60 }
 0x22b   : > { %v1475_v24 = vpop.f32.mrf.mxu0  ;;  %v1493_v62 = vpop.f32.mrf.mxu1 }
 0x22c   : > { %v5445_v19 = vadd.f32 %v1493_v62, %v1475_v24  ;;  %v5492_v62 = vperm.slane %v1773_v31, 0  ;;  %v5524_v31 = vpop.permute.xlu0 %1705 }
 0x22e   : > { %v1682_v55 = vrot.slane %v5445_v19, 7  ;;  %v1727_v52 = vrot.slane %v5445_v19, 1  ;;  %v1799_v5 = vmul.f32 %v5471_v45, %v5445_v19 }
 0x232   : > { %v1511_v16 = vpop.f32.mrf.mxu2  ;;  %v1529_v17 = vpop.f32.mrf.mxu3 }
 0x233   : > { %v1477_v21 = vpop.f32.mrf.mxu0  ;;  %v1495_v27 = vpop.f32.mrf.mxu1  ;;  %v5480_v53 = vadd.f32 %v1529_v17, %v1511_v16  ;;  %v3649_v16 = vld [vmem:[%s5015_s6] sm:$0xf]  ;;  %v4227_v17 = vld [vmem:[%s5015_s6 + $0x8] sm:$0xf0] }
 0x234   : > { %v5451_v23 = vadd.f32 %v1495_v27, %v1477_v21  ;;  %v3650_v21 = vor.u32 %v4227_v17, %v3649_v16  ;;  %v4226_v27 = vld [vmem:[%s5015_s6 + $0x4] sm:$0xf] }
 0x235   : > { %v1683_v35 = vrot.slane %v5480_v53, 7  ;;  %v1728_v29 = vrot.slane %v5480_v53, 1  ;;  %v3654_v33 = vor.u32 %v4226_v27, %v3651_v28 }
 0x236   : > { %v1685_v41 = vrot.slane %v5451_v23, 7  ;;  %v1730_v48 = vrot.slane %v5451_v23, 1  ;;  %v1802_v30 = vmul.f32 %v5471_v45, %v5451_v23  ;;  %2302 = vmatpush.bf16.msrb.mxu0 %v3650_v21 }
 0x237   : > { %2356 = vmatpush.bf16.msrb.mxu3 %v3654_v33  ;;  %v4273_v33 = vld [vmem:[%s5015_s6 + $0x178] sm:$0xf0] }
 0x238   : > { %v1697_v57 = vsel %vm1693_vm10, %v1682_v55, %v1685_v41  ;;  %v1740_v1 = vsel %vm1736_vm11, %v1727_v52, %v1730_v48 }
 0x239   : > { %v1721_v11 = vmul.f32 %v5455_v38, %v1697_v57  ;;  %v1761_v39 = vmul.f32 %v5425_v59, %v1740_v1 }
 0x23a   : > { %v1513_v61 = vpop.f32.mrf.mxu2  ;;  %v1531_v24 = vpop.f32.mrf.mxu3 }
 0x23b   : > { %v5500_v2 = vadd.f32 %v1531_v24, %v1513_v61  ;;  %v1480_v3 = vpop.f32.mrf.mxu0  ;;  %v1498_v4 = vpop.f32.mrf.mxu1  ;;  %v1784_v42 = vmul.f32 %v5482_v54, %v1721_v11  ;;  %v1826_v11 = vmul.f32 %v5494_v26, %v1761_v39  ;;  %v3837_v39 = vld [vmem:[%s5015_s6 + $0x170] sm:$0xf] }
 0x23c   : > { %v1499_v46 = vadd.f32 %v1498_v4, %v1480_v3  ;;  %v1819_v3 = vperm.slane %v5477_v37, 2 }
 0x23d   : > { %v1686_v36 = vrot.slane %v5500_v2, 7  ;;  %v1811_v0 = vadd.f32 %v1802_v30, %v1784_v42  ;;  %v1803_v21 = vmul.f32 %v5473_v51, %v5500_v2  ;;  %v3831_v30 = vld [vmem:[%s5015_s6 + $0x174] sm:$0xf0] }
 0x23e   : > { %v1688_v18 = vrot.slane %v1499_v46, 7  ;;  %v1733_v20 = vrot.slane %v1499_v46, 1  ;;  %v1805_v61 = vmul.f32 %v5471_v45, %v1499_v46 }
 0x23f   : > { %v1698_v43 = vsel %vm1693_vm10, %v1683_v35, %v1686_v36 }
 0x240   : > { %v1737_v44 = vsel %vm1736_vm11, %v1730_v48, %v1733_v20  ;;  %v1694_v47 = vsel %vm1693_vm10, %v1685_v41, %v1688_v18  ;;  %v1743_v50 = vsel %vm1736_vm11, %v1733_v20, %v1727_v52  ;;  %v1700_v10 = vsel %vm1693_vm10, %v1688_v18, %v1682_v55  ;;  %v4296_v18 = vld [vmem:[%s5015_s6 + $0x230] sm:$0xf0]  ;;  %v4271_v20 = vld [vmem:[%s5015_s6 + $0x16c] sm:$0xf] }
 0x241   : > { %v1764_v56 = vmul.f32 %v5457_v40, %v1737_v44  ;;  %v1724_v49 = vmul.f32 %v5514_v22, %v1694_v47  ;;  %v1731_v48 = vrot.slane %v5500_v2, 1  ;;  %v1767_v23 = vmul.f32 %v5521_v15, %v1743_v50  ;;  %v4251_v44 = vld [vmem:[%s5015_s6 + $0xc8] sm:$0xf0] }
 0x242   : > { %v1718_v57 = vmul.f32 %v5524_v31, %v1700_v10  ;;  %v1516_v41 = vpop.f32.mrf.mxu2  ;;  %v1534_v58 = vpop.f32.mrf.mxu3  ;;  %v1722_v63 = vmul.f32 %v5455_v38, %v1698_v43  ;;  %v3745_v43 = vld [vmem:[%s5015_s6 + $0xc0] sm:$0xf] }
 0x243   : > { %v1787_v52 = vmul.f32 %v5482_v54, %v1724_v49  ;;  %v1829_v19 = vmul.f32 %v5494_v26, %v1764_v56  ;;  %v5553_v24 = vadd.f32 %v1534_v58, %v1516_v41  ;;  %v1482_v55 = vpop.f32.mrf.mxu0  ;;  %v1500_v25 = vpop.f32.mrf.mxu1  ;;  %v1832_v4 = vmul.f32 %v5494_v26, %v1767_v23 }
 0x244   : > { %v1781_v1 = vmul.f32 %v5482_v54, %v1718_v57  ;;  %v1774_v54 = vperm.slane %v5477_v37, 0  ;;  %v1741_v14 = vsel %vm1736_vm11, %v1728_v29, %v1731_v48 }
 0x245   : > { %v1814_v45 = vadd.f32 %v1805_v61, %v1787_v52  ;;  %v1689_v8 = vrot.slane %v5553_v24, 7  ;;  %v1734_v9 = vrot.slane %v5553_v24, 1  ;;  %v5563_v13 = vadd.f32 %v1829_v19, %v1811_v0  ;;  %v4268_v52 = vld [vmem:[%s5015_s6 + $0x154] sm:$0xf] }
 0x246   : > { %v1808_v46 = vadd.f32 %v1799_v5, %v1781_v1  ;;  %v3925_v5 = vld [vmem:[%s5015_s6 + $0x228] sm:$0xf]  ;;  %v1762_v47 = vmul.f32 %v5425_v59, %v1741_v14  ;;  %v3834_v61 = vor.u32 %v4271_v20, %v3831_v30  ;;  %v1800_v19 = vmul.f32 %v5473_v51, %v5480_v53  ;;  %v3825_v1 = vld [vmem:[%s5015_s6 + $0x158] sm:$0xf]  ;;  %v4295_v14 = vld [vmem:[%s5015_s6 + $0x22c] sm:$0xf] }
 0x247   : > { %v5569_v16 = vadd.f32 %v1832_v4, %v1814_v45  ;;  %v1701_v17 = vsel %vm1693_vm10, %v1689_v8, %v1683_v35  ;;  %v1738_v26 = vsel %vm1736_vm11, %v1731_v48, %v1734_v9  ;;  %v1785_v35 = vmul.f32 %v5492_v62, %v1722_v63  ;;  %v3913_v48 = vld [vmem:[%s5015_s6 + $0x210] sm:$0xf]  ;;  %v3819_v63 = vld [vmem:[%s5015_s6 + $0x15c] sm:$0xf0]  ;;  %v3901_v20 = vld [vmem:[%s5015_s6 + $0x1f8] sm:$0xf] }
 0x248   : > { %v5580_v27 = vadd.f32 %v1826_v11, %v1808_v46  ;;  %v1719_v28 = vmul.f32 %v5524_v31, %v1701_v17  ;;  %v1695_v34 = vsel %vm1693_vm10, %v1686_v36, %v1689_v8  ;;  %v1765_v32 = vmul.f32 %v5457_v40, %v1738_v26  ;;  %v4293_v36 = vld [vmem:[%s5015_s6 + $0x218] sm:$0xf0]  ;;  %2367 = vmatpush.bf16.msra.mxu0 %v3834_v61  ;;  %v4270_v46 = vld [vmem:[%s5015_s6 + $0x160] sm:$0xf0]  ;;  %v3927_v17 = vld [vmem:[%s5015_s6 + $0x234] sm:$0xf0] }
 0x249   : > { %v1847_v42 = vsub.f32 0.0, %v5563_v13  ;;  %v1850_v56 = vsub.f32 0.0, %v5569_v16  ;;  %v3926_v2 = vor.u32 %v4296_v18, %v3925_v5  ;;  %v1725_v25 = vmul.f32 %v5514_v22, %v1695_v34  ;;  %v4265_v53 = vld [vmem:[%s5015_s6 + $0x13c] sm:$0xf]  ;;  %v4267_v34 = vld [vmem:[%s5015_s6 + $0x148] sm:$0xf0] }
 0x24a   : > { %v1844_v49 = vsub.f32 0.0, %v5580_v27  ;;  %v1518_v50 = vpop.f32.mrf.mxu2  ;;  %v1536_v10 = vpop.f32.mrf.mxu3  ;;  %v1782_v23 = vmul.f32 %v5492_v62, %v1719_v28  ;;  %v1830_v57 = vmul.f32 %v5502_v6, %v1765_v32  ;;  %v3838_v0 = vor.u32 %v4273_v33, %v3837_v39  ;;  %v3807_v33 = vld [vmem:[%s5015_s6 + $0x144] sm:$0xf0]  ;;  %v4292_v32 = vld [vmem:[%s5015_s6 + $0x214] sm:$0xf] }
 0x24b   : > { %v1547_v41 = vpop.f32.mrf.mxu0  ;;  %v1565_v58 = vpop.f32.mrf.mxu1  ;;  %v1859_v60 = vmul.f32 1.442695, %v1847_v42  ;;  %2331 = vmatpush.bf16.msrb.mxu2 %v3926_v2  ;;  %v1812_v45 = vadd.f32 %v1803_v21, %v1785_v35  ;;  %v3746_v4 = vor.u32 %v4251_v44, %v3745_v43  ;;  %v3914_v8 = vor.u32 %v4293_v36, %v3913_v48  ;;  %v4290_v21 = vld [vmem:[%s5015_s6 + $0x200] sm:$0xf0]  ;;  %v3915_v42 = vld [vmem:[%s5015_s6 + $0x21c] sm:$0xf0] }
 0x24c   : > { %v1853_v55 = vmul.f32 1.442695, %v1844_v49  ;;  %v3822_v11 = vor.u32 %v4268_v52, %v3819_v63  ;;  %v1744_v26 = vsel %vm1736_vm11, %v1734_v9, %v1728_v29  ;;  %v1806_v5 = vmul.f32 %v5473_v51, %v5553_v24  ;;  %2421 = vmatpush.bf16.msra.mxu3 %v3838_v0  ;;  %v3813_v29 = vld [vmem:[%s5015_s6 + $0x140] sm:$0xf] }
 0x24d   : > { %v1827_v18 = vmul.f32 %v5502_v6, %v1762_v47  ;;  %2320 = vmatpush.bf16.msrb.mxu1 %v3746_v4  ;;  %v3826_v28 = vor.u32 %v4270_v46, %v3825_v1  ;;  %v1809_v30 = vadd.f32 %v1800_v19, %v1782_v23  ;;  %v5620_v39 = vadd.f32 %v1830_v57, %v1812_v45  ;;  %v3889_v36 = vld [vmem:[%s5015_s6 + $0x1e0] sm:$0xf]  ;;  %v4287_v23 = vld [vmem:[%s5015_s6 + $0x1e8] sm:$0xf0]  ;;  %v3795_v19 = vld [vmem:[%s5015_s6 + $0x12c] sm:$0xf0] }
 0x24e   : > { %4437 = vpow2.f32 %v1853_v55  ;;  %v1788_v9 = vmul.f32 %v5492_v62, %v1725_v25  ;;  %v5626_v51 = vadd.f32 %v1565_v58, %v1547_v41  ;;  %v3930_v24 = vor.u32 %v4295_v14, %v3927_v17  ;;  %2368 = vmatpush.bf16.msra.mxu0 %v3822_v11  ;;  %v3801_v45 = vld [vmem:[%s5015_s6 + $0x128] sm:$0xf]  ;;  %v4264_v4 = vld [vmem:[%s5015_s6 + $0x130] sm:$0xf0]  ;;  %v4289_v14 = vld [vmem:[%s5015_s6 + $0x1fc] sm:$0xf] }
 0x24f   : > { %4439 = vpow2.f32 %v1859_v60  ;;  %2332 = vmatpush.bf16.msrb.mxu2 %v3914_v8  ;;  %v3902_v35 = vor.u32 %v4290_v21, %v3901_v20  ;;  %v1865_v43 = vmul.f32 1.442695, %v1850_v56  ;;  %v5631_v44 = vadd.f32 %v1827_v18, %v1809_v30  ;;  %v4262_v56 = vld [vmem:[%s5015_s6 + $0x124] sm:$0xf]  ;;  %v3877_v18 = vld [vmem:[%s5015_s6 + $0x1c8] sm:$0xf] }
 0x250   : > { %v1848_v47 = vsub.f32 0.0, %v5620_v39  ;;  %v3810_v49 = vor.u32 %v4265_v53, %v3807_v33  ;;  %v1768_v62 = vmul.f32 %v5521_v15, %v1744_v26  ;;  %2422 = vmatpush.bf16.msra.mxu3 %v3826_v28  ;;  %v3814_v2 = vor.u32 %v4267_v34, %v3813_v29  ;;  %v4284_v53 = vld [vmem:[%s5015_s6 + $0x1d0] sm:$0xf0] }
 0x251   : > { %2385 = vmatpush.bf16.msra.mxu1 %v3930_v24  ;;  %v3918_v48 = vor.u32 %v4292_v32, %v3915_v42  ;;  %v5642_v60 = vperm.slane %v1774_v54, 0  ;;  %v1845_v61 = vsub.f32 0.0, %v5631_v44  ;;  %v1815_v25 = vadd.f32 %v1806_v5, %v1788_v9  ;;  %v3903_v5 = vld [vmem:[%s5015_s6 + $0x204] sm:$0xf0]  ;;  %v3783_v9 = vld [vmem:[%s5015_s6 + $0x114] sm:$0xf0] }
 0x252   : > { %v1583_v50 = vpop.f32.mrf.mxu2  ;;  %v1601_v10 = vpop.f32.mrf.mxu3  ;;  %v1861_v52 = vmul.f32 1.442695, %v1848_v47  ;;  %v1684_v0 = vrot.slane %v5626_v51, 7  ;;  %v3890_v1 = vor.u32 %v4287_v23, %v3889_v36  ;;  %2369 = vmatpush.bf16.msra.mxu0 %v3810_v49  ;;  %v3798_v46 = vor.u32 %v4262_v56, %v3795_v19  ;;  %v3789_v24 = vld [vmem:[%s5015_s6 + $0x110] sm:$0xf] }
 0x253   : > { %v5638_v57 = vadd.f32 %v1601_v10, %v1583_v50  ;;  %v1549_v41 = vpop.f32.mrf.mxu0  ;;  %v1567_v58 = vpop.f32.mrf.mxu1  ;;  %2333 = vmatpush.bf16.msrb.mxu2 %v3902_v35  ;;  %v1855_v11 = vmul.f32 1.442695, %v1845_v61  ;;  %v1729_v17 = vrot.slane %v5626_v51, 1  ;;  %v1833_v20 = vmul.f32 %v5502_v6, %v1768_v62  ;;  %v4259_v6 = vld [vmem:[%s5015_s6 + $0x10c] sm:$0xf] }
 0x254   : > { %v4438_v55 = vpop.eup %4437  ;;  %v5647_v63 = vadd.f32 %v1567_v58, %v1549_v41  ;;  %4441 = vpow2.f32 %v1861_v52  ;;  %2423 = vmatpush.bf16.msra.mxu3 %v3814_v2  ;;  %v3802_v30 = vor.u32 %v4264_v4, %v3801_v45  ;;  %v3906_v29 = vor.u32 %v4289_v14, %v3903_v5  ;;  %v4261_v42 = vld [vmem:[%s5015_s6 + $0x118] sm:$0xf0]  ;;  %v4286_v47 = vld [vmem:[%s5015_s6 + $0x1e4] sm:$0xf]  ;;  %v3891_v49 = vld [vmem:[%s5015_s6 + $0x1ec] sm:$0xf0] }
 0x255   : > { %v4440_v8 = vpop.eup %4439  ;;  %v1871_v54 = vadd.f32 1.0, %v4438_v55  ;;  %2386 = vmatpush.bf16.msra.mxu1 %v3918_v48  ;;  %v5668_v35 = vadd.f32 %v1833_v20, %v1815_v25  ;;  %v3878_v32 = vor.u32 %v4284_v53, %v3877_v18  ;;  %v3786_v10 = vor.u32 %v4259_v6, %v3783_v9  ;;  %v3865_v48 = vld [vmem:[%s5015_s6 + $0x1b0] sm:$0xf]  ;;  %v4281_v36 = vld [vmem:[%s5015_s6 + $0x1b8] sm:$0xf0] }
 0x256   : > { %v1687_v26 = vrot.slane %v5647_v63, 7  ;;  %v1732_v21 = vrot.slane %v5647_v63, 1  ;;  %v1874_v28 = vadd.f32 1.0, %v4440_v8  ;;  %2370 = vmatpush.bf16.msra.mxu0 %v3798_v46  ;;  %v3790_v2 = vor.u32 %v4261_v42, %v3789_v24  ;;  %v3771_v61 = vld [vmem:[%s5015_s6 + $0xfc] sm:$0xf0] }
 0x257   : > { %4443 = vrcp.f32 %v1871_v54  ;;  %2334 = vmatpush.bf16.msrb.mxu2 %v3890_v1  ;;  %v3777_v52 = vld [vmem:[%s5015_s6 + $0xf8] sm:$0xf]  ;;  %v4258_v19 = vld [vmem:[%s5015_s6 + $0x100] sm:$0xf0]  ;;  %v3866_v25 = vor.u32 %v4281_v36, %v3865_v48  ;;  %v1851_v1 = vsub.f32 0.0, %v5668_v35  ;;  %v5687_v4 = vperm.slane %v1792_v7, 1 }
 0x258   : > { %v1699_v33 = vsel %vm1693_vm10, %v1684_v0, %v1687_v26  ;;  %4445 = vpow2.f32 %v1855_v11  ;;  %2424 = vmatpush.bf16.msra.mxu3 %v3802_v30  ;;  %v1742_v8 = vsel %vm1736_vm11, %v1729_v17, %v1732_v21  ;;  %v3778_v20 = vor.u32 %v4258_v19, %v3777_v52 }
 0x259   : > { %4447 = vpow2.f32 %v1865_v43  ;;  %v1723_v34 = vmul.f32 %v5455_v38, %v1699_v33  ;;  %2387 = vmatpush.bf16.msra.mxu1 %v3906_v29  ;;  %v3894_v43 = vor.u32 %v4286_v47, %v3891_v49  ;;  %v4256_v38 = vld [vmem:[%s5015_s6 + $0xf4] sm:$0xf]  ;;  %v1804_v30 = vmul.f32 %v5687_v4, %v5647_v63 }
 0x25a   : > { %v1585_v62 = vpop.f32.mrf.mxu2  ;;  %v1603_v50 = vpop.f32.mrf.mxu3  ;;  %4449 = vrcp.f32 %v1874_v28  ;;  %2371 = vmatpush.bf16.msra.mxu0 %v3786_v10  ;;  %v3774_v11 = vor.u32 %v4256_v38, %v3771_v61  ;;  %v5698_v28 = vperm.slane %v1819_v3, 2  ;;  %v1867_v37 = vmul.f32 1.442695, %v1851_v1  ;;  %v4283_v10 = vld [vmem:[%s5015_s6 + $0x1cc] sm:$0xf] }
 0x25b   : > { %v4442_v23 = vpop.eup %4441  ;;  %v5677_v56 = vadd.f32 %v1603_v50, %v1585_v62  ;;  %v1552_v41 = vpop.f32.mrf.mxu0  ;;  %2335 = vmatpush.bf16.msrb.mxu2 %v3878_v32  ;;  %v1786_v14 = vmul.f32 %v5642_v60, %v1723_v34  ;;  %v1801_v3 = vmul.f32 %v5687_v4, %v5626_v51  ;;  %v1763_v24 = vmul.f32 %v5425_v59, %v1742_v8  ;;  %v3759_v1 = vld [vmem:[%s5015_s6 + $0xe4] sm:$0xf0]  ;;  %v4255_v51 = vld [vmem:[%s5015_s6 + $0xe8] sm:$0xf0] }
 0x25c   : > { %v1570_v58 = vpop.f32.mrf.mxu1  ;;  %v1875_v54 = vadd.f32 1.0, %v4442_v23  ;;  %2425 = vmatpush.bf16.msra.mxu3 %v3790_v2 }
 0x25d   : > { %v5682_v55 = vadd.f32 %v1570_v58, %v1552_v41  ;;  %v4444_v45 = vpop.eup %4443  ;;  %2388 = vmatpush.bf16.msra.mxu1 %v3894_v43  ;;  %v1813_v32 = vadd.f32 %v1804_v30, %v1786_v14  ;;  %v3853_v41 = vld [vmem:[%s5015_s6 + $0x198] sm:$0xf]  ;;  %v4278_v58 = vld [vmem:[%s5015_s6 + $0x1a0] sm:$0xf0] }
 0x25e   : > { %v4446_v46 = vpop.eup %4445  ;;  %v5709_v9 = vmul.f32 %v4444_v45, %v5580_v27  ;;  %4451 = vrcp.f32 %v1875_v54  ;;  %2372 = vmatpush.bf16.msra.mxu0 %v3774_v11  ;;  %v3854_v19 = vor.u32 %v4278_v58, %v3853_v41  ;;  %v3765_v45 = vld [vmem:[%s5015_s6 + $0xe0] sm:$0xf]  ;;  %v4274_v58 = vld [vmem:[%s5015_s6 + $0x184] sm:$0xf] }
 0x25f   : > { %v1690_v5 = vrot.slane %v5682_v55, 7  ;;  %v1735_v18 = vrot.slane %v5682_v55, 1  ;;  %v4448_v7 = vpop.eup %4447  ;;  %v1872_v53 = vadd.f32 1.0, %v4446_v46  ;;  %2336 = vmatpush.bf16.msrb.mxu2 %v3866_v25  ;;  %v4253_v25 = vld [vmem:[%s5015_s6 + $0xdc] sm:$0xf] }
 0x260   : > { %v4450_v33 = vpop.eup %4449  ;;  %2426 = vmatpush.bf16.msra.mxu3 %v3778_v20  ;;  %v3762_v20 = vor.u32 %v4253_v25, %v3759_v1 }
 0x261   : > { %v1702_v29 = vsel %vm1693_vm10, %v1690_v5, %v1684_v0  ;;  %v1739_v6 = vsel %vm1736_vm11, %v1732_v21, %v1735_v18  ;;  %v1877_v0 = vadd.f32 1.0, %v4448_v7  ;;  %v5717_v47 = vmul.f32 %v4450_v33, %v5563_v13 }
 0x262   : > { %v1720_v34 = vmul.f32 %v5524_v31, %v1702_v29  ;;  %v1766_v21 = vmul.f32 %v5457_v40, %v1739_v6  ;;  %v1588_v42 = vpop.f32.mrf.mxu2  ;;  %v1606_v27 = vpop.f32.mrf.mxu3  ;;  %v1696_v59 = vsel %vm1693_vm10, %v1687_v26, %v1690_v5  ;;  %4453 = vrcp.f32 %v1872_v53  ;;  %v3879_v40 = vld [vmem:[%s5015_s6 + $0x1d4] sm:$0xf0]  ;;  %2373 = vmatpush.bf16.msra.mxu0 %v3762_v20 }
 0x263   : > { %v5724_v49 = vadd.f32 %v1606_v27, %v1588_v42  ;;  %v1554_v62 = vpop.f32.mrf.mxu0  ;;  %v5731_v2 = vpack.c.bf16 %v5717_v47, %v5709_v9  ;;  %4455 = vpow2.f32 %v1867_v37  ;;  %v3882_v63 = vor.u32 %v4283_v10, %v3879_v40  ;;  %2337 = vmatpush.bf16.msrb.mxu2 %v3854_v19  ;;  %v3841_v37 = vld [vmem:[%s5015_s6 + $0x180] sm:$0xf]  ;;  %v4277_v27 = vld [vmem:[%s5015_s6 + $0x19c] sm:$0xf]  ;;  %v3741_v40 = vld [vmem:[%s5015_s6 + $0xb0] sm:$0xf] }
 0x264   : > { %v1783_v31 = vmul.f32 %v5642_v60, %v1720_v34  ;;  %v1572_v50 = vpop.f32.mrf.mxu1  ;;  %v1831_v13 = vmul.f32 %v5698_v28, %v1766_v21  ;;  %v1828_v26 = vmul.f32 %v5698_v28, %v1763_v24  ;;  %v1726_v48 = vmul.f32 %v5514_v22, %v1696_v59  ;;  %v4452_v38 = vpop.eup %4451  ;;  %v4250_v24 = vld [vmem:[%s5015_s6 + $0xc4] sm:$0xf]  ;;  %v3855_v59 = vld [vmem:[%s5015_s6 + $0x1a4] sm:$0xf0] }
 0x265   : > { %2303 = vmatmul.bf16.vlgmr.msrb.gmra.mxu0 %v5731_v2  ;;  %2357 = vmatmul.bf16.vlgmr.msrb.gmra.mxu3 %v5731_v2  ;;  %4457 = vrcp.f32 %v1877_v0  ;;  %v1745_v52 = vsel %vm1736_vm11, %v1735_v18, %v1729_v17  ;;  %v5756_v46 = vmul.f32 %v4452_v38, %v5620_v39  ;;  %v3867_v17 = vld [vmem:[%s5015_s6 + $0x1bc] sm:$0xf0]  ;;  %v1807_v33 = vmul.f32 %v5687_v4, %v5682_v55  ;;  %v4252_v55 = vld [vmem:[%s5015_s6 + $0xd0] sm:$0xf0] }
 0x266   : > { %v1810_v43 = vadd.f32 %v1801_v3, %v1783_v31  ;;  %v5737_v36 = vadd.f32 %v1831_v13, %v1813_v32  ;;  %2389 = vmatpush.bf16.msra.mxu1 %v3882_v63  ;;  %v1789_v54 = vmul.f32 %v5642_v60, %v1726_v48  ;;  %v3766_v60 = vor.u32 %v4255_v51, %v3765_v45  ;;  %v4275_v3 = vld [vmem:[%s5015_s6 + $0x188] sm:$0xf0]  ;;  %v3753_v32 = vld [vmem:[%s5015_s6 + $0xc8] sm:$0xf]  ;;  %v4249_v63 = vld [vmem:[%s5015_s6 + $0xb8] sm:$0xf0] }
 0x267   : > { %v1769_v53 = vmul.f32 %v5521_v15, %v1745_v52  ;;  %v3842_v0 = vor.u32 %v4275_v3, %v3841_v37  ;;  %v3747_v15 = vld [vmem:[%s5015_s6 + $0xcc] sm:$0xf0]  ;;  %v3754_v42 = vor.u32 %v4252_v55, %v3753_v32  ;;  %v3858_v31 = vor.u32 %v4277_v27, %v3855_v59  ;;  %v3729_v52 = vld [vmem:[%s5015_s6 + $0x98] sm:$0xf]  ;;  %v4246_v45 = vld [vmem:[%s5015_s6 + $0xa0] sm:$0xf0] }
 0x268   : > { %v5739_v23 = vadd.f32 %v1828_v26, %v1810_v43  ;;  %v1849_v61 = vsub.f32 0.0, %v5737_v36  ;;  %v4454_v22 = vpop.eup %4453  ;;  %2427 = vmatpush.bf16.msra.mxu3 %v3766_v60  ;;  %v1816_v4 = vadd.f32 %v1807_v33, %v1789_v54  ;;  %v3750_v21 = vor.u32 %v4250_v24, %v3747_v15  ;;  %v3933_v26 = vld [vmem:[%s5015_s6 + $0x230] sm:$0xf]  ;;  %v4297_v43 = vld [vmem:[%s5015_s6 + $0x238] sm:$0xf0] }
 0x269   : > { %v4456_v8 = vpop.eup %4455  ;;  %v5753_v11 = vmul.f32 %v4454_v22, %v5631_v44  ;;  %v3870_v44 = vor.u32 %v4280_v12, %v3867_v17  ;;  %2338 = vmatpush.bf16.msrb.mxu2 %v3842_v0  ;;  %v1834_v13 = vmul.f32 %v5698_v28, %v1769_v53  ;;  %v3934_v41 = vor.u32 %v4297_v43, %v3933_v26  ;;  %v3843_v22 = vld [vmem:[%s5015_s6 + $0x18c] sm:$0xf0]  ;;  %v4294_v54 = vld [vmem:[%s5015_s6 + $0x220] sm:$0xf0]  ;;  %v3717_v12 = vld [vmem:[%s5015_s6 + $0x80] sm:$0xf] }
 0x26a   : > { %v1590_v14 = vpop.f32.mrf.mxu2  ;;  %v1608_v5 = vpop.f32.mrf.mxu3  ;;  %v1878_v30 = vadd.f32 1.0, %v4456_v8  ;;  %v1846_v39 = vsub.f32 0.0, %v5739_v23  ;;  %2374 = vmatpush.bf16.msra.mxu0 %v3750_v21  ;;  %v1863_v10 = vmul.f32 1.442695, %v1849_v61  ;;  %v3846_v1 = vor.u32 %v4274_v58, %v3843_v22  ;;  %v3921_v8 = vld [vmem:[%s5015_s6 + $0x218] sm:$0xf] }
 0x26b   : > { %v1619_v18 = vpop.f32.mrf.mxu0  ;;  %v5767_v29 = vpack.c.bf16 %v5756_v46, %v5753_v11  ;;  %v4458_v34 = vpop.eup %4457  ;;  %2390 = vmatpush.bf16.msra.mxu1 %v3870_v44  ;;  %v5791_v61 = vadd.f32 %v1834_v13, %v1816_v4  ;;  %v3730_v51 = vor.u32 %v4246_v45, %v3729_v52  ;;  %v3922_v17 = vor.u32 %v4294_v54, %v3921_v8  ;;  %v3705_v3 = vld [vmem:[%s5015_s6 + $0x68] sm:$0xf]  ;;  %v4240_v24 = vld [vmem:[%s5015_s6 + $0x70] sm:$0xf0]  ;;  %v4237_v13 = vld [vmem:[%s5015_s6 + $0x58] sm:$0xf0] }
 0x26c   : > { %v1637_v7 = vpop.f32.mrf.mxu1  ;;  %4459 = vrcp.f32 %v1878_v30  ;;  %v1857_v62 = vmul.f32 1.442695, %v1846_v39  ;;  %v5781_v50 = vmul.f32 %v4458_v34, %v5569_v16  ;;  %2428 = vmatpush.bf16.msra.mxu3 %v3754_v42  ;;  %v3742_v16 = vor.u32 %v4249_v63, %v3741_v40  ;;  %v4291_v30 = vld [vmem:[%s5015_s6 + $0x208] sm:$0xf0]  ;;  %v3897_v34 = vld [vmem:[%s5015_s6 + $0x1e8] sm:$0xf] }
 0x26d   : > { %v5769_v6 = vadd.f32 %v1637_v7, %v1619_v18  ;;  %2321 = vmatmul.bf16.vlgmr.msrb.gmra.mxu1 %v5767_v29  ;;  %v4243_v18 = vld [vmem:[%s5015_s6 + $0x88] sm:$0xf0]  ;;  %v3909_v7 = vld [vmem:[%s5015_s6 + $0x200] sm:$0xf]  ;;  %v1852_v60 = vsub.f32 0.0, %v5791_v61 }
 0x26e   : > { %4461 = vpow2.f32 %v1857_v62  ;;  %v5800_v5 = vpack.c.bf16 %v5781_v50, %v5781_v50  ;;  %2403 = vmatpush.bf16.msra.mxu2 %v3742_v16  ;;  %2439 = vmatpush.bf16.msrb.mxu0 %v3934_v41  ;;  %v3718_v33 = vor.u32 %v4243_v18, %v3717_v12  ;;  %v3910_v37 = vor.u32 %v4291_v30, %v3909_v7  ;;  %v4288_v0 = vld [vmem:[%s5015_s6 + $0x1f0] sm:$0xf0]  ;;  %v3693_v40 = vld [vmem:[%s5015_s6 + $0x50] sm:$0xf]  ;;  %v4285_v26 = vld [vmem:[%s5015_s6 + $0x1d8] sm:$0xf0] }
 0x26f   : > { %2391 = vmatpush.bf16.msra.mxu1 %v3858_v31  ;;  %4463 = vpow2.f32 %v1863_v10  ;;  %v1869_v4 = vmul.f32 1.442695, %v1852_v60  ;;  %v3706_v62 = vor.u32 %v4240_v24, %v3705_v3  ;;  %v3898_v10 = vor.u32 %v4288_v0, %v3897_v34  ;;  %v3885_v63 = vld [vmem:[%s5015_s6 + $0x1d0] sm:$0xf]  ;;  %v3873_v16 = vld [vmem:[%s5015_s6 + $0x1b8] sm:$0xf] }
 0x270   : > { %v3694_v43 = vor.u32 %v4237_v13, %v3693_v40  ;;  %v4282_v41 = vld [vmem:[%s5015_s6 + $0x1c0] sm:$0xf0]  ;;  %v3861_v18 = vld [vmem:[%s5015_s6 + $0x1a0] sm:$0xf]  ;;  %v4279_v7 = vld [vmem:[%s5015_s6 + $0x1a8] sm:$0xf0] }
 0x271   : > { %v3874_v12 = vor.u32 %v4282_v41, %v3873_v16  ;;  %v4231_v60 = vld [vmem:[%s5015_s6 + $0x28] sm:$0xf0]  ;;  %v3657_v34 = vld [vmem:[%s5015_s6 + $0x8] sm:$0xf]  ;;  %v4228_v0 = vld [vmem:[%s5015_s6 + $0x10] sm:$0xf0] }
 0x272   : > { %v1655_v48 = vpop.f32.mrf.mxu2  ;;  %v1673_v38 = vpop.f32.mrf.mxu3  ;;  %2404 = vmatpush.bf16.msra.mxu2 %v3730_v51  ;;  %2440 = vmatpush.bf16.msrb.mxu0 %v3922_v17 }
 0x273   : > { %v5793_v28 = vadd.f32 %v1673_v38, %v1655_v48  ;;  %v1621_v19 = vpop.f32.mrf.mxu0  ;;  %v4460_v14 = vpop.eup %4459  ;;  %2392 = vmatpush.bf16.msra.mxu1 %v3846_v1  ;;  %v3886_v48 = vor.u32 %v4285_v26, %v3885_v63  ;;  %v2637_v26 = vsub.f32 0.0, %v5638_v57 }
 0x274   : > { %v1639_v25 = vpop.f32.mrf.mxu1  ;;  %v4462_v44 = vpop.eup %4461  ;;  %v5812_v39 = vmul.f32 %v4460_v14, %v5668_v35 }
 0x275   : > { %v5802_v20 = vadd.f32 %v1639_v25, %v1621_v19  ;;  %2308 = vmatmul.bf16.gmra.mxu0 %v5800_v5  ;;  %2362 = vmatmul.bf16.gmra.mxu3 %v5800_v5  ;;  %v1873_v53 = vadd.f32 1.0, %v4462_v44  ;;  %v4464_v15 = vpop.eup %4463  ;;  %v3681_v19 = vld [vmem:[%s5015_s6 + $0x38] sm:$0xf]  ;;  %v4234_v25 = vld [vmem:[%s5015_s6 + $0x40] sm:$0xf0]  ;;  %v3862_v44 = vor.u32 %v4279_v7, %v3861_v18 }
 0x276   : > { %v5820_v35 = vpack.c.bf16 %v5812_v39, %v5812_v39  ;;  %v1876_v59 = vadd.f32 1.0, %v4464_v15  ;;  %2405 = vmatpush.bf16.msra.mxu2 %v3718_v33  ;;  %2441 = vmatpush.bf16.msrb.mxu0 %v3910_v37  ;;  %v3849_v33 = vld [vmem:[%s5015_s6 + $0x188] sm:$0xf]  ;;  %v4276_v37 = vld [vmem:[%s5015_s6 + $0x190] sm:$0xf0] }
 0x277   : > { %4465 = vrcp.f32 %v1873_v53  ;;  %v3850_v15 = vor.u32 %v4276_v37, %v3849_v33  ;;  %v2639_v33 = vsub.f32 0.0, %v5793_v28  ;;  %v2641_v37 = vsub.f32 0.0, %v5802_v20  ;;  %v4312_v20 = vld [vmem:[%s5038_s29 + $0x74] sm:$0xf] }
 0x278   : > { %4467 = vrcp.f32 %v1876_v59 }
 0x279   : > { %4469 = vpow2.f32 %v1869_v4 }
 0x27a   : > { %v1657_v32 = vpop.f32.mrf.mxu2  ;;  %v1675_v55 = vpop.f32.mrf.mxu3  ;;  %2406 = vmatpush.bf16.msra.mxu2 %v3706_v62  ;;  %2442 = vmatpush.bf16.msrb.mxu0 %v3898_v10 }
 0x27b   : > { %v5822_v21 = vadd.f32 %v1675_v55, %v1657_v32  ;;  %v1624_v42 = vpop.f32.mrf.mxu0  ;;  %v3658_v32 = vor.u32 %v4228_v0, %v3657_v34 }
 0x27c   : > { %v1642_v27 = vpop.f32.mrf.mxu1 }
 0x27d   : > { %v5824_v31 = vadd.f32 %v1642_v27, %v1624_v42  ;;  %2326 = vmatmul.bf16.gmra.mxu1 %v5820_v35  ;;  %v4466_v38 = vpop.eup %4465 }
 0x27e   : > { %v5834_v52 = vmul.f32 %v4466_v38, %v5739_v23  ;;  %v4468_v1 = vpop.eup %4467  ;;  %2407 = vmatpush.bf16.msra.mxu2 %v3694_v43  ;;  %2443 = vmatpush.bf16.msrb.mxu0 %v3886_v48  ;;  %v3682_v23 = vor.u32 %v4234_v25, %v3681_v19  ;;  %v2646_v43 = vmul.f32 1.442695, %v2637_v26  ;;  %v5873_v48 = vld [vmem:[%s5017_s1] sm:$0x7]  ;;  %v2638_v19 = vsub.f32 0.0, %v5769_v6  ;;  %s6323_s1 = sld [smem:[#allocation24_spill]] (!%p4127_p10) }
 0x27f   : > { %v4470_v14 = vpop.eup %4469  ;;  %v5841_v51 = vmul.f32 %v4468_v1, %v5737_v36  ;;  %v3669_v36 = vld [vmem:[%s5015_s6 + $0x20] sm:$0xf]  ;;  %v3995_v26 = vld [vmem:[%s5038_s29 + $0x78] sm:$0xf0] }
 0x280   : > { %v1879_v17 = vadd.f32 1.0, %v4470_v14  ;;  %v3670_v53 = vor.u32 %v4231_v60, %v3669_v36  ;;  %v2648_v25 = vmul.f32 1.442695, %v2638_v19 }
 0x281   : > { %v1900_v30 = vpack.c.bf16 %v5841_v51, %v5834_v52 }
 0x282   : > { %v1660_v58 = vpop.f32.mrf.mxu2  ;;  %v1678_v22 = vpop.f32.mrf.mxu3  ;;  %2444 = vmatpush.bf16.msrb.mxu0 %v3874_v12  ;;  %4471 = vrcp.f32 %v1879_v17  ;;  %2408 = vmatpush.bf16.msra.mxu2 %v3682_v23 }
 0x283   : > { %v5838_v45 = vadd.f32 %v1678_v22, %v1660_v58  ;;  %v1626_v8 = vpop.f32.mrf.mxu0  ;;  %2339 = vmatmul.bf16.vlgmr.msrb.gmra.mxu2 %v1900_v30  ;;  %v5876_v58 = vperm.slane %v5873_v48, 0  ;;  %v5879_v22 = vperm.slane %v5873_v48, 1  ;;  %4473 = vpow2.f32 %v2646_v43 }
 0x284   : > { %v1644_v54 = vpop.f32.mrf.mxu1  ;;  %v2643_v8 = vsub.f32 0.0, %v5724_v49 }
 0x285   : > { %2375 = vmatmul.bf16.vlgmr.msra.gmra.mxu0 %v5767_v29  ;;  %2429 = vmatmul.bf16.vlgmr.msra.gmra.mxu3 %v5767_v29 }
 0x286   : > { %2445 = vmatpush.bf16.msrb.mxu0 %v3862_v44  ;;  %2409 = vmatpush.bf16.msra.mxu2 %v3670_v53  ;;  %v2658_v60 = vmul.f32 1.442695, %v2643_v8  ;;  %v4327_v8 = vld [vmem:[%s5038_s29 + $0xe4] sm:$0xf0] }
 0x288   : > { %v4472_v29 = vpop.eup %4471 }
 0x289   : > { %v5856_v55 = vmul.f32 %v4472_v29, %v5791_v61  ;;  %v4474_v12 = vpop.eup %4473 }
 0x28a   : > { %v1662_v3 = vpop.f32.mrf.mxu2  ;;  %v1680_v24 = vpop.f32.mrf.mxu3  ;;  %2446 = vmatpush.bf16.msrb.mxu0 %v3850_v15  ;;  %2410 = vmatpush.bf16.msra.mxu2 %v3658_v32  ;;  %v2664_v36 = vadd.f32 1.0, %v4474_v12  ;;  %v3993_v15 = vld [vmem:[%s5038_s29 + $0x70] sm:$0xf] }
 0x28b   : > { %v1903_v4 = vpack.c.bf16 %v5856_v55, %v5856_v55 }
 0x28d   : > { %2393 = vmatmul.bf16.vlgmr.msra.gmra.mxu1 %v1900_v30 }
 0x293   : > { %2344 = vmatmul.bf16.gmra.mxu2 %v1903_v4 }
 0x295   : > { %2380 = vmatmul.bf16.gmra.mxu0 %v5820_v35  ;;  %2434 = vmatmul.bf16.gmra.mxu3 %v5820_v35 }
 0x29d   : > { %2398 = vmatmul.bf16.gmra.mxu1 %v1903_v4 }
 0x2a3   : > { %2411 = vmatmul.bf16.vlgmr.msra.gmra.mxu2 %v5731_v2  ;;  %v2640_v2 = vsub.f32 0.0, %v5677_v56 }
 0x2a5   : > { %2447 = vmatmul.bf16.vlgmr.msrb.gmra.mxu0 %v1900_v30  ;;  %v2652_v38 = vmul.f32 1.442695, %v2640_v2  ;;  %v5905_v2 = vmul.f32 1.442695, %v2639_v33 }
 0x2a7   : > { %4475 = vpow2.f32 %v2652_v38  ;;  %v5910_v38 = vmul.f32 1.442695, %v2641_v37 }
 0x2a8   : > { %4477 = vpow2.f32 %v2648_v25  ;;  %v4049_v25 = vld [vmem:[%s5038_s29 + $0xe0] sm:$0xf] }
 0x2ad   : > { %v4476_v18 = vpop.eup %4475 }
 0x2ae   : > { %v2667_v53 = vadd.f32 1.0, %v4476_v18 }
 0x2b3   : > { %2416 = vmatmul.bf16.gmra.mxu2 %v5800_v5 }
 0x2b5   : > { %2452 = vmatmul.bf16.gmra.mxu0 %v1903_v4  ;;  %v4313_v4 = vld [vmem:[%s5038_s29 + $0x74] sm:$0xf0] }
 0x2b6   : > { %v3994_v28 = vor.u32 %v4313_v4, %v3993_v15  ;;  %v4041_v4 = vld [vmem:[%s5038_s29 + $0xd0] sm:$0xf] }
 0x2b8   : > { %2937 = vmatpush.bf16.msrb.mxu1 %v3994_v28 }
 0x2e2   : > { %v2304_v42 = vpop.f32.mrf.mxu0 }
 0x2e3   : > { %v2305_v57 = vadd.f32 %v2304_v42, %v5876_v58  ;;  %v4057_v42 = vld [vmem:[%s5038_s29 + $0xf0] sm:$0xf] }
 0x2e8   : > { %v2358_v27 = vpop.f32.mrf.mxu3 }
 0x2e9   : > { %v2359_v56 = vadd.f32 %v2358_v27, %v5879_v22  ;;  %v4329_v27 = vld [vmem:[%s5038_s29 + $0xf4] sm:$0xf0] }
 0x2ea   : > { %v2322_v61 = vpop.f32.mrf.mxu1  ;;  %v2306_v59 = vpop.f32.mrf.mxu0 }
 0x2eb   : > { %v2323_v54 = vadd.f32 %v2322_v61, %v2305_v57  ;;  %v2307_v3 = vadd.f32 %v2306_v59, %v5876_v58  ;;  %v4478_v59 = vpop.eup %4477  ;;  %v3985_v57 = vld [vmem:[%s5038_s29 + $0x60] sm:$0xf] }
 0x2f0   : > { %v2360_v62 = vpop.f32.mrf.mxu3 }
 0x2f1   : > { %v2361_v24 = vadd.f32 %v2360_v62, %v5879_v22  ;;  %v2644_v62 = vsub.f32 0.0, %v5824_v31  ;;  %v4311_v31 = vld [vmem:[%s5038_s29 + $0x64] sm:$0xf0] }
 0x2f2   : > { %v2324_v10 = vpop.f32.mrf.mxu1  ;;  %v5864_v40 = vpop.f32.mrf.mxu0 }
 0x2f3   : > { %v2325_v32 = vadd.f32 %v2324_v10, %v2307_v3  ;;  %v5927_v18 = vmul.f32 1.442695, %v2644_v62  ;;  %v3977_v3 = vld [vmem:[%s5038_s29 + $0x50] sm:$0xf]  ;;  %v4319_v62 = vld [vmem:[%s5038_s29 + $0xa4] sm:$0xf0] }
 0x2f8   : > { %v5866_v13 = vpop.f32.mrf.mxu3 }
 0x2fa   : > { %v5868_v35 = vpop.f32.mrf.mxu1  ;;  %v2311_v63 = vpop.f32.mrf.mxu0 }
 0x2fb   : > { %v4058_v63 = vor.u32 %v4329_v27, %v4057_v42 }
 0x2fd   : > { %2955 = vmatpush.bf16.msrb.mxu2 %v4058_v63 }
 0x300   : > { %v2365_v5 = vpop.f32.mrf.mxu3 }
 0x301   : > { %v5908_v5 = vor.u32 %v4312_v20, %v3995_v26  ;;  %v4325_v20 = vld [vmem:[%s5038_s29 + $0xd4] sm:$0xf0] }
 0x302   : > { %v2329_v16 = vpop.f32.mrf.mxu1  ;;  %v2376_v41 = vpop.f32.mrf.mxu0 }
 0x303   : > { %v2377_v14 = vadd.f32 %v2376_v41, %v2359_v56  ;;  %2991 = vmatpush.bf16.msra.mxu0 %v5908_v5  ;;  %v3986_v56 = vor.u32 %v4311_v31, %v3985_v57  ;;  %v4042_v31 = vor.u32 %v4325_v20, %v4041_v4 }
 0x305   : > { %2938 = vmatpush.bf16.msrb.mxu1 %v3986_v56  ;;  %v3979_v56 = vld [vmem:[%s5038_s29 + $0x58] sm:$0xf0] }
 0x306   : > { %v2340_v17 = vpop.f32.mrf.mxu2 }
 0x307   : > { %v5887_v7 = vadd.f32 %v2340_v17, %v2323_v54  ;;  %v4310_v54 = vld [vmem:[%s5038_s29 + $0x64] sm:$0xf] }
 0x308   : > { %v5884_v1 = vpop.f32.mrf.mxu3 }
 0x309   : > { %v2466_v49 = vmin.f32 %v5887_v7, 20.0  ;;  %vm2457_vm12 = vcmp.gt.f32.partialorder %v5887_v7, 20.0 }
 0x30a   : > { %v2394_v23 = vpop.f32.mrf.mxu1  ;;  %v2378_v30 = vpop.f32.mrf.mxu0 }
 0x30b   : > { %v5889_v6 = vadd.f32 %v2394_v23, %v2377_v14  ;;  %v2475_v34 = vmul.f32 1.442695, %v2466_v49  ;;  %v2379_v61 = vadd.f32 %v2378_v30, %v2361_v24  ;;  %v5922_v14 = vadd.f32 1.0, %v4478_v59  ;;  %v3987_v23 = vld [vmem:[%s5038_s29 + $0x68] sm:$0xf0] }
 0x30c   : > { %v2310_v30 = vadd.f32 %v5864_v40, %v5876_v58  ;;  %v5931_v49 = vor.u32 %v4310_v54, %v3987_v23 }
 0x30d   : > { %v2467_v44 = vmin.f32 %v5889_v6, 20.0  ;;  %4479 = vpow2.f32 %v2475_v34  ;;  %vm2458_vm15 = vcmp.gt.f32.partialorder %v5889_v6, 20.0 }
 0x30e   : > { %v2342_v10 = vpop.f32.mrf.mxu2  ;;  %v2328_v34 = vadd.f32 %v5868_v35, %v2310_v30  ;;  %2992 = vmatpush.bf16.msra.mxu0 %v5931_v49  ;;  %v4033_v30 = vld [vmem:[%s5038_s29 + $0xc0] sm:$0xf] }
 0x30f   : > { %v2477_v0 = vmul.f32 1.442695, %v2467_v44  ;;  %v5912_v16 = vadd.f32 %v2342_v10, %v2325_v32 }
 0x310   : > { %v5898_v29 = vpop.f32.mrf.mxu3 }
 0x311   : > { %4481 = vpow2.f32 %v2477_v0  ;;  %v2469_v12 = vmin.f32 %v5912_v16, 20.0  ;;  %vm2460_vm1 = vcmp.gt.f32.partialorder %v5912_v16, 20.0 }
 0x312   : > { %v2396_v43 = vpop.f32.mrf.mxu1  ;;  %v2381_v19 = vpop.f32.mrf.mxu0  ;;  %4483 = vrcp.f32 %v2664_v36  ;;  %v4050_v36 = vor.u32 %v4327_v8, %v4049_v25  ;;  %v3969_v25 = vld [vmem:[%s5038_s29 + $0x40] sm:$0xf]  ;;  %v4307_v8 = vld [vmem:[%s5038_s29 + $0x44] sm:$0xf0] }
 0x313   : > { %v5914_v41 = vadd.f32 %v2396_v43, %v2379_v61  ;;  %4485 = vpow2.f32 %v2658_v60  ;;  %v4480_v44 = vpop.eup %4479  ;;  %v2364_v60 = vadd.f32 %v5866_v13, %v5879_v22  ;;  %v2481_v33 = vmul.f32 1.442695, %v2469_v12 }
 0x314   : > { %4487 = vrcp.f32 %v2667_v53  ;;  %v2493_v0 = vadd.f32 1.0, %v4480_v44  ;;  %v2496_v40 = vmul.f32 -0.5, %v4480_v44  ;;  %v2499_v58 = vand.u32 2147483647, %v4480_v44  ;;  %2956 = vmatpush.bf16.msrb.mxu2 %v4050_v36  ;;  %v4309_v53 = vld [vmem:[%s5038_s29 + $0x54] sm:$0xf0] }
 0x315   : > { %v2470_v17 = vmin.f32 %v5914_v41, 20.0  ;;  %4489 = vpow2.f32 %v2481_v33  ;;  %v2382_v27 = vadd.f32 %v2381_v19, %v2364_v60  ;;  %v3978_v63 = vor.u32 %v4309_v53, %v3977_v3  ;;  %v4308_v19 = vld [vmem:[%s5038_s29 + $0x54] sm:$0xf]  ;;  %v4323_v36 = vld [vmem:[%s5038_s29 + $0xc4] sm:$0xf0] }
 0x316   : > { %4491 = vlog2.f32 %v2493_v0  ;;  %v2497_v42 = vadd.f32 1.0, %v2496_v40  ;;  %v2345_v61 = vpop.f32.mrf.mxu2  ;;  %vm5953_vm13 = vcmp.lt.f32.partialorder %v2499_v58, 0.0004427343  ;;  %v5974_v23 = vor.u32 %v4308_v19, %v3979_v56  ;;  %v3971_v0 = vld [vmem:[%s5038_s29 + $0x48] sm:$0xf0] }
 0x317   : > { %v2483_v37 = vmul.f32 1.442695, %v2470_v17  ;;  %v5936_v24 = vpop.eup %4481  ;;  %v5961_v10 = vadd.f32 %v2345_v61, %v2328_v34  ;;  %2939 = vmatpush.bf16.msrb.mxu1 %v3978_v63  ;;  %v5980_v33 = vperm.slane %v5873_v48, 2  ;;  %v4034_v3 = vor.u32 %v4323_v36, %v4033_v30  ;;  %v4306_v34 = vld [vmem:[%s5038_s29 + $0x44] sm:$0xf] }
 0x318   : > { %v5939_v15 = vpop.f32.mrf.mxu3  ;;  %v2502_v13 = vadd.f32 1.0, %v5936_v24  ;;  %v2505_v22 = vmul.f32 -0.5, %v5936_v24  ;;  %v2508_v32 = vand.u32 2147483647, %v5936_v24  ;;  %v5947_v35 = vpop.eup %4483  ;;  %2957 = vmatpush.bf16.msrb.mxu2 %v4042_v31  ;;  %v2498_v40 = vmul.f32 %v4480_v44, %v2497_v42  ;;  %2993 = vmatpush.bf16.msra.mxu0 %v5974_v23  ;;  %v4025_v42 = vld [vmem:[%s5038_s29 + $0xb0] sm:$0xf] }
 0x319   : > { %v5950_v26 = vpop.eup %4485  ;;  %v2472_v17 = vmin.f32 %v5961_v10, 20.0  ;;  %v5986_v53 = vor.u32 %v4306_v34, %v3971_v0  ;;  %v4304_v34 = vld [vmem:[%s5038_s29 + $0x34] sm:$0xf]  ;;  %v3963_v0 = vld [vmem:[%s5038_s29 + $0x38] sm:$0xf0]  ;;  %vm2461_vm3 = vcmp.gt.f32.partialorder %v5914_v41, 20.0 }
 0x31a   : > { %v2399_v28 = vpop.f32.mrf.mxu1  ;;  %4493 = vlog2.f32 %v2502_v13  ;;  %vm5957_vm14 = vcmp.lt.f32.partialorder %v2508_v32, 0.0004427343  ;;  %v2383_v43 = vpop.f32.mrf.mxu0  ;;  %v2506_v12 = vadd.f32 1.0, %v2505_v22  ;;  %v3961_v13 = vld [vmem:[%s5038_s29 + $0x30] sm:$0xf]  ;;  %vm2463_vm5 = vcmp.gt.f32.partialorder %v5961_v10, 20.0 }
 0x31b   : > { %4495 = vpow2.f32 %v2483_v37  ;;  %v5965_v57 = vadd.f32 %v2399_v28, %v2382_v27  ;;  %v5970_v54 = vpop.eup %4487  ;;  %v3970_v37 = vor.u32 %v4307_v8, %v3969_v25  ;;  %v2487_v58 = vmul.f32 1.442695, %v2472_v17  ;;  %v4305_v22 = vld [vmem:[%s5038_s29 + $0x34] sm:$0xf0] }
 0x31c   : > { %4497 = vpow2.f32 %v5910_v38  ;;  %v4490_v38 = vpop.eup %4489  ;;  %v3962_v44 = vor.u32 %v4305_v22, %v3961_v13  ;;  %v4321_v43 = vld [vmem:[%s5038_s29 + $0xb4] sm:$0xf0]  ;;  %2958 = vmatpush.bf16.msrb.mxu2 %v4034_v3  ;;  %2994 = vmatpush.bf16.msra.mxu0 %v5986_v53 }
 0x31d   : > { %v2473_v60 = vmin.f32 %v5965_v57, 20.0  ;;  %4499 = vrcp.f32 %v5922_v14  ;;  %v4492_v48 = vpop.eup %4491  ;;  %v2520_v32 = vadd.f32 1.0, %v4490_v38  ;;  %v2523_v4 = vmul.f32 -0.5, %v4490_v38  ;;  %2940 = vmatpush.bf16.msrb.mxu1 %v3970_v37 }
 0x31e   : > { %v2526_v27 = vand.u32 2147483647, %v4490_v38  ;;  %v2495_v20 = vmul.f32 0.6931472, %v4492_v48  ;;  %v2507_v14 = vmul.f32 %v5936_v24, %v2506_v12  ;;  %4501 = vpow2.f32 %v2487_v58  ;;  %v2347_v8 = vpop.f32.mrf.mxu2  ;;  %v4303_v58 = vld [vmem:[%s5038_s29 + $0x24] sm:$0xf0] }
 0x31f   : > { %v2489_v61 = vmul.f32 1.442695, %v2473_v60  ;;  %4503 = vlog2.f32 %v2520_v32  ;;  %v2524_v56 = vadd.f32 1.0, %v2523_v4  ;;  %v3955_v8 = vld [vmem:[%s5038_s29 + $0x28] sm:$0xf0]  ;;  %vm2464_vm6 = vcmp.gt.f32.partialorder %v5965_v57, 20.0 }
 0x320   : > { %v2437_v28 = vpop.f32.mrf.mxu3  ;;  %v4494_v63 = vpop.eup %4493  ;;  %vm5995_vm0 = vcmp.lt.f32.partialorder %v2526_v27, 0.0004427343  ;;  %v2501_v12 = vsel %vm5953_vm13, %v2498_v40, %v2495_v20  ;;  %v3953_v40 = vld [vmem:[%s5038_s29 + $0x20] sm:$0xf]  ;;  %v4026_v27 = vor.u32 %v4321_v43, %v4025_v42  ;;  %v3939_v43 = vld [vmem:[%s5038_s29 + $0x8] sm:$0xf0] }
 0x321   : > { %v5993_v19 = vpop.eup %4495  ;;  %v2504_v31 = vmul.f32 0.6931472, %v4494_v63  ;;  %v2574_v3 = vsel %vm2457_vm12, %v5887_v7, %v2501_v12  ;;  %4505 = vpow2.f32 %v2489_v61  ;;  %2941 = vmatpush.bf16.msrb.mxu1 %v3962_v44  ;;  %v4017_v7 = vld [vmem:[%s5038_s29 + $0xa0] sm:$0xf]  ;;  %v6026_v61 = vor.u32 %v4304_v34, %v3963_v0  ;;  %v4302_v28 = vld [vmem:[%s5038_s29 + $0x24] sm:$0xf] }
 0x322   : > { %v2401_v17 = vpop.f32.mrf.mxu1  ;;  %v5999_v24 = vpop.eup %4497  ;;  %v2529_v30 = vadd.f32 1.0, %v5993_v19  ;;  %v2532_v36 = vmul.f32 -0.5, %v5993_v19  ;;  %v2535_v60 = vand.u32 2147483647, %v5993_v19  ;;  %v2583_v22 = vsub.f32 0.0, %v2574_v3  ;;  %2959 = vmatpush.bf16.msrb.mxu2 %v4026_v27 }
 0x323   : > { %v6006_v37 = vpop.f32.mrf.mxu0  ;;  %v2510_v59 = vsel %vm5957_vm14, %v2507_v14, %v2504_v31  ;;  %v6018_v13 = vpop.eup %4499  ;;  %v2525_v14 = vmul.f32 %v4490_v38, %v2524_v56  ;;  %v3954_v44 = vor.u32 %v4303_v58, %v3953_v40  ;;  %v4018_v31 = vor.u32 %v4319_v62, %v4017_v7  ;;  %2995 = vmatpush.bf16.msra.mxu0 %v6026_v61  ;;  %v4301_v56 = vld [vmem:[%s5038_s29 + $0x14] sm:$0xf0]  ;;  %v4009_v58 = vld [vmem:[%s5038_s29 + $0x90] sm:$0xf] }
 0x324   : > { %v2575_v48 = vsel %vm2458_vm15, %v5889_v6, %v2510_v59  ;;  %4507 = vlog2.f32 %v2529_v30  ;;  %v2533_v4 = vadd.f32 1.0, %v2532_v36  ;;  %v4502_v63 = vpop.eup %4501  ;;  %v2592_v20 = vmul.f32 1.442695, %v2583_v22  ;;  %v3945_v6 = vld [vmem:[%s5038_s29 + $0x10] sm:$0xf] }
 0x325   : > { %v2584_v32 = vsub.f32 0.0, %v2575_v48  ;;  %v4504_v17 = vpop.eup %4503  ;;  %v2547_v3 = vadd.f32 1.0, %v4502_v63  ;;  %v2550_v30 = vmul.f32 -0.5, %v4502_v63  ;;  %v2553_v59 = vand.u32 2147483647, %v4502_v63  ;;  %2942 = vmatpush.bf16.msrb.mxu1 %v3954_v44 }
 0x326   : > { %4509 = vpow2.f32 %v2592_v20  ;;  %v2522_v42 = vmul.f32 0.6931472, %v4504_v17  ;;  %vm6032_vm2 = vcmp.lt.f32.partialorder %v2535_v60, 0.0004427343  ;;  %v6036_v38 = vor.u32 %v4302_v28, %v3955_v8  ;;  %v2412_v0 = vpop.f32.mrf.mxu2  ;;  %v4317_v22 = vld [vmem:[%s5038_s29 + $0x94] sm:$0xf0]  ;;  %2960 = vmatpush.bf16.msrb.mxu2 %v4018_v31 }
 0x327   : > { %v2594_v12 = vmul.f32 1.442695, %v2584_v32  ;;  %v6039_v36 = vpop.eup %4505  ;;  %v2551_v34 = vadd.f32 1.0, %v2550_v30  ;;  %v3946_v40 = vor.u32 %v4301_v56, %v3945_v6  ;;  %vm6046_vm4 = vcmp.lt.f32.partialorder %v2553_v59, 0.0004427343 }
 0x328   : > { %v2528_v48 = vsel %vm5995_vm0, %v2525_v14, %v2522_v42  ;;  %v2556_v62 = vadd.f32 1.0, %v6039_v36  ;;  %v2559_v32 = vmul.f32 -0.5, %v6039_v36  ;;  %v4300_v28 = vld [vmem:[%s5038_s29 + $0x14] sm:$0xf]  ;;  %v3947_v20 = vld [vmem:[%s5038_s29 + $0x18] sm:$0xf0]  ;;  %v2534_v44 = vmul.f32 %v5993_v19, %v2533_v4  ;;  %2996 = vmatpush.bf16.msra.mxu0 %v6036_v38 }
 0x329   : > { %4511 = vpow2.f32 %v2594_v12  ;;  %v2577_v25 = vsel %vm2460_vm1, %v5912_v16, %v2528_v48  ;;  %v2562_v8 = vand.u32 2147483647, %v6039_v36  ;;  %v3937_v6 = vld [vmem:[%s5038_s29] sm:$0xf]  ;;  %v2413_v12 = vadd.f32 %v2412_v0, %v5980_v33  ;;  %2943 = vmatpush.bf16.msrb.mxu1 %v3946_v40  ;;  %v4299_v16 = vld [vmem:[%s5038_s29 + $0x4] sm:$0xf0] }
 0x32a   : > { %v4508_v60 = vpop.eup %4507  ;;  %4513 = vlog2.f32 %v2547_v3  ;;  %v2586_v17 = vsub.f32 0.0, %v2577_v25  ;;  %v4001_v3 = vld [vmem:[%s5038_s29 + $0x80] sm:$0xf]  ;;  %v2560_v4 = vadd.f32 1.0, %v2559_v32  ;;  %v4010_v31 = vor.u32 %v4317_v22, %v4009_v58  ;;  %v4315_v59 = vld [vmem:[%s5038_s29 + $0x84] sm:$0xf0] }
 0x32b   : > { %v6052_v27 = vpop.f32.mrf.mxu0  ;;  %v2531_v14 = vmul.f32 0.6931472, %v4508_v60  ;;  %4515 = vlog2.f32 %v2556_v62  ;;  %v6070_v30 = vor.u32 %v4300_v28, %v3947_v20  ;;  %v4298_v42 = vld [vmem:[%s5038_s29 + $0x4] sm:$0xf]  ;;  %v2552_v40 = vmul.f32 %v4502_v63, %v2551_v34  ;;  %v4328_v62 = vld [vmem:[%s5038_s29 + $0xf4] sm:$0xf] }
 0x32c   : > { %v4510_v56 = vpop.eup %4509  ;;  %v2598_v60 = vmul.f32 1.442695, %v2586_v17  ;;  %v2431_v48 = vadd.f32 %v5884_v1, %v2413_v12  ;;  %2961 = vmatpush.bf16.msrb.mxu2 %v4010_v31  ;;  %v3938_v58 = vor.u32 %v4299_v16, %v3937_v6  ;;  %v4002_v22 = vor.u32 %v4315_v59, %v4001_v3  ;;  %v4059_v28 = vld [vmem:[%s5038_s29 + $0xf8] sm:$0xf0]  ;;  %v4121_v31 = vld [vmem:[%s5038_s29 + $0x170] sm:$0xf] }
 0x32d   : > { %v2537_v19 = vsel %vm6032_vm2, %v2534_v44, %v2531_v14  ;;  %v2610_v14 = vadd.f32 1.0, %v4510_v56  ;;  %2997 = vmatpush.bf16.msra.mxu0 %v6070_v30  ;;  %vm6082_vm7 = vcmp.lt.f32.partialorder %v2562_v8, 0.0004427343  ;;  %v4062_v6 = vor.u32 %v4328_v62, %v4059_v28  ;;  %v4345_v59 = vld [vmem:[%s5038_s29 + $0x174] sm:$0xf0] }
 0x32e   : > { %v2578_v0 = vsel %vm2461_vm3, %v5914_v41, %v2537_v19  ;;  %4517 = vpow2.f32 %v2598_v60  ;;  %v6087_v1 = vadd.f32 %v6006_v37, %v2431_v48  ;;  %v6089_v41 = vor.u32 %v4298_v42, %v3939_v43  ;;  %v2414_v12 = vpop.f32.mrf.mxu2  ;;  %2944 = vmatpush.bf16.msrb.mxu1 %v3938_v58  ;;  %v4123_v62 = vld [vmem:[%s5038_s29 + $0x178] sm:$0xf0]  ;;  %v4343_v28 = vld [vmem:[%s5038_s29 + $0x164] sm:$0xf0] }
 0x32f   : > { %v4512_v25 = vpop.eup %4511  ;;  %v2587_v32 = vsub.f32 0.0, %v2578_v0  ;;  %4519 = vrcp.f32 %v2610_v14  ;;  %v2561_v8 = vmul.f32 %v6039_v36, %v2560_v4  ;;  %v2415_v19 = vadd.f32 %v2414_v12, %v5980_v33  ;;  %v4326_v36 = vld [vmem:[%s5038_s29 + $0xe4] sm:$0xf]  ;;  %v4051_v4 = vld [vmem:[%s5038_s29 + $0xe8] sm:$0xf0] }
 0x330   : > { %v4514_v20 = vpop.eup %4513  ;;  %v2611_v63 = vadd.f32 1.0, %v4512_v25  ;;  %v2468_v3 = vmin.f32 %v6087_v1, 20.0  ;;  %2962 = vmatpush.bf16.msrb.mxu2 %v4002_v22  ;;  %v4122_v60 = vor.u32 %v4345_v59, %v4121_v31  ;;  %v4054_v7 = vor.u32 %v4326_v36, %v4051_v4  ;;  %v4113_v22 = vld [vmem:[%s5038_s29 + $0x160] sm:$0xf]  ;;  %v4043_v12 = vld [vmem:[%s5038_s29 + $0xd8] sm:$0xf0] }
 0x331   : > { %v2600_v34 = vmul.f32 1.442695, %v2587_v32  ;;  %v2549_v17 = vmul.f32 0.6931472, %v4514_v20  ;;  %v4516_v16 = vpop.eup %4515  ;;  %2998 = vmatpush.bf16.msra.mxu0 %v6089_v41  ;;  %v2433_v43 = vadd.f32 %v5898_v29, %v2415_v19  ;;  %v4324_v20 = vld [vmem:[%s5038_s29 + $0xd4] sm:$0xf] }
 0x332   : > { %v2558_v56 = vmul.f32 0.6931472, %v4516_v16  ;;  %v2479_v48 = vmul.f32 1.442695, %v2468_v3  ;;  %3009 = vmatpush.bf16.msra.mxu1 %v4062_v6  ;;  %2973 = vmatpush.bf16.msrb.mxu3 %v4122_v60  ;;  %v6122_v16 = vadd.f32 1.0, %v5950_v26  ;;  %v2668_v31 = vadd.f32 1.0, %v5999_v24 }
 0x333   : > { %v6094_v37 = vpop.f32.mrf.mxu0  ;;  %4521 = vpow2.f32 %v2600_v34  ;;  %v2555_v42 = vsel %vm6046_vm4, %v2552_v40, %v2549_v17  ;;  %v4344_v40 = vld [vmem:[%s5038_s29 + $0x174] sm:$0xf]  ;;  %v6115_v29 = vadd.f32 %v6052_v27, %v2433_v43  ;;  %v4114_v17 = vor.u32 %v4343_v28, %v4113_v22  ;;  %v4115_v3 = vld [vmem:[%s5038_s29 + $0x168] sm:$0xf0]  ;;  %v4105_v4 = vld [vmem:[%s5038_s29 + $0x150] sm:$0xf] }
 0x334   : > { %v2580_v0 = vsel %vm2463_vm5, %v5961_v10, %v2555_v42  ;;  %4523 = vrcp.f32 %v2611_v63  ;;  %v2564_v14 = vsel %vm6082_vm7, %v2561_v8, %v2558_v56  ;;  %v4126_v32 = vor.u32 %v4344_v40, %v4123_v62  ;;  %v4518_v58 = vpop.eup %4517  ;;  %v4342_v8 = vld [vmem:[%s5038_s29 + $0x164] sm:$0xf]  ;;  %v4341_v24 = vld [vmem:[%s5038_s29 + $0x154] sm:$0xf0]  ;;  %v4035_v43 = vld [vmem:[%s5038_s29 + $0xc8] sm:$0xf0] }
 0x335   : > { %v2589_v25 = vsub.f32 0.0, %v2580_v0  ;;  %v2581_v10 = vsel %vm2464_vm6, %v5965_v57, %v2564_v14  ;;  %4525 = vpow2.f32 %v2479_v48  ;;  %v2613_v63 = vadd.f32 1.0, %v4518_v58  ;;  %v4520_v6 = vpop.eup %4519  ;;  %v4322_v48 = vld [vmem:[%s5038_s29 + $0xc4] sm:$0xf]  ;;  %v4107_v14 = vld [vmem:[%s5038_s29 + $0x158] sm:$0xf0] }
 0x336   : > { %v2590_v34 = vsub.f32 0.0, %v2581_v10  ;;  %3027 = vmatpush.bf16.msra.mxu2 %v4126_v32  ;;  %4527 = vpow2.f32 %v5927_v18  ;;  %v2471_v57 = vmin.f32 %v6115_v29, 20.0  ;;  %3010 = vmatpush.bf16.msra.mxu1 %v4054_v7  ;;  %v4046_v27 = vor.u32 %v4324_v20, %v4043_v12  ;;  %v2417_v42 = vpop.f32.mrf.mxu2  ;;  %v4097_v20 = vld [vmem:[%s5038_s29 + $0x140] sm:$0xf] }
 0x337   : > { %v2604_v44 = vmul.f32 1.442695, %v2589_v25  ;;  %4529 = vrcp.f32 %v2613_v63  ;;  %2974 = vmatpush.bf16.msrb.mxu3 %v4114_v17  ;;  %v4118_v26 = vor.u32 %v4342_v8, %v4115_v3  ;;  %v2418_v60 = vadd.f32 %v2417_v42, %v5980_v33  ;;  %v4340_v25 = vld [vmem:[%s5038_s29 + $0x154] sm:$0xf]  ;;  %v4339_v63 = vld [vmem:[%s5038_s29 + $0x144] sm:$0xf0] }
 0x338   : > { %v2606_v59 = vmul.f32 1.442695, %v2590_v34  ;;  %v2485_v18 = vmul.f32 1.442695, %v2471_v57  ;;  %v4106_v62 = vor.u32 %v4341_v24, %v4105_v4  ;;  %v4038_v33 = vor.u32 %v4322_v48, %v4035_v43  ;;  %v4099_v42 = vld [vmem:[%s5038_s29 + $0x148] sm:$0xf0] }
 0x339   : > { %v4522_v19 = vpop.eup %4521  ;;  %4531 = vpow2.f32 %v2604_v44  ;;  %v2436_v40 = vadd.f32 %v5939_v15, %v2418_v60  ;;  %v2642_v32 = vsub.f32 0.0, %v5822_v21  ;;  %v4110_v15 = vor.u32 %v4340_v25, %v4107_v14  ;;  %v4320_v44 = vld [vmem:[%s5038_s29 + $0xb4] sm:$0xf]  ;;  %v4089_v60 = vld [vmem:[%s5038_s29 + $0x130] sm:$0xf] }
 0x33a   : > { %v2614_v56 = vadd.f32 1.0, %v4522_v19  ;;  %v4524_v0 = vpop.eup %4523  ;;  %4533 = vpow2.f32 %v2606_v59  ;;  %3028 = vmatpush.bf16.msra.mxu2 %v4118_v26  ;;  %3011 = vmatpush.bf16.msra.mxu1 %v4046_v27  ;;  %v2628_v12 = vmul.f32 %v4520_v6, %v5709_v9  ;;  %v4098_v57 = vor.u32 %v4339_v63, %v4097_v20  ;;  %v4027_v27 = vld [vmem:[%s5038_s29 + $0xb8] sm:$0xf0]  ;;  %v4338_v59 = vld [vmem:[%s5038_s29 + $0x144] sm:$0xf] }
 0x33b   : > { %v2455_v36 = vpop.f32.mrf.mxu0  ;;  %v6134_v7 = vpop.eup %4525  ;;  %v6143_v28 = vadd.f32 %v6094_v37, %v2436_v40  ;;  %2975 = vmatpush.bf16.msrb.mxu3 %v4106_v62  ;;  %v2629_v19 = vmul.f32 %v4524_v0, %v5753_v11  ;;  %v4318_v48 = vld [vmem:[%s5038_s29 + $0xa4] sm:$0xf]  ;;  %v4019_v25 = vld [vmem:[%s5038_s29 + $0xa8] sm:$0xf0]  ;;  %v4336_v14 = vld [vmem:[%s5038_s29 + $0x134] sm:$0xf] }
 0x33c   : > { %4535 = vrcp.f32 %v2614_v56  ;;  %v2511_v58 = vadd.f32 1.0, %v6134_v7  ;;  %v2514_v10 = vmul.f32 -0.5, %v6134_v7  ;;  %v4528_v22 = vpop.eup %4527  ;;  %v2517_v17 = vand.u32 2147483647, %v6134_v7  ;;  %v4337_v36 = vld [vmem:[%s5038_s29 + $0x134] sm:$0xf0] }
 0x33d   : > { %4537 = vpow2.f32 %v2485_v18  ;;  %v4530_v34 = vpop.eup %4529  ;;  %v2474_v37 = vmin.f32 %v6143_v28, 20.0  ;;  %v4102_v18 = vor.u32 %v4338_v59, %v4099_v42  ;;  %v4090_v0 = vor.u32 %v4337_v36, %v4089_v60  ;;  %v4081_v20 = vld [vmem:[%s5038_s29 + $0x120] sm:$0xf]  ;;  %v4083_v59 = vld [vmem:[%s5038_s29 + $0x128] sm:$0xf0] }
 0x33e   : > { %4539 = vrcp.f32 %v2668_v31  ;;  %v2631_v3 = vmul.f32 %v4530_v34, %v5717_v47  ;;  %3012 = vmatpush.bf16.msra.mxu1 %v4038_v33  ;;  %3029 = vmatpush.bf16.msra.mxu2 %v4110_v15  ;;  %v4030_v31 = vor.u32 %v4320_v44, %v4027_v27  ;;  %v2515_v9 = vadd.f32 1.0, %v2514_v10  ;;  %v2419_v6 = vpop.f32.mrf.mxu2  ;;  %v4335_v34 = vld [vmem:[%s5038_s29 + $0x124] sm:$0xf0]  ;;  %v4073_v42 = vld [vmem:[%s5038_s29 + $0x110] sm:$0xf] }
 0x33f   : > { %4541 = vlog2.f32 %v2511_v58  ;;  %v4532_v8 = vpop.eup %4531  ;;  %v2491_v47 = vmul.f32 1.442695, %v2474_v37  ;;  %2976 = vmatpush.bf16.msrb.mxu3 %v4098_v57  ;;  %v2671_v40 = vadd.f32 1.0, %v4528_v22  ;;  %v2682_v62 = vmul.f32 %v5947_v35, %v2628_v12  ;;  %v4091_v22 = vld [vmem:[%s5038_s29 + $0x138] sm:$0xf0] }
 0x340   : > { %v4534_v26 = vpop.eup %4533  ;;  %v2616_v56 = vadd.f32 1.0, %v4532_v8  ;;  %v2685_v11 = vmul.f32 %v5970_v54, %v2631_v3  ;;  %v2683_v15 = vmul.f32 %v6018_v13, %v2629_v19  ;;  %v4022_v44 = vor.u32 %v4318_v48, %v4019_v25  ;;  %v4316_v12 = vld [vmem:[%s5038_s29 + $0x94] sm:$0xf]  ;;  %v4011_v57 = vld [vmem:[%s5038_s29 + $0x98] sm:$0xf0] }
 0x341   : > { %v2617_v24 = vadd.f32 1.0, %v4534_v26  ;;  %v2516_v8 = vmul.f32 %v6134_v7, %v2515_v9  ;;  %vm6175_vm8 = vcmp.lt.f32.partialorder %v2517_v17, 0.0004427343  ;;  %v4094_v3 = vor.u32 %v4336_v14, %v4091_v22  ;;  %v4314_v60 = vld [vmem:[%s5038_s29 + $0x84] sm:$0xf] }
 0x342   : > { %v4536_v4 = vpop.eup %4535  ;;  %4543 = vrcp.f32 %v2616_v56  ;;  %3013 = vmatpush.bf16.msra.mxu1 %v4030_v31  ;;  %3030 = vmatpush.bf16.msra.mxu2 %v4102_v18  ;;  %v4082_v19 = vor.u32 %v4335_v34, %v4081_v20  ;;  %v4334_v31 = vld [vmem:[%s5038_s29 + $0x124] sm:$0xf]  ;;  %vm2459_vm9 = vcmp.gt.f32.partialorder %v6087_v1, 20.0  ;;  %v4014_v26 = vor.u32 %v4316_v12, %v4011_v57  ;;  %v4333_v56 = vld [vmem:[%s5038_s29 + $0x114] sm:$0xf0] }
 0x343   : > { %v6160_v43 = vpop.eup %4537  ;;  %v2632_v33 = vmul.f32 %v4536_v4, %v5756_v46  ;;  %4545 = vrcp.f32 %v2617_v24  ;;  %v2691_v46 = vpack.c.bf16 %v2685_v11, %v2682_v62  ;;  %2977 = vmatpush.bf16.msrb.mxu3 %v4090_v0  ;;  %v4003_v36 = vld [vmem:[%s5038_s29 + $0x88] sm:$0xf0]  ;;  %v2656_v24 = vmul.f32 1.442695, %v2642_v32  ;;  %v4332_v48 = vld [vmem:[%s5038_s29 + $0x114] sm:$0xf] }
 0x344   : > { %v4540_v58 = vpop.eup %4539  ;;  %v2538_v54 = vadd.f32 1.0, %v6160_v43  ;;  %v2541_v10 = vmul.f32 -0.5, %v6160_v43  ;;  %4547 = vpow2.f32 %v2491_v47  ;;  %v2544_v17 = vand.u32 2147483647, %v6160_v43  ;;  %v4075_v62 = vld [vmem:[%s5038_s29 + $0x118] sm:$0xf0] }
 0x345   : > { %v4542_v35 = vpop.eup %4541  ;;  %v2686_v63 = vmul.f32 %v4540_v58, %v2632_v33  ;;  %2945 = vmatmul.bf16.vlgmr.msrb.gmra.mxu1 %v2691_v46  ;;  %2999 = vmatmul.bf16.vlgmr.msra.gmra.mxu0 %v2691_v46  ;;  %v4086_v11 = vor.u32 %v4334_v31, %v4083_v59  ;;  %v4074_v0 = vor.u32 %v4333_v56, %v4073_v42  ;;  %v4065_v33 = vld [vmem:[%s5038_s29 + $0x100] sm:$0xf]  ;;  %vm2462_vm11 = vcmp.gt.f32.partialorder %v6115_v29, 20.0 }
 0x346   : > { %v2513_v27 = vmul.f32 0.6931472, %v4542_v35  ;;  %4549 = vlog2.f32 %v2538_v54  ;;  %3014 = vmatpush.bf16.msra.mxu1 %v4022_v44  ;;  %v2542_v18 = vadd.f32 1.0, %v2541_v10  ;;  %3031 = vmatpush.bf16.msra.mxu2 %v4094_v3  ;;  %v4006_v54 = vor.u32 %v4314_v60, %v4003_v36  ;;  %v4067_v44 = vld [vmem:[%s5038_s29 + $0x108] sm:$0xf0] }
 0x347   : > { %v6179_v37 = vpack.c.bf16 %v2686_v63, %v2683_v15  ;;  %4551 = vrcp.f32 %v6122_v16  ;;  %2978 = vmatpush.bf16.msrb.mxu3 %v4082_v19  ;;  %vm6201_vm10 = vcmp.lt.f32.partialorder %v2544_v17, 0.0004427343  ;;  %v4330_v63 = vld [vmem:[%s5038_s29 + $0x104] sm:$0xf]  ;;  %vm2465_vm13 = vcmp.gt.f32.partialorder %v6143_v28, 20.0 }
 0x348   : > { %v2519_v7 = vsel %vm6175_vm8, %v2516_v8, %v2513_v27  ;;  %v4544_v9 = vpop.eup %4543  ;;  %4553 = vrcp.f32 %v2671_v40  ;;  %v2543_v21 = vmul.f32 %v6160_v43, %v2542_v18  ;;  %v4078_v40 = vor.u32 %v4332_v48, %v4075_v62 }
 0x349   : > { %v2576_v6 = vsel %vm2459_vm9, %v6087_v1, %v2519_v7  ;;  %2963 = vmatmul.bf16.vlgmr.msrb.gmra.mxu2 %v6179_v37  ;;  %v4546_v4 = vpop.eup %4545  ;;  %v4331_v1 = vld [vmem:[%s5038_s29 + $0x104] sm:$0xf0]  ;;  %v2634_v15 = vmul.f32 %v4544_v9, %v5781_v50  ;;  %v4070_v8 = vor.u32 %v4330_v63, %v4067_v44 }
 0x34a   : > { %v2585_v47 = vsub.f32 0.0, %v2576_v6  ;;  %v4548_v16 = vpop.eup %4547  ;;  %3015 = vmatpush.bf16.msra.mxu1 %v4014_v26  ;;  %3032 = vmatpush.bf16.msra.mxu2 %v4086_v11  ;;  %v4066_v20 = vor.u32 %v4331_v1, %v4065_v33  ;;  %v2635_v43 = vmul.f32 %v4546_v4, %v5812_v39 }
 0x34b   : > { %v2565_v58 = vadd.f32 1.0, %v4548_v16  ;;  %v2568_v22 = vmul.f32 -0.5, %v4548_v16  ;;  %2979 = vmatpush.bf16.msrb.mxu3 %v4074_v0  ;;  %v2571_v3 = vand.u32 2147483647, %v4548_v16 }
 0x34c   : > { %v4550_v25 = vpop.eup %4549  ;;  %v2596_v14 = vmul.f32 1.442695, %v2585_v47 }
 0x34d   : > { %v2540_v10 = vmul.f32 0.6931472, %v4550_v25  ;;  %v4552_v35 = vpop.eup %4551  ;;  %v2569_v27 = vadd.f32 1.0, %v2568_v22  ;;  %vm2572_vm12 = vcmp.lt.f32.partialorder %v2571_v3, 0.0004427343 }
 0x34e   : > { %4555 = vpow2.f32 %v2596_v14  ;;  %3016 = vmatpush.bf16.msra.mxu1 %v4006_v54  ;;  %v2688_v12 = vmul.f32 %v4552_v35, %v2634_v15  ;;  %v4554_v57 = vpop.eup %4553  ;;  %3033 = vmatpush.bf16.msra.mxu2 %v4078_v40 }
 0x34f   : > { %v2546_v46 = vsel %vm6201_vm10, %v2543_v21, %v2540_v10  ;;  %4557 = vlog2.f32 %v2565_v58  ;;  %2980 = vmatpush.bf16.msrb.mxu3 %v4066_v20  ;;  %v2689_v19 = vmul.f32 %v4554_v57, %v2635_v43  ;;  %v2570_v7 = vmul.f32 %v4548_v16, %v2569_v27  ;;  %v4581_v27 = vld [vmem:[#allocation2 + $0x28] sm:$0xff] }
 0x350   : > { %4559 = vpow2.f32 %v5905_v2  ;;  %v2579_v50 = vsel %vm2462_vm11, %v6115_v29, %v2546_v46  ;;  %v2694_v2 = vpack.c.bf16 %v2688_v12, %v2688_v12 }
 0x351   : > { %v2588_v34 = vsub.f32 0.0, %v2579_v50  ;;  %4561 = vpow2.f32 %v2656_v24  ;;  %v2695_v17 = vpack.c.bf16 %v2689_v19, %v2689_v19 }
 0x352   : > { %3034 = vmatpush.bf16.msra.mxu2 %v4070_v8 }
 0x353   : > { %v2602_v13 = vmul.f32 1.442695, %v2588_v34  ;;  %4346 = vmatpush.bf16.msra.mxu3 %v5908_v5  ;;  %v2645_v5 = vsub.f32 0.0, %v5838_v45 }
 0x354   : > { %v4556_v39 = vpop.eup %4555 }
 0x355   : > { %v4558_v31 = vpop.eup %4557  ;;  %4563 = vpow2.f32 %v2602_v13  ;;  %v2612_v29 = vadd.f32 1.0, %v4556_v39  ;;  %2950 = vmatmul.bf16.gmra.mxu1 %v2694_v2  ;;  %v4582_v13 = vld [vmem:[#allocation2 + $0x10] sm:$0xff] }
 0x356   : > { %v4560_v59 = vpop.eup %4559  ;;  %v2567_v42 = vmul.f32 0.6931472, %v4558_v31 }
 0x357   : > { %4347 = vmatpush.bf16.msra.mxu3 %v5931_v49  ;;  %v4562_v56 = vpop.eup %4561  ;;  %v2666_v9 = vadd.f32 1.0, %v4560_v59  ;;  %4565 = vrcp.f32 %v2612_v29  ;;  %v2662_v49 = vmul.f32 1.442695, %v2645_v5  ;;  %v4584_v5 = vld [vmem:[#allocation2] sm:$0xff] }
 0x358   : > { %v2573_v26 = vsel %vm2572_vm12, %v2570_v7, %v2567_v42  ;;  %v2669_v36 = vadd.f32 1.0, %v4562_v56  ;;  %v4583_v56 = vld [vmem:[#allocation2 + $0x8] sm:$0xff] }
 0x359   : > { %v2582_v6 = vsel %vm2465_vm13, %v6143_v28, %v2573_v26  ;;  %2968 = vmatmul.bf16.gmra.mxu2 %v2695_v17  ;;  %4567 = vrcp.f32 %v2666_v9 }
 0x35a   : > { %v2591_v18 = vsub.f32 0.0, %v2582_v6 }
 0x35b   : > { %v4564_v60 = vpop.eup %4563  ;;  %4348 = vmatpush.bf16.msra.mxu3 %v5974_v23 }
 0x35c   : > { %v2615_v4 = vadd.f32 1.0, %v4564_v60  ;;  %v2608_v24 = vmul.f32 1.442695, %v2591_v18 }
 0x35d   : > { %v4566_v47 = vpop.eup %4565 }
 0x35e   : > { %4569 = vrcp.f32 %v2615_v4  ;;  %v2630_v28 = vmul.f32 %v4566_v47, %v5834_v52  ;;  %v4585_v47 = vld [vmem:[#allocation2 + $0x18] sm:$0xff] }
 0x35f   : > { %4571 = vpow2.f32 %v2608_v24  ;;  %4349 = vmatpush.bf16.msra.mxu3 %v5986_v53  ;;  %v4568_v45 = vpop.eup %4567 }
 0x360   : > { %4573 = vrcp.f32 %v2669_v36  ;;  %v2684_v33 = vmul.f32 %v4568_v45, %v2630_v28 }
 0x361   : > { %4575 = vpow2.f32 %v2662_v49 }
 0x363   : > { %4350 = vmatpush.bf16.msra.mxu3 %v6026_v61 }
 0x364   : > { %v4570_v11 = vpop.eup %4569 }
 0x365   : > { %v4572_v0 = vpop.eup %4571  ;;  %v2633_v23 = vmul.f32 %v4570_v11, %v5841_v51  ;;  %3017 = vmatmul.bf16.vlgmr.msra.gmra.mxu1 %v6179_v37 }
 0x366   : > { %v4574_v48 = vpop.eup %4573  ;;  %v2618_v16 = vadd.f32 1.0, %v4572_v0 }
 0x367   : > { %v4576_v62 = vpop.eup %4575  ;;  %v2687_v1 = vmul.f32 %v4574_v48, %v2633_v23  ;;  %4351 = vmatpush.bf16.msra.mxu3 %v6036_v38 }
 0x368   : > { %4577 = vrcp.f32 %v2618_v16  ;;  %v2672_v25 = vadd.f32 1.0, %v4576_v62  ;;  %v4586_v62 = vld [vmem:[#allocation2 + $0x20] sm:$0xff] }
 0x369   : > { %v2693_v53 = vpack.c.bf16 %v2687_v1, %v2684_v33 }
 0x36a   : > { %4579 = vrcp.f32 %v2672_v25 }
 0x36b   : > { %2981 = vmatmul.bf16.vlgmr.msrb.gmra.mxu3 %v2693_v53  ;;  %3035 = vmatmul.bf16.vlgmr.msra.gmra.mxu2 %v2693_v53 }
 0x36c   : > { %4352 = vmatpush.bf16.msra.mxu3 %v6070_v30 }
 0x36e   : > { %v4578_v52 = vpop.eup %4577 }
 0x36f   : > { %v2636_v51 = vmul.f32 %v4578_v52, %v5856_v55  ;;  %v877_v55 = vld [vmem:[%s519_s30] sm:$0x3] }
 0x370   : > { %4353 = vmatpush.bf16.msra.mxu3 %v6089_v41  ;;  %v4580_v61 = vpop.eup %4579  ;;  %v3046_v46 = vperm.slane %v877_v55, 0  ;;  %v3047_v43 = vperm.slane %v877_v55, 1 }
 0x371   : > { %v2690_v14 = vmul.f32 %v4580_v61, %v2636_v51 }
 0x373   : > { %v2696_v37 = vpack.c.bf16 %v2690_v14, %v2690_v14 }
 0x375   : > { %3022 = vmatmul.bf16.gmra.mxu1 %v2695_v17 }
 0x37b   : > { %2986 = vmatmul.bf16.gmra.mxu3 %v2696_v37  ;;  %3040 = vmatmul.bf16.gmra.mxu2 %v2696_v37 }
 0x38b   : > { %3004 = vmatmul.bf16.vlgmr.msra.gmra.mxu3 %v2694_v2 }
 0x3c2   : > { %v2946_v38 = vpop.f32.mrf.mxu1  ;;  %v3000_v41 = vpop.f32.mrf.mxu0 }
 0x3ca   : > { %v2948_v54 = vpop.f32.mrf.mxu1  ;;  %v3002_v19 = vpop.f32.mrf.mxu0 }
 0x3cc   : > { %v2964_v58 = vpop.f32.mrf.mxu2 }
 0x3cd   : > { %v2965_v20 = vadd.f32 %v2964_v58, %v2946_v38 }
 0x3d2   : > { %v2951_v21 = vpop.f32.mrf.mxu1 }
 0x3d4   : > { %v2966_v10 = vpop.f32.mrf.mxu2 }
 0x3d5   : > { %v2967_v31 = vadd.f32 %v2966_v10, %v2948_v54 }
 0x3da   : > { %v2953_v32 = vpop.f32.mrf.mxu1 }
 0x3dc   : > { %v2969_v30 = vpop.f32.mrf.mxu2 }
 0x3dd   : > { %v2970_v60 = vadd.f32 %v2969_v30, %v2951_v21 }
 0x3e2   : > { %v3018_v22 = vpop.f32.mrf.mxu1 }
 0x3e3   : > { %v3019_v35 = vadd.f32 %v3018_v22, %v3000_v41 }
 0x3e4   : > { %v2971_v15 = vpop.f32.mrf.mxu2 }
 0x3ea   : > { %v3020_v40 = vpop.f32.mrf.mxu1 }
 0x3eb   : > { %v3021_v2 = vadd.f32 %v3020_v40, %v3002_v19 }
 0x3ee   : > { %v2982_v63 = vpop.f32.mrf.mxu3  ;;  %v3036_v44 = vpop.f32.mrf.mxu2 }
 0x3ef   : > { %v2983_v50 = vadd.f32 %v2982_v63, %v2965_v20  ;;  %v3037_v34 = vadd.f32 %v3036_v44, %v3019_v35 }
 0x3f1   : > { %v3050_v12 = vmul.f32 %v3046_v46, %v2983_v50  ;;  %v3051_v57 = vmul.f32 %v3047_v43, %v3037_v34 }
 0x3f2   : > { %v3023_v39 = vpop.f32.mrf.mxu1 }
 0x3f3   : > { %v3056_v8 = vadd.f32 %v4581_v27, %v3050_v12  ;;  %v3057_v3 = vadd.f32 %v4582_v13, %v3051_v57 }
 0x3f5   : > { %3062 = vst [vmem:[#allocation2 + $0x28] sm:$0xff] %v3056_v8 }
 0x3f6   : > { %3063 = vst [vmem:[#allocation2 + $0x10] sm:$0xff] %v3057_v3  ;;  %v2984_v59 = vpop.f32.mrf.mxu3  ;;  %v3038_v29 = vpop.f32.mrf.mxu2 }
 0x3f7   : > { %v2985_v42 = vadd.f32 %v2984_v59, %v2967_v31  ;;  %v3039_v7 = vadd.f32 %v3038_v29, %v3021_v2 }
 0x3f9   : > { %v3052_v17 = vmul.f32 %v3046_v46, %v2985_v42  ;;  %v3053_v26 = vmul.f32 %v3047_v43, %v3039_v7 }
 0x3fa   : > { %v3025_v18 = vpop.f32.mrf.mxu1 }
 0x3fb   : > { %v3058_v9 = vadd.f32 %v4583_v56, %v3052_v17  ;;  %v3059_v6 = vadd.f32 %v4584_v5, %v3053_v26 }
 0x3fd   : > { %3064 = vst [vmem:[#allocation2 + $0x8] sm:$0xff] %v3058_v9 }
 0x3fe   : > { %3065 = vst [vmem:[#allocation2] sm:$0xff] %v3059_v6  ;;  %v2987_v36 = vpop.f32.mrf.mxu3  ;;  %v3041_v4 = vpop.f32.mrf.mxu2 }
 0x3ff   : > { %v2988_v24 = vadd.f32 %v2987_v36, %v2970_v60 }
 0x401   : > { %v3054_v49 = vmul.f32 %v3046_v46, %v2988_v24 }
 0x403   : > { %v3060_v45 = vadd.f32 %v4585_v47, %v3054_v49 }
 0x405   : > { %3066 = vst [vmem:[#allocation2 + $0x18] sm:$0xff] %v3060_v45 }
 0x406   : > { %v2989_v28 = vpop.f32.mrf.mxu3  ;;  %v3043_v11 = vpop.f32.mrf.mxu2 }
 0x40e   : > { %v3005_v0 = vpop.f32.mrf.mxu3 }
 0x40f   : > { %v3024_v23 = vadd.f32 %v3023_v39, %v3005_v0 }
 0x411   : > { %v3042_v48 = vadd.f32 %v3041_v4, %v3024_v23 }
 0x413   : > { %v3055_v16 = vmul.f32 %v3047_v43, %v3042_v48  ;;  %3071 = sbr.rel (%p4127_p10) target bundleno = 1056 (0x420), region = 92 }
 0x415   : > { %v3061_v33 = vadd.f32 %v4586_v62, %v3055_v16 }
 0x416   : > { %v3007_v1 = vpop.f32.mrf.mxu3 }
 0x417   : > { %3067 = vst [vmem:[#allocation2 + $0x20] sm:$0xff] %v3061_v33 }
 0x418   : > { %v3072_v53 = vld [vmem:[#allocation2 + $0x28] sm:$0xff]  ;;  %v3073_v25 = vld [vmem:[#allocation2 + $0x10] sm:$0xff]  ;;  %v3075_v51 = vld [vmem:[#allocation2] sm:$0xff] }
 0x419   : > { %v3074_v52 = vld [vmem:[#allocation2 + $0x8] sm:$0xff]  ;;  %3078 = vst [vmem:[%s6323_s1] sm:$0xff] %v3072_v53  ;;  %v3076_v61 = vld [vmem:[#allocation2 + $0x18] sm:$0xff] }
 0x41a   : > { %3079 = vst [vmem:[%s6323_s1 + $0x8] sm:$0xff] %v3073_v25 }
 0x41b   : > { %3080 = vst [vmem:[%s6323_s1 + $0x10] sm:$0xff] %v3074_v52 }
 0x41c   : > { %3081 = vst [vmem:[%s6323_s1 + $0x18] sm:$0xff] %v3075_v51 }
 0x41d   : > { %3082 = vst [vmem:[%s6323_s1 + $0x20] sm:$0xff] %v3076_v61 }
 0x41e   : > { %v3077_v14 = vld [vmem:[#allocation2 + $0x20] sm:$0xff] }
 0x41f   : > { %3083 = vst [vmem:[%s6323_s1 + $0x28] sm:$0xff] %v3077_v14 }
 0x420 PF: > { %s6324_s20 = sld [smem:[#allocation15_spill]]  ;;  %s6327_s17 = smov %s4771_s18 }
 0x421   : > { %s6325_s22 = sld [smem:[#allocation14_spill]] }
 0x422   : > { %s6326_s19 = sld [smem:[#allocation16_spill]] }
 0x426   : > { %p27_p5 = scmp.ge.s32.totalorder %s6324_s20, 6  }
 0x427   : > { %s6328_s18 = smov %s6325_s22 }
 0x428   :  { %29 = sbr.rel (!%p27_p5) target bundleno = 16 (0x10), region = 165 }
 0x42d   :  { %3095 = vsyncpa [#allocation4], 1 }
 0x42e   :  { %3097 = vsyncpa [#allocation4 + $0x1], 1 }
 0x42f   :  { %3098 = vsyncpa [#allocation6], 1 }
 0x430   :  { %3100 = vsyncpa [#allocation6 + $0x1], 1 }
 0x431   :  { %3101 = vsyncpa [#allocation9], 1 }
 0x432   :  { %3103 = vsyncpa [#allocation9 + $0x1], 1 }

// kernel: forward.4
= control target key start
LH: loop header
LB: loop body
LE: loop exit
PB: predicated region body
PF: predicated region fallthrough
CT: control target
= control target key end

     0   :  { %s9872_s0 = inlined_call_operand.vmem [shape: f32[32,256], index: 0, kind: input, shape index: {}]   ;;  %s9873_s1 = inlined_call_operand.vmem [shape: f32[32,1], index: 1, kind: input, shape index: {}]   ;;  %s9874_s2 = inlined_call_operand.vmem [shape: f32[32,1], index: 2, kind: input, shape index: {}]   ;;  %s9875_s3 = inlined_call_operand.hbm [shape: f32[2,1,256], index: 3, kind: input, shape index: {}]   ;;  %s9876_s4 = inlined_call_operand.hbm [shape: f32[2,1,256], index: 4, kind: input, shape index: {}]   ;;  %s9877_s5 = inlined_call_operand.hbm [shape: bf16[2,256,768], index: 5, kind: input, shape index: {}]   ;;  %s9878_s6 = inlined_call_operand.vmem [shape: f32[2,3,384], index: 6, kind: input, shape index: {}]   ;;  %s9879_s7 = inlined_call_operand.hbm [shape: bf16[2,384,384], index: 7, kind: input, shape index: {}]   ;;  %s9880_s8 = inlined_call_operand.hbm [shape: f32[2,1,384], index: 8, kind: input, shape index: {}]   ;;  %s9881_s9 = inlined_call_operand.hbm [shape: bf16[2,384,256], index: 9, kind: input, shape index: {}]   ;;  %s9882_s10 = inlined_call_operand.hbm [shape: f32[2,1,256], index: 10, kind: input, shape index: {}]   ;;  %s9883_s11 = inlined_call_operand.hbm [shape: f32[1,256], index: 11, kind: input, shape index: {}]   ;;  %s9884_s12 = inlined_call_operand.hbm [shape: f32[1,256], index: 12, kind: input, shape index: {}]   ;;  %s9885_s13 = inlined_call_operand.hbm [shape: bf16[256,256], index: 13, kind: input, shape index: {}]   ;;  %s9886_s14 = inlined_call_operand.hbm [shape: f32[1,256], index: 14, kind: input, shape index: {}]   ;;  %s9887_s15 = inlined_call_operand.hbm [shape: f32[1,256], index: 15, kind: input, shape index: {}]   ;;  %s9888_s16 = inlined_call_operand.hbm [shape: f32[1,256], index: 16, kind: input, shape index: {}]   ;;  %s9889_s17 = inlined_call_operand.hbm [shape: bf16[256,256], index: 17, kind: input, shape index: {}]   ;;  %s9890_s18 = inlined_call_operand.hbm [shape: f32[1,256], index: 18, kind: input, shape index: {}]   ;;  %s9891_s19 = inlined_call_operand.hbm [shape: bf16[256,128], index: 19, kind: input, shape index: {}]   ;;  %s9892_s20 = inlined_call_operand.hbm [shape: f32[1,128], index: 20, kind: input, shape index: {}]   ;;  %s9893_s21 = inlined_call_operand.hbm [shape: f32[1,128], index: 21, kind: input, shape index: {}]   ;;  %s9894_s22 = inlined_call_operand.<no memory space> [shape: f32[1,1], index: 22, kind: input, shape index: {}]   ;;  %s9895_s23 = inlined_call_operand.hbm [shape: f32[32,256], index: 23, kind: output, shape index: {0}]   ;;  %s9896_s24 = inlined_call_operand.vmem [shape: f32[2,256], index: 24, kind: output, shape index: {1}]   ;;  %s9897_s25 = inlined_call_operand.vmem [shape: f32[2,1], index: 25, kind: output, shape index: {2}]  }
   0x1   :  { %9935 = sst [smem:[#allocation59_spill]] %s9872_s0  ;;  %v31_v0 = vstv %s9894_s22 }
   0x2   :  { %9936 = sst [smem:[#allocation60_spill]] %s9873_s1  ;;  %32 = vst [vmem:[#allocation3] sm:$0x1] %v31_v0 }
   0x3   :  { %9937 = sst [smem:[#allocation61_spill]] %s9874_s2 }
   0x4   :  { %9938 = sst [smem:[#allocation62_spill]] %s9875_s3 }
   0x5   :  { %9939 = sst [smem:[#allocation63_spill]] %s9876_s4 }
   0x6   :  { %9940 = sst [smem:[#allocation64_spill]] %s9877_s5 }
   0x7   :  { %9941 = sst [smem:[#allocation65_spill]] %s9878_s6 }
   0x8   :  { %9942 = sst [smem:[#allocation66_spill]] %s9879_s7 }
   0x9   :  { %9943 = sst [smem:[#allocation67_spill]] %s9880_s8 }
   0xa   :  { %9944 = sst [smem:[#allocation68_spill]] %s9881_s9 }
   0xb   :  { %9945 = sst [smem:[#allocation69_spill]] %s9882_s10 }
   0xc   :  { %9946 = sst [smem:[#allocation70_spill]] %s9883_s11 }
   0xd   :  { %9947 = sst [smem:[#allocation71_spill]] %s9884_s12 }
   0xe   :  { %9948 = sst [smem:[#allocation72_spill]] %s9885_s13 }
   0xf   :  { %9949 = sst [smem:[#allocation73_spill]] %s9886_s14 }
  0x10   :  { %9950 = sst [smem:[#allocation74_spill]] %s9887_s15 }
  0x11   :  { %9951 = sst [smem:[#allocation75_spill]] %s9888_s16 }
  0x12   :  { %9952 = sst [smem:[#allocation76_spill]] %s9889_s17 }
  0x13   :  { %9953 = sst [smem:[#allocation77_spill]] %s9891_s19 }
  0x14   :  { %9954 = sst [smem:[#allocation78_spill]] %s9893_s21 }
  0x15   :  { %9955 = sst [smem:[#allocation79_spill]] %s9895_s23 }
  0x16   :  { %9956 = sst [smem:[#allocation80_spill]] %s9896_s24 }
  0x17   :  { %9957 = sst [smem:[#allocation81_spill]] %s9897_s25 }
  0x18   :  { %33 = vsyncpa [#allocation5], 0 }
  0x19   :  { %35 = vsyncpa [#allocation5 + $0x1], 0 }
  0x1a   :  { %36 = vsyncpa [#allocation8], 0 }
  0x1b   :  { %38 = vsyncpa [#allocation8 + $0x1], 0 }
  0x1c   :  { %39 = vsyncpa [#allocation11], 0 }
  0x1d   :  { %41 = vsyncpa [#allocation11 + $0x1], 0 }
  0x1e   :  { %42 = vsyncpa [#allocation14], 0 }
  0x1f   :  { %44 = vsyncpa [#allocation14 + $0x1], 0 }
  0x20   :  { %45 = vsyncpa [#allocation17], 0 }
  0x21   :  { %46 = vsyncpa [#allocation20], 0 }
  0x22   :  { %47 = vsyncpa [#allocation23], 0 }
  0x23   :  { %48 = vsyncpa [#allocation26], 0 }
  0x24   :  { %49 = vsyncpa [#allocation29], 0 }
  0x25   :  { %50 = vsyncpa [#allocation32], 0 }
  0x26   :  { %51 = vsyncpa [#allocation6], 0  ;;  %s7925_s6 = smov 0   ;;  %s7927_s30 = smov 0  }
  0x27   :  { %s7929_s22 = smov 0   ;;  %s7931_s7 = smov 0  }
  0x28 LB: > { %9958 = sst [smem:[#allocation45_spill]] %s7757_s30  ;;  %s7949_s8 = sadd.s32 4294967295, %s7765_s7   ;;  %s7765_s7 = sphi %s7931_s7, %s10040_s7   ;;  %s7761_s22 = sphi %s7929_s22, %s10043_s22   ;;  %s7757_s30 = sphi %s7927_s30, %s10042_s30   ;;  %s7753_s6 = sphi %s7925_s6, %s10041_s6  }
  0x29   : > { %9959 = sst [smem:[#allocation46_spill]] %s7761_s22  ;;  %p5140_p0 = scmp.ge.s32.totalorder %s7765_s7, 1 }
  0x2a   : > { %s9960_s11 = sld [smem:[#allocation70_spill]]  ;;  %p141_p1 = scmp.eq.s32.totalorder %s7949_s8, 0 }
  0x2b   : > { %9961 = sst [smem:[#allocation47_spill]] %s7949_s8  ;;  %p648_p2 = scmp.lt.s32.totalorder %s7765_s7, 3 }
  0x2c   : > { %p5141_p3 = scmp.ne.s32.totalorder %s7949_s8, 0  ;;  %s7767_s4 = smov [#allocation16]  }
  0x2d   : > { %p7955_p4 = pnand %p5140_p0, %p648_p2  ;;  %s671_s28 = sshll.u32 %s7767_s4, 4  ;;  %s672_s28 = int_to_ptr.vmem [resolvable:$true] %s671_s28 }
  0x2e   : > { %s9964_s13 = sld [smem:[#allocation72_spill]]  ;;  %s7768_s2 = smov [#allocation19]  }
  0x2f   : > { %s9962_s27 = scalar_select %p7955_p4, 1, 0 }
  0x30   : > { %s669_s1 = sshll.u32 %s9960_s11, 4  ;;  %p6747_p5 = pneg %p7955_p4  ;;  %s670_s1 = int_to_ptr.hbm [resolvable:$true] %s669_s1 }
  0x31   : > { %9963 = sst [smem:[#allocation48_spill]] %s9962_s27  ;;  %s694_s3 = sshll.u32 %s7768_s2, 4  ;;  %s695_s3 = int_to_ptr.vmem [resolvable:$true] %s694_s3 }
  0x32   : > { %p7966_p6 = pnand %p6747_p5, %p141_p1  ;;  %s9907_s26 = smov 128  }
  0x33   : > { %s9908_s4 = smov 8   ;;  %s9966_s15 = sld [smem:[#allocation74_spill]] }
  0x34   : > { %s692_s0 = sshll.u32 %s9964_s13, 4  ;;  %s7771_s13 = smov [#allocation22]   ;;  %s693_s0 = int_to_ptr.hbm [resolvable:$true] %s692_s0 }
  0x35   : > { %6750 = dma.hbm_to_vmem [thread:$0]  (!%p7966_p6), %s670_s1, 32, %s672_s28, [#allocation17]  }
  0x36   : > { %6756 = dma.hbm_to_vmem [thread:$0]  (!%p7966_p6), %s693_s0, 4096, %s695_s3, [#allocation20], %s9907_s26, %s9907_s26, %s9908_s4  }
  0x37   : > { %s721_s23 = sshll.u32 %s7771_s13, 4  ;;  %s9967_s17 = sld [smem:[#allocation76_spill]]  ;;  %s722_s23 = int_to_ptr.vmem [resolvable:$true] %s721_s23 }
  0x38   : > { %s7772_s28 = smov [#allocation25]   ;;  %s9968_s19 = sld [smem:[#allocation77_spill]] }
  0x39   : > { %s719_s11 = sshll.u32 %s9966_s15, 4  ;;  %s744_s0 = sshll.u32 %s7772_s28, 4  ;;  %s720_s11 = int_to_ptr.hbm [resolvable:$true] %s719_s11  ;;  %s745_s0 = int_to_ptr.vmem [resolvable:$true] %s744_s0 }
  0x3a   : > { %6762 = dma.hbm_to_vmem [thread:$0]  (!%p7966_p6), %s720_s11, 32, %s722_s23, [#allocation23]  }
  0x3b   : > { %s7773_s11 = smov [#allocation28]   ;;  %s7774_s25 = smov 64  }
  0x3c   : > { %s770_s23 = sshll.u32 %s7773_s11, 4  ;;  %s7775_s5 = smov 4   ;;  %s771_s23 = int_to_ptr.vmem [resolvable:$true] %s770_s23 }
  0x3d   : > { %s742_s1 = sshll.u32 %s9967_s17, 4  ;;  %s7996_s2 = sadd.s32 1, %s7765_s7   ;;  %s743_s1 = int_to_ptr.hbm [resolvable:$true] %s742_s1 }
  0x3e   : > { %s768_s13 = sshll.u32 %s9968_s19, 4  ;;  %9969 = sst [smem:[#allocation49_spill]] %s7996_s2  ;;  %s769_s13 = int_to_ptr.hbm [resolvable:$true] %s768_s13 }
  0x3f   : > { %6768 = dma.hbm_to_vmem [thread:$0]  (!%p7966_p6), %s743_s1, 4096, %s745_s0, [#allocation26], %s9907_s26, %s9907_s26, %s9908_s4  }
  0x40   : > { %6774 = dma.hbm_to_vmem [thread:$0]  (!%p7966_p6), %s769_s13, 2048, %s771_s23, [#allocation29], %s7774_s25, %s7774_s25, %s7775_s5  }
  0x41   : > { %s124_s28 = ssub.s32 %s7765_s7, %s7996_s2  ;;  %s127_s3 = sadd.s32 1, %s7761_s22 }
  0x42   : > { %p125_p7 = scmp.eq.s32.totalorder %s124_s28, 0  ;;  %p134_p8 = scmp.ne.s32.totalorder %s7761_s22, %s7757_s30 }
  0x43   : > { %p135_p9 = scmp.eq.s32.totalorder %s7765_s7, 0  ;;  %p140_p10 = scmp.ne.s32.totalorder %s7757_s30, %s7753_s6 }
  0x44   : > { %s8007_s1 = scalar_select %p125_p7, %s7761_s22, %s127_s3  }
  0x45   : > { %p136_p11 = por %p135_p9, %p134_p8  ;;  %p8011_p12 = por %p141_p1, %p140_p10 }
  0x46   : > { %9970 = sst [smem:[#allocation50_spill]] %s8007_s1  ;;  %p6814_p13 = scmp.lt.s32.totalorder %s7765_s7, 2 }
  0x47   : > { %s9971_s0 = scalar_select %p8011_p12, 1, 0 }
  0x48   : > { %s8017_s9 = sand.u32 1, %s7761_s22   ;;  %s8023_s11 = sshll.u32 %s7765_s7, 1 }
  0x49   : > { %9972 = sst [smem:[#allocation51_spill]] %s9971_s0  ;;  %s8020_s13 = sshll.u32 %s8017_s9, 1 }
  0x4a   : > { %9973 = sst [smem:[#allocation52_spill]] %s8017_s9  ;;  %p8025_p0 = pnand %p6814_p13, %p136_p11 }
  0x4b   : > { %9974 = sst [smem:[#allocation53_spill]] %s8020_s13  ;;  %s8030_s23 = sand.u32 1, %s7765_s7  }
  0x4c   : > { %s9976_s28 = sld [smem:[#allocation63_spill]]  ;;  %s834_s4 = scalar_lea.vmem [#allocation7], %s8020_s13 }
  0x4d   : > { %s842_s15 = sshll.u32 %s834_s4, 4  ;;  %s9919_s17 = scalar_lea.sflag [#allocation8], %s8030_s23  ;;  %s843_s15 = int_to_ptr.vmem [resolvable:$true] %s842_s15 }
  0x4e   : > { %p8040_p5 = pneg %p8025_p0 }
  0x52   : > { %s838_s3 = scalar_lea.hbm %s9976_s28, %s8023_s11  ;;  %s7280_s4 = scalar_lea.hbm %s9976_s28, 4 }
  0x53   : > { %s840_s26 = sshll.u32 %s838_s3, 4  ;;  %s841_s26 = int_to_ptr.hbm [resolvable:$true] %s840_s26 }
  0x54   : > { %s7273_s19 = sshra.s32 %s841_s26, 4  ;;  %s7274_s19 = int_to_ptr.hbm [resolvable:$true] %s7273_s19 }
  0x55   : > { %s7275_s1 = scalar_lea.hbm %s7274_s19, 2  ;;  %p7281_p9 = scmp.lt.s32.totalorder %s7274_s19, %s9976_s28 }
  0x56   : > { %p7276_p2 = scmp.ne.s32.totalorder %s7274_s19, %s7275_s1  ;;  %p7282_p10 = scmp.lt.s32.totalorder %s7280_s4, %s7275_s1 }
  0x58   : > { %p7278_p7 = pnand %p8040_p5, %p7276_p2  ;;  %p7283_p11 = por %p7282_p10, %p7281_p9 }
  0x5a   : > { %p7279_p8 = pneg %p7278_p7 }
  0x5c   : > { %p7284_p13 = pnand %p7283_p11, %p7279_p8 }
  0x5e   : > { %7287 = shalt.err (!%p7284_p13)
}
  0x5f   : > { %6787 = dma.hbm_to_vmem [thread:$0]  (!%p8025_p0), %s841_s26, 32, %s843_s15, %s9919_s17  }
  0x60   : > { %s6674_s25 = smul.u32 576, %s8017_s9  ;;  %s9978_s19 = sld [smem:[#allocation66_spill]] }
  0x61   : > { %s6675_s5 = smul.u32 576, %s7765_s7  ;;  %s9927_s0 = scalar_lea.sflag [#allocation11], %s8030_s23 }
  0x62   : > { %s6678_s24 = smul.u32 384, %s8017_s9  ;;  %s883_s4 = scalar_lea.vmem [#allocation10], %s6674_s25 }
  0x63   : > { %s891_s3 = sshll.u32 %s883_s4, 4  ;;  %s892_s3 = int_to_ptr.vmem [resolvable:$true] %s891_s3 }
  0x66   : > { %s888_s1 = scalar_lea.hbm %s9978_s19, %s6675_s5  ;;  %s7310_s17 = scalar_lea.hbm %s9978_s19, 1152 }
  0x67   : > { %s889_s28 = sshll.u32 %s888_s1, 4  ;;  %s890_s28 = int_to_ptr.hbm [resolvable:$true] %s889_s28 }
  0x68   : > { %s7303_s30 = sshra.s32 %s890_s28, 4  ;;  %s7304_s30 = int_to_ptr.hbm [resolvable:$true] %s7303_s30 }
  0x69   : > { %s7305_s27 = scalar_lea.hbm %s7304_s30, 576  ;;  %p7311_p9 = scmp.lt.s32.totalorder %s7304_s30, %s9978_s19 }
  0x6a   : > { %p7306_p2 = scmp.ne.s32.totalorder %s7304_s30, %s7305_s27  ;;  %p7312_p10 = scmp.lt.s32.totalorder %s7310_s17, %s7305_s27 }
  0x6c   : > { %p7308_p7 = pnand %p7306_p2, %p8040_p5  ;;  %p7313_p11 = por %p7312_p10, %p7311_p9 }
  0x6e   : > { %p7309_p8 = pneg %p7308_p7 }
  0x70   : > { %p7314_p13 = pnand %p7313_p11, %p7309_p8 }
  0x72   : > { %7317 = shalt.err (!%p7314_p13)
}
  0x73   : > { %s7776_s25 = smov 192   ;;  %s7777_s5 = smov 12  }
  0x74   : > { %6793 = dma.hbm_to_vmem [thread:$0]  (!%p8025_p0), %s890_s28, 9216, %s892_s3, %s9927_s0, %s7776_s25, %s7776_s25, %s7777_s5  }
  0x75   : > { %s6679_s2 = smul.u32 384, %s7765_s7  ;;  %s924_s1 = scalar_lea.vmem [#allocation13], %s6678_s24 }
  0x76   : > { %s932_s4 = sshll.u32 %s924_s1, 4  ;;  %s9979_s12 = sld [smem:[#allocation71_spill]]  ;;  %s933_s4 = int_to_ptr.vmem [resolvable:$true] %s932_s4 }
  0x77   : > { %s9980_s26 = sld [smem:[#allocation68_spill]]  ;;  %s7778_s9 = smov [#allocation18]  }
  0x78   : > { %s683_s21 = sshll.u32 %s7778_s9, 4  ;;  %s9926_s13 = scalar_lea.sflag [#allocation14], %s8030_s23  ;;  %s684_s21 = int_to_ptr.vmem [resolvable:$true] %s683_s21 }
  0x7c   : > { %s681_s17 = sshll.u32 %s9979_s12, 4  ;;  %s682_s17 = int_to_ptr.hbm [resolvable:$true] %s681_s17 }
  0x7d   : > { %s929_s8 = scalar_lea.hbm %s9980_s26, %s6679_s2  ;;  %s7340_s5 = scalar_lea.hbm %s9980_s26, 768 }
  0x7e   : > { %s930_s19 = sshll.u32 %s929_s8, 4  ;;  %s931_s19 = int_to_ptr.hbm [resolvable:$true] %s930_s19 }
  0x7f   : > { %s7333_s28 = sshra.s32 %s931_s19, 4  ;;  %s7334_s28 = int_to_ptr.hbm [resolvable:$true] %s7333_s28 }
  0x80   : > { %s7335_s3 = scalar_lea.hbm %s7334_s28, 384  ;;  %p7341_p9 = scmp.lt.s32.totalorder %s7334_s28, %s9980_s26 }
  0x81   : > { %p7336_p2 = scmp.ne.s32.totalorder %s7334_s28, %s7335_s3  ;;  %p7342_p10 = scmp.lt.s32.totalorder %s7340_s5, %s7335_s3 }
  0x83   : > { %p7338_p7 = pnand %p7336_p2, %p8040_p5  ;;  %p7343_p11 = por %p7342_p10, %p7341_p9 }
  0x85   : > { %p7339_p8 = pneg %p7338_p7 }
  0x87   : > { %p7344_p13 = pnand %p7343_p11, %p7339_p8 }
  0x89   : > { %7347 = shalt.err (!%p7344_p13)
}
  0x8a   : > { %s9981_s9 = smov 8   ;;  %s9982_s2 = smov 128  }
  0x8b   : > { %6799 = dma.hbm_to_vmem [thread:$0]  (!%p8025_p0), %s931_s19, 6144, %s933_s4, %s9926_s13, %s9982_s2, %s9982_s2, %s9981_s9  }
  0x8c   : > { %s9983_s14 = sld [smem:[#allocation73_spill]]  ;;  %s7779_s8 = smov [#allocation21]  }
  0x8d   : > { %6753 = dma.hbm_to_vmem [thread:$0]  (!%p7966_p6), %s682_s17, 32, %s684_s21, [#allocation17]  }
  0x8e   : > { %s709_s28 = sshll.u32 %s7779_s8, 4  ;;  %s9984_s16 = sld [smem:[#allocation75_spill]]  ;;  %s710_s28 = int_to_ptr.vmem [resolvable:$true] %s709_s28 }
  0x8f   : > { %s757_s5 = sshll.u32 %s9890_s18, 4  ;;  %s7780_s1 = smov [#allocation24]   ;;  %s758_s5 = int_to_ptr.hbm [resolvable:$true] %s757_s5 }
  0x90   : > { %s733_s10 = sshll.u32 %s7780_s1, 4  ;;  %s7781_s21 = smov [#allocation27]   ;;  %s734_s10 = int_to_ptr.vmem [resolvable:$true] %s733_s10 }
  0x91   : > { %s759_s17 = sshll.u32 %s7781_s21, 4  ;;  %s9985_s30 = sld [smem:[#allocation53_spill]]  ;;  %s760_s17 = int_to_ptr.vmem [resolvable:$true] %s759_s17 }
  0x92   : > { %s707_s15 = sshll.u32 %s9983_s14, 4  ;;  %s783_s27 = sshll.u32 %s9892_s20, 4  ;;  %s708_s15 = int_to_ptr.hbm [resolvable:$true] %s707_s15  ;;  %s784_s27 = int_to_ptr.hbm [resolvable:$true] %s783_s27 }
  0x93   : > { %6759 = dma.hbm_to_vmem [thread:$0]  (!%p7966_p6), %s708_s15, 32, %s710_s28, [#allocation20]  }
  0x94   : > { %s731_s25 = sshll.u32 %s9984_s16, 4  ;;  %s9986_s28 = sld [smem:[#allocation78_spill]]  ;;  %s732_s25 = int_to_ptr.hbm [resolvable:$true] %s731_s25 }
  0x95   : > { %6765 = dma.hbm_to_vmem [thread:$0]  (!%p7966_p6), %s732_s25, 32, %s734_s10, [#allocation23]  }
  0x96   : > { %6771 = dma.hbm_to_vmem [thread:$0]  (!%p7966_p6), %s758_s5, 32, %s760_s17, [#allocation26]  }
  0x97   : > { %s9987_s24 = sld [smem:[#allocation52_spill]]  ;;  %s7782_s19 = smov [#allocation30]  }
  0x98   : > { %s785_s25 = sshll.u32 %s7782_s19, 4  ;;  %s7783_s4 = smov [#allocation31]   ;;  %s786_s25 = int_to_ptr.vmem [resolvable:$true] %s785_s25 }
  0x99   : > { %6777 = dma.hbm_to_vmem [thread:$0]  (!%p7966_p6), %s784_s27, 16, %s786_s25, [#allocation29]  }
  0x9a   : > { %s795_s3 = sshll.u32 %s9986_s28, 4  ;;  %s797_s1 = sshll.u32 %s7783_s4, 4  ;;  %s796_s3 = int_to_ptr.hbm [resolvable:$true] %s795_s3  ;;  %s798_s1 = int_to_ptr.vmem [resolvable:$true] %s797_s1 }
  0x9b   : > { %6780 = dma.hbm_to_vmem [thread:$0]  (!%p7966_p6), %s796_s3, 16, %s798_s1, [#allocation32]  }
  0x9c   : > { %s9988_s21 = sld [smem:[#allocation62_spill]]  ;;  %s815_s9 = scalar_lea.vmem [#allocation4], %s9985_s30 }
  0x9d   : > { %s823_s2 = sshll.u32 %s815_s9, 4  ;;  %s6672_s8 = smul.u32 768, %s9987_s24  ;;  %s824_s2 = int_to_ptr.vmem [resolvable:$true] %s823_s2 }
  0x9e   : > { %s812_s28 = scalar_lea.sflag [#allocation5], %s9987_s24 }
  0xa2   : > { %s819_s17 = scalar_lea.hbm %s9988_s21, %s8023_s11  ;;  %s7550_s25 = scalar_lea.hbm %s9988_s21, 4 }
  0xa3   : > { %s821_s15 = sshll.u32 %s819_s17, 4  ;;  %s822_s15 = int_to_ptr.hbm [resolvable:$true] %s821_s15 }
  0xa4   : > { %s7543_s19 = sshra.s32 %s822_s15, 4  ;;  %s7544_s19 = int_to_ptr.hbm [resolvable:$true] %s7543_s19 }
  0xa5   : > { %s7545_s27 = scalar_lea.hbm %s7544_s19, 2  ;;  %p7551_p6 = scmp.lt.s32.totalorder %s7544_s19, %s9988_s21 }
  0xa6   : > { %p7546_p2 = scmp.ne.s32.totalorder %s7544_s19, %s7545_s27  ;;  %p7552_p9 = scmp.lt.s32.totalorder %s7550_s25, %s7545_s27 }
  0xa8   : > { %p7548_p7 = pnand %p7546_p2, %p8040_p5  ;;  %p7553_p10 = por %p7552_p9, %p7551_p6 }
  0xaa   : > { %p7549_p8 = pneg %p7548_p7 }
  0xac   : > { %p7554_p11 = pnand %p7553_p10, %p7549_p8 }
  0xae   : > { %7557 = shalt.err (!%p7554_p11)
}
  0xaf   : > { %6784 = dma.hbm_to_vmem [thread:$0]  (!%p8025_p0), %s822_s15, 32, %s824_s2, %s812_s28  }
  0xb0   : > { %s6673_s10 = smul.u32 768, %s7765_s7  ;;  %s853_s5 = scalar_lea.vmem [#allocation9], %s6672_s8 }
  0xb1   : > { %s861_s17 = sshll.u32 %s853_s5, 4  ;;  %s9989_s3 = sld [smem:[#allocation64_spill]]  ;;  %s862_s17 = int_to_ptr.vmem [resolvable:$true] %s861_s17 }
  0xb2   : > { %s6676_s19 = smul.u32 3, %s9987_s24 }
  0xb7   : > { %s858_s13 = scalar_lea.hbm %s9989_s3, %s6673_s10  ;;  %s7580_s15 = scalar_lea.hbm %s9989_s3, 1536 }
  0xb8   : > { %s859_s4 = sshll.u32 %s858_s13, 4  ;;  %s860_s4 = int_to_ptr.hbm [resolvable:$true] %s859_s4 }
  0xb9   : > { %s7573_s27 = sshra.s32 %s860_s4, 4  ;;  %s7574_s27 = int_to_ptr.hbm [resolvable:$true] %s7573_s27 }
  0xba   : > { %s7575_s25 = scalar_lea.hbm %s7574_s27, 768  ;;  %p7581_p8 = scmp.lt.s32.totalorder %s7574_s27, %s9989_s3 }
  0xbb   : > { %p7576_p13 = scmp.ne.s32.totalorder %s7574_s27, %s7575_s25  ;;  %p7582_p6 = scmp.lt.s32.totalorder %s7580_s15, %s7575_s25 }
  0xbd   : > { %p7578_p2 = pnand %p7576_p13, %p8040_p5  ;;  %p7583_p9 = por %p7582_p6, %p7581_p8 }
  0xbf   : > { %p7579_p7 = pneg %p7578_p2 }
  0xc1   : > { %p7584_p10 = pnand %p7583_p9, %p7579_p7 }
  0xc3   : > { %7587 = shalt.err (!%p7584_p10)
}
  0xc4   : > { %s7784_s13 = smov 384   ;;  %s7785_s24 = smov 24  }
  0xc5   : > { %s9990_s10 = scalar_lea.sflag [#allocation8], %s8030_s23  ;;  %s6677_s5 = smul.u32 3, %s7765_s7 }
  0xc6   : > { %6790 = dma.hbm_to_vmem [thread:$0]  (!%p8025_p0), %s860_s4, 12288, %s862_s17, %s9990_s10, %s7784_s13, %s7784_s13, %s7785_s24  }
  0xc7   : > { %s905_s9 = scalar_lea.vmem [#allocation12], %s6676_s19  ;;  %s9991_s27 = sld [smem:[#allocation67_spill]] }
  0xc8   : > { %s913_s29 = sshll.u32 %s905_s9, 4  ;;  %s9992_s0 = sld [smem:[#allocation69_spill]]  ;;  %s914_s29 = int_to_ptr.vmem [resolvable:$true] %s913_s29 }
  0xcd   : > { %s909_s25 = scalar_lea.hbm %s9991_s27, %s6677_s5  ;;  %s7610_s4 = scalar_lea.hbm %s9991_s27, 6 }
  0xce   : > { %s911_s15 = sshll.u32 %s909_s25, 4  ;;  %s950_s3 = scalar_lea.hbm %s9992_s0, %s8023_s11  ;;  %s912_s15 = int_to_ptr.hbm [resolvable:$true] %s911_s15 }
  0xcf   : > { %s8167_s12 = sshll.u32 %s950_s3, 4  ;;  %s7603_s14 = sshra.s32 %s912_s15, 4  ;;  %s7604_s14 = int_to_ptr.hbm [resolvable:$true] %s7603_s14  ;;  %s953_s12 = int_to_ptr.hbm [resolvable:$true] %s8167_s12 }
  0xd0   : > { %s7605_s16 = scalar_lea.hbm %s7604_s14, 3  ;;  %p7611_p7 = scmp.lt.s32.totalorder %s7604_s14, %s9991_s27 }
  0xd1   : > { %p7606_p11 = scmp.ne.s32.totalorder %s7604_s14, %s7605_s16  ;;  %p7612_p8 = scmp.lt.s32.totalorder %s7610_s4, %s7605_s16 }
  0xd3   : > { %p7608_p13 = pnand %p7606_p11, %p8040_p5  ;;  %p7613_p6 = por %p7612_p8, %p7611_p7 }
  0xd5   : > { %p7609_p2 = pneg %p7608_p13 }
  0xd7   : > { %p7614_p9 = pnand %p7613_p6, %p7609_p2 }
  0xd9   : > { %7617 = shalt.err (!%p7614_p9)
}
  0xda   : > { %s9993_s11 = scalar_lea.sflag [#allocation11], %s8030_s23  ;;  %s946_s3 = scalar_lea.vmem [#allocation15], %s9985_s30 }
  0xdb   : > { %6796 = dma.hbm_to_vmem [thread:$0]  (!%p8025_p0), %s912_s15, 48, %s914_s29, %s9993_s11  }
  0xdc   : > { %s954_s24 = sshll.u32 %s946_s3, 4  ;;  %s7633_s10 = sshra.s32 %s953_s12, 4  ;;  %s955_s24 = int_to_ptr.vmem [resolvable:$true] %s954_s24  ;;  %s7634_s10 = int_to_ptr.hbm [resolvable:$true] %s7633_s10 }
  0xdd   : > { %s7635_s5 = scalar_lea.hbm %s7634_s10, 2  ;;  %s7640_s9 = scalar_lea.hbm %s9992_s0, 4 }
  0xde   : > { %p7636_p10 = scmp.ne.s32.totalorder %s7634_s10, %s7635_s5  ;;  %p7641_p2 = scmp.lt.s32.totalorder %s7634_s10, %s9992_s0 }
  0xdf   : > { %p7642_p7 = scmp.lt.s32.totalorder %s7640_s9, %s7635_s5 }
  0xe0   : > { %p7638_p11 = pnand %p7636_p10, %p8040_p5 }
  0xe1   : > { %p7643_p8 = por %p7642_p7, %p7641_p2 }
  0xe2   : > { %p7639_p13 = pneg %p7638_p11 }
  0xe4   : > { %p7644_p6 = pnand %p7643_p8, %p7639_p13 }
  0xe6   : > { %7647 = shalt.err (!%p7644_p6)
}
  0xe7   : > { %s9994_s30 = scalar_lea.sflag [#allocation14], %s8030_s23  ;;  %963 = sbr.rel (%p7955_p4) target bundleno = 2282 (0x8ea), region = 112 }
  0xe8   : > { %6802 = dma.hbm_to_vmem [thread:$0]  (!%p8025_p0), %s953_s12, 32, %s955_s24, %s9994_s30  }
  0xec   : > { %s9996_s29 = sld [smem:[#allocation45_spill]] }
  0xf2   : > { %s965_s15 = sand.u32 1, %s9996_s29  }
  0xf3   : > { %s8198_s8 = sshll.u32 %s965_s15, 1  ;;  %s966_s28 = scalar_lea.sflag [#allocation5], %s965_s15 }
  0xf4   : > { %s969_s7 = scalar_lea.vmem [#allocation4], %s8198_s8 }
  0xf5   : > { %7708 = dma.done.wait (%p8011_p12), %s966_s28, 32  }
  0xf6   : > { %7710 = vsyncadd (%p8011_p12), %s966_s28, 4294967264  ;;  %s9998_s6 = sld [smem:[#allocation47_spill]]  ;;  %s979_s17 = scalar_lea.vmem [#allocation7], %s8198_s8 }
  0xfc   : > { %s975_s12 = sand.u32 1, %s9998_s6  }
  0xfd   : > { %s976_s23 = scalar_lea.sflag [#allocation8], %s975_s12 }
  0xfe   : > { %7712 = dma.done.wait (%p8011_p12), %s976_s23, 12320  }
  0xff   : > { %7714 = vsyncadd (%p8011_p12), %s976_s23, 4294954976  ;;  %s6680_s4 = smul.u32 768, %s965_s15  ;;  %s996_s11 = scalar_lea.sflag [#allocation11], %s975_s12 }
 0x100   : > { %s6681_s19 = smul.u32 576, %s965_s15 }
 0x101   : > { %s8211_s13 = scalar_lea.vmem [#allocation9], %s6680_s4 }
 0x102   : > { %s8213_s3 = scalar_lea.vmem [#allocation10], %s6681_s19 }
 0x103   : > { %7716 = dma.done.wait (%p8011_p12), %s996_s11, 9264  }
 0x104   : > { %7718 = vsyncadd (%p8011_p12), %s996_s11, 4294958032  ;;  %s6682_s24 = smul.u32 3, %s965_s15  ;;  %s1016_s14 = scalar_lea.sflag [#allocation14], %s975_s12 }
 0x105   : > { %s6683_s10 = smul.u32 384, %s965_s15 }
 0x106   : > { %s8219_s5 = scalar_lea.vmem [#allocation12], %s6682_s24 }
 0x107   : > { %s8221_s16 = scalar_lea.vmem [#allocation13], %s6683_s10 }
 0x108   : > { %7720 = dma.done.wait (%p8011_p12), %s1016_s14, 6176  }
 0x109   : > { %7722 = vsyncadd (%p8011_p12), %s1016_s14, 4294961120  ;;  %s1029_s9 = scalar_lea.vmem [#allocation15], %s8198_s8 }
 0x10a   : > { %7724 = dma.done.wait (%p141_p1), [#allocation17], 64  }
 0x10b   : > { %7726 = vsyncadd (%p141_p1), [#allocation17], 4294967232 }
 0x10c   : > { %7728 = dma.done.wait (%p141_p1), [#allocation20], 4128  }
 0x10d   : > { %7730 = vsyncadd (%p141_p1), [#allocation20], 4294963168 }
 0x10e   : > { %7732 = dma.done.wait (%p141_p1), [#allocation23], 64  }
 0x10f   : > { %7734 = vsyncadd (%p141_p1), [#allocation23], 4294967232 }
 0x110   : > { %7736 = dma.done.wait (%p141_p1), [#allocation26], 4128  }
 0x111   : > { %7738 = vsyncadd (%p141_p1), [#allocation26], 4294963168 }
 0x112   : > { %7740 = dma.done.wait (%p141_p1), [#allocation29], 2064  }
 0x113   : > { %7742 = vsyncadd (%p141_p1), [#allocation29], 4294965232 }
 0x114   : > { %7744 = dma.done.wait (%p141_p1), [#allocation32], 16  }
 0x115   : > { %7746 = vsyncadd (%p141_p1), [#allocation32], 4294967280  ;;  %p1182_p4 = scmp.lt.s32.totalorder %s9998_s6, 1  ;;  %s9999_s29 = sld [smem:[#allocation65_spill]] }
 0x116   : > { %s10000_s12 = sld [smem:[#allocation59_spill]] (!%p5141_p3) }
 0x117   : > { %s1183_s1 = scalar_select %p1182_p4, %s9998_s6, 1 }
 0x118   : > { %1190 = sbr.rel (%p5141_p3) target bundleno = 294 (0x126), region = 188 }
 0x119   : > { %s6684_s2 = smul.u32 12, %s1183_s1 }
 0x11b   : > { %s8257_s25 = scalar_lea.vmem %s9999_s29, %s6684_s2 }
 0x11d   : > { %v1191_v1 = vld [vmem:[%s10000_s12] sm:$0xff]  ;;  %v1192_v2 = vld [vmem:[%s10000_s12 + $0x8] sm:$0xff]  ;;  %v1193_v3 = vld [vmem:[%s10000_s12 + $0x10] sm:$0xff] }
 0x11e   : > { %1199 = vst [vmem:[#allocation2 + $0x30] sm:$0xff] %v1191_v1  ;;  %v1194_v4 = vld [vmem:[%s10000_s12 + $0x18] sm:$0xff]  ;;  %v1195_v5 = vld [vmem:[%s10000_s12 + $0x20] sm:$0xff]  ;;  %v1196_v6 = vld [vmem:[%s10000_s12 + $0x28] sm:$0xff] }
 0x11f   : > { %1200 = vst [vmem:[#allocation2] sm:$0xff] %v1192_v2  ;;  %v1197_v7 = vld [vmem:[%s10000_s12 + $0x30] sm:$0xff]  ;;  %v1198_v8 = vld [vmem:[%s10000_s12 + $0x38] sm:$0xff] }
 0x120   : > { %1201 = vst [vmem:[#allocation2 + $0x18] sm:$0xff] %v1193_v3 }
 0x121   : > { %1202 = vst [vmem:[#allocation2 + $0x10] sm:$0xff] %v1194_v4 }
 0x122   : > { %1203 = vst [vmem:[#allocation2 + $0x8] sm:$0xff] %v1195_v5 }
 0x123   : > { %1204 = vst [vmem:[#allocation2 + $0x20] sm:$0xff] %v1196_v6 }
 0x124   : > { %1205 = vst [vmem:[#allocation2 + $0x28] sm:$0xff] %v1197_v7 }
 0x125   : > { %1206 = vst [vmem:[#allocation2 + $0x38] sm:$0xff] %v1198_v8 }
 0x126 PF: > { %v1207_v11 = vld [vmem:[#allocation2 + $0x30] sm:$0xff]  ;;  %v1208_v13 = vld [vmem:[#allocation2] sm:$0xff]  ;;  %v7786_v21 = vmov 256.0   ;;  %v5349_v56 = vld [vmem:[%s8211_s13 + $0x150] sm:$0xf]  ;;  %s10004_s28 = sld [smem:[#allocation61_spill]] }
 0x127   : > { %v1469_v14 = vadd.f32 %v1208_v13, %v1207_v11  ;;  %v1209_v17 = vld [vmem:[#allocation2 + $0x18] sm:$0xff]  ;;  %6888 = vrcp.f32 %v7786_v21  ;;  %v6413_v57 = vld [vmem:[%s8211_s13 + $0x164] sm:$0xf0]  ;;  %v5325_v4 = vld [vmem:[%s8211_s13 + $0x120] sm:$0xf]  ;;  %s10005_s19 = sld [smem:[#allocation60_spill]] }
 0x128   : > { %v1210_v18 = vld [vmem:[#allocation2 + $0x10] sm:$0xff]  ;;  %v5541_v58 = vld [vmem:[%s8211_s13 + $0x2d0] sm:$0xf]  ;;  %v5350_v59 = vor.u32 %v6413_v57, %v5349_v56  ;;  %v6410_v61 = vld [vmem:[%s8211_s13 + $0x154] sm:$0xf]  ;;  %s10034_s8 = sld [smem:[#allocation47_spill]] }
 0x129   : > { %v1211_v9 = vld [vmem:[#allocation2 + $0x8] sm:$0xff]  ;;  %1470 = vadd.xlane.f32.xlu0 %v1469_v14  ;;  %v1472_v20 = vadd.f32 %v1210_v18, %v1209_v17  ;;  %v6461_v60 = vld [vmem:[%s8211_s13 + $0x2e4] sm:$0xf0]  ;;  %v5351_v62 = vld [vmem:[%s8211_s13 + $0x168] sm:$0xf0] }
 0x12a   : > { %v1212_v10 = vld [vmem:[#allocation2 + $0x20] sm:$0xff]  ;;  %v5542_v63 = vor.u32 %v6461_v60, %v5541_v58  ;;  %v5354_v0 = vor.u32 %v6410_v61, %v5351_v62  ;;  %v5543_v2 = vld [vmem:[%s8211_s13 + $0x2e8] sm:$0xf0]  ;;  %2086 = vmatpush.bf16.msra.mxu0 %v5350_v59  ;;  %v5517_v6 = vld [vmem:[%s8211_s13 + $0x2a0] sm:$0xf] }
 0x12b   : > { %v1475_v12 = vadd.f32 %v1212_v10, %v1211_v9  ;;  %v1213_v15 = vld [vmem:[#allocation2 + $0x28] sm:$0xff]  ;;  %v6458_v1 = vld [vmem:[%s8211_s13 + $0x2d4] sm:$0xf]  ;;  %v6407_v5 = vld [vmem:[%s8211_s13 + $0x134] sm:$0xf0] }
 0x12c   : > { %v1214_v16 = vld [vmem:[#allocation2 + $0x38] sm:$0xff]  ;;  %v5546_v3 = vor.u32 %v6458_v1, %v5543_v2  ;;  %2105 = vmatpush.bf16.msra.mxu1 %v5542_v63  ;;  %2124 = vmatpush.bf16.msra.mxu2 %v5354_v0  ;;  %v5326_v7 = vor.u32 %v6407_v5, %v5325_v4  ;;  %v6455_v8 = vld [vmem:[%s8211_s13 + $0x2b4] sm:$0xf0]  ;;  %v5519_v14 = vld [vmem:[%s8211_s13 + $0x2b8] sm:$0xf0] }
 0x12d   : > { %1476 = vadd.xlane.f32.xlu1 %v1475_v12  ;;  %v1478_v19 = vadd.f32 %v1214_v16, %v1213_v15  ;;  %v6889_v22 = vpop.eup %6888  ;;  %v6398_v21 = vld [vmem:[%s8211_s13 + $0xf4] sm:$0xf]  ;;  %v5447_v59 = vld [vmem:[%s8211_s13 + $0x228] sm:$0xf0]  ;;  %v5229_v61 = vld [vmem:[%s8211_s13 + $0x60] sm:$0xf] }
 0x12e   : > { %v1482_v23 = vmul.f32 256.0, %v6889_v22  ;;  %vm1486_vm0 = vweird.f32 %v6889_v22  ;;  %2143 = vmatpush.bf16.msra.mxu3 %v5546_v3  ;;  %2087 = vmatpush.bf16.msra.mxu0 %v5326_v7  ;;  %v6434_v58 = vld [vmem:[%s8211_s13 + $0x214] sm:$0xf]  ;;  %v6383_v62 = vld [vmem:[%s8211_s13 + $0x74] sm:$0xf0]  ;;  %p6043_p1 = scmp.ne.s32.totalorder %s10034_s8, 1 }
 0x12f   : > { %v5450_v60 = vor.u32 %v6434_v58, %v5447_v59  ;;  %v5421_v63 = vld [vmem:[%s8211_s13 + $0x1e0] sm:$0xf]  ;;  %v5230_v0 = vor.u32 %v6383_v62, %v5229_v61  ;;  %v6431_v1 = vld [vmem:[%s8211_s13 + $0x1f4] sm:$0xf0]  ;;  %v6380_v2 = vld [vmem:[%s8211_s13 + $0x64] sm:$0xf] }
 0x130   : > { %v1483_v24 = vsub.f32 1.0, %v1482_v23  ;;  %v5231_v3 = vld [vmem:[%s8211_s13 + $0x78] sm:$0xf0]  ;;  %v5422_v4 = vor.u32 %v6431_v1, %v5421_v63  ;;  %v5551_v61 = vld [vmem:[%s8211_s13 + $0x2f0] sm:$0xf0] }
 0x131   : > { %1473 = vadd.xlane.f32.xlu0 %v1472_v20  ;;  %v6449_v20 = vld [vmem:[%s8211_s13 + $0x284] sm:$0xf0]  ;;  %v5234_v5 = vor.u32 %v6380_v2, %v5231_v3  ;;  %v5423_v7 = vld [vmem:[%s8211_s13 + $0x1f8] sm:$0xf0]  ;;  %v6408_v1 = vld [vmem:[%s8211_s13 + $0x13c] sm:$0xf0] }
 0x132   : > { %v1484_v25 = vmul.f32 %v6889_v22, %v1483_v24  ;;  %v5333_v62 = vld [vmem:[%s8211_s13 + $0x128] sm:$0xf]  ;;  %v6456_v3 = vld [vmem:[%s8211_s13 + $0x2bc] sm:$0xf0] }
 0x133   : > { %v5525_v2 = vld [vmem:[%s8211_s13 + $0x2a8] sm:$0xf] }
 0x134   : > { %v1485_v26 = vadd.f32 %v6889_v22, %v1484_v25  ;;  %v6446_v25 = vld [vmem:[%s8211_s13 + $0x274] sm:$0xf] }
 0x135   : > { %1479 = vadd.xlane.f32.xlu1 %v1478_v19 }
 0x136   : > { %v8285_v27 = vsel %vm1486_vm0, %v6889_v22, %v1485_v26  ;;  %v5303_v22 = vld [vmem:[%s8211_s13 + $0x108] sm:$0xf0] }
 0x137   : > { %10001 = vst [vmem:[#allocation54_spill] sm:$0xff] %v8285_v27  ;;  %v5306_v24 = vor.u32 %v6398_v21, %v5303_v22  ;;  %v5495_v26 = vld [vmem:[%s8211_s13 + $0x288] sm:$0xf0] }
 0x19c   : > { %v1471_v30 = vpop.xlane.xlu0 %1470 }
 0x19d   : > { %v1488_v31 = vmul.f32 %v8285_v27, %v1471_v30  ;;  %v6395_v30 = vld [vmem:[%s8211_s13 + $0xd4] sm:$0xf0] }
 0x19f   : > { %v8293_v34 = vsub.f32 %v1207_v11, %v1488_v31  ;;  %v8295_v35 = vsub.f32 %v1208_v13, %v1488_v31  ;;  %v5518_v11 = vor.u32 %v6455_v8, %v5517_v6  ;;  %v6452_v13 = vld [vmem:[%s8211_s13 + $0x2a4] sm:$0xf]  ;;  %v5469_v31 = vld [vmem:[%s8211_s13 + $0x240] sm:$0xf] }
 0x1a0   : > { %v1477_v28 = vpop.xlane.xlu1 %1476  ;;  %v6428_v6 = vld [vmem:[%s8211_s13 + $0x1e4] sm:$0xf] }
 0x1a1   : > { %v1490_v29 = vmul.f32 %v8285_v27, %v1477_v28  ;;  %v1500_v38 = vmul.f32 %v8293_v34, %v8293_v34  ;;  %v1501_v39 = vmul.f32 %v8295_v35, %v8295_v35  ;;  %2106 = vmatpush.bf16.msra.mxu1 %v5518_v11  ;;  %v5498_v28 = vor.u32 %v6446_v25, %v5495_v26  ;;  %v5397_v11 = vld [vmem:[%s8211_s13 + $0x1b0] sm:$0xf]  ;;  %v5181_v25 = vld [vmem:[%s8211_s13] sm:$0xf]  ;;  %v6371_v26 = vld [vmem:[%s8211_s13 + $0x14] sm:$0xf0] }
 0x1a2   : > { %v5426_v8 = vor.u32 %v6428_v6, %v5423_v7  ;;  %v5334_v6 = vor.u32 %v6408_v1, %v5333_v62  ;;  %v5526_v7 = vor.u32 %v6456_v3, %v5525_v2 }
 0x1a3   : > { %v8289_v32 = vsub.f32 %v1211_v9, %v1490_v29  ;;  %v8291_v33 = vsub.f32 %v1212_v10, %v1490_v29  ;;  %v1508_v42 = vadd.f32 %v1501_v39, %v1500_v38  ;;  %v6404_v9 = vld [vmem:[%s8211_s13 + $0x124] sm:$0xf]  ;;  %v5327_v10 = vld [vmem:[%s8211_s13 + $0x138] sm:$0xf0]  ;;  %v5277_v29 = vld [vmem:[%s8211_s13 + $0xc0] sm:$0xf] }
 0x1a4   : > { %v1474_v44 = vpop.xlane.xlu0 %1473  ;;  %v5330_v12 = vor.u32 %v6404_v9, %v5327_v10  ;;  %v6392_v38 = vld [vmem:[%s8211_s13 + $0xc4] sm:$0xf]  ;;  %v5279_v39 = vld [vmem:[%s8211_s13 + $0xd8] sm:$0xf0]  ;;  %v5205_v9 = vld [vmem:[%s8211_s13 + $0x30] sm:$0xf] }
 0x1a5   : > { %v1504_v36 = vmul.f32 %v8289_v32, %v8289_v32  ;;  %v1505_v37 = vmul.f32 %v8291_v33, %v8291_v33  ;;  %v1489_v45 = vmul.f32 %v8285_v27, %v1474_v44  ;;  %1509 = vadd.xlane.f32.xlu2 %v1508_v42  ;;  %v6440_v42 = vld [vmem:[%s8211_s13 + $0x244] sm:$0xf]  ;;  %v6377_v10 = vld [vmem:[%s8211_s13 + $0x44] sm:$0xf0] }
 0x1a6   : > { %2125 = vmatpush.bf16.msra.mxu2 %v5330_v12  ;;  %v5206_v12 = vor.u32 %v6377_v10, %v5205_v9  ;;  %v5335_v9 = vld [vmem:[%s8211_s13 + $0x140] sm:$0xf0] }
 0x1a7   : > { %v1514_v40 = vadd.f32 %v1505_v37, %v1504_v36  ;;  %v8311_v48 = vsub.f32 %v1209_v17, %v1489_v45  ;;  %v8313_v49 = vsub.f32 %v1210_v18, %v1489_v45  ;;  %v6401_v17 = vld [vmem:[%s8211_s13 + $0x104] sm:$0xf0]  ;;  %v5493_v18 = vld [vmem:[%s8211_s13 + $0x270] sm:$0xf]  ;;  %v5278_v36 = vor.u32 %v6395_v30, %v5277_v29  ;;  %v6443_v37 = vld [vmem:[%s8211_s13 + $0x254] sm:$0xf0] }
 0x1a8   : > { %v1480_v41 = vpop.xlane.xlu1 %1479  ;;  %v5494_v23 = vor.u32 %v6449_v20, %v5493_v18  ;;  %v5253_v45 = vld [vmem:[%s8211_s13 + $0x90] sm:$0xf]  ;;  %v5399_v20 = vld [vmem:[%s8211_s13 + $0x1c8] sm:$0xf0]  ;;  %v5182_v30 = vor.u32 %v6371_v26, %v5181_v25  ;;  %v6399_v25 = vld [vmem:[%s8211_s13 + $0xfc] sm:$0xf] }
 0x1a9   : > { %v1491_v43 = vmul.f32 %v8285_v27, %v1480_v41  ;;  %1515 = vadd.xlane.f32.xlu0 %v1514_v40  ;;  %v1502_v52 = vmul.f32 %v8311_v48, %v8311_v48  ;;  %v1503_v53 = vmul.f32 %v8313_v49, %v8313_v49  ;;  %v5470_v40 = vor.u32 %v6443_v37, %v5469_v31  ;;  %v6419_v31 = vld [vmem:[%s8211_s13 + $0x194] sm:$0xf0]  ;;  %v5311_v26 = vld [vmem:[%s8211_s13 + $0x110] sm:$0xf0] }
 0x1aa   : > { %2107 = vmatpush.bf16.msra.mxu1 %v5494_v23  ;;  %2126 = vmatpush.bf16.msra.mxu2 %v5306_v24  ;;  %v5282_v41 = vor.u32 %v6392_v38, %v5279_v39  ;;  %v5183_v39 = vld [vmem:[%s8211_s13 + $0x18] sm:$0xf0] }
 0x1ab   : > { %v8307_v46 = vsub.f32 %v1213_v15, %v1491_v43  ;;  %v8309_v47 = vsub.f32 %v1214_v16, %v1491_v43  ;;  %v1511_v55 = vadd.f32 %v1503_v53, %v1502_v52  ;;  %v5522_v15 = vor.u32 %v6452_v13, %v5519_v14  ;;  %v5301_v16 = vld [vmem:[%s8211_s13 + $0xf0] sm:$0xf]  ;;  %v5471_v43 = vld [vmem:[%s8211_s13 + $0x258] sm:$0xf0]  ;;  %v6437_v53 = vld [vmem:[%s8211_s13 + $0x224] sm:$0xf0] }
 0x1ac   : > { %v5302_v19 = vor.u32 %v6401_v17, %v5301_v16  ;;  %v5474_v44 = vor.u32 %v6440_v42, %v5471_v43  ;;  %v6425_v13 = vld [vmem:[%s8211_s13 + $0x1c4] sm:$0xf0]  ;;  %v6374_v14 = vld [vmem:[%s8211_s13 + $0x34] sm:$0xf]  ;;  %v5375_v42 = vld [vmem:[%s8211_s13 + $0x198] sm:$0xf0] }
 0x1ad   : > { %v1506_v50 = vmul.f32 %v8307_v46, %v8307_v46  ;;  %v1507_v51 = vmul.f32 %v8309_v47, %v8309_v47  ;;  %1512 = vadd.xlane.f32.xlu2 %v1511_v55  ;;  %2144 = vmatpush.bf16.msra.mxu3 %v5522_v15  ;;  %v5255_v55 = vld [vmem:[%s8211_s13 + $0xa8] sm:$0xf0]  ;;  %v5398_v17 = vor.u32 %v6425_v13, %v5397_v11 }
 0x1ae   : > { %2088 = vmatpush.bf16.msra.mxu0 %v5302_v19  ;;  %2108 = vmatpush.bf16.msra.mxu1 %v5470_v40  ;;  %v5207_v15 = vld [vmem:[%s8211_s13 + $0x48] sm:$0xf0]  ;;  %v6422_v19 = vld [vmem:[%s8211_s13 + $0x1b4] sm:$0xf]  ;;  %v6416_v40 = vld [vmem:[%s8211_s13 + $0x184] sm:$0xf] }
 0x1af   : > { %v1517_v54 = vadd.f32 %v1507_v51, %v1506_v50  ;;  %2127 = vmatpush.bf16.msra.mxu2 %v5282_v41  ;;  %v6389_v50 = vld [vmem:[%s8211_s13 + $0xa4] sm:$0xf0]  ;;  %v5445_v51 = vld [vmem:[%s8211_s13 + $0x210] sm:$0xf]  ;;  %v5210_v18 = vor.u32 %v6374_v14, %v5207_v15  ;;  %v5402_v23 = vor.u32 %v6422_v19, %v5399_v20  ;;  %v5378_v43 = vor.u32 %v6416_v40, %v5375_v42  ;;  %v6453_v13 = vld [vmem:[%s8211_s13 + $0x2ac] sm:$0xf] }
 0x1b0   : > { %v5254_v52 = vor.u32 %v6389_v50, %v5253_v45  ;;  %v5446_v56 = vor.u32 %v6437_v53, %v5445_v51  ;;  %v6414_v45 = vld [vmem:[%s8211_s13 + $0x16c] sm:$0xf0]  ;;  %v5549_v50 = vld [vmem:[%s8211_s13 + $0x2d8] sm:$0xf]  ;;  %v5527_v14 = vld [vmem:[%s8211_s13 + $0x2c0] sm:$0xf0] }
 0x1b1   : > { %1518 = vadd.xlane.f32.xlu1 %v1517_v54  ;;  %2145 = vmatpush.bf16.msra.mxu3 %v5498_v28  ;;  %v6386_v54 = vld [vmem:[%s8211_s13 + $0x94] sm:$0xf]  ;;  %v5373_v28 = vld [vmem:[%s8211_s13 + $0x180] sm:$0xf]  ;;  %v6462_v53 = vld [vmem:[%s8211_s13 + $0x2ec] sm:$0xf0]  ;;  %v5530_v19 = vor.u32 %v6453_v13, %v5527_v14 }
 0x1b2   : > { %2089 = vmatpush.bf16.msra.mxu0 %v5278_v36  ;;  %v5258_v57 = vor.u32 %v6386_v54, %v5255_v55  ;;  %2109 = vmatpush.bf16.msra.mxu1 %v5446_v56  ;;  %v6368_v36 = vld [vmem:[%s8211_s13 + $0x4] sm:$0xf]  ;;  %v5374_v38 = vor.u32 %v6419_v31, %v5373_v28  ;;  %v6411_v54 = vld [vmem:[%s8211_s13 + $0x15c] sm:$0xf]  ;;  %v5359_v55 = vld [vmem:[%s8211_s13 + $0x170] sm:$0xf0]  ;;  %v5550_v58 = vor.u32 %v6462_v53, %v5549_v50 }
 0x1b3   : > { %v5186_v41 = vor.u32 %v6368_v36, %v5183_v39  ;;  %v5362_v59 = vor.u32 %v6411_v54, %v5359_v55  ;;  %v5501_v20 = vld [vmem:[%s8211_s13 + $0x278] sm:$0xf]  ;;  %v6447_v28 = vld [vmem:[%s8211_s13 + $0x27c] sm:$0xf]  ;;  %v5503_v31 = vld [vmem:[%s8211_s13 + $0x290] sm:$0xf0] }
 0x1b4   : > { %2128 = vmatpush.bf16.msra.mxu2 %v5258_v57  ;;  %v5285_v36 = vld [vmem:[%s8211_s13 + $0xc8] sm:$0xf]  ;;  %v5506_v39 = vor.u32 %v6447_v28, %v5503_v31  ;;  %v6396_v40 = vld [vmem:[%s8211_s13 + $0xdc] sm:$0xf0]  ;;  %v1223_v42 = vld [vmem:[%s969_s7] sm:$0x3] }
 0x1b5   : > { %2146 = vmatpush.bf16.msra.mxu3 %v5474_v44  ;;  %v5357_v44 = vld [vmem:[%s8211_s13 + $0x158] sm:$0xf]  ;;  %v6393_v50 = vld [vmem:[%s8211_s13 + $0xcc] sm:$0xf]  ;;  %v5287_v54 = vld [vmem:[%s8211_s13 + $0xe0] sm:$0xf0] }
 0x1b6   : > { %2090 = vmatpush.bf16.msra.mxu0 %v5254_v52  ;;  %2110 = vmatpush.bf16.msra.mxu1 %v5422_v4  ;;  %v5358_v52 = vor.u32 %v6414_v45, %v5357_v44  ;;  %v5286_v44 = vor.u32 %v6396_v40, %v5285_v36  ;;  %v6444_v45 = vld [vmem:[%s8211_s13 + $0x25c] sm:$0xf0]  ;;  %v6441_v55 = vld [vmem:[%s8211_s13 + $0x24c] sm:$0xf]  ;;  %v8462_v1 = vperm.slane %v1223_v42, 1 }
 0x1b7   : > { %v6384_v31 = vld [vmem:[%s8211_s13 + $0x7c] sm:$0xf0]  ;;  %v5429_v36 = vld [vmem:[%s8211_s13 + $0x1e8] sm:$0xf]  ;;  %v5239_v40 = vld [vmem:[%s8211_s13 + $0x80] sm:$0xf0] }
 0x1b8   : > { %2129 = vmatpush.bf16.msra.mxu2 %v5234_v5 }
 0x1b9   : > { %2147 = vmatpush.bf16.msra.mxu3 %v5450_v60  ;;  %v6459_v60 = vld [vmem:[%s8211_s13 + $0x2dc] sm:$0xf] }
 0x1ba   : > { %2091 = vmatpush.bf16.msra.mxu0 %v5230_v0  ;;  %2111 = vmatpush.bf16.msra.mxu1 %v5398_v17  ;;  %v5554_v0 = vor.u32 %v6459_v60, %v5551_v61  ;;  %v6402_v17 = vld [vmem:[%s8211_s13 + $0x10c] sm:$0xf0]  ;;  %v1224_v60 = vld [vmem:[%s979_s17] sm:$0x3] }
 0x1bc   : > { %2130 = vmatpush.bf16.msra.mxu2 %v5210_v18 }
 0x1bd   : > { %2148 = vmatpush.bf16.msra.mxu3 %v5426_v8  ;;  %v6405_v8 = vld [vmem:[%s8211_s13 + $0x12c] sm:$0xf] }
 0x1be   : > { %2092 = vmatpush.bf16.msra.mxu0 %v5206_v12  ;;  %2112 = vmatpush.bf16.msra.mxu1 %v5374_v38  ;;  %v5338_v12 = vor.u32 %v6405_v8, %v5335_v9  ;;  %v6390_v8 = vld [vmem:[%s8211_s13 + $0xac] sm:$0xf0]  ;;  %v5453_v9 = vld [vmem:[%s8211_s13 + $0x218] sm:$0xf] }
 0x1c0   : > { %2131 = vmatpush.bf16.msra.mxu2 %v5186_v41  ;;  %v5477_v41 = vld [vmem:[%s8211_s13 + $0x248] sm:$0xf] }
 0x1c1   : > { %2149 = vmatpush.bf16.msra.mxu3 %v5402_v23  ;;  %v5478_v53 = vor.u32 %v6444_v45, %v5477_v41  ;;  %v1219_v41 = vld [vmem:[%s10004_s28] sm:$0xff]  ;;  %v6429_v45 = vld [vmem:[%s8211_s13 + $0x1ec] sm:$0xf] }
 0x1c2   : > { %2093 = vmatpush.bf16.msra.mxu0 %v5182_v30  ;;  %2181 = vmatpush.bf16.msrb.mxu1 %v5550_v58  ;;  %v5314_v30 = vor.u32 %v6399_v25, %v5311_v26  ;;  %v5290_v58 = vor.u32 %v6393_v50, %v5287_v54  ;;  %v5237_v25 = vld [vmem:[%s8211_s13 + $0x68] sm:$0xf]  ;;  %v5431_v50 = vld [vmem:[%s8211_s13 + $0x200] sm:$0xf0]  ;;  %v7787_v54 = vmov 0  }
 0x1c3   : > { %6887 = vset.pattern.permute.xlu1 %v7787_v54  ;;  %6886 = vset.pattern.permute.xlu0 %v7787_v54 }
 0x1c4   : > { %2200 = vmatpush.bf16.msrb.mxu2 %v5362_v59  ;;  %v5479_v59 = vld [vmem:[%s8211_s13 + $0x260] sm:$0xf0]  ;;  %6885 = vset.pattern.permute.xlu2 %v7787_v54 }
 0x1c5   : > { %2150 = vmatpush.bf16.msra.mxu3 %v5378_v43 }
 0x1c6   : > { %2162 = vmatpush.bf16.msrb.mxu0 %v5358_v52  ;;  %2182 = vmatpush.bf16.msrb.mxu1 %v5526_v7  ;;  %v5261_v7 = vld [vmem:[%s8211_s13 + $0x98] sm:$0xf] }
 0x1c7   : > { %v5262_v14 = vor.u32 %v6390_v8, %v5261_v7 }
 0x1c8   : > { %2201 = vmatpush.bf16.msrb.mxu2 %v5338_v12  ;;  %v8474_v12 = vperm.slane %v1224_v60, 0 }
 0x1c9   : > { %2219 = vmatpush.bf16.msrb.mxu3 %v5554_v0  ;;  %v8460_v0 = vperm.slane %v1223_v42, 0 }
 0x1ca   : > { %2163 = vmatpush.bf16.msrb.mxu0 %v5334_v6  ;;  %2400 = vperm.xlu1 %6887, %v1219_v41  }
 0x1cc   : > { %2202 = vmatpush.bf16.msrb.mxu2 %v5314_v30 }
 0x1cd   : > { %2220 = vmatpush.bf16.msrb.mxu3 %v5530_v19  ;;  %v5263_v19 = vld [vmem:[%s8211_s13 + $0xb0] sm:$0xf0] }
 0x1d0   : > { %2203 = vmatpush.bf16.msrb.mxu2 %v5290_v58  ;;  %v5405_v58 = vld [vmem:[%s8211_s13 + $0x1b8] sm:$0xf] }
 0x1d1   : > { %2221 = vmatpush.bf16.msrb.mxu3 %v5506_v39  ;;  %v6432_v39 = vld [vmem:[%s8211_s13 + $0x1fc] sm:$0xf0] }
 0x218   : > { %v1510_v21 = vpop.xlane.xlu2 %1509 }
 0x219   : > { %v1520_v24 = vmul.f32 %v1510_v21, %v8285_v27  ;;  %v6450_v21 = vld [vmem:[%s8211_s13 + $0x28c] sm:$0xf0] }
 0x21b   : > { %v8388_v37 = vadd.f32 1e-05, %v1520_v24  ;;  %v5502_v24 = vor.u32 %v6450_v21, %v5501_v20  ;;  %v6435_v20 = vld [vmem:[%s8211_s13 + $0x21c] sm:$0xf] }
 0x21c   : > { %v1516_v16 = vpop.xlane.xlu0 %1515 }
 0x21d   : > { %v1522_v22 = vmul.f32 %v1516_v16, %v8285_v27  ;;  %v5309_v16 = vld [vmem:[%s8211_s13 + $0xf8] sm:$0xf]  ;;  %2183 = vmatpush.bf16.msrb.mxu1 %v5502_v24  ;;  %vm1534_vm2 = vweird.f32 %v8388_v37  ;;  %v5455_v24 = vld [vmem:[%s8211_s13 + $0x230] sm:$0xf0] }
 0x21e   : > { %v5310_v23 = vor.u32 %v6402_v17, %v5309_v16  ;;  %v8481_v16 = vperm.slane %v1224_v60, 1 }
 0x21f   : > { %v8384_v29 = vadd.f32 1e-05, %v1522_v22 }
 0x220   : > { %v1513_v57 = vpop.xlane.xlu2 %1512  ;;  %2164 = vmatpush.bf16.msrb.mxu0 %v5310_v23 }
 0x221   : > { %6890 = vrsqrt.f32 %v8384_v29  ;;  %v1521_v63 = vmul.f32 %v1513_v57, %v8285_v27  ;;  %2184 = vmatpush.bf16.msrb.mxu1 %v5478_v53  ;;  %v5434_v53 = vor.u32 %v6429_v45, %v5431_v50  ;;  %vm1554_vm7 = vweird.f32 %v8384_v29 }
 0x222   : > { %6892 = vrsqrt.f32 %v8388_v37 }
 0x223   : > { %v8417_v11 = vadd.f32 1e-05, %v1521_v63  ;;  %v5482_v63 = vor.u32 %v6441_v55, %v5479_v59  ;;  %v5213_v55 = vld [vmem:[%s8211_s13 + $0x38] sm:$0xf] }
 0x224   : > { %v1519_v51 = vpop.xlane.xlu1 %1518  ;;  %2165 = vmatpush.bf16.msrb.mxu0 %v5286_v44 }
 0x225   : > { %v1523_v56 = vmul.f32 %v1519_v51, %v8285_v27  ;;  %2222 = vmatpush.bf16.msrb.mxu3 %v5482_v63  ;;  %vm1544_vm5 = vweird.f32 %v8417_v11  ;;  %v6375_v63 = vld [vmem:[%s8211_s13 + $0x3c] sm:$0xf] }
 0x227   : > { %v8409_v4 = vpop.eup %6890  ;;  %v8411_v5 = vadd.f32 1e-05, %v1523_v56 }
 0x228   : > { %v8415_v10 = vpop.eup %6892  ;;  %v1549_v18 = vmul.f32 %v8409_v4, %v8384_v29  ;;  %2166 = vmatpush.bf16.msrb.mxu0 %v5262_v14  ;;  %v5189_v14 = vld [vmem:[%s8211_s13 + $0x8] sm:$0xf]  ;;  %vm1555_vm10 = vweird.f32 %v8409_v4  ;;  %v5365_v29 = vld [vmem:[%s8211_s13 + $0x160] sm:$0xf] }
 0x229   : > { %v1529_v15 = vmul.f32 %v8415_v10, %v8388_v37  ;;  %6894 = vrsqrt.f32 %v8411_v5  ;;  %vm1535_vm1 = vweird.f32 %v8415_v10  ;;  %vm1564_vm8 = vweird.f32 %v8411_v5  ;;  %vm1556_vm12 = vmor %vm1554_vm7, %vm1555_vm10 }
 0x22a   : > { %6896 = vrsqrt.f32 %v8417_v11  ;;  %v1550_v43 = vmul.f32 %v8409_v4, %v1549_v18  ;;  %vm1536_vm3 = vmor %vm1534_vm2, %vm1535_vm1 }
 0x22b   : > { %v1530_v22 = vmul.f32 %v8415_v10, %v1529_v15  ;;  %v6387_v15 = vld [vmem:[%s8211_s13 + $0x9c] sm:$0xf] }
 0x22c   : > { %v8466_v2 = vmul.f32 0.5, %v1550_v43  ;;  %v5266_v23 = vor.u32 %v6387_v15, %v5263_v19  ;;  %v5430_v43 = vor.u32 %v6432_v39, %v5429_v36  ;;  %v6369_v19 = vld [vmem:[%s8211_s13 + $0xc] sm:$0xf] }
 0x22d   : > { %v1531_v38 = vmul.f32 0.5, %v1530_v22 }
 0x22e   : > { %v1552_v22 = vsub.f32 1.5, %v8466_v2  ;;  %2204 = vmatpush.bf16.msrb.mxu2 %v5266_v23 }
 0x22f   : > { %v8444_v51 = vpop.eup %6894  ;;  %v1532_v52 = vsub.f32 1.5, %v1531_v38  ;;  %v5238_v38 = vor.u32 %v6384_v31, %v5237_v25  ;;  %v5191_v25 = vld [vmem:[%s8211_s13 + $0x20] sm:$0xf0] }
 0x230   : > { %v8449_v56 = vpop.eup %6896  ;;  %v1559_v57 = vmul.f32 %v8444_v51, %v8411_v5  ;;  %vm1565_vm9 = vweird.f32 %v8444_v51  ;;  %v5194_v31 = vor.u32 %v6369_v19, %v5191_v25  ;;  %v5511_v19 = vld [vmem:[%s8211_s13 + $0x298] sm:$0xf0]  ;;  %v5293_v25 = vld [vmem:[%s8211_s13 + $0xd0] sm:$0xf] }
 0x231   : > { %v1533_v61 = vmul.f32 %v8415_v10, %v1532_v52  ;;  %v1539_v62 = vmul.f32 %v8449_v56, %v8417_v11  ;;  %vm1545_vm4 = vweird.f32 %v8449_v56  ;;  %v5458_v11 = vor.u32 %v6435_v20, %v5455_v24  ;;  %v1216_v52 = vld [vmem:[%s10005_s19 + $0x8] sm:$0xff]  ;;  %2167 = vmatpush.bf16.msrb.mxu0 %v5238_v38  ;;  %vm1566_vm11 = vmor %vm1564_vm8, %vm1565_vm9  ;;  %v1218_v38 = vld [vmem:[%s10005_s19 + $0x18] sm:$0xff] }
 0x232   : > { %v1560_v3 = vmul.f32 %v8444_v51, %v1559_v57  ;;  %vm8494_vm6 = vmor %vm1544_vm5, %vm1545_vm4  ;;  %v6378_v57 = vld [vmem:[%s8211_s13 + $0x4c] sm:$0xf0]  ;;  %2348 = vperm.xlu0 %6886, %v1216_v52   ;;  %v1553_v20 = vmul.f32 %v8409_v4, %v1552_v22  ;;  %v6460_v52 = vld [vmem:[%s8211_s13 + $0x2e4] sm:$0xf]  ;;  %2358 = vperm.xlu1 %6887, %v1218_v38  }
 0x233   : > { %v1537_v37 = vsel %vm1536_vm3, %v8415_v10, %v1533_v61  ;;  %v1540_v6 = vmul.f32 %v8449_v56, %v1539_v62  ;;  %v6438_v10 = vld [vmem:[%s8211_s13 + $0x22c] sm:$0xf0]  ;;  %2223 = vmatpush.bf16.msrb.mxu3 %v5458_v11  ;;  %v5214_v7 = vor.u32 %v6378_v57, %v5213_v55 }
 0x234   : > { %v8476_v13 = vmul.f32 0.5, %v1560_v3  ;;  %v5454_v18 = vor.u32 %v6438_v10, %v5453_v9  ;;  %v1568_v21 = vmul.f32 %v1537_v37, %v8293_v34  ;;  %v1569_v26 = vmul.f32 %v1537_v37, %v8295_v35  ;;  %v6381_v35 = vld [vmem:[%s8211_s13 + $0x6c] sm:$0xf]  ;;  %v6426_v62 = vld [vmem:[%s8211_s13 + $0x1cc] sm:$0xf0] }
 0x235   : > { %v1541_v17 = vmul.f32 0.5, %v1540_v6  ;;  %v5242_v44 = vor.u32 %v6381_v35, %v5239_v40  ;;  %v5215_v3 = vld [vmem:[%s8211_s13 + $0x50] sm:$0xf0]  ;;  %v5406_v8 = vor.u32 %v6426_v62, %v5405_v58  ;;  %v6423_v9 = vld [vmem:[%s8211_s13 + $0x1bc] sm:$0xf]  ;;  %2168 = vmatpush.bf16.msrb.mxu0 %v5214_v7  ;;  %v1557_v41 = vsel %vm1556_vm12, %v8409_v4, %v1553_v20 }
 0x236   : > { %v1562_v28 = vsub.f32 1.5, %v8476_v13  ;;  %2185 = vmatpush.bf16.msrb.mxu1 %v5454_v18  ;;  %v1581_v59 = vmul.f32 %v8460_v0, %v1568_v21  ;;  %v1582_v60 = vmul.f32 %v8462_v1, %v1569_v26  ;;  %v5407_v13 = vld [vmem:[%s8211_s13 + $0x1d0] sm:$0xf0]  ;;  %v6420_v10 = vld [vmem:[%s8211_s13 + $0x19c] sm:$0xf0] }
 0x237   : > { %v1542_v30 = vsub.f32 1.5, %v1541_v17  ;;  %2205 = vmatpush.bf16.msrb.mxu2 %v5242_v44  ;;  %2224 = vmatpush.bf16.msrb.mxu3 %v5434_v53  ;;  %v5410_v18 = vor.u32 %v6423_v9, %v5407_v13  ;;  %v6417_v26 = vld [vmem:[%s8211_s13 + $0x18c] sm:$0xf]  ;;  %v6415_v35 = vld [vmem:[%s8211_s13 + $0x174] sm:$0xf0] }
 0x238   : > { %v1563_v21 = vmul.f32 %v8444_v51, %v1562_v28  ;;  %v1594_v34 = vadd.f32 %v8474_v12, %v1581_v59  ;;  %v1595_v11 = vadd.f32 %v8481_v16, %v1582_v60  ;;  %v5557_v40 = vld [vmem:[%s8211_s13 + $0x2e0] sm:$0xf]  ;;  %v6412_v44 = vld [vmem:[%s8211_s13 + $0x164] sm:$0xf]  ;;  %v5559_v4 = vld [vmem:[%s8211_s13 + $0x2f8] sm:$0xf0] }
 0x239   : > { %v1543_v42 = vmul.f32 %v8449_v56, %v1542_v30  ;;  %v5383_v30 = vld [vmem:[%s8211_s13 + $0x1a0] sm:$0xf0]  ;;  %v5341_v53 = vld [vmem:[%s8211_s13 + $0x130] sm:$0xf]  ;;  %v5562_v57 = vor.u32 %v6460_v52, %v5559_v4  ;;  %v6409_v58 = vld [vmem:[%s8211_s13 + $0x144] sm:$0xf0] }
 0x23a   : > { %2186 = vmatpush.bf16.msrb.mxu1 %v5430_v43  ;;  %v5386_v36 = vor.u32 %v6417_v26, %v5383_v30  ;;  %v1567_v39 = vsel %vm1566_vm11, %v8444_v51, %v1563_v21  ;;  %v6463_v43 = vld [vmem:[%s8211_s13 + $0x2f4] sm:$0xf0]  ;;  %v5367_v51 = vld [vmem:[%s8211_s13 + $0x178] sm:$0xf0]  ;;  %v5533_v59 = vld [vmem:[%s8211_s13 + $0x2b0] sm:$0xf]  ;;  %v5342_v62 = vor.u32 %v6409_v58, %v5341_v53 }
 0x23b   : > { %v1547_v61 = vsel %vm8494_vm6, %v8449_v56, %v1543_v42  ;;  %v5218_v56 = vor.u32 %v6375_v63, %v5215_v3  ;;  %2225 = vmatpush.bf16.msrb.mxu3 %v5410_v18  ;;  %v5366_v42 = vor.u32 %v6415_v35, %v5365_v29  ;;  %v5558_v45 = vor.u32 %v6463_v43, %v5557_v40  ;;  %v6457_v60 = vld [vmem:[%s8211_s13 + $0x2c4] sm:$0xf0]  ;;  %v6406_v63 = vld [vmem:[%s8211_s13 + $0x134] sm:$0xf]  ;;  %v5343_v3 = vld [vmem:[%s8211_s13 + $0x148] sm:$0xf0] }
 0x23c   : > { %v1570_v37 = vmul.f32 %v1547_v61, %v8311_v48  ;;  %v1571_v6 = vmul.f32 %v1547_v61, %v8313_v49  ;;  %v6372_v48 = vld [vmem:[%s8211_s13 + $0x1c] sm:$0xf0]  ;;  %v5381_v49 = vld [vmem:[%s8211_s13 + $0x188] sm:$0xf]  ;;  %v5370_v50 = vor.u32 %v6412_v44, %v5367_v51  ;;  %v1574_v54 = vmul.f32 %v1567_v39, %v8307_v46  ;;  %v6454_v46 = vld [vmem:[%s8211_s13 + $0x2b4] sm:$0xf] }
 0x23d   : > { %v5190_v23 = vor.u32 %v6372_v48, %v5189_v14  ;;  %v5382_v24 = vor.u32 %v6420_v10, %v5381_v49  ;;  %2206 = vmatpush.bf16.msrb.mxu2 %v5218_v56  ;;  %v1575_v55 = vmul.f32 %v1567_v39, %v8309_v47  ;;  %v1572_v61 = vmul.f32 %v1557_v41, %v8289_v32  ;;  %v5535_v7 = vld [vmem:[%s8211_s13 + $0x2c8] sm:$0xf0]  ;;  %v1215_v32 = vld [vmem:[%s10005_s19] sm:$0xff]  ;;  %v5317_v9 = vld [vmem:[%s8211_s13 + $0x100] sm:$0xf] }
 0x23e   : > { %v1583_v15 = vmul.f32 %v8460_v0, %v1570_v37  ;;  %v1584_v17 = vmul.f32 %v8462_v1, %v1571_v6  ;;  %2187 = vmatpush.bf16.msrb.mxu1 %v5406_v8  ;;  %v1573_v47 = vmul.f32 %v1557_v41, %v8291_v33  ;;  %v5534_v37 = vor.u32 %v6457_v60, %v5533_v59  ;;  %v6403_v13 = vld [vmem:[%s8211_s13 + $0x114] sm:$0xf0]  ;;  %v5509_v14 = vld [vmem:[%s8211_s13 + $0x280] sm:$0xf]  ;;  %v6400_v49 = vld [vmem:[%s8211_s13 + $0x104] sm:$0xf] }
 0x23f   : > { %2169 = vmatpush.bf16.msrb.mxu0 %v5190_v23  ;;  %2226 = vmatpush.bf16.msrb.mxu3 %v5386_v36  ;;  %v5346_v6 = vor.u32 %v6406_v63, %v5343_v3  ;;  %v5538_v8 = vor.u32 %v6454_v46, %v5535_v7  ;;  %v1587_v33 = vmul.f32 %v8460_v0, %v1574_v54  ;;  %v6451_v48 = vld [vmem:[%s8211_s13 + $0x294] sm:$0xf0]  ;;  %v5319_v10 = vld [vmem:[%s8211_s13 + $0x118] sm:$0xf0]  ;;  %v6448_v18 = vld [vmem:[%s8211_s13 + $0x284] sm:$0xf] }
 0x240   : > { %v1596_v2 = vadd.f32 %v8474_v12, %v1583_v15  ;;  %v1597_v22 = vadd.f32 %v8481_v16, %v1584_v17  ;;  %2343 = vperm.xlu2 %6885, %v1215_v32   ;;  %v1588_v56 = vmul.f32 %v8462_v1, %v1575_v55  ;;  %v1585_v15 = vmul.f32 %v8460_v0, %v1572_v61  ;;  %v1222_v21 = vld [vmem:[%s10004_s28 + $0x18] sm:$0xff]  ;;  %v6397_v0 = vld [vmem:[%s8211_s13 + $0xe4] sm:$0xf0]  ;;  %v5269_v43 = vld [vmem:[%s8211_s13 + $0xa0] sm:$0xf] }
 0x241   : > { %2207 = vmatpush.bf16.msrb.mxu2 %v5194_v31  ;;  %v5318_v17 = vor.u32 %v6403_v13, %v5317_v9  ;;  %v1586_v20 = vmul.f32 %v8462_v1, %v1573_v47  ;;  %v5510_v23 = vor.u32 %v6451_v48, %v5509_v14  ;;  %v5514_v26 = vor.u32 %v6448_v18, %v5511_v19  ;;  %v6394_v31 = vld [vmem:[%s8211_s13 + $0xd4] sm:$0xf]  ;;  %v5295_v36 = vld [vmem:[%s8211_s13 + $0xe8] sm:$0xf0]  ;;  %v6391_v44 = vld [vmem:[%s8211_s13 + $0xb4] sm:$0xf0] }
 0x242   : > { %v8557_v28 = vpack.c.bf16 %v1596_v2, %v1594_v34  ;;  %v8559_v5 = vpack.c.bf16 %v1597_v22, %v1595_v11  ;;  %2188 = vmatpush.bf16.msrb.mxu1 %v5382_v24  ;;  %v5322_v24 = vor.u32 %v6400_v49, %v5319_v10  ;;  %v1600_v30 = vadd.f32 %v8474_v12, %v1587_v33  ;;  %v5485_v34 = vld [vmem:[%s8211_s13 + $0x250] sm:$0xf]  ;;  %v1220_v11 = vld [vmem:[%s10004_s28 + $0x8] sm:$0xff]  ;;  %v6445_v22 = vld [vmem:[%s8211_s13 + $0x264] sm:$0xf0] }
 0x243   : > { %v1601_v1 = vadd.f32 %v8481_v16, %v1588_v56  ;;  %2415 = vperm.xlu1 %6887, %v1222_v21   ;;  %v5294_v2 = vor.u32 %v6397_v0, %v5293_v25  ;;  %v1598_v38 = vadd.f32 %v8474_v12, %v1585_v15  ;;  %v1599_v39 = vadd.f32 %v8481_v16, %v1586_v20  ;;  %v6442_v29 = vld [vmem:[%s8211_s13 + $0x254] sm:$0xf]  ;;  %v5487_v35 = vld [vmem:[%s8211_s13 + $0x268] sm:$0xf0]  ;;  %v5461_v51 = vld [vmem:[%s8211_s13 + $0x220] sm:$0xf] }
 0x244   : > { %2094 = vmatmul.bf16.vlgmr.msra.gmra.mxu0 %v8557_v28  ;;  %2113 = vmatmul.bf16.vlgmr.msra.gmra.mxu1 %v8559_v5  ;;  %v5298_v12 = vor.u32 %v6394_v31, %v5295_v36  ;;  %v5490_v16 = vor.u32 %v6442_v29, %v5487_v35  ;;  %v6388_v52 = vld [vmem:[%s8211_s13 + $0xa4] sm:$0xf]  ;;  %v5271_v4 = vld [vmem:[%s8211_s13 + $0xb8] sm:$0xf0]  ;;  %v5245_v55 = vld [vmem:[%s8211_s13 + $0x70] sm:$0xf] }
 0x245   : > { %2132 = vmatmul.bf16.vlgmr.msra.gmra.mxu2 %v8557_v28  ;;  %2151 = vmatmul.bf16.vlgmr.msra.gmra.mxu3 %v8559_v5  ;;  %v8623_v40 = vpack.c.bf16 %v1600_v30, %v1598_v38  ;;  %v8625_v41 = vpack.c.bf16 %v1601_v1, %v1599_v39  ;;  %v6436_v53 = vld [vmem:[%s8211_s13 + $0x224] sm:$0xf]  ;;  %v5463_v54 = vld [vmem:[%s8211_s13 + $0x238] sm:$0xf0]  ;;  %v5274_v58 = vor.u32 %v6388_v52, %v5271_v4  ;;  %v6385_v59 = vld [vmem:[%s8211_s13 + $0x84] sm:$0xf0] }
 0x246   : > { %2238 = vmatpush.bf16.msra.mxu0 %v5366_v42  ;;  %2257 = vmatpush.bf16.msra.mxu1 %v5558_v45  ;;  %v5486_v42 = vor.u32 %v6445_v22, %v5485_v34  ;;  %v5270_v45 = vor.u32 %v6391_v44, %v5269_v43  ;;  %v5437_v60 = vld [vmem:[%s8211_s13 + $0x1f0] sm:$0xf]  ;;  %v6433_v61 = vld [vmem:[%s8211_s13 + $0x204] sm:$0xf0]  ;;  %v5246_v63 = vor.u32 %v6385_v59, %v5245_v55  ;;  %v6382_v3 = vld [vmem:[%s8211_s13 + $0x74] sm:$0xf] }
 0x247   : > { %2276 = vmatpush.bf16.msra.mxu2 %v5370_v50  ;;  %2295 = vmatpush.bf16.msra.mxu3 %v5562_v57  ;;  %v6439_v50 = vld [vmem:[%s8211_s13 + $0x234] sm:$0xf0]  ;;  %v5247_v46 = vld [vmem:[%s8211_s13 + $0x88] sm:$0xf0]  ;;  %v6430_v47 = vld [vmem:[%s8211_s13 + $0x1f4] sm:$0xf] }
 0x248   : > { %2405 = vperm.xlu2 %6885, %v1220_v11   ;;  %v5462_v57 = vor.u32 %v6439_v50, %v5461_v51  ;;  %v5221_v7 = vld [vmem:[%s8211_s13 + $0x40] sm:$0xf]  ;;  %v6379_v32 = vld [vmem:[%s8211_s13 + $0x54] sm:$0xf0]  ;;  %v5250_v9 = vor.u32 %v6382_v3, %v5247_v46  ;;  %v6376_v48 = vld [vmem:[%s8211_s13 + $0x44] sm:$0xf] }
 0x249   : > { %v5413_v13 = vld [vmem:[%s8211_s13 + $0x1c0] sm:$0xf]  ;;  %v6427_v14 = vld [vmem:[%s8211_s13 + $0x1d4] sm:$0xf0]  ;;  %v5222_v56 = vor.u32 %v6379_v32, %v5221_v7  ;;  %v5223_v49 = vld [vmem:[%s8211_s13 + $0x58] sm:$0xf0] }
 0x24a   : > { %2239 = vmatpush.bf16.msra.mxu0 %v5342_v62  ;;  %2258 = vmatpush.bf16.msra.mxu1 %v5534_v37  ;;  %v5466_v62 = vor.u32 %v6436_v53, %v5463_v54  ;;  %v5439_v37 = vld [vmem:[%s8211_s13 + $0x208] sm:$0xf0]  ;;  %v6424_v10 = vld [vmem:[%s8211_s13 + $0x1c4] sm:$0xf]  ;;  %v5415_v15 = vld [vmem:[%s8211_s13 + $0x1d8] sm:$0xf0]  ;;  %v5414_v19 = vor.u32 %v6427_v14, %v5413_v13  ;;  %v5226_v20 = vor.u32 %v6376_v48, %v5223_v49 }
 0x24b   : > { %2277 = vmatpush.bf16.msra.mxu2 %v5346_v6  ;;  %2296 = vmatpush.bf16.msra.mxu3 %v5538_v8  ;;  %v1217_v6 = vld [vmem:[%s10005_s19 + $0x10] sm:$0xff]  ;;  %v5438_v8 = vor.u32 %v6433_v61, %v5437_v60  ;;  %v5442_v33 = vor.u32 %v6430_v47, %v5439_v37  ;;  %v5389_v21 = vld [vmem:[%s8211_s13 + $0x190] sm:$0xf]  ;;  %v6418_v1 = vld [vmem:[%s8211_s13 + $0x194] sm:$0xf] }
 0x24c   : > { %v6373_v18 = vld [vmem:[%s8211_s13 + $0x24] sm:$0xf0]  ;;  %v5199_v30 = vld [vmem:[%s8211_s13 + $0x28] sm:$0xf0]  ;;  %v6486_v38 = vld [vmem:[%s8213_s3 + $0xb0] sm:$0xf0] }
 0x24d   : > { %v6421_v0 = vld [vmem:[%s8211_s13 + $0x1a4] sm:$0xf0]  ;;  %v5391_v34 = vld [vmem:[%s8211_s13 + $0x1a8] sm:$0xf0]  ;;  %v5651_v39 = vld [vmem:[%s8213_s3 + $0xb4] sm:$0xf0] }
 0x24e   : > { %2240 = vmatpush.bf16.msra.mxu0 %v5318_v17  ;;  %2259 = vmatpush.bf16.msra.mxu1 %v5510_v23  ;;  %v5197_v17 = vld [vmem:[%s8211_s13 + $0x10] sm:$0xf]  ;;  %v1221_v23 = vld [vmem:[%s10004_s28 + $0x10] sm:$0xff]  ;;  %v5390_v11 = vor.u32 %v6421_v0, %v5389_v21  ;;  %v5394_v22 = vor.u32 %v6418_v1, %v5391_v34  ;;  %v5625_v4 = vld [vmem:[%s8213_s3 + $0x78] sm:$0xf] }
 0x24f   : > { %2278 = vmatpush.bf16.msra.mxu2 %v5322_v24  ;;  %2297 = vmatpush.bf16.msra.mxu3 %v5514_v26  ;;  %v5418_v24 = vor.u32 %v6424_v10, %v5415_v15  ;;  %v5198_v25 = vor.u32 %v6373_v18, %v5197_v17  ;;  %v6370_v26 = vld [vmem:[%s8211_s13 + $0x14] sm:$0xf]  ;;  %v5649_v36 = vld [vmem:[%s8213_s3 + $0xa8] sm:$0xf]  ;;  %v6480_v53 = vld [vmem:[%s8213_s3 + $0x80] sm:$0xf0] }
 0x250   : > { %2353 = vperm.xlu2 %6885, %v1217_v6   ;;  %v5745_v51 = vld [vmem:[%s8213_s3 + $0x168] sm:$0xf]  ;;  %v6479_v54 = vld [vmem:[%s8213_s3 + $0x7c] sm:$0xf]  ;;  %v5733_v46 = vld [vmem:[%s8213_s3 + $0x150] sm:$0xf]  ;;  %v8712_v6 = vpop.permute.xlu1 %2400 }
 0x251   : > { %v5627_v59 = vld [vmem:[%s8213_s3 + $0x84] sm:$0xf0]  ;;  %v8708_v60 = vld [vmem:[%s8257_s25] sm:$0x77]  ;;  %v5613_v7 = vld [vmem:[%s8213_s3 + $0x60] sm:$0xf] }
 0x252   : > { %2241 = vmatpush.bf16.msra.mxu0 %v5294_v2  ;;  %2260 = vmatpush.bf16.msra.mxu1 %v5486_v42  ;;  %v5202_v2 = vor.u32 %v6370_v26, %v5199_v30  ;;  %v5630_v3 = vor.u32 %v6479_v54, %v5627_v59  ;;  %v6507_v47 = vld [vmem:[%s8213_s3 + $0x158] sm:$0xf0]  ;;  %v6477_v32 = vld [vmem:[%s8213_s3 + $0x68] sm:$0xf0]  ;;  %v6476_v14 = vld [vmem:[%s8213_s3 + $0x64] sm:$0xf] }
 0x253   : > { %2279 = vmatpush.bf16.msra.mxu2 %v5298_v12  ;;  %2298 = vmatpush.bf16.msra.mxu3 %v5490_v16  ;;  %v6483_v12 = vld [vmem:[%s8213_s3 + $0x98] sm:$0xf0]  ;;  %v5639_v16 = vld [vmem:[%s8213_s3 + $0x9c] sm:$0xf0]  ;;  %v5734_v37 = vor.u32 %v6507_v47, %v5733_v46  ;;  %v5614_v13 = vor.u32 %v6477_v32, %v5613_v7  ;;  %v5721_v49 = vld [vmem:[%s8213_s3 + $0x138] sm:$0xf] }
 0x254   : > { %2099 = vmatmul.bf16.gmra.mxu0 %v8623_v40  ;;  %2118 = vmatmul.bf16.gmra.mxu1 %v8625_v41  ;;  %v6504_v10 = vld [vmem:[%s8213_s3 + $0x140] sm:$0xf0]  ;;  %v5601_v18 = vld [vmem:[%s8213_s3 + $0x48] sm:$0xf]  ;;  %v6473_v0 = vld [vmem:[%s8213_s3 + $0x4c] sm:$0xf] }
 0x255   : > { %2137 = vmatmul.bf16.gmra.mxu2 %v8623_v40  ;;  %2156 = vmatmul.bf16.gmra.mxu3 %v8625_v41  ;;  %v5722_v15 = vor.u32 %v6504_v10, %v5721_v49  ;;  %v5603_v26 = vld [vmem:[%s8213_s3 + $0x54] sm:$0xf0]  ;;  %v2486_v1 = vperm.slane %v8708_v60, 2  ;;  %v6498_v54 = vld [vmem:[%s8213_s3 + $0x110] sm:$0xf0] }
 0x256   : > { %2242 = vmatpush.bf16.msra.mxu0 %v5270_v45  ;;  %2261 = vmatpush.bf16.msra.mxu1 %v5462_v57  ;;  %v6510_v45 = vld [vmem:[%s8213_s3 + $0x170] sm:$0xf0]  ;;  %v5577_v47 = vld [vmem:[%s8213_s3 + $0x18] sm:$0xf]  ;;  %v6467_v7 = vld [vmem:[%s8213_s3 + $0x1c] sm:$0xf] }
 0x257   : > { %2280 = vmatpush.bf16.msra.mxu2 %v5274_v58  ;;  %2299 = vmatpush.bf16.msra.mxu3 %v5466_v62  ;;  %v5746_v50 = vor.u32 %v6510_v45, %v5745_v51  ;;  %v5626_v58 = vor.u32 %v6480_v53, %v5625_v4  ;;  %v5697_v53 = vld [vmem:[%s8213_s3 + $0x108] sm:$0xf]  ;;  %v8761_v59 = vperm.slane %v2486_v1, 2 }
 0x258   : > { %2410 = vperm.xlu2 %6885, %v1221_v23   ;;  %v5698_v46 = vor.u32 %v6498_v54, %v5697_v53 }
 0x25a   : > { %2243 = vmatpush.bf16.msra.mxu0 %v5246_v63  ;;  %2262 = vmatpush.bf16.msra.mxu1 %v5438_v8  ;;  %v2326_v63 = vlaneseq  ;;  %v2453_v8 = vperm.slane %v8708_v60, 1 }
 0x25b   : > { %2281 = vmatpush.bf16.msra.mxu2 %v5250_v9  ;;  %2300 = vmatpush.bf16.msra.mxu3 %v5442_v33  ;;  %v2454_v9 = vperm.slane %v8708_v60, 5  ;;  %v5615_v33 = vld [vmem:[%s8213_s3 + $0x6c] sm:$0xf0] }
 0x25c   : > { %v5618_v48 = vor.u32 %v6476_v14, %v5615_v33  ;;  %v5579_v14 = vld [vmem:[%s8213_s3 + $0x24] sm:$0xf0] }
 0x25d   : > { %v8730_v21 = vperm.slane %v2454_v9, 1 }
 0x25e   : > { %2244 = vmatpush.bf16.msra.mxu0 %v5222_v56  ;;  %2263 = vmatpush.bf16.msra.mxu1 %v5414_v19  ;;  %v8720_v56 = vshrl.u32 %v2326_v63, 7  ;;  %v6474_v19 = vld [vmem:[%s8213_s3 + $0x50] sm:$0xf0] }
 0x25f   : > { %2282 = vmatpush.bf16.msra.mxu2 %v5226_v20  ;;  %2301 = vmatpush.bf16.msra.mxu3 %v5418_v24  ;;  %v8728_v20 = vperm.slane %v2453_v8, 1 }
 0x260   : > { %vm2328_vm13 = vcmp.lt.s32.totalorder %v8720_v56, 1  ;;  %vm2385_vm14 = vcmp.lt.s32.totalorder %v8720_v56, 7 }
 0x262   : > { %2245 = vmatpush.bf16.msra.mxu0 %v5198_v25  ;;  %2264 = vmatpush.bf16.msra.mxu1 %v5390_v11  ;;  %v5602_v25 = vor.u32 %v6474_v19, %v5601_v18  ;;  %v5582_v18 = vor.u32 %v6467_v7, %v5579_v14  ;;  %v5685_v19 = vld [vmem:[%s8213_s3 + $0xf0] sm:$0xf] }
 0x263   : > { %2283 = vmatpush.bf16.msra.mxu2 %v5202_v2  ;;  %2302 = vmatpush.bf16.msra.mxu3 %v5394_v22  ;;  %v5709_v2 = vld [vmem:[%s8213_s3 + $0x120] sm:$0xf]  ;;  %v6501_v22 = vld [vmem:[%s8213_s3 + $0x128] sm:$0xf0] }
 0x264   : > { %2170 = vmatmul.bf16.vlgmr.msrb.gmra.mxu0 %v8557_v28  ;;  %2189 = vmatmul.bf16.vlgmr.msrb.gmra.mxu1 %v8559_v5 }
 0x265   : > { %2208 = vmatmul.bf16.vlgmr.msrb.gmra.mxu2 %v8557_v28  ;;  %2227 = vmatmul.bf16.vlgmr.msrb.gmra.mxu3 %v8559_v5 }
 0x266   : > { %3007 = vmatpush.bf16.msrb.mxu1 %v5746_v50 }
 0x26a   : > { %3008 = vmatpush.bf16.msrb.mxu1 %v5734_v37  ;;  %v6468_v37 = vld [vmem:[%s8213_s3 + $0x20] sm:$0xf0] }
 0x26e   : > { %3009 = vmatpush.bf16.msrb.mxu1 %v5722_v15 }
 0x274   : > { %2175 = vmatmul.bf16.gmra.mxu0 %v8623_v40  ;;  %2194 = vmatmul.bf16.gmra.mxu1 %v8625_v41 }
 0x275   : > { %2213 = vmatmul.bf16.gmra.mxu2 %v8623_v40  ;;  %2232 = vmatmul.bf16.gmra.mxu3 %v8625_v41 }
 0x284   : > { %2246 = vmatmul.bf16.vlgmr.msra.gmra.mxu0 %v8557_v28  ;;  %2265 = vmatmul.bf16.vlgmr.msra.gmra.mxu1 %v8559_v5 }
 0x285   : > { %2284 = vmatmul.bf16.vlgmr.msra.gmra.mxu2 %v8557_v28  ;;  %2303 = vmatmul.bf16.vlgmr.msra.gmra.mxu3 %v8559_v5  ;;  %v6485_v28 = vld [vmem:[%s8213_s3 + $0xac] sm:$0xf]  ;;  %v5650_v5 = vor.u32 %v6486_v38, %v5649_v36  ;;  %v2432_v36 = vperm.slane %v8708_v60, 0 }
 0x286   : > { %v5654_v42 = vor.u32 %v6485_v28, %v5651_v39  ;;  %v5606_v28 = vor.u32 %v6473_v0, %v5603_v26 }
 0x287   : > { %2988 = vmatpush.bf16.msrb.mxu0 %v5650_v5  ;;  %v5710_v5 = vor.u32 %v6501_v22, %v5709_v2  ;;  %v5565_v2 = vld [vmem:[%s8213_s3] sm:$0xf]  ;;  %v6465_v22 = vld [vmem:[%s8213_s3 + $0x8] sm:$0xf0] }
 0x288   : > { %3045 = vmatpush.bf16.msrb.mxu3 %v5654_v42  ;;  %v5589_v42 = vld [vmem:[%s8213_s3 + $0x30] sm:$0xf] }
 0x289   : > { %3010 = vmatpush.bf16.msrb.mxu1 %v5710_v5 }
 0x28d   : > { %3011 = vmatpush.bf16.msrb.mxu1 %v5698_v46 }
 0x294   : > { %2251 = vmatmul.bf16.gmra.mxu0 %v8623_v40  ;;  %2270 = vmatmul.bf16.gmra.mxu1 %v8625_v41 }
 0x295   : > { %2289 = vmatmul.bf16.gmra.mxu2 %v8623_v40  ;;  %2308 = vmatmul.bf16.gmra.mxu3 %v8625_v41  ;;  %v5637_v40 = vld [vmem:[%s8213_s3 + $0x90] sm:$0xf]  ;;  %v6482_v41 = vld [vmem:[%s8213_s3 + $0x94] sm:$0xf] }
 0x296   : > { %v5638_v43 = vor.u32 %v6483_v12, %v5637_v40  ;;  %v5642_v44 = vor.u32 %v6482_v41, %v5639_v16  ;;  %v6471_v40 = vld [vmem:[%s8213_s3 + $0x38] sm:$0xf0]  ;;  %v2487_v41 = vperm.slane %v8708_v60, 6 }
 0x297   : > { %v5590_v16 = vor.u32 %v6471_v40, %v5589_v42  ;;  %v5567_v42 = vld [vmem:[%s8213_s3 + $0xc] sm:$0xf0] }
 0x298   : > { %2989 = vmatpush.bf16.msrb.mxu0 %v5638_v43  ;;  %3046 = vmatpush.bf16.msrb.mxu3 %v5642_v44  ;;  %v6470_v43 = vld [vmem:[%s8213_s3 + $0x34] sm:$0xf]  ;;  %v5591_v44 = vld [vmem:[%s8213_s3 + $0x3c] sm:$0xf0]  ;;  %v8792_v49 = vperm.slane %v2487_v41, 2 }
 0x299   : > { %v5594_v4 = vor.u32 %v6470_v43, %v5591_v44 }
 0x29a   : > { %v8685_v31 = vpop.permute.xlu2 %2343 }
 0x29c   : > { %2990 = vmatpush.bf16.msrb.mxu0 %v5626_v58  ;;  %3047 = vmatpush.bf16.msrb.mxu3 %v5630_v3 }
 0x2a0   : > { %2991 = vmatpush.bf16.msrb.mxu0 %v5614_v13  ;;  %3048 = vmatpush.bf16.msrb.mxu3 %v5618_v48  ;;  %v5578_v13 = vor.u32 %v6468_v37, %v5577_v47 }
 0x2a2   : > { %v8697_v52 = vpop.permute.xlu2 %2405 }
 0x2a4   : > { %2992 = vmatpush.bf16.msrb.mxu0 %v5602_v25  ;;  %3049 = vmatpush.bf16.msrb.mxu3 %v5606_v28  ;;  %v8755_v50 = vpop.permute.xlu1 %2358  ;;  %v8773_v63 = vpop.permute.xlu0 %2348 }
 0x2a8   : > { %2993 = vmatpush.bf16.msrb.mxu0 %v5590_v16  ;;  %3050 = vmatpush.bf16.msrb.mxu3 %v5594_v4 }
 0x2ac   : > { %2994 = vmatpush.bf16.msrb.mxu0 %v5578_v13  ;;  %3051 = vmatpush.bf16.msrb.mxu3 %v5582_v18  ;;  %v8850_v18 = vld [vmem:[%s8257_s25 + $0x8] sm:$0x7]  ;;  %s10037_s25 = sld [smem:[#allocation81_spill]] (!%p6043_p1) }
 0x2b5   : > { %v8828_v37 = vpop.permute.xlu1 %2415 }
 0x2c1   : > { %v2095_v29 = vpop.f32.mrf.mxu0  ;;  %v2114_v35 = vpop.f32.mrf.mxu1 }
 0x2c2   : > { %v8734_v30 = vadd.f32 %v2114_v35, %v2095_v29  ;;  %v2433_v29 = vperm.slane %v8708_v60, 4  ;;  %v8745_v35 = vpop.permute.xlu2 %2353  ;;  %v8763_v60 = vperm.slane %v2432_v36, 0 }
 0x2c4   : > { %v2314_v51 = vrot.slane %v8734_v30, 7  ;;  %v2373_v32 = vrot.slane %v8734_v30, 1 }
 0x2c8   : > { %v8702_v55 = vpop.f32.mrf.mxu2  ;;  %v8704_v57 = vpop.f32.mrf.mxu3 }
 0x2c9   : > { %v2097_v61 = vpop.f32.mrf.mxu0  ;;  %v2116_v62 = vpop.f32.mrf.mxu1 }
 0x2ca   : > { %v8724_v17 = vadd.f32 %v2116_v62, %v2097_v61  ;;  %v8767_v61 = vadd.f32 %v8704_v57, %v8702_v55  ;;  %v8781_v55 = vperm.slane %v2433_v29, 0  ;;  %v6464_v29 = vld [vmem:[%s8213_s3 + $0x4] sm:$0xf]  ;;  %v8811_v43 = vpop.permute.xlu2 %2410 }
 0x2cb   : > { %v5570_v44 = vor.u32 %v6464_v29, %v5567_v42 }
 0x2cc   : > { %v2317_v39 = vrot.slane %v8724_v17, 7  ;;  %v2376_v58 = vrot.slane %v8724_v17, 1  ;;  %v2315_v1 = vrot.slane %v8767_v61, 7  ;;  %v2465_v40 = vmul.f32 %v8728_v20, %v8724_v17 }
 0x2cd   : > { %3052 = vmatpush.bf16.msrb.mxu3 %v5570_v44  ;;  %v2488_v44 = vperm.slane %v8850_v18, 2 }
 0x2ce   : > { %v2335_v62 = vsel %vm2328_vm13, %v2314_v51, %v2317_v39 }
 0x2cf   : > { %v2364_v25 = vmul.f32 %v8773_v63, %v2335_v62  ;;  %v6492_v62 = vld [vmem:[%s8213_s3 + $0xe0] sm:$0xf0] }
 0x2d0   : > { %v2135_v23 = vpop.f32.mrf.mxu2  ;;  %v2154_v24 = vpop.f32.mrf.mxu3 }
 0x2d1   : > { %v2100_v34 = vpop.f32.mrf.mxu0  ;;  %v2119_v11 = vpop.f32.mrf.mxu1  ;;  %v8775_v3 = vadd.f32 %v2154_v24, %v2135_v23  ;;  %v6495_v23 = vld [vmem:[%s8213_s3 + $0xf8] sm:$0xf0]  ;;  %v2392_v24 = vsel %vm2385_vm14, %v2373_v32, %v2376_v58  ;;  %v2444_v4 = vmul.f32 %v8763_v60, %v2364_v25 }
 0x2d2   : > { %v8741_v38 = vadd.f32 %v2119_v11, %v2100_v34  ;;  %v5686_v26 = vor.u32 %v6495_v23, %v5685_v19  ;;  %v2418_v41 = vmul.f32 %v8712_v6, %v2392_v24 }
 0x2d3   : > { %v2318_v34 = vrot.slane %v8775_v3, 7  ;;  %v2377_v53 = vrot.slane %v8775_v3, 1  ;;  %v2477_v23 = vadd.f32 %v2465_v40, %v2444_v4 }
 0x2d4   : > { %v2379_v12 = vrot.slane %v8741_v38, 1  ;;  %v2320_v45 = vrot.slane %v8741_v38, 7  ;;  %3012 = vmatpush.bf16.msrb.mxu1 %v5686_v26  ;;  %v2468_v25 = vmul.f32 %v8728_v20, %v8741_v38  ;;  %v2374_v38 = vrot.slane %v8767_v61, 1 }
 0x2d5   : > { %v2336_v46 = vsel %vm2328_vm13, %v2315_v1, %v2318_v34  ;;  %v2495_v40 = vmul.f32 %v8761_v59, %v2418_v41 }
 0x2d6   : > { %v2389_v57 = vsel %vm2385_vm14, %v2376_v58, %v2379_v12  ;;  %v2332_v33 = vsel %vm2328_vm13, %v2317_v39, %v2320_v45  ;;  %v5566_v39 = vor.u32 %v6465_v22, %v5565_v2  ;;  %v5673_v58 = vld [vmem:[%s8213_s3 + $0xd8] sm:$0xf]  ;;  %v2365_v24 = vmul.f32 %v8773_v63, %v2336_v46 }
 0x2d7   : > { %v2421_v11 = vmul.f32 %v8697_v52, %v2389_v57  ;;  %v2367_v36 = vmul.f32 %v8745_v35, %v2332_v33  ;;  %v2393_v4 = vsel %vm2385_vm14, %v2374_v38, %v2377_v53 }
 0x2d8   : > { %v2138_v8 = vpop.f32.mrf.mxu2  ;;  %v2157_v9 = vpop.f32.mrf.mxu3  ;;  %2995 = vmatpush.bf16.msrb.mxu0 %v5566_v39  ;;  %v2455_v39 = vperm.slane %v8850_v18, 1 }
 0x2d9   : > { %v8790_v48 = vadd.f32 %v2157_v9, %v2138_v8  ;;  %v2102_v10 = vpop.f32.mrf.mxu0  ;;  %v2121_v15 = vpop.f32.mrf.mxu1  ;;  %v2447_v57 = vmul.f32 %v8763_v60, %v2367_v36 }
 0x2da   : > { %v2122_v0 = vadd.f32 %v2121_v15, %v2102_v10 }
 0x2db   : > { %v2380_v16 = vrot.slane %v8790_v48, 1  ;;  %v2321_v41 = vrot.slane %v8790_v48, 7 }
 0x2dc   : > { %v2323_v28 = vrot.slane %v2122_v0, 7  ;;  %v2382_v5 = vrot.slane %v2122_v0, 1  ;;  %v2471_v26 = vmul.f32 %v8728_v20, %v2122_v0  ;;  %v2480_v0 = vadd.f32 %v2468_v25, %v2447_v57 }
 0x2dd   : > { %v2390_v33 = vsel %vm2385_vm14, %v2377_v53, %v2380_v16  ;;  %v5841_v53 = vld [vmem:[%s8213_s3 + $0x228] sm:$0xf] }
 0x2de   : > { %v2329_v54 = vsel %vm2328_vm13, %v2320_v45, %v2323_v28  ;;  %v2338_v17 = vsel %vm2328_vm13, %v2323_v28, %v2314_v51  ;;  %v2386_v45 = vsel %vm2385_vm14, %v2379_v12, %v2382_v5  ;;  %v2498_v51 = vmul.f32 %v8761_v59, %v2421_v11 }
 0x2df   : > { %v2361_v47 = vmul.f32 %v8685_v31, %v2338_v17  ;;  %v2370_v7 = vmul.f32 %v8755_v50, %v2329_v54  ;;  %v2395_v8 = vsel %vm2385_vm14, %v2382_v5, %v2373_v32  ;;  %v2424_v9 = vmul.f32 %v8811_v43, %v2386_v45 }
 0x2e0   : > { %v2140_v13 = vpop.f32.mrf.mxu2  ;;  %v2159_v14 = vpop.f32.mrf.mxu3  ;;  %v5674_v32 = vor.u32 %v6492_v62, %v5673_v58  ;;  %v2427_v2 = vmul.f32 %v8828_v37, %v2395_v8  ;;  %v2462_v28 = vmul.f32 %v8728_v20, %v8734_v30  ;;  %v2422_v5 = vmul.f32 %v8697_v52, %v2390_v33 }
 0x2e1   : > { %v2450_v12 = vmul.f32 %v8763_v60, %v2370_v7  ;;  %v8845_v10 = vadd.f32 %v2159_v14, %v2140_v13  ;;  %v8847_v15 = vpop.f32.mrf.mxu0  ;;  %v8852_v19 = vpop.f32.mrf.mxu1  ;;  %v2441_v11 = vmul.f32 %v8763_v60, %v2361_v47  ;;  %v2501_v22 = vmul.f32 %v8761_v59, %v2424_v9  ;;  %v6534_v13 = vld [vmem:[%s8213_s3 + $0x230] sm:$0xf0]  ;;  %v6509_v14 = vld [vmem:[%s8213_s3 + $0x16c] sm:$0xf] }
 0x2e2   : > { %3013 = vmatpush.bf16.msrb.mxu1 %v5674_v32  ;;  %v8866_v29 = vadd.f32 %v2498_v51, %v2477_v23  ;;  %v2445_v20 = vmul.f32 %v8781_v55, %v2365_v24  ;;  %v2466_v30 = vmul.f32 %v8730_v21, %v8775_v3  ;;  %v2504_v54 = vmul.f32 %v8761_v59, %v2427_v2  ;;  %v5747_v32 = vld [vmem:[%s8213_s3 + $0x174] sm:$0xf0]  ;;  %v5753_v23 = vld [vmem:[%s8213_s3 + $0x170] sm:$0xf]  ;;  %v6511_v2 = vld [vmem:[%s8213_s3 + $0x178] sm:$0xf0] }
 0x2e3   : > { %v2324_v36 = vrot.slane %v8845_v10, 7  ;;  %v2483_v60 = vadd.f32 %v2471_v26, %v2450_v12  ;;  %v8883_v17 = vadd.f32 %v2501_v22, %v2480_v0  ;;  %v2499_v58 = vmul.f32 %v8792_v49, %v2422_v5  ;;  %v5661_v22 = vld [vmem:[%s8213_s3 + $0xc0] sm:$0xf]  ;;  %v6489_v0 = vld [vmem:[%s8213_s3 + $0xc8] sm:$0xf0] }
 0x2e4   : > { %v2522_v7 = vsub.f32 0.0, %v8866_v29  ;;  %v2434_v8 = vperm.slane %v8850_v18, 0  ;;  %v2478_v33 = vadd.f32 %v2466_v30, %v2445_v20  ;;  %v2419_v24 = vmul.f32 %v8712_v6, %v2393_v4  ;;  %v6531_v4 = vld [vmem:[%s8213_s3 + $0x218] sm:$0xf0] }
 0x2e5   : > { %v2339_v42 = vsel %vm2328_vm13, %v2324_v36, %v2315_v1  ;;  %v2474_v1 = vadd.f32 %v2462_v28, %v2441_v11  ;;  %v8890_v45 = vadd.f32 %v2504_v54, %v2483_v60  ;;  %v2525_v25 = vsub.f32 0.0, %v8883_v17  ;;  %v5829_v60 = vld [vmem:[%s8213_s3 + $0x210] sm:$0xf] }
 0x2e6   : > { %v2362_v62 = vmul.f32 %v8685_v31, %v2339_v42  ;;  %v2537_v12 = vmul.f32 1.442695, %v2522_v7  ;;  %v5842_v11 = vor.u32 %v6534_v13, %v5841_v53  ;;  %v2333_v28 = vsel %vm2328_vm13, %v2318_v34, %v2321_v41  ;;  %v6508_v13 = vld [vmem:[%s8213_s3 + $0x160] sm:$0xf0] }
 0x2e7   : > { %v8895_v9 = vadd.f32 %v2495_v40, %v2474_v1  ;;  %v8915_v42 = vadd.f32 %v2499_v58, %v2478_v33  ;;  %v2528_v40 = vsub.f32 0.0, %v8890_v45  ;;  %v5750_v30 = vor.u32 %v6509_v14, %v5747_v32 }
 0x2e8   : > { %v2209_v46 = vpop.f32.mrf.mxu2  ;;  %v2228_v47 = vpop.f32.mrf.mxu3  ;;  %v2442_v5 = vmul.f32 %v8781_v55, %v2362_v62  ;;  %6898 = vpow2.f32 %v2537_v12  ;;  %3026 = vmatpush.bf16.msrb.mxu2 %v5842_v11  ;;  %v5754_v3 = vor.u32 %v6511_v2, %v5753_v23  ;;  %v2463_v34 = vmul.f32 %v8730_v21, %v8767_v61  ;;  %v6506_v62 = vld [vmem:[%s8213_s3 + $0x154] sm:$0xf]  ;;  %v5717_v61 = vld [vmem:[%s8213_s3 + $0x128] sm:$0xf] }
 0x2e9   : > { %v8892_v59 = vadd.f32 %v2228_v47, %v2209_v46  ;;  %v2173_v51 = vpop.f32.mrf.mxu0  ;;  %v2192_v57 = vpop.f32.mrf.mxu1  ;;  %v2519_v26 = vsub.f32 0.0, %v8895_v9  ;;  %v5662_v54 = vor.u32 %v6489_v0, %v5661_v22  ;;  %v5830_v1 = vor.u32 %v6531_v4, %v5829_v60  ;;  %v5735_v46 = vld [vmem:[%s8213_s3 + $0x15c] sm:$0xf0]  ;;  %v5741_v47 = vld [vmem:[%s8213_s3 + $0x158] sm:$0xf]  ;;  %3064 = vmatpush.bf16.msra.mxu0 %v5750_v30 }
 0x2ea   : > { %v2368_v7 = vmul.f32 %v8745_v35, %v2333_v28  ;;  %v2543_v58 = vmul.f32 1.442695, %v2525_v25  ;;  %3121 = vmatpush.bf16.msra.mxu3 %v5754_v3  ;;  %v5738_v53 = vor.u32 %v6506_v62, %v5735_v46  ;;  %v2496_v33 = vmul.f32 %v8792_v49, %v2419_v24  ;;  %v5817_v46 = vld [vmem:[%s8213_s3 + $0x1f8] sm:$0xf] }
 0x2eb   : > { %v2531_v20 = vmul.f32 1.442695, %v2519_v26  ;;  %3014 = vmatpush.bf16.msrb.mxu1 %v5662_v54  ;;  %v5742_v32 = vor.u32 %v6508_v13, %v5741_v47  ;;  %v2475_v23 = vadd.f32 %v2463_v34, %v2442_v5  ;;  %v2523_v26 = vsub.f32 0.0, %v8915_v42  ;;  %v6533_v5 = vld [vmem:[%s8213_s3 + $0x22c] sm:$0xf] }
 0x2ec   : > { %v2549_v11 = vmul.f32 1.442695, %v2528_v40  ;;  %3027 = vmatpush.bf16.msrb.mxu2 %v5830_v1  ;;  %v8932_v24 = vadd.f32 %v8852_v19, %v8847_v15  ;;  %v8934_v0 = vadd.f32 %v2192_v57, %v2173_v51  ;;  %v8941_v40 = vperm.slane %v2455_v39, 1  ;;  %v5843_v15 = vld [vmem:[%s8213_s3 + $0x234] sm:$0xf0] }
 0x2ed   : > { %6900 = vpow2.f32 %v2531_v20  ;;  %v8936_v60 = vadd.f32 %v2496_v33, %v2475_v23  ;;  %v2539_v20 = vmul.f32 1.442695, %v2523_v26  ;;  %v8945_v30 = vperm.slane %v2488_v44, 2  ;;  %3065 = vmatpush.bf16.msra.mxu0 %v5738_v53  ;;  %v6528_v47 = vld [vmem:[%s8213_s3 + $0x200] sm:$0xf0] }
 0x2ee   : > { %v6899_v28 = vpop.eup %6898  ;;  %v8947_v3 = vperm.slane %v2434_v8, 0  ;;  %3122 = vmatpush.bf16.msra.mxu3 %v5742_v32  ;;  %v2448_v19 = vmul.f32 %v8781_v55, %v2368_v7  ;;  %v2469_v51 = vmul.f32 %v8730_v21, %v8790_v48  ;;  %6902 = vpow2.f32 %v2543_v58  ;;  %v5723_v32 = vld [vmem:[%s8213_s3 + $0x144] sm:$0xf0] }
 0x2ef   : > { %v2558_v4 = vadd.f32 1.0, %v6899_v28  ;;  %v2330_v18 = vsel %vm2328_vm13, %v2321_v41, %v2324_v36  ;;  %6904 = vpow2.f32 %v2549_v11  ;;  %v2383_v39 = vrot.slane %v8845_v10, 1 }
 0x2f0   : > { %v2211_v14 = vpop.f32.mrf.mxu2  ;;  %v2230_v12 = vpop.f32.mrf.mxu3  ;;  %v2520_v44 = vsub.f32 0.0, %v8936_v60  ;;  %v5846_v57 = vor.u32 %v6533_v5, %v5843_v15  ;;  %v2316_v34 = vrot.slane %v8932_v24, 7  ;;  %v2375_v54 = vrot.slane %v8932_v24, 1  ;;  %v6530_v5 = vld [vmem:[%s8213_s3 + $0x214] sm:$0xf] }
 0x2f1   : > { %v8928_v2 = vadd.f32 %v2230_v12, %v2211_v14  ;;  %v2176_v25 = vpop.f32.mrf.mxu0  ;;  %v2195_v22 = vpop.f32.mrf.mxu1  ;;  %v2319_v1 = vrot.slane %v8934_v0, 7  ;;  %6906 = vpow2.f32 %v2539_v20  ;;  %v2371_v62 = vmul.f32 %v8755_v50, %v2330_v18  ;;  %v6503_v12 = vld [vmem:[%s8213_s3 + $0x13c] sm:$0xf]  ;;  %v6525_v18 = vld [vmem:[%s8213_s3 + $0x1e8] sm:$0xf0] }
 0x2f2   : > { %v2378_v36 = vrot.slane %v8934_v0, 1  ;;  %6908 = vrcp.f32 %v2558_v4  ;;  %3083 = vmatpush.bf16.msra.mxu1 %v5846_v57  ;;  %v8968_v7 = vadd.f32 %v2469_v51, %v2448_v19  ;;  %v2472_v58 = vmul.f32 %v8730_v21, %v8845_v10  ;;  %v5729_v21 = vld [vmem:[%s8213_s3 + $0x140] sm:$0xf]  ;;  %v6505_v10 = vld [vmem:[%s8213_s3 + $0x148] sm:$0xf0] }
 0x2f3   : > { %v6901_v8 = vpop.eup %6900  ;;  %v2533_v33 = vmul.f32 1.442695, %v2520_v44  ;;  %v5818_v14 = vor.u32 %v6528_v47, %v5817_v46  ;;  %v8976_v23 = vmul.f32 %v8941_v40, %v8932_v24  ;;  %v8978_v26 = vadd.f32 %v2195_v22, %v2176_v25  ;;  %v5831_v25 = vld [vmem:[%s8213_s3 + $0x21c] sm:$0xf0]  ;;  %v6500_v47 = vld [vmem:[%s8213_s3 + $0x124] sm:$0xf] }
 0x2f4   : > { %v2555_v41 = vadd.f32 1.0, %v6901_v8  ;;  %v6903_v4 = vpop.eup %6902  ;;  %v5726_v19 = vor.u32 %v6503_v12, %v5723_v32  ;;  %v5730_v51 = vor.u32 %v6505_v10, %v5729_v21  ;;  %v5805_v22 = vld [vmem:[%s8213_s3 + $0x1e0] sm:$0xf]  ;;  %v2387_v57 = vsel %vm2385_vm14, %v2380_v16, %v2383_v39 }
 0x2f5   : > { %3028 = vmatpush.bf16.msrb.mxu2 %v5818_v14  ;;  %v6905_v44 = vpop.eup %6904  ;;  %v2451_v8 = vmul.f32 %v8781_v55, %v2371_v62  ;;  %v5806_v46 = vor.u32 %v6525_v18, %v5805_v22  ;;  %v2337_v48 = vsel %vm2328_vm13, %v2316_v34, %v2319_v1  ;;  %v2394_v55 = vsel %vm2385_vm14, %v2375_v54, %v2378_v36  ;;  %v6502_v62 = vld [vmem:[%s8213_s3 + $0x130] sm:$0xf0]  ;;  %v6527_v22 = vld [vmem:[%s8213_s3 + $0x1fc] sm:$0xf]  ;;  %v5819_v18 = vld [vmem:[%s8213_s3 + $0x204] sm:$0xf0] }
 0x2f6   : > { %6910 = vrcp.f32 %v2555_v41  ;;  %v5834_v41 = vor.u32 %v6530_v5, %v5831_v25  ;;  %3066 = vmatpush.bf16.msra.mxu0 %v5726_v19  ;;  %3123 = vmatpush.bf16.msra.mxu3 %v5730_v51  ;;  %v5718_v32 = vor.u32 %v6502_v62, %v5717_v61  ;;  %v2366_v25 = vmul.f32 %v8773_v63, %v2337_v48  ;;  %v6522_v63 = vld [vmem:[%s8213_s3 + $0x1d0] sm:$0xf0]  ;;  %v6499_v61 = vld [vmem:[%s8213_s3 + $0x118] sm:$0xf0] }
 0x2f7   : > { %6912 = vpow2.f32 %v2533_v33  ;;  %v2396_v33 = vsel %vm2385_vm14, %v2383_v39, %v2374_v38  ;;  %v9014_v38 = vadd.f32 1.0, %v6903_v4  ;;  %v2381_v39 = vrot.slane %v8978_v26, 1 }
 0x2f8   : > { %v2214_v53 = vpop.f32.mrf.mxu2  ;;  %v2233_v13 = vpop.f32.mrf.mxu3  ;;  %3084 = vmatpush.bf16.msra.mxu1 %v5834_v41  ;;  %v2425_v4 = vmul.f32 %v8811_v43, %v2387_v57  ;;  %v2428_v19 = vmul.f32 %v8828_v37, %v2396_v33  ;;  %v9024_v51 = vadd.f32 %v2472_v58, %v2451_v8  ;;  %v6497_v58 = vld [vmem:[%s8213_s3 + $0x10c] sm:$0xf]  ;;  %v5699_v8 = vld [vmem:[%s8213_s3 + $0x114] sm:$0xf0] }
 0x2f9   : > { %v8980_v11 = vadd.f32 %v2233_v13, %v2214_v53  ;;  %v2178_v28 = vpop.f32.mrf.mxu0  ;;  %v2197_v20 = vpop.f32.mrf.mxu1  ;;  %v5711_v53 = vld [vmem:[%s8213_s3 + $0x12c] sm:$0xf0]  ;;  %3029 = vmatpush.bf16.msrb.mxu2 %v5806_v46 }
 0x2fa   : > { %v8985_v15 = vadd.f32 %v2197_v20, %v2178_v28  ;;  %v6907_v13 = vpop.eup %6906  ;;  %v5714_v12 = vor.u32 %v6500_v47, %v5711_v53  ;;  %v2564_v28 = vadd.f32 1.0, %v6905_v44  ;;  %v2322_v20 = vrot.slane %v8978_v26, 7  ;;  %v5793_v44 = vld [vmem:[%s8213_s3 + $0x1c8] sm:$0xf]  ;;  %3124 = vmatpush.bf16.msra.mxu3 %v5718_v32  ;;  %v5781_v32 = vld [vmem:[%s8213_s3 + $0x1b0] sm:$0xf] }
 0x2fb   : > { %v6909_v14 = vpop.eup %6908  ;;  %v2559_v10 = vadd.f32 1.0, %v6907_v13 }
 0x2fc   : > { %v2325_v16 = vrot.slane %v8985_v15, 7  ;;  %v6911_v5 = vpop.eup %6910  ;;  %v9035_v53 = vmul.f32 %v6909_v14, %v8866_v29  ;;  %3067 = vmatpush.bf16.msra.mxu0 %v5714_v12  ;;  %v6524_v12 = vld [vmem:[%s8213_s3 + $0x1e4] sm:$0xf] }
 0x2fd   : > { %v6913_v41 = vpop.eup %6912  ;;  %v9032_v57 = vmul.f32 %v6911_v5, %v8895_v9  ;;  %6914 = vrcp.f32 %v2559_v10  ;;  %v2467_v5 = vmul.f32 %v8941_v40, %v8934_v0  ;;  %v2384_v0 = vrot.slane %v8985_v15, 1 }
 0x2fe   : > { %v2340_v21 = vsel %vm2328_vm13, %v2325_v16, %v2316_v34  ;;  %v2420_v34 = vmul.f32 %v8712_v6, %v2394_v55  ;;  %v2391_v6 = vsel %vm2385_vm14, %v2378_v36, %v2381_v39  ;;  %v2556_v48 = vadd.f32 1.0, %v6913_v41  ;;  %v5705_v55 = vld [vmem:[%s8213_s3 + $0x110] sm:$0xf]  ;;  %v6519_v41 = vld [vmem:[%s8213_s3 + $0x1b8] sm:$0xf0] }
 0x2ff   : > { %v2363_v9 = vmul.f32 %v8685_v31, %v2340_v21  ;;  %v9053_v62 = vpack.c.bf16 %v9035_v53, %v9032_v57  ;;  %v5822_v36 = vor.u32 %v6527_v22, %v5819_v18  ;;  %v5807_v31 = vld [vmem:[%s8213_s3 + $0x1ec] sm:$0xf0]  ;;  %v9061_v21 = vmul.f32 %v8947_v3, %v2366_v25  ;;  %v5693_v25 = vld [vmem:[%s8213_s3 + $0xf8] sm:$0xf] }
 0x300   : > { %v2216_v46 = vpop.f32.mrf.mxu2  ;;  %v2235_v47 = vpop.f32.mrf.mxu3  ;;  %6916 = vrcp.f32 %v2556_v48  ;;  %v2423_v10 = vmul.f32 %v8697_v52, %v2391_v6  ;;  %v5794_v22 = vor.u32 %v6522_v63, %v5793_v44  ;;  %v5702_v18 = vor.u32 %v6497_v58, %v5699_v8 }
 0x301   : > { %v9047_v13 = vadd.f32 %v2235_v47, %v2216_v46  ;;  %v2247_v29 = vpop.f32.mrf.mxu0  ;;  %v2266_v33 = vpop.f32.mrf.mxu1  ;;  %v6494_v46 = vld [vmem:[%s8213_s3 + $0xf4] sm:$0xf]  ;;  %v5687_v47 = vld [vmem:[%s8213_s3 + $0xfc] sm:$0xf0]  ;;  %6918 = vrcp.f32 %v2564_v28  ;;  %2996 = vmatmul.bf16.vlgmr.msrb.gmra.mxu0 %v9053_v62  ;;  %3053 = vmatmul.bf16.vlgmr.msrb.gmra.mxu3 %v9053_v62  ;;  %v2334_v48 = vsel %vm2328_vm13, %v2319_v1, %v2322_v20  ;;  %v2443_v28 = vmul.f32 %v8947_v3, %v2363_v9  ;;  %v6521_v9 = vld [vmem:[%s8213_s3 + $0x1cc] sm:$0xf] }
 0x302   : > { %v9055_v14 = vadd.f32 %v2266_v33, %v2247_v29  ;;  %v2502_v29 = vmul.f32 %v8792_v49, %v2425_v4  ;;  %v6496_v33 = vld [vmem:[%s8213_s3 + $0x100] sm:$0xf0]  ;;  %3085 = vmatpush.bf16.msra.mxu1 %v5822_v36  ;;  %v5706_v52 = vor.u32 %v6499_v61, %v5705_v55  ;;  %v5810_v4 = vor.u32 %v6524_v12, %v5807_v31  ;;  %v5769_v12 = vld [vmem:[%s8213_s3 + $0x198] sm:$0xf] }
 0x303   : > { %6920 = vrcp.f32 %v9014_v38  ;;  %v2497_v44 = vmul.f32 %v8945_v30, %v2420_v34  ;;  %3030 = vmatpush.bf16.msrb.mxu2 %v5794_v22  ;;  %3068 = vmatpush.bf16.msra.mxu0 %v5702_v18  ;;  %v5782_v63 = vor.u32 %v6519_v41, %v5781_v32  ;;  %v5690_v58 = vor.u32 %v6494_v46, %v5687_v47  ;;  %v5795_v38 = vld [vmem:[%s8213_s3 + $0x1d4] sm:$0xf0]  ;;  %v6915_v55 = vpop.eup %6914  ;;  %v6516_v31 = vld [vmem:[%s8213_s3 + $0x1a0] sm:$0xf0]  ;;  %v6491_v32 = vld [vmem:[%s8213_s3 + $0xdc] sm:$0xf] }
 0x304   : > { %3125 = vmatpush.bf16.msra.mxu3 %v5706_v52  ;;  %v5694_v1 = vor.u32 %v6496_v33, %v5693_v25  ;;  %v2505_v8 = vmul.f32 %v8792_v49, %v2428_v19  ;;  %v9086_v6 = vadd.f32 %v2502_v29, %v8968_v7  ;;  %v2369_v34 = vmul.f32 %v8745_v35, %v2334_v48  ;;  %v6493_v22 = vld [vmem:[%s8213_s3 + $0xe8] sm:$0xf0]  ;;  %v6518_v52 = vld [vmem:[%s8213_s3 + $0x1b4] sm:$0xf] }
 0x305   : > { %v2500_v61 = vmul.f32 %v8945_v30, %v2423_v10  ;;  %v2331_v36 = vsel %vm2328_vm13, %v2322_v20, %v2325_v16  ;;  %v5798_v19 = vor.u32 %v6521_v9, %v5795_v38  ;;  %v9102_v35 = vmul.f32 %v6915_v55, %v8915_v42  ;;  %v5675_v20 = vld [vmem:[%s8213_s3 + $0xe4] sm:$0xf0]  ;;  %v5681_v10 = vld [vmem:[%s8213_s3 + $0xe0] sm:$0xf]  ;;  %v6513_v38 = vld [vmem:[%s8213_s3 + $0x188] sm:$0xf0] }
 0x306   : > { %v6917_v41 = vpop.eup %6916  ;;  %3086 = vmatpush.bf16.msra.mxu1 %v5810_v4  ;;  %v9107_v16 = vadd.f32 %v2505_v8, %v9024_v51  ;;  %v2476_v18 = vadd.f32 %v8976_v23, %v2443_v28  ;;  %v2526_v48 = vsub.f32 0.0, %v9086_v6  ;;  %v5770_v51 = vor.u32 %v6516_v31, %v5769_v12  ;;  %v5783_v4 = vld [vmem:[%s8213_s3 + $0x1bc] sm:$0xf0] }
 0x307   : > { %v6919_v25 = vpop.eup %6918  ;;  %v9114_v42 = vmul.f32 %v6917_v41, %v8936_v60  ;;  %3031 = vmatpush.bf16.msrb.mxu2 %v5782_v63  ;;  %3069 = vmatpush.bf16.msra.mxu0 %v5690_v58  ;;  %v2479_v8 = vadd.f32 %v2467_v5, %v9061_v21  ;;  %v5678_v28 = vor.u32 %v6491_v32, %v5675_v20  ;;  %v5757_v60 = vld [vmem:[%s8213_s3 + $0x180] sm:$0xf]  ;;  %v6488_v5 = vld [vmem:[%s8213_s3 + $0xc4] sm:$0xf]  ;;  %v6515_v41 = vld [vmem:[%s8213_s3 + $0x19c] sm:$0xf] }
 0x308   : > { %v2285_v49 = vpop.f32.mrf.mxu2  ;;  %v2304_v7 = vpop.f32.mrf.mxu3  ;;  %3126 = vmatpush.bf16.msra.mxu3 %v5694_v1  ;;  %v2529_v23 = vsub.f32 0.0, %v9107_v16  ;;  %v5682_v9 = vor.u32 %v6493_v22, %v5681_v10  ;;  %v9126_v63 = vmul.f32 %v8947_v3, %v2369_v34  ;;  %v2372_v58 = vmul.f32 %v8755_v50, %v2331_v36  ;;  %v5663_v34 = vld [vmem:[%s8213_s3 + $0xcc] sm:$0xf0] }
 0x309   : > { %v9104_v46 = vadd.f32 %v2304_v7, %v2285_v49  ;;  %v2249_v47 = vpop.f32.mrf.mxu0  ;;  %v2268_v29 = vpop.f32.mrf.mxu1  ;;  %v9131_v49 = vpack.c.bf16 %v9102_v35, %v9114_v42  ;;  %v2545_v21 = vmul.f32 1.442695, %v2526_v48  ;;  %v2388_v1 = vsel %vm2385_vm14, %v2381_v39, %v2384_v0  ;;  %v5669_v39 = vld [vmem:[%s8213_s3 + $0xc8] sm:$0xf] }
 0x30a   : > { %v9116_v33 = vadd.f32 %v2268_v29, %v2249_v47  ;;  %v6921_v55 = vpop.eup %6920  ;;  %3087 = vmatpush.bf16.msra.mxu1 %v5798_v19  ;;  %v5786_v7 = vor.u32 %v6518_v52, %v5783_v4  ;;  %v9141_v50 = vadd.f32 %v2497_v44, %v2476_v18  ;;  %v9143_v36 = vadd.f32 %v2500_v61, %v2479_v8  ;;  %v6490_v19 = vld [vmem:[%s8213_s3 + $0xd0] sm:$0xf0]  ;;  %v5771_v47 = vld [vmem:[%s8213_s3 + $0x1a4] sm:$0xf0]  ;;  %v6535_v52 = vld [vmem:[%s8213_s3 + $0x238] sm:$0xf0] }
 0x30b   : > { %3015 = vmatmul.bf16.vlgmr.msrb.gmra.mxu1 %v9131_v49  ;;  %v9147_v12 = vmul.f32 %v6919_v25, %v8890_v45  ;;  %6922 = vpow2.f32 %v2545_v21  ;;  %v2551_v31 = vmul.f32 1.442695, %v2529_v23  ;;  %3032 = vmatpush.bf16.msrb.mxu2 %v5770_v51  ;;  %v5758_v32 = vor.u32 %v6513_v38, %v5757_v60  ;;  %v5849_v51 = vld [vmem:[%s8213_s3 + $0x230] sm:$0xf]  ;;  %v5645_v60 = vld [vmem:[%s8213_s3 + $0x98] sm:$0xf] }
 0x30c   : > { %v2397_v44 = vsel %vm2385_vm14, %v2384_v0, %v2375_v54  ;;  %v2473_v61 = vmul.f32 %v8941_v40, %v8985_v15  ;;  %3070 = vmatpush.bf16.msra.mxu0 %v5678_v28  ;;  %3127 = vmatpush.bf16.msra.mxu3 %v5682_v9  ;;  %v5666_v45 = vor.u32 %v6488_v5, %v5663_v34  ;;  %v5657_v0 = vld [vmem:[%s8213_s3 + $0xb0] sm:$0xf]  ;;  %v6487_v15 = vld [vmem:[%s8213_s3 + $0xb8] sm:$0xf0]  ;;  %v2521_v48 = vsub.f32 0.0, %v9141_v50 }
 0x30d   : > { %v2426_v29 = vmul.f32 %v8811_v43, %v2388_v1  ;;  %v2452_v24 = vmul.f32 %v8947_v3, %v2372_v58  ;;  %v9164_v56 = vmul.f32 %v6921_v55, %v8883_v17  ;;  %v5670_v54 = vor.u32 %v6490_v19, %v5669_v39  ;;  %v6512_v28 = vld [vmem:[%s8213_s3 + $0x184] sm:$0xf]  ;;  %v5759_v9 = vld [vmem:[%s8213_s3 + $0x18c] sm:$0xf0]  ;;  %v6481_v19 = vld [vmem:[%s8213_s3 + $0x88] sm:$0xf0] }
 0x30e   : > { %3088 = vmatpush.bf16.msra.mxu1 %v5786_v7  ;;  %v5774_v43 = vor.u32 %v6515_v41, %v5771_v47  ;;  %v2524_v3 = vsub.f32 0.0, %v9143_v36  ;;  %v5658_v8 = vor.u32 %v6487_v15, %v5657_v0  ;;  %v5850_v23 = vor.u32 %v6535_v52, %v5849_v51  ;;  %v6484_v1 = vld [vmem:[%s8213_s3 + $0xa0] sm:$0xf0]  ;;  %v5837_v7 = vld [vmem:[%s8213_s3 + $0x218] sm:$0xf] }
 0x30f   : > { %v9176_v17 = vpack.c.bf16 %v9147_v12, %v9164_v56  ;;  %3033 = vmatpush.bf16.msrb.mxu2 %v5758_v32  ;;  %v2429_v38 = vmul.f32 %v8828_v37, %v2397_v44  ;;  %6924 = vpow2.f32 %v2551_v31  ;;  %v2535_v55 = vmul.f32 1.442695, %v2521_v48  ;;  %v6532_v39 = vld [vmem:[%s8213_s3 + $0x220] sm:$0xf0]  ;;  %v5825_v41 = vld [vmem:[%s8213_s3 + $0x200] sm:$0xf] }
 0x310   : > { %v2287_v20 = vpop.f32.mrf.mxu2  ;;  %v2306_v10 = vpop.f32.mrf.mxu3  ;;  %3071 = vmatpush.bf16.msra.mxu0 %v5666_v45  ;;  %3128 = vmatpush.bf16.msra.mxu3 %v5670_v54  ;;  %v2541_v58 = vmul.f32 1.442695, %v2524_v3  ;;  %v2470_v5 = vmul.f32 %v8941_v40, %v8978_v26  ;;  %v2503_v37 = vmul.f32 %v8945_v30, %v2426_v29  ;;  %v2485_v34 = vadd.f32 %v2473_v61, %v2452_v24  ;;  %v5633_v45 = vld [vmem:[%s8213_s3 + $0x80] sm:$0xf]  ;;  %v6529_v24 = vld [vmem:[%s8213_s3 + $0x208] sm:$0xf0] }
 0x311   : > { %v9168_v22 = vadd.f32 %v2306_v10, %v2287_v20  ;;  %v2252_v18 = vpop.f32.mrf.mxu0  ;;  %v2271_v25 = vpop.f32.mrf.mxu1  ;;  %3001 = vmatmul.bf16.gmra.mxu0 %v9176_v17  ;;  %3058 = vmatmul.bf16.gmra.mxu3 %v9176_v17  ;;  %6926 = vpow2.f32 %v2535_v55  ;;  %v5762_v31 = vor.u32 %v6512_v28, %v5759_v9  ;;  %v5646_v32 = vor.u32 %v6484_v1, %v5645_v60  ;;  %v5813_v48 = vld [vmem:[%s8213_s3 + $0x1e8] sm:$0xf]  ;;  %v6526_v3 = vld [vmem:[%s8213_s3 + $0x1f0] sm:$0xf0]  ;;  %v6475_v55 = vld [vmem:[%s8213_s3 + $0x58] sm:$0xf0] }
 0x312   : > { %v9178_v4 = vadd.f32 %v2271_v25, %v2252_v18  ;;  %v6923_v21 = vpop.eup %6922  ;;  %3089 = vmatpush.bf16.msra.mxu1 %v5774_v43  ;;  %v2482_v40 = vadd.f32 %v2470_v5, %v9126_v63  ;;  %6928 = vpow2.f32 %v2541_v58  ;;  %v5838_v44 = vor.u32 %v6532_v39, %v5837_v7  ;;  %v5621_v25 = vld [vmem:[%s8213_s3 + $0x68] sm:$0xf]  ;;  %v5801_v58 = vld [vmem:[%s8213_s3 + $0x1d0] sm:$0xf]  ;;  %v6472_v39 = vld [vmem:[%s8213_s3 + $0x40] sm:$0xf0] }
 0x313   : > { %3102 = vmatpush.bf16.msra.mxu2 %v5658_v8  ;;  %v2562_v26 = vadd.f32 1.0, %v6923_v21  ;;  %v2506_v61 = vmul.f32 %v8945_v30, %v2429_v38  ;;  %v5634_v54 = vor.u32 %v6481_v19, %v5633_v45  ;;  %v5826_v18 = vor.u32 %v6529_v24, %v5825_v41  ;;  %v6478_v30 = vld [vmem:[%s8213_s3 + $0x70] sm:$0xf0]  ;;  %v5609_v38 = vld [vmem:[%s8213_s3 + $0x50] sm:$0xf] }
 0x314   : > { %3140 = vmatpush.bf16.msrb.mxu0 %v5850_v23  ;;  %v9198_v20 = vadd.f32 %v2503_v37, %v2482_v40  ;;  %v5622_v23 = vor.u32 %v6478_v30, %v5621_v25  ;;  %v5814_v60 = vor.u32 %v6526_v3, %v5813_v48  ;;  %v6523_v21 = vld [vmem:[%s8213_s3 + $0x1d8] sm:$0xf0]  ;;  %v5610_v37 = vor.u32 %v6475_v55, %v5609_v38  ;;  %v6520_v45 = vld [vmem:[%s8213_s3 + $0x1c0] sm:$0xf0]  ;;  %v6517_v24 = vld [vmem:[%s8213_s3 + $0x1a8] sm:$0xf0] }
 0x315   : > { %v6925_v10 = vpop.eup %6924  ;;  %v9202_v0 = vadd.f32 %v2506_v61, %v2485_v34  ;;  %6930 = vrcp.f32 %v2562_v26  ;;  %v5585_v61 = vld [vmem:[%s8213_s3 + $0x20] sm:$0xf]  ;;  %v5573_v30 = vld [vmem:[%s8213_s3 + $0x8] sm:$0xf] }
 0x316   : > { %3090 = vmatpush.bf16.msra.mxu1 %v5762_v31  ;;  %v2565_v15 = vadd.f32 1.0, %v6925_v10  ;;  %v2527_v8 = vsub.f32 0.0, %v9198_v20  ;;  %v5802_v31 = vor.u32 %v6523_v21, %v5801_v58  ;;  %v5765_v3 = vld [vmem:[%s8213_s3 + $0x188] sm:$0xf] }
 0x317   : > { %3103 = vmatpush.bf16.msra.mxu2 %v5646_v32  ;;  %v6927_v43 = vpop.eup %6926  ;;  %v2530_v28 = vsub.f32 0.0, %v9202_v0  ;;  %v5597_v32 = vld [vmem:[%s8213_s3 + $0x38] sm:$0xf] }
 0x318   : > { %v2290_v47 = vpop.f32.mrf.mxu2  ;;  %v2309_v29 = vpop.f32.mrf.mxu3  ;;  %3141 = vmatpush.bf16.msrb.mxu0 %v5838_v44  ;;  %6932 = vrcp.f32 %v2565_v15  ;;  %v2557_v52 = vadd.f32 1.0, %v6927_v43  ;;  %v2547_v5 = vmul.f32 1.442695, %v2527_v8  ;;  %v5789_v44 = vld [vmem:[%s8213_s3 + $0x1b8] sm:$0xf]  ;;  %v5598_v41 = vor.u32 %v6472_v39, %v5597_v32 }
 0x319   : > { %v9200_v63 = vadd.f32 %v2309_v29, %v2290_v47  ;;  %v6929_v51 = vpop.eup %6928  ;;  %v2553_v7 = vmul.f32 1.442695, %v2530_v28  ;;  %v6469_v47 = vld [vmem:[%s8213_s3 + $0x28] sm:$0xf0]  ;;  %v5777_v29 = vld [vmem:[%s8213_s3 + $0x1a0] sm:$0xf]  ;;  %v2254_v58 = vpop.f32.mrf.mxu0 }
 0x31a   : > { %v2560_v9 = vadd.f32 1.0, %v6929_v51  ;;  %6934 = vrcp.f32 %v2557_v52  ;;  %v5778_v25 = vor.u32 %v6517_v24, %v5777_v29  ;;  %v6466_v43 = vld [vmem:[%s8213_s3 + $0x10] sm:$0xf0]  ;;  %v3405_v39 = vsub.f32 0.0, %v8980_v11 }
 0x31b   : > { %3104 = vmatpush.bf16.msra.mxu2 %v5634_v54  ;;  %v6931_v1 = vpop.eup %6930  ;;  %v5586_v54 = vor.u32 %v6469_v47, %v5585_v61  ;;  %v6514_v51 = vld [vmem:[%s8213_s3 + $0x190] sm:$0xf0] }
 0x31c   : > { %3142 = vmatpush.bf16.msrb.mxu0 %v5826_v18  ;;  %v9217_v40 = vmul.f32 %v6931_v1, %v9086_v6  ;;  %6936 = vrcp.f32 %v2560_v9  ;;  %v5766_v28 = vor.u32 %v6514_v51, %v5765_v3  ;;  %v3423_v61 = vmul.f32 1.442695, %v3405_v39 }
 0x31d   : > { %6938 = vpow2.f32 %v2547_v5  ;;  %v2273_v5 = vpop.f32.mrf.mxu1 }
 0x31e   : > { %v6933_v34 = vpop.eup %6932  ;;  %6940 = vpow2.f32 %v2553_v7  ;;  %v2274_v24 = vadd.f32 %v2273_v5, %v2254_v58 }
 0x31f   : > { %3105 = vmatpush.bf16.msra.mxu2 %v5622_v23  ;;  %v9220_v26 = vmul.f32 %v6933_v34, %v9107_v16  ;;  %v5790_v16 = vor.u32 %v6520_v45, %v5789_v44  ;;  %v5574_v23 = vor.u32 %v6466_v43, %v5573_v30 }
 0x320   : > { %3143 = vmatpush.bf16.msrb.mxu0 %v5814_v60  ;;  %v6935_v19 = vpop.eup %6934  ;;  %v9258_v7 = vpop.f32.mrf.mxu3  ;;  %v3409_v3 = vsub.f32 0.0, %v2274_v24 }
 0x321   : > { %3072 = vmatmul.bf16.vlgmr.msra.gmra.mxu0 %v9131_v49  ;;  %3129 = vmatmul.bf16.vlgmr.msra.gmra.mxu3 %v9131_v49  ;;  %v2595_v6 = vpack.c.bf16 %v9220_v26, %v9217_v40  ;;  %v9232_v49 = vmul.f32 %v6935_v19, %v9141_v50  ;;  %v3408_v19 = vsub.f32 0.0, %v9047_v13  ;;  %v9275_v47 = vpop.f32.mrf.mxu2  ;;  %v3401_v13 = vsub.f32 0.0, %v9104_v46 }
 0x322   : > { %v6937_v10 = vpop.eup %6936 }
 0x323   : > { %3106 = vmatpush.bf16.msra.mxu2 %v5610_v37  ;;  %3020 = vmatmul.bf16.gmra.mxu1 %v2595_v6  ;;  %v6939_v15 = vpop.eup %6938  ;;  %v9236_v18 = vmul.f32 %v6937_v10, %v9143_v36 }
 0x324   : > { %3144 = vmatpush.bf16.msrb.mxu0 %v5802_v31  ;;  %v6941_v48 = vpop.eup %6940  ;;  %v2563_v8 = vadd.f32 1.0, %v6939_v15  ;;  %v3402_v31 = vsub.f32 0.0, %v8928_v2  ;;  %v3403_v2 = vsub.f32 0.0, %v9116_v33 }
 0x325   : > { %v2593_v52 = vpack.c.bf16 %v9236_v18, %v9232_v49  ;;  %v2566_v50 = vadd.f32 1.0, %v6941_v48 }
 0x326   : > { %v3417_v45 = vmul.f32 1.442695, %v3402_v31  ;;  %v3419_v15 = vmul.f32 1.442695, %v3403_v2 }
 0x327   : > { %3107 = vmatpush.bf16.msra.mxu2 %v5598_v41  ;;  %6942 = vrcp.f32 %v2566_v50  ;;  %v3400_v41 = vsub.f32 0.0, %v9055_v14 }
 0x328   : > { %3145 = vmatpush.bf16.msrb.mxu0 %v5790_v16  ;;  %3034 = vmatmul.bf16.vlgmr.msrb.gmra.mxu2 %v2593_v52  ;;  %6944 = vrcp.f32 %v2563_v8  ;;  %v9272_v16 = vld [vmem:[%s8219_s5] sm:$0x7]  ;;  %s10036_s5 = sld [smem:[#allocation80_spill]] (!%p6043_p1) }
 0x329   : > { %v9278_v11 = vperm.slane %v9272_v16, 0  ;;  %v3413_v29 = vmul.f32 1.442695, %v3400_v41  ;;  %v9285_v33 = vperm.slane %v9272_v16, 1 }
 0x32b   : > { %3108 = vmatpush.bf16.msra.mxu2 %v5586_v54 }
 0x32c   : > { %3146 = vmatpush.bf16.msrb.mxu0 %v5778_v25  ;;  %v3406_v25 = vsub.f32 0.0, %v9178_v4 }
 0x32d   : > { %v6943_v36 = vpop.eup %6942 }
 0x32e   : > { %v6945_v9 = vpop.eup %6944  ;;  %v9245_v60 = vmul.f32 %v6943_v36, %v9202_v0  ;;  %v3425_v46 = vmul.f32 1.442695, %v3406_v25  ;;  %v3407_v25 = vsub.f32 0.0, %v9200_v63 }
 0x32f   : > { %3109 = vmatpush.bf16.msra.mxu2 %v5574_v23  ;;  %v9248_v38 = vmul.f32 %v6945_v9, %v9198_v20 }
 0x330   : > { %3147 = vmatpush.bf16.msrb.mxu0 %v5766_v28  ;;  %10006 = vst [vmem:[#allocation55_spill] sm:$0xff] %v9245_v60 }
 0x331   : > { %3077 = vmatmul.bf16.gmra.mxu0 %v2595_v6  ;;  %3134 = vmatmul.bf16.gmra.mxu3 %v2595_v6  ;;  %10007 = vst [vmem:[#allocation56_spill] sm:$0xff] %v9248_v38  ;;  %v2596_v55 = vpack.c.bf16 %v9245_v60, %v9248_v38  ;;  %v6543_v60 = vld [vmem:[%s8221_s16 + $0x34] sm:$0xf0]  ;;  %v9476_v38 = vld [vmem:[%s8221_s16 + $0xb0] sm:$0xf] }
 0x333   : > { %3091 = vmatmul.bf16.vlgmr.msra.gmra.mxu1 %v2593_v52 }
 0x338   : > { %3039 = vmatmul.bf16.gmra.mxu2 %v2596_v55 }
 0x341   : > { %3148 = vmatmul.bf16.vlgmr.msrb.gmra.mxu0 %v2593_v52  ;;  %v3415_v52 = vmul.f32 1.442695, %v3401_v13 }
 0x343   : > { %3096 = vmatmul.bf16.gmra.mxu1 %v2596_v55 }
 0x348   : > { %3110 = vmatmul.bf16.vlgmr.msra.gmra.mxu2 %v9053_v62  ;;  %v3399_v62 = vsub.f32 0.0, %v8892_v59  ;;  %v3429_v59 = vmul.f32 1.442695, %v3408_v19 }
 0x351   : > { %3153 = vmatmul.bf16.gmra.mxu0 %v2596_v55  ;;  %v3431_v55 = vmul.f32 1.442695, %v3409_v3 }
 0x358   : > { %3115 = vmatmul.bf16.gmra.mxu2 %v9176_v17  ;;  %v3411_v17 = vmul.f32 1.442695, %v3399_v62 }
 0x35a   : > { %6946 = vpow2.f32 %v3411_v17 }
 0x35b   : > { %6948 = vpow2.f32 %v3417_v45 }
 0x35c   : > { %6950 = vpow2.f32 %v3423_v61 }
 0x35d   : > { %6952 = vpow2.f32 %v3429_v59 }
 0x35e   : > { %6954 = vpow2.f32 %v3413_v29 }
 0x35f   : > { %6956 = vpow2.f32 %v3419_v15 }
 0x360   : > { %v6947_v10 = vpop.eup %6946 }
 0x361   : > { %v6949_v43 = vpop.eup %6948  ;;  %v3435_v48 = vadd.f32 1.0, %v6947_v10 }
 0x362   : > { %v6951_v28 = vpop.eup %6950  ;;  %v3438_v36 = vadd.f32 1.0, %v6949_v43 }
 0x363   : > { %v6953_v9 = vpop.eup %6952  ;;  %6958 = vrcp.f32 %v3435_v48  ;;  %v3441_v31 = vadd.f32 1.0, %v6951_v28 }
 0x364   : > { %6960 = vpow2.f32 %v3415_v52  ;;  %v6955_v62 = vpop.eup %6954 }
 0x365   : > { %6962 = vpow2.f32 %v3425_v46  ;;  %v6957_v41 = vpop.eup %6956  ;;  %v3436_v61 = vadd.f32 1.0, %v6955_v62 }
 0x366   : > { %6964 = vrcp.f32 %v3438_v36  ;;  %v3439_v15 = vadd.f32 1.0, %v6957_v41 }
 0x367   : > { %6966 = vpow2.f32 %v3431_v55 }
 0x369   : > { %v9299_v2 = vpop.eup %6958 }
 0x37e   : > { %v2997_v21 = vpop.f32.mrf.mxu0 }
 0x37f   : > { %v2998_v30 = vadd.f32 %v2997_v21, %v9278_v11 }
 0x384   : > { %v3054_v32 = vpop.f32.mrf.mxu3 }
 0x385   : > { %v3055_v8 = vadd.f32 %v3054_v32, %v9285_v33  ;;  %v3444_v32 = vadd.f32 1.0, %v6953_v9 }
 0x386   : > { %v9254_v1 = vpop.f32.mrf.mxu0 }
 0x387   : > { %v3000_v39 = vadd.f32 %v9254_v1, %v9278_v11  ;;  %v6961_v1 = vpop.eup %6960 }
 0x388   : > { %v3016_v0 = vpop.f32.mrf.mxu1  ;;  %v6963_v43 = vpop.eup %6962 }
 0x389   : > { %v3017_v50 = vadd.f32 %v3016_v0, %v2998_v30  ;;  %v3404_v0 = vsub.f32 0.0, %v9168_v22  ;;  %v9305_v48 = vpop.eup %6964  ;;  %v9314_v63 = vadd.f32 1.0, %v6963_v43  ;;  %v6567_v43 = vld [vmem:[%s8221_s16 + $0xf4] sm:$0xf0] }
 0x38b   : > { %v3421_v22 = vmul.f32 1.442695, %v3404_v0 }
 0x38c   : > { %v3056_v54 = vpop.f32.mrf.mxu3 }
 0x38d   : > { %v3057_v29 = vadd.f32 %v3056_v54, %v9285_v33  ;;  %v6967_v54 = vpop.eup %6966 }
 0x38e   : > { %v9256_v20 = vpop.f32.mrf.mxu0 }
 0x38f   : > { %v3003_v36 = vadd.f32 %v9256_v20, %v9278_v11 }
 0x390   : > { %v9260_v37 = vpop.f32.mrf.mxu1 }
 0x391   : > { %v3019_v59 = vadd.f32 %v9260_v37, %v3000_v39  ;;  %v6551_v39 = vld [vmem:[%s8221_s16 + $0x74] sm:$0xf0] }
 0x394   : > { %v3059_v45 = vpop.f32.mrf.mxu3 }
 0x395   : > { %v3060_v62 = vadd.f32 %v3059_v45, %v9285_v33 }
 0x396   : > { %v9262_v34 = vpop.f32.mrf.mxu0 }
 0x397   : > { %v3005_v41 = vadd.f32 %v9262_v34, %v9278_v11 }
 0x39e   : > { %v3073_v6 = vpop.f32.mrf.mxu0 }
 0x39f   : > { %v3074_v58 = vadd.f32 %v3073_v6, %v3055_v8 }
 0x3a0   : > { %v9267_v44 = vpop.f32.mrf.mxu1 }
 0x3a6   : > { %v3075_v51 = vpop.f32.mrf.mxu0 }
 0x3a7   : > { %v3076_v37 = vadd.f32 %v3075_v51, %v3057_v29  ;;  %v9316_v51 = vmul.f32 1.442695, %v3407_v25 }
 0x3a8   : > { %v9281_v14 = vpop.f32.mrf.mxu1 }
 0x3a9   : > { %v3024_v34 = vadd.f32 %v9281_v14, %v3005_v41  ;;  %v6548_v41 = vld [vmem:[%s8221_s16 + $0x64] sm:$0xf] }
 0x3ab   : > { %v3035_v23 = vpop.f32.mrf.mxu2 }
 0x3ac   : > { %v9289_v4 = vadd.f32 %v3035_v23, %v3017_v50  ;;  %v9308_v50 = vadd.f32 1.0, %v6961_v1 }
 0x3ae   : > { %v3171_v21 = vmin.f32 %v9289_v4, 20.0  ;;  %v3078_v13 = vpop.f32.mrf.mxu0  ;;  %vm3159_vm15 = vcmp.gt.f32.partialorder %v9289_v4, 20.0 }
 0x3af   : > { %v3079_v1 = vadd.f32 %v3078_v13, %v3060_v62 }
 0x3b0   : > { %v3092_v5 = vpop.f32.mrf.mxu1  ;;  %v3183_v19 = vmul.f32 1.442695, %v3171_v21 }
 0x3b1   : > { %v9293_v17 = vadd.f32 %v3092_v5, %v3074_v58  ;;  %v9327_v5 = vadd.f32 1.0, %v6967_v54 }
 0x3b2   : > { %6968 = vpow2.f32 %v3183_v19  ;;  %v3022_v19 = vadd.f32 %v9267_v44, %v3003_v36 }
 0x3b3   : > { %v3172_v6 = vmin.f32 %v9293_v17, 20.0  ;;  %6970 = vrcp.f32 %v3441_v31  ;;  %v3037_v10 = vpop.f32.mrf.mxu2  ;;  %v3061_v31 = vpop.f32.mrf.mxu3  ;;  %vm3160_vm1 = vcmp.gt.f32.partialorder %v9293_v17, 20.0 }
 0x3b4   : > { %6972 = vrcp.f32 %v3444_v32  ;;  %v9303_v30 = vadd.f32 %v3037_v10, %v3019_v59  ;;  %v5909_v32 = vld [vmem:[%s8221_s16 + $0x70] sm:$0xf]  ;;  %v3062_v11 = vadd.f32 %v3061_v31, %v9285_v33 }
 0x3b5   : > { %v3185_v24 = vmul.f32 1.442695, %v3172_v6  ;;  %v5973_v59 = vld [vmem:[%s8221_s16 + $0xf0] sm:$0xf] }
 0x3b6   : > { %v3174_v3 = vmin.f32 %v9303_v30, 20.0  ;;  %v3080_v25 = vpop.f32.mrf.mxu0  ;;  %v5974_v13 = vor.u32 %v6567_v43, %v5973_v59  ;;  %vm3162_vm4 = vcmp.gt.f32.partialorder %v9303_v30, 20.0 }
 0x3b7   : > { %6974 = vpow2.f32 %v3185_v24 }
 0x3b8   : > { %6976 = vrcp.f32 %v3436_v61  ;;  %v3094_v52 = vpop.f32.mrf.mxu1  ;;  %v9312_v8 = vpop.eup %6968  ;;  %v3189_v23 = vmul.f32 1.442695, %v3174_v3  ;;  %v5910_v61 = vor.u32 %v6551_v39, %v5909_v32  ;;  %v5911_v3 = vld [vmem:[%s8221_s16 + $0x78] sm:$0xf0]  ;;  %3736 = vmatpush.bf16.msrb.mxu2 %v5974_v13 }
 0x3b9   : > { %6978 = vpow2.f32 %v3421_v22  ;;  %v9310_v46 = vadd.f32 %v3094_v52, %v3076_v37  ;;  %v9318_v28 = vpop.eup %6970  ;;  %v3207_v9 = vadd.f32 1.0, %v9312_v8  ;;  %v3210_v55 = vmul.f32 -0.5, %v9312_v8  ;;  %v6550_v37 = vld [vmem:[%s8221_s16 + $0x74] sm:$0xf] }
 0x3ba   : > { %6980 = vrcp.f32 %v3439_v15  ;;  %v3213_v58 = vand.u32 2147483647, %v9312_v8  ;;  %v9325_v21 = vpop.eup %6972  ;;  %3717 = vmatpush.bf16.msrb.mxu1 %v5910_v61  ;;  %v9367_v32 = vor.u32 %v6550_v37, %v5911_v3 }
 0x3bb   : > { %6982 = vpow2.f32 %v3189_v23  ;;  %v3175_v0 = vmin.f32 %v9310_v46, 20.0  ;;  %v3040_v6 = vpop.f32.mrf.mxu2  ;;  %v3211_v22 = vadd.f32 1.0, %v3210_v55  ;;  %v5901_v23 = vld [vmem:[%s8221_s16 + $0x60] sm:$0xf]  ;;  %v6549_v55 = vld [vmem:[%s8221_s16 + $0x64] sm:$0xf0] }
 0x3bc   : > { %6984 = vlog2.f32 %v3207_v9  ;;  %v9348_v15 = vadd.f32 %v3040_v6, %v3022_v19  ;;  %vm9355_vm0 = vcmp.lt.f32.partialorder %v3213_v58, 0.0004427343  ;;  %v5965_v58 = vld [vmem:[%s8221_s16 + $0xe0] sm:$0xf]  ;;  %v5902_v39 = vor.u32 %v6549_v55, %v5901_v23  ;;  %v6565_v19 = vld [vmem:[%s8221_s16 + $0xe4] sm:$0xf0]  ;;  %3774 = vmatpush.bf16.msra.mxu0 %v9367_v32 }
 0x3bd   : > { %v9333_v20 = vpop.eup %6974  ;;  %v3191_v44 = vmul.f32 1.442695, %v3175_v0  ;;  %v3081_v0 = vadd.f32 %v3080_v25, %v3062_v11  ;;  %v3212_v43 = vmul.f32 %v9312_v8, %v3211_v22  ;;  %v5903_v11 = vld [vmem:[%s8221_s16 + $0x68] sm:$0xf0]  ;;  %v5893_v23 = vld [vmem:[%s8221_s16 + $0x50] sm:$0xf] }
 0x3be   : > { %v9339_v45 = vpop.eup %6976  ;;  %v3216_v29 = vadd.f32 1.0, %v9333_v20  ;;  %v3219_v24 = vmul.f32 -0.5, %v9333_v20  ;;  %v3222_v14 = vand.u32 2147483647, %v9333_v20  ;;  %v3177_v36 = vmin.f32 %v9348_v15, 20.0  ;;  %3718 = vmatpush.bf16.msrb.mxu1 %v5902_v39 }
 0x3bf   : > { %v9344_v10 = vpop.eup %6978  ;;  %v9379_v13 = vor.u32 %v6548_v41, %v5903_v11  ;;  %vm3163_vm5 = vcmp.gt.f32.partialorder %v9310_v46, 20.0  ;;  %vm3165_vm7 = vcmp.gt.f32.partialorder %v9348_v15, 20.0 }
 0x3c0   : > { %v9353_v52 = vpop.eup %6980  ;;  %6986 = vlog2.f32 %v3216_v29  ;;  %v3097_v33 = vpop.f32.mrf.mxu1  ;;  %v3220_v31 = vadd.f32 1.0, %v3219_v24  ;;  %v5966_v24 = vor.u32 %v6565_v19, %v5965_v58  ;;  %vm9375_vm2 = vcmp.lt.f32.partialorder %v3222_v14, 0.0004427343  ;;  %v6547_v58 = vld [vmem:[%s8221_s16 + $0x54] sm:$0xf0] }
 0x3c1   : > { %6988 = vpow2.f32 %v3191_v44  ;;  %v9363_v9 = vadd.f32 %v3097_v33, %v3079_v1  ;;  %v6983_v62 = vpop.eup %6982  ;;  %v3195_v44 = vmul.f32 1.442695, %v3177_v36  ;;  %10012 = vst [vmem:[#allocation57_spill] sm:$0xff] %v9379_v13  ;;  %3775 = vmatpush.bf16.msra.mxu0 %v9379_v13  ;;  %v5933_v13 = vld [vmem:[%s8221_s16 + $0xa0] sm:$0xf] }
 0x3c2   : > { %v6985_v6 = vpop.eup %6984  ;;  %v3234_v61 = vadd.f32 1.0, %v6983_v62  ;;  %v3237_v59 = vmul.f32 -0.5, %v6983_v62  ;;  %v3240_v29 = vand.u32 2147483647, %v6983_v62  ;;  %3737 = vmatpush.bf16.msrb.mxu2 %v5966_v24  ;;  %v3221_v41 = vmul.f32 %v9333_v20, %v3220_v31  ;;  %v5957_v20 = vld [vmem:[%s8221_s16 + $0xd0] sm:$0xf] }
 0x3c3   : > { %v3209_v1 = vmul.f32 0.6931472, %v6985_v6  ;;  %v3178_v33 = vmin.f32 %v9363_v9, 20.0  ;;  %v3042_v3 = vpop.f32.mrf.mxu2  ;;  %v5894_v6 = vor.u32 %v6547_v58, %v5893_v23  ;;  %v6563_v31 = vld [vmem:[%s8221_s16 + $0xd4] sm:$0xf0]  ;;  %vm3166_vm9 = vcmp.gt.f32.partialorder %v9363_v9, 20.0 }
 0x3c4   : > { %6990 = vlog2.f32 %v3234_v61  ;;  %v3238_v37 = vadd.f32 1.0, %v3237_v59  ;;  %v9384_v55 = vadd.f32 %v3042_v3, %v3024_v34  ;;  %vm9391_vm3 = vcmp.lt.f32.partialorder %v3240_v29, 0.0004427343 }
 0x3c5   : > { %v3215_v8 = vsel %vm9355_vm0, %v3212_v43, %v3209_v1  ;;  %6992 = vpow2.f32 %v3195_v44  ;;  %v3197_v22 = vmul.f32 1.442695, %v3178_v33  ;;  %3719 = vmatpush.bf16.msrb.mxu1 %v5894_v6  ;;  %v5958_v58 = vor.u32 %v6563_v31, %v5957_v20 }
 0x3c6   : > { %v6987_v36 = vpop.eup %6986  ;;  %v3315_v39 = vsel %vm3159_vm15, %v9289_v4, %v3215_v8  ;;  %v3180_v4 = vmin.f32 %v9384_v55, 20.0  ;;  %v3239_v33 = vmul.f32 %v6983_v62, %v3238_v37  ;;  %v3130_v62 = vpop.f32.mrf.mxu3  ;;  %vm3168_vm11 = vcmp.gt.f32.partialorder %v9384_v55, 20.0 }
 0x3c7   : > { %v6989_v14 = vpop.eup %6988  ;;  %v3218_v19 = vmul.f32 0.6931472, %v6987_v36  ;;  %v3327_v61 = vsub.f32 0.0, %v3315_v39  ;;  %6994 = vpow2.f32 %v3197_v22  ;;  %3738 = vmatpush.bf16.msrb.mxu2 %v5958_v58 }
 0x3c8   : > { %v3243_v34 = vadd.f32 1.0, %v6989_v14  ;;  %v3246_v59 = vmul.f32 -0.5, %v6989_v14  ;;  %v3099_v44 = vpop.f32.mrf.mxu1  ;;  %v3249_v25 = vand.u32 2147483647, %v6989_v14  ;;  %v3201_v3 = vmul.f32 1.442695, %v3180_v4 }
 0x3c9   : > { %v3224_v1 = vsel %vm9375_vm2, %v3221_v41, %v3218_v19  ;;  %v3339_v29 = vmul.f32 1.442695, %v3327_v61  ;;  %v9406_v23 = vadd.f32 %v3099_v44, %v3081_v0  ;;  %v9412_v0 = vperm.slane %v9272_v16, 2  ;;  %v3149_v16 = vpop.f32.mrf.mxu0 }
 0x3ca   : > { %v3316_v43 = vsel %vm3160_vm1, %v9293_v17, %v3224_v1  ;;  %6996 = vlog2.f32 %v3243_v34  ;;  %v6991_v24 = vpop.eup %6990  ;;  %v3247_v22 = vadd.f32 1.0, %v3246_v59  ;;  %vm9417_vm6 = vcmp.lt.f32.partialorder %v3249_v25, 0.0004427343 }
 0x3cb   : > { %v3328_v11 = vsub.f32 0.0, %v3316_v43  ;;  %v6993_v36 = vpop.eup %6992  ;;  %6998 = vpow2.f32 %v3339_v29  ;;  %v3236_v8 = vmul.f32 0.6931472, %v6991_v24  ;;  %v3111_v17 = vpop.f32.mrf.mxu2  ;;  %v3181_v61 = vmin.f32 %v9406_v23, 20.0 }
 0x3cc   : > { %v3261_v19 = vadd.f32 1.0, %v6993_v36  ;;  %v3264_v41 = vmul.f32 -0.5, %v6993_v36  ;;  %v3267_v6 = vand.u32 2147483647, %v6993_v36  ;;  %7000 = vpow2.f32 %v3201_v3 }
 0x3cd   : > { %v3341_v39 = vmul.f32 1.442695, %v3328_v11  ;;  %v3242_v37 = vsel %vm9391_vm3, %v3239_v33, %v3236_v8  ;;  %v6995_v34 = vpop.eup %6994  ;;  %v3248_v43 = vmul.f32 %v6989_v14, %v3247_v22  ;;  %v3112_v3 = vadd.f32 %v3111_v17, %v9412_v0  ;;  %v6546_v8 = vld [vmem:[%s8221_s16 + $0x54] sm:$0xf]  ;;  %v5895_v22 = vld [vmem:[%s8221_s16 + $0x58] sm:$0xf0] }
 0x3ce   : > { %v3318_v59 = vsel %vm3162_vm4, %v9303_v30, %v3242_v37  ;;  %v3265_v1 = vadd.f32 1.0, %v3264_v41  ;;  %v3270_v20 = vadd.f32 1.0, %v6995_v34  ;;  %v3273_v31 = vmul.f32 -0.5, %v6995_v34 }
 0x3cf   : > { %7002 = vpow2.f32 %v3341_v39  ;;  %v3330_v4 = vsub.f32 0.0, %v3318_v59  ;;  %vm9422_vm8 = vcmp.lt.f32.partialorder %v3267_v6, 0.0004427343  ;;  %v3203_v30 = vmul.f32 1.442695, %v3181_v61 }
 0x3d0   : > { %v6997_v54 = vpop.eup %6996  ;;  %7004 = vlog2.f32 %v3261_v19  ;;  %v3266_v25 = vmul.f32 %v6993_v36, %v3265_v1  ;;  %v3276_v14 = vand.u32 2147483647, %v6995_v34  ;;  %v3274_v36 = vadd.f32 1.0, %v3273_v31  ;;  %v3132_v31 = vpop.f32.mrf.mxu3 }
 0x3d1   : > { %v3245_v29 = vmul.f32 0.6931472, %v6997_v54  ;;  %v6999_v24 = vpop.eup %6998  ;;  %v3345_v11 = vmul.f32 1.442695, %v3330_v4  ;;  %7006 = vlog2.f32 %v3270_v20  ;;  %v3131_v6 = vadd.f32 %v3130_v62, %v3112_v3 }
 0x3d2   : > { %v3363_v58 = vadd.f32 1.0, %v6999_v24  ;;  %7008 = vpow2.f32 %v3203_v30  ;;  %v7001_v19 = vpop.eup %7000  ;;  %vm9439_vm10 = vcmp.lt.f32.partialorder %v3276_v14, 0.0004427343  ;;  %v3275_v24 = vmul.f32 %v6995_v34, %v3274_v36  ;;  %v5885_v34 = vld [vmem:[%s8221_s16 + $0x40] sm:$0xf] }
 0x3d3   : > { %v3251_v39 = vsel %vm9417_vm6, %v3248_v43, %v3245_v29  ;;  %7010 = vpow2.f32 %v3345_v11  ;;  %v3288_v61 = vadd.f32 1.0, %v7001_v19  ;;  %v3291_v59 = vmul.f32 -0.5, %v7001_v19  ;;  %v3113_v44 = vpop.f32.mrf.mxu2  ;;  %v6545_v14 = vld [vmem:[%s8221_s16 + $0x44] sm:$0xf0] }
 0x3d4   : > { %v3319_v41 = vsel %vm3163_vm5, %v9310_v46, %v3251_v39  ;;  %7012 = vrcp.f32 %v3363_v58  ;;  %v3294_v4 = vand.u32 2147483647, %v7001_v19  ;;  %v9435_v20 = vadd.f32 %v3149_v16, %v3131_v6  ;;  %v3151_v6 = vpop.f32.mrf.mxu0  ;;  %v5871_v39 = vld [vmem:[%s8221_s16 + $0x28] sm:$0xf0] }
 0x3d5   : > { %v7003_v37 = vpop.eup %7002  ;;  %v3331_v17 = vsub.f32 0.0, %v3319_v41  ;;  %v9437_v29 = vor.u32 %v6546_v8, %v5895_v22  ;;  %7014 = vlog2.f32 %v3288_v61  ;;  %v3292_v11 = vadd.f32 1.0, %v3291_v59 }
 0x3d6   : > { %v7005_v1 = vpop.eup %7004  ;;  %v3364_v54 = vadd.f32 1.0, %v7003_v37  ;;  %v3173_v16 = vmin.f32 %v9435_v20, 20.0  ;;  %vm9450_vm12 = vcmp.lt.f32.partialorder %v3294_v4, 0.0004427343  ;;  %v5949_v37 = vld [vmem:[%s8221_s16 + $0xc0] sm:$0xf] }
 0x3d7   : > { %10019 = vst [vmem:[#allocation58_spill] sm:$0xff] %v9437_v29  ;;  %v3347_v43 = vmul.f32 1.442695, %v3331_v17  ;;  %v3263_v30 = vmul.f32 0.6931472, %v7005_v1  ;;  %v7007_v62 = vpop.eup %7006  ;;  %3776 = vmatpush.bf16.msra.mxu0 %v9437_v29  ;;  %vm3169_vm13 = vcmp.gt.f32.partialorder %v9406_v23, 20.0 }
 0x3d8   : > { %7016 = vrcp.f32 %v3364_v54  ;;  %v9446_v3 = vpop.eup %7008  ;;  %v3272_v58 = vmul.f32 0.6931472, %v7007_v62  ;;  %v6561_v17 = vld [vmem:[%s8221_s16 + $0xc4] sm:$0xf0]  ;;  %v3187_v4 = vmul.f32 1.442695, %v3173_v16  ;;  %v3114_v16 = vadd.f32 %v3113_v44, %v9412_v0 }
 0x3d9   : > { %7018 = vpow2.f32 %v3347_v43  ;;  %v3269_v8 = vsel %vm9422_vm8, %v3266_v25, %v3263_v30  ;;  %v7011_v22 = vpop.eup %7010  ;;  %v3297_v36 = vadd.f32 1.0, %v9446_v3  ;;  %v3300_v33 = vmul.f32 -0.5, %v9446_v3  ;;  %v5887_v43 = vld [vmem:[%s8221_s16 + $0x48] sm:$0xf0]  ;;  %v5877_v30 = vld [vmem:[%s8221_s16 + $0x30] sm:$0xf] }
 0x3da   : > { %v3321_v41 = vsel %vm3165_vm7, %v9348_v15, %v3269_v8  ;;  %v3303_v25 = vand.u32 2147483647, %v9446_v3  ;;  %v9464_v61 = vpop.eup %7012  ;;  %v3366_v59 = vadd.f32 1.0, %v7011_v22  ;;  %v3278_v54 = vsel %vm9439_vm10, %v3275_v24, %v3272_v58  ;;  %v6544_v15 = vld [vmem:[%s8221_s16 + $0x44] sm:$0xf] }
 0x3db   : > { %v3333_v1 = vsub.f32 0.0, %v3321_v41  ;;  %v3322_v62 = vsel %vm3166_vm9, %v9363_v9, %v3278_v54  ;;  %v3293_v8 = vmul.f32 %v7001_v19, %v3292_v11  ;;  %7020 = vlog2.f32 %v3297_v36  ;;  %v7015_v22 = vpop.eup %7014  ;;  %v6559_v58 = vld [vmem:[%s8221_s16 + $0xb4] sm:$0xf0]  ;;  %v6542_v36 = vld [vmem:[%s8221_s16 + $0x34] sm:$0xf] }
 0x3dc   : > { %v3301_v27 = vadd.f32 1.0, %v3300_v33  ;;  %7022 = vrcp.f32 %v3366_v59  ;;  %v3334_v24 = vsub.f32 0.0, %v3322_v62  ;;  %v3290_v9 = vmul.f32 0.6931472, %v7015_v22  ;;  %v3116_v33 = vpop.f32.mrf.mxu2  ;;  %v5879_v62 = vld [vmem:[%s8221_s16 + $0x38] sm:$0xf0] }
 0x3dd   : > { %v3351_v46 = vmul.f32 1.442695, %v3333_v1  ;;  %vm9483_vm14 = vcmp.lt.f32.partialorder %v3303_v25, 0.0004427343  ;;  %7024 = vpow2.f32 %v3187_v4  ;;  %v5886_v11 = vor.u32 %v6545_v14, %v5885_v34  ;;  %v5869_v22 = vld [vmem:[%s8221_s16 + $0x20] sm:$0xf] }
 0x3de   : > { %v9481_v41 = vpop.eup %7016  ;;  %v3353_v1 = vmul.f32 1.442695, %v3334_v24  ;;  %v3133_v54 = vadd.f32 %v3132_v31, %v3114_v16  ;;  %v5950_v44 = vor.u32 %v6561_v17, %v5949_v37  ;;  %v3296_v29 = vsel %vm9450_vm12, %v3293_v8, %v3290_v9  ;;  %v6541_v14 = vld [vmem:[%s8221_s16 + $0x24] sm:$0xf0]  ;;  %v6540_v24 = vld [vmem:[%s8221_s16 + $0x24] sm:$0xf]  ;;  %v3135_v16 = vpop.f32.mrf.mxu3 }
 0x3df   : > { %v7019_v59 = vpop.eup %7018  ;;  %7026 = vpow2.f32 %v3351_v46  ;;  %3720 = vmatpush.bf16.msrb.mxu1 %v5886_v11  ;;  %v9492_v4 = vor.u32 %v6544_v15, %v5887_v43  ;;  %v5878_v34 = vor.u32 %v6543_v60, %v5877_v30  ;;  %v3324_v31 = vsel %vm3168_vm11, %v9384_v55, %v3296_v29  ;;  %v6557_v46 = vld [vmem:[%s8221_s16 + $0xa4] sm:$0xf0]  ;;  %v3154_v11 = vpop.f32.mrf.mxu0  ;;  %v6555_v19 = vld [vmem:[%s8221_s16 + $0x94] sm:$0xf0] }
 0x3e0   : > { %v3367_v25 = vadd.f32 1.0, %v7019_v59  ;;  %7028 = vpow2.f32 %v3353_v1  ;;  %v9499_v37 = vadd.f32 %v3151_v6, %v3133_v54  ;;  %3739 = vmatpush.bf16.msrb.mxu2 %v5950_v44  ;;  %v5942_v17 = vor.u32 %v6559_v58, %v9476_v38  ;;  %v6539_v1 = vld [vmem:[%s8221_s16 + $0x14] sm:$0xf0] }
 0x3e1   : > { %v7021_v8 = vpop.eup %7020  ;;  %v3336_v15 = vsub.f32 0.0, %v3324_v31  ;;  %v3302_v60 = vmul.f32 %v9446_v3, %v3301_v27  ;;  %3777 = vmatpush.bf16.msra.mxu0 %v9492_v4  ;;  %v9507_v43 = vor.u32 %v6542_v36, %v5879_v62  ;;  %v3117_v55 = vadd.f32 %v3116_v33, %v9412_v0  ;;  %v5861_v36 = vld [vmem:[%s8221_s16 + $0x10] sm:$0xf] }
 0x3e2   : > { %v9510_v29 = vpop.eup %7022  ;;  %7030 = vrcp.f32 %v3367_v25  ;;  %v3299_v38 = vmul.f32 0.6931472, %v7021_v8  ;;  %v3176_v6 = vmin.f32 %v9499_v37, 20.0  ;;  %v5870_v30 = vor.u32 %v6541_v14, %v5869_v22  ;;  %v5925_v25 = vld [vmem:[%s8221_s16 + $0x90] sm:$0xf] }
 0x3e3   : > { %v7025_v58 = vpop.eup %7024  ;;  %v3357_v9 = vmul.f32 1.442695, %v3336_v15  ;;  %3721 = vmatpush.bf16.msrb.mxu1 %v5878_v34  ;;  %v3136_v27 = vadd.f32 %v3135_v16, %v3117_v55  ;;  %v5934_v3 = vor.u32 %v6557_v46, %v5933_v13  ;;  %v9513_v59 = vor.u32 %v6540_v24, %v5871_v39  ;;  %v6538_v39 = vld [vmem:[%s8221_s16 + $0x14] sm:$0xf]  ;;  %v5853_v15 = vld [vmem:[%s8221_s16] sm:$0xf] }
 0x3e4   : > { %v3305_v54 = vsel %vm9483_vm14, %v3302_v60, %v3299_v38  ;;  %v3225_v44 = vadd.f32 1.0, %v7025_v58  ;;  %v3228_v62 = vmul.f32 -0.5, %v7025_v58  ;;  %v3231_v22 = vand.u32 2147483647, %v7025_v58  ;;  %3740 = vmatpush.bf16.msrb.mxu2 %v5942_v17  ;;  %v5863_v17 = vld [vmem:[%s8221_s16 + $0x18] sm:$0xf0]  ;;  %v3118_v16 = vpop.f32.mrf.mxu2 }
 0x3e5   : > { %v7027_v33 = vpop.eup %7026  ;;  %7032 = vpow2.f32 %v3357_v9  ;;  %v3325_v13 = vsel %vm3169_vm13, %v9406_v23, %v3305_v54  ;;  %v3193_v34 = vmul.f32 1.442695, %v3176_v6  ;;  %3778 = vmatpush.bf16.msra.mxu0 %v9507_v43  ;;  %vm3161_vm15 = vcmp.gt.f32.partialorder %v9435_v20, 20.0  ;;  %v6537_v60 = vld [vmem:[%s8221_s16 + $0x4] sm:$0xf0] }
 0x3e6   : > { %v3369_v14 = vadd.f32 1.0, %v7027_v33  ;;  %v7029_v31 = vpop.eup %7028  ;;  %v3337_v46 = vsub.f32 0.0, %v3325_v13  ;;  %7034 = vlog2.f32 %v3225_v44  ;;  %v3229_v24 = vadd.f32 1.0, %v3228_v62  ;;  %v5917_v55 = vld [vmem:[%s8221_s16 + $0x80] sm:$0xf]  ;;  %v3137_v13 = vpop.f32.mrf.mxu3 }
 0x3e7   : > { %7036 = vrcp.f32 %v9314_v63  ;;  %v9529_v8 = vadd.f32 %v3154_v11, %v3136_v27  ;;  %3722 = vmatpush.bf16.msrb.mxu1 %v5870_v30  ;;  %v5862_v23 = vor.u32 %v6539_v1, %v5861_v36  ;;  %vm9534_vm0 = vcmp.lt.f32.partialorder %v3231_v22, 0.0004427343  ;;  %v6553_v33 = vld [vmem:[%s8221_s16 + $0x84] sm:$0xf0]  ;;  %v6536_v44 = vld [vmem:[%s8221_s16 + $0x4] sm:$0xf] }
 0x3e8   : > { %v7031_v38 = vpop.eup %7030  ;;  %v3359_v6 = vmul.f32 1.442695, %v3337_v46  ;;  %7038 = vpow2.f32 %v3193_v34  ;;  %3741 = vmatpush.bf16.msrb.mxu2 %v5934_v3  ;;  %v5926_v63 = vor.u32 %v6555_v19, %v5925_v25  ;;  %v3370_v11 = vadd.f32 1.0, %v7029_v31  ;;  %v5855_v62 = vld [vmem:[%s8221_s16 + $0x8] sm:$0xf0] }
 0x3e9   : > { %7040 = vrcp.f32 %v3369_v14  ;;  %v3179_v30 = vmin.f32 %v9529_v8, 20.0  ;;  %3779 = vmatpush.bf16.msra.mxu0 %v9513_v59  ;;  %v9541_v27 = vor.u32 %v6538_v39, %v5863_v17  ;;  %v3230_v36 = vmul.f32 %v7025_v58, %v3229_v24  ;;  %v3156_v17 = vpop.f32.mrf.mxu0 }
 0x3ea   : > { %7042 = vpow2.f32 %v3359_v6  ;;  %v3119_v1 = vadd.f32 %v3118_v16, %v9412_v0  ;;  %v5854_v54 = vor.u32 %v6537_v60, %v5853_v15  ;;  %v5918_v25 = vor.u32 %v6553_v33, %v5917_v55  ;;  %v6583_v55 = vld [vmem:[%s8221_s16 + $0x174] sm:$0xf0]  ;;  %v6564_v33 = vld [vmem:[%s8221_s16 + $0xe4] sm:$0xf] }
 0x3eb   : > { %v7033_v22 = vpop.eup %7032  ;;  %v3199_v3 = vmul.f32 1.442695, %v3179_v30  ;;  %3723 = vmatpush.bf16.msrb.mxu1 %v5862_v23  ;;  %v3387_v14 = vmul.f32 %v9464_v61, %v9032_v57  ;;  %v3390_v34 = vmul.f32 %v9510_v29, %v9035_v53  ;;  %v3388_v0 = vmul.f32 %v9481_v41, %v9114_v42  ;;  %v6566_v41 = vld [vmem:[%s8221_s16 + $0xf4] sm:$0xf]  ;;  %v5975_v23 = vld [vmem:[%s8221_s16 + $0xf8] sm:$0xf0] }
 0x3ec   : > { %v7035_v19 = vpop.eup %7034  ;;  %v3372_v31 = vadd.f32 1.0, %v7033_v22  ;;  %3742 = vmatpush.bf16.msrb.mxu2 %v5926_v63  ;;  %v3138_v58 = vadd.f32 %v3137_v13, %v3119_v1  ;;  %v3391_v46 = vmul.f32 %v7031_v38, %v9102_v35  ;;  %v9556_v57 = vor.u32 %v6536_v44, %v5855_v62  ;;  %v6582_v1 = vld [vmem:[%s8221_s16 + $0x174] sm:$0xf]  ;;  %v6029_v22 = vld [vmem:[%s8221_s16 + $0x160] sm:$0xf] }
 0x3ed   : > { %v9553_v24 = vpop.eup %7036  ;;  %v3227_v39 = vmul.f32 0.6931472, %v7035_v19  ;;  %7044 = vpow2.f32 %v3199_v3  ;;  %3780 = vmatpush.bf16.msra.mxu0 %v9541_v27  ;;  %v3462_v53 = vmul.f32 %v9305_v48, %v3390_v34  ;;  %v3459_v35 = vmul.f32 %v9299_v2, %v3387_v14  ;;  %v6037_v2 = vld [vmem:[%s8221_s16 + $0x170] sm:$0xf]  ;;  %v6580_v34 = vld [vmem:[%s8221_s16 + $0x164] sm:$0xf] }
 0x3ee   : > { %v9559_v61 = vpop.eup %7038  ;;  %7046 = vrcp.f32 %v3370_v11  ;;  %v9561_v29 = vadd.f32 %v3156_v17, %v3138_v58  ;;  %v3463_v42 = vmul.f32 %v9353_v52, %v3391_v46  ;;  %v3460_v63 = vmul.f32 %v9339_v45, %v3388_v0  ;;  %v5967_v11 = vld [vmem:[%s8221_s16 + $0xe8] sm:$0xf0]  ;;  %v6581_v45 = vld [vmem:[%s8221_s16 + $0x164] sm:$0xf0] }
 0x3ef   : > { %v9567_v16 = vpop.eup %7040  ;;  %7048 = vrcp.f32 %v3372_v31  ;;  %v3233_v15 = vsel %vm9534_vm0, %v3230_v36, %v3227_v39  ;;  %v3252_v48 = vadd.f32 1.0, %v9559_v61  ;;  %v3255_v60 = vmul.f32 -0.5, %v9559_v61  ;;  %3724 = vmatpush.bf16.msrb.mxu1 %v5854_v54  ;;  %v6039_v54 = vld [vmem:[%s8221_s16 + $0x178] sm:$0xf0]  ;;  %v6031_v58 = vld [vmem:[%s8221_s16 + $0x168] sm:$0xf0] }
 0x3f0   : > { %v7043_v52 = vpop.eup %7042  ;;  %v3317_v38 = vsel %vm3161_vm15, %v9435_v20, %v3233_v15  ;;  %v3182_v6 = vmin.f32 %v9561_v29, 20.0  ;;  %3743 = vmatpush.bf16.msrb.mxu2 %v5918_v25  ;;  %v3471_v9 = vpack.c.bf16 %v3462_v53, %v3459_v35  ;;  %v9586_v44 = vpack.c.bf16 %v3463_v42, %v3460_v63  ;;  %v6562_v35 = vld [vmem:[%s8221_s16 + $0xd4] sm:$0xf]  ;;  %v6579_v15 = vld [vmem:[%s8221_s16 + $0x154] sm:$0xf0] }
 0x3f1   : > { %v3373_v30 = vadd.f32 1.0, %v7043_v52  ;;  %v3329_v36 = vsub.f32 0.0, %v3317_v38  ;;  %7050 = vlog2.f32 %v3252_v48  ;;  %3781 = vmatpush.bf16.msra.mxu0 %v9556_v57  ;;  %v5978_v62 = vor.u32 %v6566_v41, %v5975_v23  ;;  %v5959_v41 = vld [vmem:[%s8221_s16 + $0xd8] sm:$0xf0]  ;;  %v6021_v23 = vld [vmem:[%s8221_s16 + $0x150] sm:$0xf] }
 0x3f2   : > { %7052 = vrcp.f32 %v9327_v5  ;;  %v3205_v20 = vmul.f32 1.442695, %v3182_v6  ;;  %3725 = vmatmul.bf16.vlgmr.msrb.gmra.mxu1 %v3471_v9  ;;  %v3256_v3 = vadd.f32 1.0, %v3255_v60  ;;  %v3258_v25 = vand.u32 2147483647, %v9559_v61 }
 0x3f3   : > { %v9590_v13 = vpop.eup %7044  ;;  %7054 = vrcp.f32 %v3373_v30  ;;  %v6038_v14 = vor.u32 %v6583_v55, %v6037_v2  ;;  %v3343_v31 = vmul.f32 1.442695, %v3329_v36  ;;  %vm3164_vm1 = vcmp.gt.f32.partialorder %v9499_v37, 20.0  ;;  %3744 = vmatmul.bf16.vlgmr.msrb.gmra.mxu2 %v9586_v44  ;;  %3793 = vmatpush.bf16.msra.mxu1 %v5978_v62  ;;  %v6023_v6 = vld [vmem:[%s8221_s16 + $0x158] sm:$0xf0] }
 0x3f4   : > { %v7047_v19 = vpop.eup %7046  ;;  %v3279_v5 = vadd.f32 1.0, %v9590_v13  ;;  %7056 = vpow2.f32 %v3205_v20  ;;  %3782 = vmatmul.bf16.vlgmr.msra.gmra.mxu0 %v3471_v9  ;;  %v3282_v46 = vmul.f32 -0.5, %v9590_v13  ;;  %v5970_v39 = vor.u32 %v6564_v33, %v5967_v11  ;;  %v6560_v36 = vld [vmem:[%s8221_s16 + $0xc4] sm:$0xf] }
 0x3f5   : > { %v7049_v0 = vpop.eup %7048  ;;  %3755 = vmatpush.bf16.msrb.mxu3 %v6038_v14  ;;  %v6042_v17 = vor.u32 %v6582_v1, %v6039_v54  ;;  %v6030_v53 = vor.u32 %v6581_v45, %v6029_v22  ;;  %v9602_v42 = vadd.f32 %v9258_v7, %v9275_v47  ;;  %v3257_v60 = vmul.f32 %v9559_v61, %v3256_v3  ;;  %v6578_v47 = vld [vmem:[%s8221_s16 + $0x154] sm:$0xf]  ;;  %v5951_v1 = vld [vmem:[%s8221_s16 + $0xc8] sm:$0xf0]  ;;  %v6013_v22 = vld [vmem:[%s8221_s16 + $0x140] sm:$0xf] }
 0x3f6   : > { %7058 = vlog2.f32 %v3279_v5  ;;  %vm9608_vm2 = vcmp.lt.f32.partialorder %v3258_v25, 0.0004427343  ;;  %v3285_v55 = vand.u32 2147483647, %v9590_v13  ;;  %v6034_v52 = vor.u32 %v6580_v34, %v6031_v58  ;;  %v6577_v45 = vld [vmem:[%s8221_s16 + $0x144] sm:$0xf0] }
 0x3f7   : > { %v7051_v48 = vpop.eup %7050  ;;  %3812 = vmatpush.bf16.msra.mxu2 %v6042_v17  ;;  %7060 = vpow2.f32 %v3343_v31  ;;  %v3393_v9 = vmul.f32 %v9567_v16, %v9164_v56  ;;  %v3396_v61 = vmul.f32 %v7049_v0, %v9147_v12  ;;  %v3283_v33 = vadd.f32 1.0, %v3282_v46  ;;  %3794 = vmatpush.bf16.msra.mxu1 %v5970_v39  ;;  %v5943_v34 = vld [vmem:[%s8221_s16 + $0xb8] sm:$0xf0]  ;;  %v6576_v58 = vld [vmem:[%s8221_s16 + $0x144] sm:$0xf] }
 0x3f8   : > { %v7053_v38 = vpop.eup %7052  ;;  %v3254_v7 = vmul.f32 0.6931472, %v7051_v48  ;;  %v5962_v11 = vor.u32 %v6562_v35, %v5959_v41  ;;  %v6022_v30 = vor.u32 %v6579_v15, %v6021_v23  ;;  %v3394_v54 = vmul.f32 %v7047_v19, %v9217_v40  ;;  %v6015_v0 = vld [vmem:[%s8221_s16 + $0x148] sm:$0xf0]  ;;  %v6005_v17 = vld [vmem:[%s8221_s16 + $0x130] sm:$0xf] }
 0x3f9   : > { %v7055_v63 = vpop.eup %7054  ;;  %3756 = vmatpush.bf16.msrb.mxu3 %v6030_v53  ;;  %v3465_v12 = vmul.f32 %v9318_v28, %v3393_v9  ;;  %v3468_v16 = vmul.f32 %v9325_v21, %v3396_v61  ;;  %v3410_v3 = vsub.f32 0.0, %v9602_v42  ;;  %v6026_v14 = vor.u32 %v6578_v47, %v6023_v6  ;;  %v6558_v28 = vld [vmem:[%s8221_s16 + $0xb4] sm:$0xf]  ;;  %v6575_v23 = vld [vmem:[%s8221_s16 + $0x134] sm:$0xf0] }
 0x3fa   : > { %v9621_v20 = vpop.eup %7056  ;;  %v3260_v56 = vsel %vm9608_vm2, %v3257_v60, %v3254_v7  ;;  %v3397_v62 = vmul.f32 %v7055_v63, %v9220_v26  ;;  %v5954_v31 = vor.u32 %v6560_v36, %v5951_v1  ;;  %v6014_v39 = vor.u32 %v6577_v45, %v6013_v22  ;;  %v6556_v9 = vld [vmem:[%s8221_s16 + $0xa4] sm:$0xf]  ;;  %v5935_v61 = vld [vmem:[%s8221_s16 + $0xa8] sm:$0xf0]  ;;  %v5997_v63 = vld [vmem:[%s8221_s16 + $0x120] sm:$0xf] }
 0x3fb   : > { %v3320_v40 = vsel %vm3164_vm1, %v9499_v37, %v3260_v56  ;;  %v3306_v25 = vadd.f32 1.0, %v9621_v20  ;;  %3813 = vmatpush.bf16.msra.mxu2 %v6034_v52  ;;  %v3309_v26 = vmul.f32 -0.5, %v9621_v20  ;;  %v9638_v5 = vpack.c.bf16 %v3468_v16, %v3465_v12  ;;  %3795 = vmatpush.bf16.msra.mxu1 %v5962_v11  ;;  %v6572_v56 = vld [vmem:[%s8221_s16 + $0x124] sm:$0xf]  ;;  %v5999_v12 = vld [vmem:[%s8221_s16 + $0x128] sm:$0xf0] }
 0x3fc   : > { %v7059_v21 = vpop.eup %7058  ;;  %v3332_v19 = vsub.f32 0.0, %v3320_v40  ;;  %v3284_v37 = vmul.f32 %v9590_v13, %v3283_v33  ;;  %vm3286_vm3 = vcmp.lt.f32.partialorder %v3285_v55, 0.0004427343  ;;  %v3466_v42 = vmul.f32 %v9553_v24, %v3394_v54  ;;  %v6574_v55 = vld [vmem:[%s8221_s16 + $0x134] sm:$0xf] }
 0x3fd   : > { %v3281_v46 = vmul.f32 0.6931472, %v7059_v21  ;;  %7062 = vlog2.f32 %v3306_v25  ;;  %3757 = vmatpush.bf16.msrb.mxu3 %v6022_v30  ;;  %v7061_v53 = vpop.eup %7060  ;;  %v3469_v41 = vmul.f32 %v7053_v38, %v3397_v62  ;;  %vm3167_vm4 = vcmp.gt.f32.partialorder %v9529_v8, 20.0  ;;  %v6007_v24 = vld [vmem:[%s8221_s16 + $0x138] sm:$0xf0] }
 0x3fe   : > { %v3349_v35 = vmul.f32 1.442695, %v3332_v19  ;;  %v5946_v13 = vor.u32 %v6558_v28, %v5943_v34  ;;  %v6018_v48 = vor.u32 %v6576_v58, %v6015_v0  ;;  %v3310_v2 = vadd.f32 1.0, %v3309_v26  ;;  %v6554_v22 = vld [vmem:[%s8221_s16 + $0x94] sm:$0xf] }
 0x3ff   : > { %v3287_v15 = vsel %vm3286_vm3, %v3284_v37, %v3281_v46  ;;  %3814 = vmatpush.bf16.msra.mxu2 %v6026_v14  ;;  %v9648_v52 = vpack.c.bf16 %v3469_v41, %v3466_v42  ;;  %v3365_v38 = vadd.f32 1.0, %v7061_v53  ;;  %v3312_v47 = vand.u32 2147483647, %v9621_v20  ;;  %3796 = vmatpush.bf16.msra.mxu1 %v5954_v31  ;;  %v5989_v40 = vld [vmem:[%s8221_s16 + $0x110] sm:$0xf] }
 0x400   : > { %7064 = vpow2.f32 %v3349_v35  ;;  %v3323_v60 = vsel %vm3167_vm4, %v9529_v8, %v3287_v15  ;;  %v6006_v6 = vor.u32 %v6575_v23, %v6005_v17  ;;  %v6573_v8 = vld [vmem:[%s8221_s16 + $0x124] sm:$0xf0]  ;;  %v3433_v11 = vmul.f32 1.442695, %v3410_v3  ;;  %v5927_v3 = vld [vmem:[%s8221_s16 + $0x98] sm:$0xf0] }
 0x401   : > { %v3335_v7 = vsub.f32 0.0, %v3323_v60  ;;  %3758 = vmatpush.bf16.msrb.mxu3 %v6014_v39  ;;  %vm3170_vm5 = vcmp.gt.f32.partialorder %v9561_v29, 20.0  ;;  %v6010_v36 = vor.u32 %v6574_v55, %v6007_v24  ;;  %7066 = vrcp.f32 %v9308_v50  ;;  %v6570_v19 = vld [vmem:[%s8221_s16 + $0x114] sm:$0xf]  ;;  %v5991_v26 = vld [vmem:[%s8221_s16 + $0x118] sm:$0xf0] }
 0x402   : > { %3730 = vmatmul.bf16.gmra.mxu1 %v9638_v5  ;;  %v3311_v54 = vmul.f32 %v9621_v20, %v3310_v2  ;;  %7068 = vrcp.f32 %v3365_v38  ;;  %vm3313_vm6 = vcmp.lt.f32.partialorder %v3312_v47, 0.0004427343  ;;  %v5938_v16 = vor.u32 %v6556_v9, %v5935_v61  ;;  %v6571_v20 = vld [vmem:[%s8221_s16 + $0x114] sm:$0xf0]  ;;  %v6552_v58 = vld [vmem:[%s8221_s16 + $0x84] sm:$0xf] }
 0x403   : > { %v7063_v33 = vpop.eup %7062  ;;  %v3355_v30 = vmul.f32 1.442695, %v3335_v7  ;;  %3815 = vmatpush.bf16.msra.mxu2 %v6018_v48  ;;  %3797 = vmatpush.bf16.msra.mxu1 %v5946_v13  ;;  %v5998_v62 = vor.u32 %v6573_v8, %v5997_v63  ;;  %v3440_v25 = vadd.f32 1.0, %v9344_v10  ;;  %v6002_v34 = vor.u32 %v6572_v56, %v5999_v12  ;;  %v5919_v0 = vld [vmem:[%s8221_s16 + $0x88] sm:$0xf0] }
 0x404   : > { %v3308_v1 = vmul.f32 0.6931472, %v7063_v33  ;;  %3749 = vmatmul.bf16.gmra.mxu2 %v9648_v52  ;;  %v5930_v31 = vor.u32 %v6554_v22, %v5927_v3  ;;  %v5990_v10 = vor.u32 %v6571_v20, %v5989_v40  ;;  %v5981_v37 = vld [vmem:[%s8221_s16 + $0x100] sm:$0xf]  ;;  %v6569_v39 = vld [vmem:[%s8221_s16 + $0x104] sm:$0xf0]  ;;  %v5922_v41 = vor.u32 %v6552_v58, %v5919_v0 }
 0x405   : > { %3759 = vmatpush.bf16.msrb.mxu3 %v6006_v6  ;;  %7070 = vpow2.f32 %v3355_v30  ;;  %v6568_v35 = vld [vmem:[%s8221_s16 + $0x104] sm:$0xf]  ;;  %v5983_v42 = vld [vmem:[%s8221_s16 + $0x108] sm:$0xf0]  ;;  %v5982_v23 = vor.u32 %v6569_v39, %v5981_v37  ;;  %v1468_v20 = vld [vmem:[%s1029_s9] sm:$0x3] }
 0x406   : > { %v7065_v50 = vpop.eup %7064  ;;  %v3314_v45 = vsel %vm3313_vm6, %v3311_v54, %v3308_v1  ;;  %7072 = vpow2.f32 %v9316_v51  ;;  %v5994_v51 = vor.u32 %v6570_v19, %v5991_v26  ;;  %v5986_v2 = vor.u32 %v6568_v35, %v5983_v42  ;;  %v7091_v0 = vld [vmem:[#allocation2] sm:$0xff] }
 0x407   : > { %v3368_v14 = vadd.f32 1.0, %v7065_v50  ;;  %v3326_v28 = vsel %vm3170_vm5, %v9561_v29, %v3314_v45  ;;  %3816 = vmatpush.bf16.msra.mxu2 %v6010_v36  ;;  %3798 = vmatpush.bf16.msra.mxu1 %v5938_v16  ;;  %v7067_v46 = vpop.eup %7066  ;;  %v10033_v36 = vld [vmem:[#allocation55_spill] sm:$0xff] }
 0x408   : > { %v3338_v21 = vsub.f32 0.0, %v3326_v28  ;;  %v7069_v17 = vpop.eup %7068 }
 0x409   : > { %7074 = vrcp.f32 %v3368_v14  ;;  %3760 = vmatpush.bf16.msrb.mxu3 %v5998_v62  ;;  %v3389_v13 = vmul.f32 %v7069_v17, %v9232_v49 }
 0x40a   : > { %7076 = vpow2.f32 %v3433_v11  ;;  %v3361_v29 = vmul.f32 1.442695, %v3338_v21  ;;  %v10031_v11 = vld [vmem:[#allocation58_spill] sm:$0xff] }
 0x40b   : > { %7078 = vrcp.f32 %v3440_v25  ;;  %3817 = vmatpush.bf16.msra.mxu2 %v6002_v34  ;;  %v7071_v53 = vpop.eup %7070  ;;  %3799 = vmatpush.bf16.msra.mxu1 %v5930_v31  ;;  %v3461_v47 = vmul.f32 %v7067_v46, %v3389_v13  ;;  %v3833_v34 = vperm.slane %v1468_v20, 1  ;;  %v7093_v13 = vld [vmem:[#allocation2 + $0x10] sm:$0xff] }
 0x40c   : > { %7080 = vpow2.f32 %v3361_v29  ;;  %v7073_v15 = vpop.eup %7072  ;;  %v3371_v60 = vadd.f32 1.0, %v7071_v53 }
 0x40d   : > { %3761 = vmatpush.bf16.msrb.mxu3 %v5990_v10  ;;  %v3443_v63 = vadd.f32 1.0, %v7073_v15  ;;  %v7090_v10 = vld [vmem:[#allocation2 + $0x30] sm:$0xff] }
 0x40e   : > { %7082 = vrcp.f32 %v3371_v60 }
 0x40f   : > { %v7075_v48 = vpop.eup %7074  ;;  %3818 = vmatpush.bf16.msra.mxu2 %v5994_v51  ;;  %3800 = vmatpush.bf16.msra.mxu1 %v5922_v41 }
 0x410   : > { %v7077_v55 = vpop.eup %7076  ;;  %v3392_v24 = vmul.f32 %v7075_v48, %v9236_v18  ;;  %v10030_v18 = vld [vmem:[#allocation57_spill] sm:$0xff] }
 0x411   : > { %v7079_v38 = vpop.eup %7078  ;;  %3762 = vmatpush.bf16.msrb.mxu3 %v5982_v23  ;;  %v3446_v9 = vadd.f32 1.0, %v7077_v55  ;;  %v7092_v23 = vld [vmem:[#allocation2 + $0x18] sm:$0xff] }
 0x412   : > { %v7081_v7 = vpop.eup %7080  ;;  %v3464_v6 = vmul.f32 %v7079_v38, %v3392_v24  ;;  %3801 = vmatmul.bf16.vlgmr.msra.gmra.mxu1 %v9586_v44  ;;  %v7094_v38 = vld [vmem:[#allocation2 + $0x8] sm:$0xff] }
 0x413   : > { %v3374_v61 = vadd.f32 1.0, %v7081_v7  ;;  %3819 = vmatpush.bf16.msra.mxu2 %v5986_v2 }
 0x414   : > { %v3473_v49 = vpack.c.bf16 %v3464_v6, %v3461_v47  ;;  %v7083_v8 = vpop.eup %7082 }
 0x415   : > { %6664 = vmatpush.bf16.msra.mxu3 %v9367_v32  ;;  %7084 = vrcp.f32 %v3374_v61  ;;  %v10032_v32 = vld [vmem:[#allocation56_spill] sm:$0xff] }
 0x416   : > { %3763 = vmatmul.bf16.vlgmr.msrb.gmra.mxu3 %v3473_v49  ;;  %3820 = vmatmul.bf16.vlgmr.msra.gmra.mxu2 %v3473_v49  ;;  %7086 = vrcp.f32 %v3446_v9  ;;  %v3395_v30 = vmul.f32 %v7083_v8, %v10032_v32  ;;  %v7095_v49 = vld [vmem:[#allocation2 + $0x28] sm:$0xff] }
 0x417   : > { %7088 = vrcp.f32 %v3443_v63 }
 0x419   : > { %6665 = vmatpush.bf16.msra.mxu3 %v10030_v18 }
 0x41b   : > { %v7085_v33 = vpop.eup %7084 }
 0x41c   : > { %v3398_v1 = vmul.f32 %v7085_v33, %v10033_v36  ;;  %v7087_v54 = vpop.eup %7086  ;;  %v7096_v36 = vld [vmem:[#allocation2 + $0x20] sm:$0xff] }
 0x41d   : > { %6666 = vmatpush.bf16.msra.mxu3 %v10031_v11  ;;  %v7089_v44 = vpop.eup %7088 }
 0x41e   : > { %v3470_v56 = vmul.f32 %v7087_v54, %v3398_v1  ;;  %v3467_v12 = vmul.f32 %v7089_v44, %v3395_v30 }
 0x420   : > { %v3476_v16 = vpack.c.bf16 %v3470_v56, %v3467_v12 }
 0x421   : > { %6667 = vmatpush.bf16.msra.mxu3 %v9492_v4 }
 0x422   : > { %3806 = vmatmul.bf16.gmra.mxu1 %v9648_v52 }
 0x425   : > { %6668 = vmatpush.bf16.msra.mxu3 %v9507_v43 }
 0x426   : > { %3768 = vmatmul.bf16.gmra.mxu3 %v3476_v16  ;;  %3825 = vmatmul.bf16.gmra.mxu2 %v3476_v16 }
 0x429   : > { %6669 = vmatpush.bf16.msra.mxu3 %v9513_v59  ;;  %v3832_v59 = vperm.slane %v1468_v20, 0 }
 0x42d   : > { %6670 = vmatpush.bf16.msra.mxu3 %v9541_v27 }
 0x431   : > { %6671 = vmatpush.bf16.msra.mxu3 %v9556_v57 }
 0x436   : > { %3787 = vmatmul.bf16.vlgmr.msra.gmra.mxu3 %v9638_v5 }
 0x46f   : > { %v3726_v62 = vpop.f32.mrf.mxu1 }
 0x471   : > { %v3783_v25 = vpop.f32.mrf.mxu0 }
 0x476   : > { %v3745_v22 = vpop.f32.mrf.mxu2 }
 0x477   : > { %v3728_v4 = vpop.f32.mrf.mxu1  ;;  %v3746_v14 = vadd.f32 %v3745_v22, %v3726_v62  ;;  %v7097_v22 = vld [vmem:[#allocation2 + $0x38] sm:$0xff] }
 0x479   : > { %v3785_v29 = vpop.f32.mrf.mxu0 }
 0x47e   : > { %v3747_v50 = vpop.f32.mrf.mxu2 }
 0x47f   : > { %v3731_v45 = vpop.f32.mrf.mxu1  ;;  %v3748_v37 = vadd.f32 %v3747_v50, %v3728_v4 }
 0x487   : > { %v3750_v3 = vpop.f32.mrf.mxu2  ;;  %v3733_v43 = vpop.f32.mrf.mxu1 }
 0x488   : > { %v3751_v60 = vadd.f32 %v3750_v3, %v3731_v45 }
 0x48f   : > { %v3752_v40 = vpop.f32.mrf.mxu2  ;;  %v3802_v52 = vpop.f32.mrf.mxu1 }
 0x490   : > { %v3803_v28 = vadd.f32 %v3802_v52, %v3783_v25  ;;  %v3753_v47 = vadd.f32 %v3752_v40, %v3733_v43 }
 0x497   : > { %v3804_v31 = vpop.f32.mrf.mxu1 }
 0x498   : > { %v3805_v39 = vadd.f32 %v3804_v31, %v3785_v29 }
 0x499   : > { %v3764_v27 = vpop.f32.mrf.mxu3  ;;  %v3821_v21 = vpop.f32.mrf.mxu2 }
 0x49a   : > { %v3765_v57 = vadd.f32 %v3764_v27, %v3746_v14  ;;  %v3822_v5 = vadd.f32 %v3821_v21, %v3803_v28 }
 0x49c   : > { %v3836_v19 = vmul.f32 %v3832_v59, %v3765_v57  ;;  %v3837_v26 = vmul.f32 %v3833_v34, %v3822_v5 }
 0x49e   : > { %v3844_v58 = vadd.f32 %v7090_v10, %v3836_v19  ;;  %v3845_v46 = vadd.f32 %v7091_v0, %v3837_v26 }
 0x49f   : > { %v3807_v18 = vpop.f32.mrf.mxu1 }
 0x4a0   : > { %3852 = vst [vmem:[#allocation2 + $0x30] sm:$0xff] %v3844_v58 }
 0x4a1   : > { %3853 = vst [vmem:[#allocation2] sm:$0xff] %v3845_v46  ;;  %v3766_v17 = vpop.f32.mrf.mxu3  ;;  %v3823_v53 = vpop.f32.mrf.mxu2 }
 0x4a2   : > { %v3767_v51 = vadd.f32 %v3766_v17, %v3748_v37  ;;  %v3824_v35 = vadd.f32 %v3823_v53, %v3805_v39 }
 0x4a4   : > { %v3838_v42 = vmul.f32 %v3832_v59, %v3767_v51  ;;  %v3839_v41 = vmul.f32 %v3833_v34, %v3824_v35 }
 0x4a6   : > { %v3846_v15 = vadd.f32 %v7092_v23, %v3838_v42  ;;  %v3847_v48 = vadd.f32 %v7093_v13, %v3839_v41 }
 0x4a7   : > { %v3809_v54 = vpop.f32.mrf.mxu1 }
 0x4a8   : > { %3854 = vst [vmem:[#allocation2 + $0x18] sm:$0xff] %v3846_v15 }
 0x4a9   : > { %3855 = vst [vmem:[#allocation2 + $0x10] sm:$0xff] %v3847_v48  ;;  %v3769_v2 = vpop.f32.mrf.mxu3  ;;  %v3826_v8 = vpop.f32.mrf.mxu2 }
 0x4aa   : > { %v3770_v55 = vadd.f32 %v3769_v2, %v3751_v60 }
 0x4ac   : > { %v3840_v24 = vmul.f32 %v3832_v59, %v3770_v55 }
 0x4ae   : > { %v3848_v7 = vadd.f32 %v7094_v38, %v3840_v24 }
 0x4b0   : > { %3856 = vst [vmem:[#allocation2 + $0x8] sm:$0xff] %v3848_v7 }
 0x4b1   : > { %v3771_v6 = vpop.f32.mrf.mxu3  ;;  %v3828_v12 = vpop.f32.mrf.mxu2 }
 0x4b2   : > { %v3772_v9 = vadd.f32 %v3771_v6, %v3753_v47 }
 0x4b4   : > { %v3842_v61 = vmul.f32 %v3832_v59, %v3772_v9 }
 0x4b6   : > { %v3850_v63 = vadd.f32 %v7095_v49, %v3842_v61 }
 0x4b8   : > { %3858 = vst [vmem:[#allocation2 + $0x28] sm:$0xff] %v3850_v63 }
 0x4b9   : > { %v3788_v33 = vpop.f32.mrf.mxu3 }
 0x4ba   : > { %v3808_v11 = vadd.f32 %v3807_v18, %v3788_v33 }
 0x4bc   : > { %v3827_v32 = vadd.f32 %v3826_v8, %v3808_v11 }
 0x4be   : > { %v3841_v30 = vmul.f32 %v3833_v34, %v3827_v32 }
 0x4c0   : > { %v3849_v1 = vadd.f32 %v7096_v36, %v3841_v30 }
 0x4c1   : > { %v3790_v56 = vpop.f32.mrf.mxu3 }
 0x4c2   : > { %3857 = vst [vmem:[#allocation2 + $0x20] sm:$0xff] %v3849_v1  ;;  %v3810_v44 = vadd.f32 %v3809_v54, %v3790_v56 }
 0x4c4   : > { %v3829_v16 = vadd.f32 %v3828_v12, %v3810_v44 }
 0x4c6   : > { %v3843_v62 = vmul.f32 %v3833_v34, %v3829_v16  ;;  %3863 = sbr.rel (%p6043_p1) target bundleno = 2271 (0x8df), region = 192 }
 0x4c8   : > { %v3851_v4 = vadd.f32 %v7097_v22, %v3843_v62 }
 0x4ca   : > { %3859 = vst [vmem:[#allocation2 + $0x38] sm:$0xff] %v3851_v4 }
 0x4cb   : > { %v3868_v50 = vld [vmem:[#allocation2 + $0x8] sm:$0xff]  ;;  %v3869_v45 = vld [vmem:[#allocation2 + $0x20] sm:$0xff]  ;;  %v3864_v3 = vld [vmem:[#allocation2 + $0x30] sm:$0xff]  ;;  %vm4047_vm4 = vcmask 1040384   ;;  %vm4304_vm5 = vcmask 1041408  }
 0x4cc   : > { %v3880_v43 = vadd.f32 %v3869_v45, %v3868_v50  ;;  %v3865_v40 = vld [vmem:[#allocation2] sm:$0xff]  ;;  %v3870_v20 = vld [vmem:[#allocation2 + $0x28] sm:$0xff]  ;;  %v3866_v14 = vld [vmem:[#allocation2 + $0x18] sm:$0xff] }
 0x4cd   : > { %v3874_v52 = vadd.f32 %v3865_v40, %v3864_v3  ;;  %v3867_v59 = vld [vmem:[#allocation2 + $0x10] sm:$0xff]  ;;  %v10035_v57 = vld [vmem:[#allocation54_spill] sm:$0xff]  ;;  %v6598_v49 = vld [vmem:[#allocation19 + $0x74] sm:$0xf] }
 0x4ce   : > { %3881 = vadd.xlane.f32.xlu1 %v3880_v43  ;;  %v3877_v27 = vadd.f32 %v3867_v59, %v3866_v14  ;;  %v6102_v7 = vld [vmem:[#allocation19 + $0x70] sm:$0xf]  ;;  %v6599_v47 = vld [vmem:[#allocation19 + $0x74] sm:$0xf0]  ;;  %v6104_v63 = vld [vmem:[#allocation19 + $0x78] sm:$0xf0] }
 0x4cf   : > { %3875 = vadd.xlane.f32.xlu0 %v3874_v52  ;;  %v6166_v6 = vld [vmem:[#allocation19 + $0xf0] sm:$0xf]  ;;  %v6103_v9 = vor.u32 %v6599_v47, %v6102_v7  ;;  %v6615_v61 = vld [vmem:[#allocation19 + $0xf4] sm:$0xf0]  ;;  %v6107_v8 = vor.u32 %v6598_v49, %v6104_v63  ;;  %v6614_v33 = vld [vmem:[#allocation19 + $0xf4] sm:$0xf] }
 0x4d0   : > { %v6167_v18 = vor.u32 %v6615_v61, %v6166_v6  ;;  %v6168_v11 = vld [vmem:[#allocation19 + $0xf8] sm:$0xf0]  ;;  %v6094_v30 = vld [vmem:[#allocation19 + $0x60] sm:$0xf]  ;;  %v6597_v36 = vld [vmem:[#allocation19 + $0x64] sm:$0xf0] }
 0x4d1   : > { %v3871_v25 = vld [vmem:[#allocation2 + $0x38] sm:$0xff]  ;;  %4250 = vmatpush.bf16.msra.mxu0 %v6103_v9  ;;  %v6171_v32 = vor.u32 %v6614_v33, %v6168_v11  ;;  %4276 = vmatpush.bf16.msra.mxu2 %v6107_v8  ;;  %v6095_v54 = vor.u32 %v6597_v36, %v6094_v30  ;;  %v6096_v12 = vld [vmem:[#allocation19 + $0x68] sm:$0xf0]  ;;  %v6595_v52 = vld [vmem:[#allocation19 + $0x54] sm:$0xf0] }
 0x4d2   : > { %v3883_v28 = vadd.f32 %v3871_v25, %v3870_v20  ;;  %4263 = vmatpush.bf16.msra.mxu1 %v6167_v18  ;;  %v6158_v1 = vld [vmem:[#allocation19 + $0xe0] sm:$0xf]  ;;  %v6613_v56 = vld [vmem:[#allocation19 + $0xe4] sm:$0xf0]  ;;  %v6596_v44 = vld [vmem:[#allocation19 + $0x64] sm:$0xf] }
 0x4d3   : > { %4289 = vmatpush.bf16.msra.mxu3 %v6171_v32  ;;  %v6159_v16 = vor.u32 %v6613_v56, %v6158_v1  ;;  %v6099_v62 = vor.u32 %v6596_v44, %v6096_v12  ;;  %v6612_v22 = vld [vmem:[#allocation19 + $0xe4] sm:$0xf]  ;;  %v6160_v4 = vld [vmem:[#allocation19 + $0xe8] sm:$0xf0]  ;;  %v6070_v7 = vld [vmem:[#allocation19 + $0x30] sm:$0xf] }
 0x4d4   : > { %v6591_v47 = vld [vmem:[#allocation19 + $0x34] sm:$0xf0]  ;;  %v6134_v6 = vld [vmem:[#allocation19 + $0xb0] sm:$0xf]  ;;  %v6590_v18 = vld [vmem:[#allocation19 + $0x34] sm:$0xf] }
 0x4d5   : > { %4251 = vmatpush.bf16.msra.mxu0 %v6095_v54  ;;  %4277 = vmatpush.bf16.msra.mxu2 %v6099_v62  ;;  %v6071_v49 = vor.u32 %v6591_v47, %v6070_v7  ;;  %v6607_v63 = vld [vmem:[#allocation19 + $0xb4] sm:$0xf0]  ;;  %v6072_v8 = vld [vmem:[#allocation19 + $0x38] sm:$0xf0]  ;;  %v6606_v30 = vld [vmem:[#allocation19 + $0xb4] sm:$0xf] }
 0x4d6   : > { %3884 = vadd.xlane.f32.xlu1 %v3883_v28  ;;  %4264 = vmatpush.bf16.msra.mxu1 %v6159_v16  ;;  %v6594_v28 = vld [vmem:[#allocation19 + $0x54] sm:$0xf]  ;;  %v6135_v11 = vor.u32 %v6607_v63, %v6134_v6  ;;  %v6075_v32 = vor.u32 %v6590_v18, %v6072_v8  ;;  %v6136_v36 = vld [vmem:[#allocation19 + $0xb8] sm:$0xf0]  ;;  %v6062_v1 = vld [vmem:[#allocation19 + $0x20] sm:$0xf] }
 0x4d7   : > { %3878 = vadd.xlane.f32.xlu0 %v3877_v27  ;;  %v6088_v27 = vld [vmem:[#allocation19 + $0x58] sm:$0xf0]  ;;  %v6139_v44 = vor.u32 %v6606_v30, %v6136_v36  ;;  %v6589_v12 = vld [vmem:[#allocation19 + $0x24] sm:$0xf0]  ;;  %v6126_v16 = vld [vmem:[#allocation19 + $0xa0] sm:$0xf] }
 0x4d8   : > { %v6046_v6 = vld [vmem:[#allocation19] sm:$0xf]  ;;  %v6601_v18 = vld [vmem:[#allocation19 + $0x84] sm:$0xf0]  ;;  %v6584_v36 = vld [vmem:[#allocation19 + $0x4] sm:$0xf] }
 0x4d9   : > { %v6110_v63 = vld [vmem:[#allocation19 + $0x80] sm:$0xf] }
 0x4da   : > { %v6111_v30 = vor.u32 %v6601_v18, %v6110_v63 }
 0x541   : > { %v3882_v34 = vpop.xlane.xlu1 %3881 }
 0x542   : > { %v3888_v21 = vmul.f32 %v3882_v34, %v10035_v57  ;;  %v3876_v5 = vpop.xlane.xlu0 %3875 }
 0x543   : > { %v3886_v19 = vmul.f32 %v3876_v5, %v10035_v57  ;;  %v6091_v5 = vor.u32 %v6594_v28, %v6088_v27  ;;  %v6128_v28 = vld [vmem:[#allocation19 + $0xa8] sm:$0xf0]  ;;  %v6054_v27 = vld [vmem:[#allocation19 + $0x10] sm:$0xf] }
 0x544   : > { %v9701_v26 = vsub.f32 %v3868_v50, %v3888_v21  ;;  %v9703_v31 = vsub.f32 %v3869_v45, %v3888_v21  ;;  %v6163_v45 = vor.u32 %v6612_v22, %v6160_v4 }
 0x545   : > { %v9705_v10 = vsub.f32 %v3864_v3, %v3886_v19  ;;  %v9707_v58 = vsub.f32 %v3865_v40, %v3886_v19  ;;  %v6086_v40 = vld [vmem:[#allocation19 + $0x50] sm:$0xf]  ;;  %v6610_v19 = vld [vmem:[#allocation19 + $0xd4] sm:$0xf]  ;;  %4278 = vmatpush.bf16.msra.mxu2 %v6091_v5 }
 0x546   : > { %v3902_v0 = vmul.f32 %v9701_v26, %v9701_v26  ;;  %v3903_v46 = vmul.f32 %v9703_v31, %v9703_v31  ;;  %4290 = vmatpush.bf16.msra.mxu3 %v6163_v45  ;;  %v6605_v45 = vld [vmem:[#allocation19 + $0xa4] sm:$0xf0] }
 0x547   : > { %v3898_v29 = vmul.f32 %v9705_v10, %v9705_v10  ;;  %v3899_v37 = vmul.f32 %v9707_v58, %v9707_v58 }
 0x548   : > { %v3912_v39 = vadd.f32 %v3903_v46, %v3902_v0  ;;  %v6152_v0 = vld [vmem:[#allocation19 + $0xd8] sm:$0xf0] }
 0x549   : > { %v3885_v17 = vpop.xlane.xlu1 %3884  ;;  %v3906_v51 = vadd.f32 %v3899_v37, %v3898_v29  ;;  %v6155_v29 = vor.u32 %v6610_v19, %v6152_v0  ;;  %v6078_v37 = vld [vmem:[#allocation19 + $0x40] sm:$0xf]  ;;  %v6587_v0 = vld [vmem:[#allocation19 + $0x14] sm:$0xf0] }
 0x54a   : > { %v3889_v53 = vmul.f32 %v3885_v17, %v10035_v57  ;;  %v3879_v35 = vpop.xlane.xlu0 %3878  ;;  %3913 = vadd.xlane.f32.xlu0 %v3912_v39  ;;  %v6593_v39 = vld [vmem:[#allocation19 + $0x44] sm:$0xf0]  ;;  %v6142_v17 = vld [vmem:[#allocation19 + $0xc0] sm:$0xf] }
 0x54b   : > { %v3887_v42 = vmul.f32 %v3879_v35, %v10035_v57  ;;  %3907 = vadd.xlane.f32.xlu2 %v3906_v51  ;;  %4291 = vmatpush.bf16.msra.mxu3 %v6155_v29  ;;  %v6079_v51 = vor.u32 %v6593_v39, %v6078_v37  ;;  %v6592_v35 = vld [vmem:[#allocation19 + $0x44] sm:$0xf]  ;;  %v6118_v29 = vld [vmem:[#allocation19 + $0x90] sm:$0xf]  ;;  %v6603_v37 = vld [vmem:[#allocation19 + $0x94] sm:$0xf0] }
 0x54c   : > { %v9719_v41 = vsub.f32 %v3870_v20, %v3889_v53  ;;  %v9721_v23 = vsub.f32 %v3871_v25, %v3889_v53  ;;  %v6150_v20 = vld [vmem:[#allocation19 + $0xd0] sm:$0xf]  ;;  %v6609_v53 = vld [vmem:[#allocation19 + $0xc4] sm:$0xf0] }
 0x54d   : > { %v9723_v15 = vsub.f32 %v3866_v14, %v3887_v42  ;;  %v9725_v13 = vsub.f32 %v3867_v59, %v3887_v42  ;;  %v6087_v14 = vor.u32 %v6595_v52, %v6086_v40  ;;  %v6611_v59 = vld [vmem:[#allocation19 + $0xd4] sm:$0xf0]  ;;  %v6080_v42 = vld [vmem:[#allocation19 + $0x48] sm:$0xf0] }
 0x54e   : > { %v3904_v48 = vmul.f32 %v9719_v41, %v9719_v41  ;;  %v3905_v60 = vmul.f32 %v9721_v23, %v9721_v23  ;;  %v6151_v21 = vor.u32 %v6611_v59, %v6150_v20  ;;  %v6064_v52 = vld [vmem:[#allocation19 + $0x28] sm:$0xf0]  ;;  %v6604_v20 = vld [vmem:[#allocation19 + $0xa4] sm:$0xf]  ;;  %v6127_v59 = vor.u32 %v6605_v45, %v6126_v16 }
 0x54f   : > { %v3900_v2 = vmul.f32 %v9723_v15, %v9723_v15  ;;  %v3901_v55 = vmul.f32 %v9725_v13, %v9725_v13  ;;  %4252 = vmatpush.bf16.msra.mxu0 %v6087_v14  ;;  %v6131_v19 = vor.u32 %v6604_v20, %v6128_v28 }
 0x550   : > { %v3915_v24 = vadd.f32 %v3905_v60, %v3904_v48  ;;  %4265 = vmatpush.bf16.msra.mxu1 %v6151_v21  ;;  %v6143_v48 = vor.u32 %v6609_v53, %v6142_v17  ;;  %v6083_v60 = vor.u32 %v6592_v35, %v6080_v42  ;;  %v6586_v53 = vld [vmem:[#allocation19 + $0x14] sm:$0xf]  ;;  %v6056_v35 = vld [vmem:[#allocation19 + $0x18] sm:$0xf0] }
 0x551   : > { %v3909_v38 = vadd.f32 %v3901_v55, %v3900_v2  ;;  %v6608_v2 = vld [vmem:[#allocation19 + $0xc4] sm:$0xf]  ;;  %v6144_v55 = vld [vmem:[#allocation19 + $0xc8] sm:$0xf0] }
 0x552   : > { %3916 = vadd.xlane.f32.xlu1 %v3915_v24  ;;  %4279 = vmatpush.bf16.msra.mxu2 %v6083_v60  ;;  %v6119_v60 = vor.u32 %v6603_v37, %v6118_v29 }
 0x553   : > { %3910 = vadd.xlane.f32.xlu2 %v3909_v38  ;;  %4253 = vmatpush.bf16.msra.mxu0 %v6079_v51  ;;  %v6147_v38 = vor.u32 %v6608_v2, %v6144_v55  ;;  %v6055_v51 = vor.u32 %v6587_v0, %v6054_v27  ;;  %v6059_v2 = vor.u32 %v6586_v53, %v6056_v35  ;;  %v6602_v55 = vld [vmem:[#allocation19 + $0x94] sm:$0xf] }
 0x554   : > { %4266 = vmatpush.bf16.msra.mxu1 %v6143_v48 }
 0x555   : > { %4292 = vmatpush.bf16.msra.mxu3 %v6147_v38 }
 0x556   : > { %4280 = vmatpush.bf16.msra.mxu2 %v6075_v32 }
 0x557   : > { %4254 = vmatpush.bf16.msra.mxu0 %v6071_v49 }
 0x558   : > { %4267 = vmatpush.bf16.msra.mxu1 %v6135_v11 }
 0x559   : > { %4293 = vmatpush.bf16.msra.mxu3 %v6139_v44  ;;  %v6600_v44 = vld [vmem:[#allocation19 + $0x84] sm:$0xf] }
 0x55c   : > { %4268 = vmatpush.bf16.msra.mxu1 %v6127_v59 }
 0x55d   : > { %4294 = vmatpush.bf16.msra.mxu3 %v6131_v19 }
 0x560   : > { %4269 = vmatpush.bf16.msra.mxu1 %v6119_v60 }
 0x564   : > { %4270 = vmatpush.bf16.msra.mxu1 %v6111_v30 }
 0x5bd   : > { %v3914_v50 = vpop.xlane.xlu0 %3913 }
 0x5be   : > { %v3908_v3 = vpop.xlane.xlu2 %3907  ;;  %v3920_v43 = vmul.f32 %v3914_v50, %v10035_v57  ;;  %v6063_v50 = vor.u32 %v6589_v12, %v6062_v1  ;;  %v6048_v1 = vld [vmem:[#allocation19 + $0x8] sm:$0xf0] }
 0x5bf   : > { %v3918_v25 = vmul.f32 %v3908_v3, %v10035_v57  ;;  %v6588_v3 = vld [vmem:[#allocation19 + $0x24] sm:$0xf]  ;;  %v6051_v16 = vor.u32 %v6584_v36, %v6048_v1 }
 0x5c0   : > { %v9737_v34 = vadd.f32 1e-05, %v3920_v43  ;;  %v3872_v43 = vld [vmem:[#allocation16] sm:$0x3]  ;;  %v6067_v5 = vor.u32 %v6588_v3, %v6064_v52  ;;  %4255 = vmatpush.bf16.msra.mxu0 %v6063_v50 }
 0x5c1   : > { %v9739_v46 = vadd.f32 1e-05, %v3918_v25  ;;  %v9758_v25 = vld [vmem:[#allocation18] sm:$0x3]  ;;  %v9763_v39 = vperm.slane %v3872_v43, 0  ;;  %v9765_v42 = vperm.slane %v3872_v43, 1 }
 0x5c2   : > { %7101 = vrsqrt.f32 %v9737_v34  ;;  %4281 = vmatpush.bf16.msra.mxu2 %v6067_v5  ;;  %v9768_v38 = vperm.slane %v9758_v25, 0  ;;  %vm3952_vm9 = vweird.f32 %v9737_v34 }
 0x5c3   : > { %7103 = vrsqrt.f32 %v9739_v46  ;;  %vm3932_vm10 = vweird.f32 %v9739_v46 }
 0x5c4   : > { %4256 = vmatpush.bf16.msra.mxu0 %v6055_v51 }
 0x5c5   : > { %v3917_v24 = vpop.xlane.xlu1 %3916 }
 0x5c6   : > { %v3921_v9 = vmul.f32 %v3917_v24, %v10035_v57  ;;  %v3911_v61 = vpop.xlane.xlu2 %3910  ;;  %v6120_v24 = vld [vmem:[#allocation19 + $0x98] sm:$0xf0]  ;;  %4282 = vmatpush.bf16.msra.mxu2 %v6059_v2 }
 0x5c7   : > { %v3919_v33 = vmul.f32 %v3911_v61, %v10035_v57  ;;  %v6123_v47 = vor.u32 %v6602_v55, %v6120_v24 }
 0x5c8   : > { %v9745_v54 = vpop.eup %7101  ;;  %v9747_v56 = vadd.f32 1e-05, %v3921_v9  ;;  %v6585_v9 = vld [vmem:[#allocation19 + $0x4] sm:$0xf0] }
 0x5c9   : > { %v9749_v62 = vpop.eup %7103  ;;  %v3947_v22 = vmul.f32 %v9745_v54, %v9737_v34  ;;  %v9753_v4 = vadd.f32 1e-05, %v3919_v33  ;;  %vm3953_vm7 = vweird.f32 %v9745_v54  ;;  %v6047_v32 = vor.u32 %v6585_v9, %v6046_v6  ;;  %4295 = vmatpush.bf16.msra.mxu3 %v6123_v47 }
 0x5ca   : > { %v3927_v40 = vmul.f32 %v9749_v62, %v9739_v46  ;;  %7105 = vrsqrt.f32 %v9747_v56  ;;  %vm3933_vm8 = vweird.f32 %v9749_v62  ;;  %vm3954_vm11 = vmor %vm3952_vm9, %vm3953_vm7  ;;  %v7788_v46 = vmov 16.0   ;;  %4283 = vmatpush.bf16.msra.mxu2 %v6051_v16 }
 0x5cb   : > { %v3948_v14 = vmul.f32 %v9745_v54, %v3947_v22  ;;  %7107 = vrsqrt.f32 %v9753_v4  ;;  %v6112_v22 = vld [vmem:[#allocation19 + $0x88] sm:$0xf0]  ;;  %vm3934_vm12 = vmor %vm3932_vm10, %vm3933_vm8  ;;  %4257 = vmatpush.bf16.msra.mxu0 %v6047_v32  ;;  %vm3962_vm14 = vweird.f32 %v9747_v56  ;;  %vm3942_vm1 = vweird.f32 %v9753_v4 }
 0x5cc   : > { %v3928_v21 = vmul.f32 %v9749_v62, %v3927_v40  ;;  %v6115_v3 = vor.u32 %v6600_v44, %v6112_v22  ;;  %7109 = vrcp.f32 %v7788_v46  ;;  %vm4818_vm9 = vcmask 1024  }
 0x5cd   : > { %v3949_v17 = vmul.f32 0.5, %v3948_v14  ;;  %v3989_v14 = vperm.slane %v9758_v25, 1 }
 0x5ce   : > { %v3929_v48 = vmul.f32 0.5, %v3928_v21  ;;  %4296 = vmatpush.bf16.msra.mxu3 %v6115_v3 }
 0x5cf   : > { %v3950_v7 = vsub.f32 1.5, %v3949_v17 }
 0x5d0   : > { %v9771_v61 = vpop.eup %7105  ;;  %v3930_v49 = vsub.f32 1.5, %v3929_v48 }
 0x5d1   : > { %v9775_v8 = vpop.eup %7107  ;;  %v3951_v33 = vmul.f32 %v9745_v54, %v3950_v7  ;;  %v3957_v11 = vmul.f32 %v9771_v61, %v9747_v56  ;;  %vm3963_vm13 = vweird.f32 %v9771_v61 }
 0x5d2   : > { %v3931_v12 = vmul.f32 %v9749_v62, %v3930_v49  ;;  %v3937_v34 = vmul.f32 %v9775_v8, %v9753_v4  ;;  %vm3943_vm15 = vweird.f32 %v9775_v8  ;;  %v7110_v25 = vpop.eup %7109  ;;  %vm3964_vm0 = vmor %vm3962_vm14, %vm3963_vm13 }
 0x5d3   : > { %v3955_v50 = vsel %vm3954_vm11, %v9745_v54, %v3951_v33  ;;  %v3958_v45 = vmul.f32 %v9771_v61, %v3957_v11  ;;  %vm3944_vm2 = vmor %vm3942_vm1, %vm3943_vm15  ;;  %v4023_v2 = vmul.f32 16.0, %v7110_v25  ;;  %vm4027_vm3 = vweird.f32 %v7110_v25 }
 0x5d4   : > { %v3935_v43 = vsel %vm3934_vm12, %v9749_v62, %v3931_v12  ;;  %v3970_v40 = vmul.f32 %v3955_v50, %v9701_v26  ;;  %v3971_v52 = vmul.f32 %v3955_v50, %v9703_v31  ;;  %v3938_v20 = vmul.f32 %v9775_v8, %v3937_v34 }
 0x5d5   : > { %v3966_v59 = vmul.f32 %v3935_v43, %v9705_v10  ;;  %v3967_v54 = vmul.f32 %v3935_v43, %v9707_v58  ;;  %v3959_v28 = vmul.f32 0.5, %v3958_v45  ;;  %v4024_v9 = vsub.f32 1.0, %v4023_v2 }
 0x5d6   : > { %v3983_v27 = vmul.f32 %v9763_v39, %v3970_v40  ;;  %v3984_v21 = vmul.f32 %v9765_v42, %v3971_v52  ;;  %v3939_v5 = vmul.f32 0.5, %v3938_v20 }
 0x5d7   : > { %v3979_v26 = vmul.f32 %v9763_v39, %v3966_v59  ;;  %v3980_v31 = vmul.f32 %v9765_v42, %v3967_v54  ;;  %v3960_v62 = vsub.f32 1.5, %v3959_v28 }
 0x5d8   : > { %v3996_v10 = vadd.f32 %v9768_v38, %v3983_v27  ;;  %v3940_v58 = vsub.f32 1.5, %v3939_v5  ;;  %v3997_v29 = vadd.f32 %v3989_v14, %v3984_v21 }
 0x5d9   : > { %v3992_v19 = vadd.f32 %v9768_v38, %v3979_v26  ;;  %v3993_v0 = vadd.f32 %v3989_v14, %v3980_v31  ;;  %v3961_v37 = vmul.f32 %v9771_v61, %v3960_v62 }
 0x5da   : > { %4004 = vst [vmem:[#allocation33 + $0x20] sm:$0xff] %v3996_v10  ;;  %v3941_v17 = vmul.f32 %v9775_v8, %v3940_v58 }
 0x5db   : > { %4000 = vst [vmem:[#allocation33] sm:$0xff] %v3992_v19  ;;  %v3965_v51 = vsel %vm3964_vm0, %v9771_v61, %v3961_v37 }
 0x5dc   : > { %4001 = vst [vmem:[#allocation33 + $0x8] sm:$0xff] %v3993_v0  ;;  %v3972_v56 = vmul.f32 %v3965_v51, %v9719_v41  ;;  %v3973_v53 = vmul.f32 %v3965_v51, %v9721_v23  ;;  %v3945_v35 = vsel %vm3944_vm2, %v9775_v8, %v3941_v17  ;;  %v4025_v8 = vmul.f32 %v7110_v25, %v4024_v9 }
 0x5dd   : > { %4005 = vst [vmem:[#allocation33 + $0x28] sm:$0xff] %v3997_v29  ;;  %v3968_v48 = vmul.f32 %v3945_v35, %v9723_v15  ;;  %v3969_v60 = vmul.f32 %v3945_v35, %v9725_v13 }
 0x5de   : > { %v3985_v55 = vmul.f32 %v9763_v39, %v3972_v56  ;;  %v3986_v4 = vmul.f32 %v9765_v42, %v3973_v53  ;;  %v4026_v44 = vadd.f32 %v7110_v25, %v4025_v8  ;;  %v6647_v8 = vld [vmem:[#allocation25 + $0xf4] sm:$0xf0] }
 0x5df   : > { %v3981_v24 = vmul.f32 %v9763_v39, %v3968_v48  ;;  %v3982_v7 = vmul.f32 %v9765_v42, %v3969_v60 }
 0x5e0   : > { %v3998_v41 = vadd.f32 %v9768_v38, %v3985_v55  ;;  %v3999_v47 = vadd.f32 %v3989_v14, %v3986_v4  ;;  %v4028_v43 = vsel %vm4027_vm3, %v7110_v25, %v4026_v44  ;;  %v6627_v44 = vld [vmem:[#allocation25 + $0x54] sm:$0xf0] }
 0x5e1   : > { %v3994_v23 = vadd.f32 %v9768_v38, %v3981_v24  ;;  %v3995_v6 = vadd.f32 %v3989_v14, %v3982_v7 }
 0x5e2   : > { %4006 = vst [vmem:[#allocation33 + $0x30] sm:$0xff] %v3998_v41  ;;  %v4031_v15 = vadd.f32 %v3998_v41, %v3996_v10  ;;  %v4038_v61 = vadd.f32 %v3999_v47, %v3997_v29  ;;  %v4084_v10 = vld [vmem:[#allocation21] sm:$0x3] }
 0x5e3   : > { %4007 = vst [vmem:[#allocation33 + $0x38] sm:$0xff] %v3999_v47  ;;  %v4008_v13 = vadd.f32 %v3994_v23, %v3992_v19  ;;  %v4015_v49 = vadd.f32 %v3995_v6, %v3993_v0  ;;  %v4086_v58 = vperm.slane %v4084_v10, 0  ;;  %v4087_v29 = vperm.slane %v4084_v10, 1  ;;  %v6639_v10 = vld [vmem:[#allocation25 + $0xb4] sm:$0xf0] }
 0x5e4   : > { %4002 = vst [vmem:[#allocation33 + $0x10] sm:$0xff] %v3994_v23  ;;  %v4032_v63 = vrot.slane %v4031_v15, 4  ;;  %v4039_v18 = vrot.slane %v4038_v61, 4 }
 0x5e5   : > { %4003 = vst [vmem:[#allocation33 + $0x18] sm:$0xff] %v3995_v6  ;;  %v4009_v39 = vrot.slane %v4008_v13, 4  ;;  %v4016_v42 = vrot.slane %v4015_v49, 4 }
 0x5e6   : > { %v4033_v33 = vadd.f32 %v4032_v63, %v4031_v15  ;;  %v4040_v11 = vadd.f32 %v4039_v18, %v4038_v61  ;;  %v6631_v63 = vld [vmem:[#allocation25 + $0x74] sm:$0xf0]  ;;  %v6294_v18 = vld [vmem:[#allocation25 + $0xf0] sm:$0xf] }
 0x5e7   : > { %v4010_v32 = vadd.f32 %v4009_v39, %v4008_v13  ;;  %v4017_v30 = vadd.f32 %v4016_v42, %v4015_v49  ;;  %v6230_v49 = vld [vmem:[#allocation25 + $0x70] sm:$0xf]  ;;  %v6295_v42 = vor.u32 %v6647_v8, %v6294_v18  ;;  %v6208_v18 = vld [vmem:[#allocation25 + $0x48] sm:$0xf0] }
 0x5e8   : > { %v4034_v38 = vrot.slane %v4033_v33, 2  ;;  %v4041_v36 = vrot.slane %v4040_v11, 2  ;;  %v6231_v39 = vor.u32 %v6631_v63, %v6230_v49  ;;  %v6624_v63 = vld [vmem:[#allocation25 + $0x44] sm:$0xf] }
 0x5e9   : > { %v4011_v1 = vrot.slane %v4010_v32, 2  ;;  %v4018_v12 = vrot.slane %v4017_v30, 2  ;;  %4579 = vmatpush.bf16.msrb.mxu1 %v6295_v42  ;;  %v6211_v8 = vor.u32 %v6624_v63, %v6208_v18  ;;  %v6272_v42 = vld [vmem:[#allocation25 + $0xc8] sm:$0xf0] }
 0x5ea   : > { %v4035_v34 = vadd.f32 %v4034_v38, %v4033_v33  ;;  %v4042_v16 = vadd.f32 %v4041_v36, %v4040_v11  ;;  %4566 = vmatpush.bf16.msrb.mxu0 %v6231_v39  ;;  %v6222_v33 = vld [vmem:[#allocation25 + $0x60] sm:$0xf]  ;;  %v6629_v11 = vld [vmem:[#allocation25 + $0x64] sm:$0xf0]  ;;  %v6640_v39 = vld [vmem:[#allocation25 + $0xc4] sm:$0xf] }
 0x5eb   : > { %v4012_v22 = vadd.f32 %v4011_v1, %v4010_v32  ;;  %v4019_v50 = vadd.f32 %v4018_v12, %v4017_v30  ;;  %v6286_v32 = vld [vmem:[#allocation25 + $0xe0] sm:$0xf]  ;;  %v6223_v30 = vor.u32 %v6629_v11, %v6222_v33  ;;  %v6645_v38 = vld [vmem:[#allocation25 + $0xe4] sm:$0xf0]  ;;  %v6214_v1 = vld [vmem:[#allocation25 + $0x50] sm:$0xf] }
 0x5ec   : > { %v4036_v45 = vrot.slane %v4035_v34, 1  ;;  %v4043_v3 = vrot.slane %v4042_v16, 1  ;;  %v6287_v36 = vor.u32 %v6645_v38, %v6286_v32  ;;  %v6278_v12 = vld [vmem:[#allocation25 + $0xd0] sm:$0xf]  ;;  %v6174_v33 = vld [vmem:[#allocation25] sm:$0xf] }
 0x5ed   : > { %v4013_v46 = vrot.slane %v4012_v22, 1  ;;  %v4020_v40 = vrot.slane %v4019_v50, 1  ;;  %v6617_v11 = vld [vmem:[#allocation25 + $0x4] sm:$0xf0]  ;;  %v6238_v38 = vld [vmem:[#allocation25 + $0x80] sm:$0xf] }
 0x5ee   : > { %v4037_v52 = vadd.f32 %v4036_v45, %v4035_v34  ;;  %v4044_v20 = vadd.f32 %v4043_v3, %v4042_v16  ;;  %4567 = vmatpush.bf16.msrb.mxu0 %v6223_v30  ;;  %4580 = vmatpush.bf16.msrb.mxu1 %v6287_v36  ;;  %v6215_v34 = vor.u32 %v6627_v44, %v6214_v1  ;;  %v6643_v16 = vld [vmem:[#allocation25 + $0xd4] sm:$0xf0]  ;;  %v6625_v45 = vld [vmem:[#allocation25 + $0x44] sm:$0xf0]  ;;  %v6270_v3 = vld [vmem:[#allocation25 + $0xc0] sm:$0xf] }
 0x5ef   : > { %v4014_v14 = vadd.f32 %v4013_v46, %v4012_v22  ;;  %v4021_v59 = vadd.f32 %v4020_v40, %v4019_v50  ;;  %v6279_v22 = vor.u32 %v6643_v16, %v6278_v12  ;;  %v6206_v50 = vld [vmem:[#allocation25 + $0x40] sm:$0xf]  ;;  %v6630_v40 = vld [vmem:[#allocation25 + $0x74] sm:$0xf]  ;;  %v6275_v30 = vor.u32 %v6640_v39, %v6272_v42  ;;  %v6633_v36 = vld [vmem:[#allocation25 + $0x84] sm:$0xf0] }
 0x5f0   : > { %v4045_v54 = vmul.f32 %v4037_v52, %v4028_v43  ;;  %v4046_v28 = vmul.f32 %v4044_v20, %v4028_v43  ;;  %v6207_v46 = vor.u32 %v6625_v45, %v6206_v50  ;;  %v6232_v52 = vld [vmem:[#allocation25 + $0x78] sm:$0xf0]  ;;  %v6622_v1 = vld [vmem:[#allocation25 + $0x34] sm:$0xf]  ;;  %v6175_v12 = vor.u32 %v6617_v11, %v6174_v33 }
 0x5f1   : > { %v4029_v27 = vmul.f32 %v4028_v43, %v4014_v14  ;;  %v4030_v21 = vmul.f32 %v4028_v43, %v4021_v59  ;;  %v6641_v43 = vld [vmem:[#allocation25 + $0xc4] sm:$0xf0]  ;;  %v6235_v14 = vor.u32 %v6630_v40, %v6232_v52  ;;  %v6646_v59 = vld [vmem:[#allocation25 + $0xf4] sm:$0xf]  ;;  %v6239_v50 = vor.u32 %v6633_v36, %v6238_v38  ;;  %v6620_v40 = vld [vmem:[#allocation25 + $0x24] sm:$0xf] }
 0x5f2   : > { %4568 = vmatpush.bf16.msrb.mxu0 %v6215_v34  ;;  %4581 = vmatpush.bf16.msrb.mxu1 %v6279_v22  ;;  %v6271_v20 = vor.u32 %v6641_v43, %v6270_v3  ;;  %v6200_v34 = vld [vmem:[#allocation25 + $0x38] sm:$0xf0]  ;;  %v6638_v16 = vld [vmem:[#allocation25 + $0xb4] sm:$0xf]  ;;  %v6192_v52 = vld [vmem:[#allocation25 + $0x28] sm:$0xf0] }
 0x5f3   : > { %v4048_v5 = vsel %vm4047_vm4, %v4029_v27, %v4045_v54  ;;  %v4049_v26 = vsel %vm4047_vm4, %v4030_v21, %v4046_v28  ;;  %v6296_v54 = vld [vmem:[#allocation25 + $0xf8] sm:$0xf0]  ;;  %4592 = vmatpush.bf16.msrb.mxu2 %v6235_v14  ;;  %v6198_v27 = vld [vmem:[#allocation25 + $0x30] sm:$0xf]  ;;  %v6623_v21 = vld [vmem:[#allocation25 + $0x34] sm:$0xf0]  ;;  %v6203_v45 = vor.u32 %v6622_v1, %v6200_v34 }
 0x5f4   : > { %v9821_v31 = vpack.c.bf16 %v4048_v5, %v4048_v5  ;;  %v9823_v62 = vpack.c.bf16 %v4049_v26, %v4049_v26  ;;  %v6299_v28 = vor.u32 %v6646_v59, %v6296_v54  ;;  %v6262_v5 = vld [vmem:[#allocation25 + $0xb0] sm:$0xf]  ;;  %v6199_v26 = vor.u32 %v6623_v21, %v6198_v27  ;;  %v6264_v22 = vld [vmem:[#allocation25 + $0xb8] sm:$0xf0]  ;;  %v6636_v14 = vld [vmem:[#allocation25 + $0xa4] sm:$0xf] }
 0x5f5   : > { %v6655_v3 = vld [vmem:[#allocation28 + $0x38] sm:$0xff]  ;;  %v6267_v43 = vor.u32 %v6638_v16, %v6264_v22  ;;  %v6256_v59 = vld [vmem:[#allocation25 + $0xa8] sm:$0xf0]  ;;  %v6618_v27 = vld [vmem:[#allocation25 + $0x14] sm:$0xf] }
 0x5f6   : > { %4258 = vmatmul.bf16.vlgmr.msra.gmra.mxu0 %v9821_v31  ;;  %4271 = vmatmul.bf16.vlgmr.msra.gmra.mxu1 %v9823_v62  ;;  %v6259_v54 = vor.u32 %v6636_v14, %v6256_v59  ;;  %v6184_v21 = vld [vmem:[#allocation25 + $0x18] sm:$0xf0]  ;;  %v6650_v42 = vld [vmem:[#allocation28 + $0x10] sm:$0xff]  ;;  %v6649_v36 = vld [vmem:[#allocation28 + $0x8] sm:$0xff] }
 0x5f7   : > { %4284 = vmatmul.bf16.vlgmr.msra.gmra.mxu2 %v9821_v31  ;;  %4297 = vmatmul.bf16.vlgmr.msra.gmra.mxu3 %v9823_v62  ;;  %v6658_v33 = vld [vmem:[#allocation28 + $0x50] sm:$0xff]  ;;  %v6657_v1 = vld [vmem:[#allocation28 + $0x48] sm:$0xff] }
 0x5f8   : > { %4569 = vmatpush.bf16.msrb.mxu0 %v6207_v46  ;;  %4582 = vmatpush.bf16.msrb.mxu1 %v6271_v20  ;;  %v6663_v20 = vld [vmem:[#allocation28 + $0x78] sm:$0xff] }
 0x5f9   : > { %4605 = vmatpush.bf16.msrb.mxu3 %v6299_v28  ;;  %v6654_v28 = vld [vmem:[#allocation28 + $0x30] sm:$0xff] }
 0x5fc   : > { %4570 = vmatpush.bf16.msrb.mxu0 %v6199_v26  ;;  %v6634_v26 = vld [vmem:[#allocation25 + $0x94] sm:$0xf] }
 0x673   : > { %v4259_v25 = vpop.f32.mrf.mxu0  ;;  %v4272_v19 = vpop.f32.mrf.mxu1 }
 0x674   : > { %v4260_v0 = vadd.f32 %v4259_v25, %v4086_v58  ;;  %v6628_v58 = vld [vmem:[#allocation25 + $0x64] sm:$0xf]  ;;  %v6224_v25 = vld [vmem:[#allocation25 + $0x68] sm:$0xf0] }
 0x676   : > { %v4273_v51 = vadd.f32 %v4272_v19, %v4260_v0  ;;  %v6263_v19 = vor.u32 %v6639_v10, %v6262_v5  ;;  %v6227_v0 = vor.u32 %v6628_v58, %v6224_v25  ;;  %v6662_v5 = vld [vmem:[#allocation28 + $0x70] sm:$0xff]  ;;  %v6248_v10 = vld [vmem:[#allocation25 + $0x98] sm:$0xf0]  ;;  %v6187_v58 = vor.u32 %v6618_v27, %v6184_v21 }
 0x678   : > { %v4305_v60 = vsel %vm4304_vm5, %v4273_v51, 0.0  ;;  %4583 = vmatpush.bf16.msrb.mxu1 %v6263_v19  ;;  %4593 = vmatpush.bf16.msrb.mxu2 %v6227_v0  ;;  %v6251_v19 = vor.u32 %v6634_v26, %v6248_v10  ;;  %v6653_v0 = vld [vmem:[#allocation28 + $0x28] sm:$0xff] }
 0x67a   : > { %v4285_v37 = vpop.f32.mrf.mxu2  ;;  %v4298_v17 = vpop.f32.mrf.mxu3 }
 0x67b   : > { %v4286_v56 = vadd.f32 %v4285_v37, %v4087_v29  ;;  %v4261_v53 = vpop.f32.mrf.mxu0  ;;  %v4274_v35 = vpop.f32.mrf.mxu1  ;;  %v6644_v29 = vld [vmem:[#allocation25 + $0xe4] sm:$0xf]  ;;  %v6288_v37 = vld [vmem:[#allocation25 + $0xe8] sm:$0xf0] }
 0x67c   : > { %v6254_v53 = vld [vmem:[#allocation25 + $0xa0] sm:$0xf] }
 0x67d   : > { %v4299_v48 = vadd.f32 %v4298_v17, %v4286_v56  ;;  %v6291_v17 = vor.u32 %v6644_v29, %v6288_v37  ;;  %v6621_v56 = vld [vmem:[#allocation25 + $0x24] sm:$0xf0]  ;;  %v6616_v29 = vld [vmem:[#allocation25 + $0x4] sm:$0xf]  ;;  %v6176_v37 = vld [vmem:[#allocation25 + $0x8] sm:$0xf0] }
 0x67f   : > { %v4306_v2 = vsel %vm4304_vm5, %v4299_v48, 0.0  ;;  %4606 = vmatpush.bf16.msrb.mxu3 %v6291_v17 }
 0x680   : > { %v4307_v55 = vadd.f32 %v4306_v2, %v4305_v60  ;;  %v6626_v60 = vld [vmem:[#allocation25 + $0x54] sm:$0xf]  ;;  %v6216_v2 = vld [vmem:[#allocation25 + $0x58] sm:$0xf0] }
 0x682   : > { %v4287_v4 = vpop.f32.mrf.mxu2  ;;  %v4300_v24 = vpop.f32.mrf.mxu3  ;;  %4308 = vadd.xlane.f32.xlu2 %v4307_v55 }
 0x683   : > { %v6219_v4 = vor.u32 %v6626_v60, %v6216_v2  ;;  %v6642_v24 = vld [vmem:[#allocation25 + $0xd4] sm:$0xf]  ;;  %v6652_v2 = vld [vmem:[#allocation28 + $0x20] sm:$0xff] }
 0x685   : > { %4594 = vmatpush.bf16.msrb.mxu2 %v6219_v4  ;;  %v6660_v4 = vld [vmem:[#allocation28 + $0x60] sm:$0xff] }
 0x689   : > { %4595 = vmatpush.bf16.msrb.mxu2 %v6211_v8 }
 0x68d   : > { %4596 = vmatpush.bf16.msrb.mxu2 %v6203_v45 }
 0x6f5   : > { %v4309_v7 = vpop.xlane.xlu2 %4308 }
 0x6f6   : > { %v4310_v41 = vmul.f32 %v4309_v7, %v10035_v57  ;;  %v6280_v7 = vld [vmem:[#allocation25 + $0xd8] sm:$0xf0] }
 0x6f8   : > { %v9832_v47 = vsub.f32 %v4273_v51, %v4310_v41  ;;  %v9834_v23 = vsub.f32 %v4299_v48, %v4310_v41  ;;  %v6190_v51 = vld [vmem:[#allocation25 + $0x20] sm:$0xf]  ;;  %v6637_v48 = vld [vmem:[#allocation25 + $0xa4] sm:$0xf0]  ;;  %v6182_v41 = vld [vmem:[#allocation25 + $0x10] sm:$0xf] }
 0x6f9   : > { %v6191_v35 = vor.u32 %v6621_v56, %v6190_v51  ;;  %v6255_v55 = vor.u32 %v6637_v48, %v6254_v53  ;;  %v6661_v51 = vld [vmem:[#allocation28 + $0x68] sm:$0xff]  ;;  %v6632_v56 = vld [vmem:[#allocation25 + $0x84] sm:$0xf]  ;;  %v6179_v48 = vor.u32 %v6616_v29, %v6176_v37 }
 0x6fa   : > { %v4313_v6 = vmul.f32 %v9832_v47, %v9832_v47  ;;  %v4314_v9 = vmul.f32 %v9834_v23, %v9834_v23  ;;  %v6240_v53 = vld [vmem:[#allocation25 + $0x88] sm:$0xf0] }
 0x6fb   : > { %4571 = vmatpush.bf16.msrb.mxu0 %v6191_v35  ;;  %4584 = vmatpush.bf16.msrb.mxu1 %v6255_v55  ;;  %v6243_v60 = vor.u32 %v6632_v56, %v6240_v53 }
 0x6fc   : > { %v4315_v15 = vsel %vm4304_vm5, %v4313_v6, 0.0  ;;  %v4316_v61 = vsel %vm4304_vm5, %v4314_v9, 0.0  ;;  %v6283_v6 = vor.u32 %v6642_v24, %v6280_v7  ;;  %v6619_v9 = vld [vmem:[#allocation25 + $0x14] sm:$0xf0]  ;;  %v4302_v24 = vld [vmem:[#allocation22] sm:$0x3] }
 0x6fd   : > { %v4317_v13 = vadd.f32 %v4316_v61, %v4315_v15  ;;  %v6246_v15 = vld [vmem:[#allocation25 + $0x90] sm:$0xf]  ;;  %v6635_v61 = vld [vmem:[#allocation25 + $0x94] sm:$0xf0] }
 0x6fe   : > { %v6247_v49 = vor.u32 %v6635_v61, %v6246_v15  ;;  %4607 = vmatpush.bf16.msrb.mxu3 %v6283_v6  ;;  %v6659_v15 = vld [vmem:[#allocation28 + $0x58] sm:$0xff]  ;;  %v4335_v61 = vperm.slane %v4302_v24, 0 }
 0x6ff   : > { %4318 = vadd.xlane.f32.xlu0 %v4317_v13  ;;  %v6183_v13 = vor.u32 %v6619_v9, %v6182_v41  ;;  %v4303_v41 = vld [vmem:[#allocation24] sm:$0x3] }
 0x700   : > { %4585 = vmatpush.bf16.msrb.mxu1 %v6247_v49  ;;  %v6651_v9 = vld [vmem:[#allocation28 + $0x18] sm:$0xff]  ;;  %v4342_v63 = vperm.slane %v4303_v41, 0  ;;  %v4343_v18 = vperm.slane %v4303_v41, 1 }
 0x701   : > { %4572 = vmatpush.bf16.msrb.mxu0 %v6183_v13  ;;  %v4336_v13 = vperm.slane %v4302_v24, 1 }
 0x702   : > { %4608 = vmatpush.bf16.msrb.mxu3 %v6275_v30 }
 0x704   : > { %4586 = vmatpush.bf16.msrb.mxu1 %v6239_v50 }
 0x705   : > { %4573 = vmatpush.bf16.msrb.mxu0 %v6175_v12 }
 0x706   : > { %4609 = vmatpush.bf16.msrb.mxu3 %v6267_v43 }
 0x708   : > { %4769 = vmatpush.bf16.msra.mxu1 %v6663_v20 }
 0x709   : > { %4756 = vmatpush.bf16.msra.mxu0 %v6655_v3 }
 0x70a   : > { %4610 = vmatpush.bf16.msrb.mxu3 %v6259_v54 }
 0x70c   : > { %4770 = vmatpush.bf16.msra.mxu1 %v6662_v5  ;;  %v4400_v5 = vld [vmem:[#allocation27] sm:$0x3] }
 0x70d   : > { %4757 = vmatpush.bf16.msra.mxu0 %v6654_v28 }
 0x70e   : > { %4611 = vmatpush.bf16.msrb.mxu3 %v6251_v19 }
 0x710   : > { %4771 = vmatpush.bf16.msra.mxu1 %v6661_v51 }
 0x711   : > { %4758 = vmatpush.bf16.msra.mxu0 %v6653_v0 }
 0x712   : > { %4612 = vmatpush.bf16.msrb.mxu3 %v6243_v60  ;;  %v7098_v60 = vld [vmem:[#allocation30] ss:$0 sm:$0xff] }
 0x714   : > { %4772 = vmatpush.bf16.msra.mxu1 %v6660_v4 }
 0x715   : > { %4759 = vmatpush.bf16.msra.mxu0 %v6652_v2 }
 0x718   : > { %4773 = vmatpush.bf16.msra.mxu1 %v6659_v15 }
 0x719   : > { %4760 = vmatpush.bf16.msra.mxu0 %v6651_v9 }
 0x71c   : > { %4774 = vmatpush.bf16.msra.mxu1 %v6658_v33 }
 0x71d   : > { %4761 = vmatpush.bf16.msra.mxu0 %v6650_v42 }
 0x720   : > { %4775 = vmatpush.bf16.msra.mxu1 %v6657_v1 }
 0x721   : > { %4762 = vmatpush.bf16.msra.mxu0 %v6649_v36 }
 0x772   : > { %v4319_v32 = vpop.xlane.xlu0 %4318 }
 0x773   : > { %v4320_v44 = vmul.f32 %v4319_v32, %v10035_v57  ;;  %v6195_v57 = vor.u32 %v6620_v40, %v6192_v52 }
 0x775   : > { %v4321_v46 = vadd.f32 1e-05, %v4320_v44  ;;  %4597 = vmatpush.bf16.msrb.mxu2 %v6195_v57 }
 0x777   : > { %7111 = vrsqrt.f32 %v4321_v46  ;;  %vm4328_vm7 = vweird.f32 %v4321_v46 }
 0x779   : > { %4598 = vmatpush.bf16.msrb.mxu2 %v6187_v58  ;;  %v4402_v58 = vperm.slane %v4400_v5, 0 }
 0x77d   : > { %v7112_v25 = vpop.eup %7111  ;;  %4599 = vmatpush.bf16.msrb.mxu2 %v6179_v48 }
 0x77e   : > { %v4323_v17 = vmul.f32 %v7112_v25, %v4321_v46  ;;  %vm4329_vm6 = vweird.f32 %v7112_v25 }
 0x77f   : > { %vm4330_vm8 = vmor %vm4328_vm7, %vm4329_vm6 }
 0x780   : > { %v4324_v35 = vmul.f32 %v7112_v25, %v4323_v17 }
 0x782   : > { %v4325_v55 = vmul.f32 0.5, %v4324_v35 }
 0x784   : > { %v4326_v7 = vsub.f32 1.5, %v4325_v55 }
 0x786   : > { %v4327_v6 = vmul.f32 %v7112_v25, %v4326_v7 }
 0x788   : > { %v4331_v49 = vsel %vm4330_vm8, %v7112_v25, %v4327_v6  ;;  %v4403_v25 = vperm.slane %v4400_v5, 1 }
 0x789   : > { %v4332_v39 = vmul.f32 %v4331_v49, %v9832_v47  ;;  %v4333_v8 = vmul.f32 %v4331_v49, %v9834_v23  ;;  %v6648_v47 = vld [vmem:[#allocation28] sm:$0xff] }
 0x78a   : > { %v6656_v23 = vld [vmem:[#allocation28 + $0x40] sm:$0xff]  ;;  %4763 = vmatpush.bf16.msra.mxu0 %v6648_v47 }
 0x78b   : > { %v4339_v11 = vmul.f32 %v4335_v61, %v4332_v39  ;;  %v4340_v32 = vmul.f32 %v4336_v13, %v4333_v8  ;;  %4776 = vmatpush.bf16.msra.mxu1 %v6656_v23  ;;  %v7099_v39 = vld [vmem:[#allocation31] ss:$0 sm:$0xff] }
 0x78d   : > { %v4346_v30 = vadd.f32 %v4342_v63, %v4339_v11  ;;  %v4347_v38 = vadd.f32 %v4343_v18, %v4340_v32  ;;  %v7100_v11 = vld [vmem:[#allocation3] ss:$0 sm:$0xff] }
 0x78f   : > { %v4350_v44 = vmul.f32 0.044715, %v4346_v30  ;;  %v4351_v12 = vmul.f32 0.044715, %v4347_v38  ;;  %v4348_v20 = vmul.f32 0.5, %v4346_v30  ;;  %v4349_v59 = vmul.f32 0.5, %v4347_v38 }
 0x791   : > { %v4352_v34 = vmul.f32 %v4350_v44, %v4346_v30  ;;  %v4353_v16 = vmul.f32 %v4351_v12, %v4347_v38 }
 0x793   : > { %v4354_v22 = vmul.f32 %v4352_v34, %v4346_v30  ;;  %v4355_v50 = vmul.f32 %v4353_v16, %v4347_v38 }
 0x795   : > { %v4356_v45 = vadd.f32 %v4354_v22, %v4346_v30  ;;  %v4357_v3 = vadd.f32 %v4355_v50, %v4347_v38 }
 0x797   : > { %v4358_v46 = vmul.f32 0.7978846, %v4356_v45  ;;  %v4359_v43 = vmul.f32 0.7978846, %v4357_v3 }
 0x799   : > { %7113 = vtanh.f32 %v4358_v46 }
 0x79a   : > { %7115 = vtanh.f32 %v4359_v43 }
 0x79f   : > { %v7114_v40 = vpop.eup %7113 }
 0x7a0   : > { %v7116_v52 = vpop.eup %7115  ;;  %v4362_v14 = vadd.f32 1.0, %v7114_v40 }
 0x7a1   : > { %v4363_v57 = vadd.f32 1.0, %v7116_v52 }
 0x7a2   : > { %v4364_v54 = vmul.f32 %v4362_v14, %v4348_v20 }
 0x7a3   : > { %v4365_v28 = vmul.f32 %v4363_v57, %v4349_v59 }
 0x7a4   : > { %v4366_v27 = vpack.c.bf16 %v4364_v54, %v4364_v54 }
 0x7a5   : > { %v4367_v21 = vpack.c.bf16 %v4365_v28, %v4365_v28 }
 0x7a6   : > { %4574 = vmatmul.bf16.vlgmr.msrb.gmra.mxu0 %v4366_v27  ;;  %4600 = vmatmul.bf16.vlgmr.msrb.gmra.mxu2 %v4366_v27 }
 0x7a7   : > { %4587 = vmatmul.bf16.vlgmr.msrb.gmra.mxu1 %v4367_v21  ;;  %4613 = vmatmul.bf16.vlgmr.msrb.gmra.mxu3 %v4367_v21 }
 0x7b6   : > { %4764 = vmatmul.bf16.vlgmr.msra.gmra.mxu0 %v9821_v31 }
 0x7b7   : > { %4777 = vmatmul.bf16.vlgmr.msra.gmra.mxu1 %v9823_v62 }
 0x823   : > { %v4575_v26 = vpop.f32.mrf.mxu0 }
 0x824   : > { %v4588_v10 = vpop.f32.mrf.mxu1  ;;  %v4576_v0 = vadd.f32 %v4575_v26, %v4402_v58 }
 0x826   : > { %v4589_v53 = vadd.f32 %v4588_v10, %v4576_v0 }
 0x829   : > { %v4601_v19 = vpop.f32.mrf.mxu2 }
 0x82a   : > { %v4602_v29 = vadd.f32 %v4601_v19, %v4403_v25  ;;  %v4614_v37 = vpop.f32.mrf.mxu3 }
 0x82b   : > { %v4577_v17 = vpop.f32.mrf.mxu0 }
 0x82c   : > { %v4615_v51 = vadd.f32 %v4614_v37, %v4602_v29  ;;  %v4590_v56 = vpop.f32.mrf.mxu1 }
 0x82e   : > { %v4620_v35 = vrot.slane %v4615_v51, 6 }
 0x830   : > { %v4621_v48 = vsel %vm4304_vm5, %v4589_v53, %v4620_v35 }
 0x831   : > { %4623 = vst [vmem:[%s10036_s5] sm:$0xf] %v4621_v48  ;;  %v4603_v31 = vpop.f32.mrf.mxu2 }
 0x832   : > { %v4616_v62 = vpop.f32.mrf.mxu3 }
 0x833   : > { %v4765_v2 = vpop.f32.mrf.mxu0 }
 0x834   : > { %v4766_v55 = vadd.f32 %v7098_v60, %v4765_v2  ;;  %v4778_v4 = vpop.f32.mrf.mxu1 }
 0x836   : > { %v4779_v24 = vadd.f32 %v4778_v4, %v4766_v55 }
 0x838   : > { %v4783_v7 = vmul.f32 0.044715, %v4779_v24  ;;  %v4782_v63 = vmul.f32 0.5, %v4779_v24 }
 0x83a   : > { %v4784_v41 = vmul.f32 %v4783_v7, %v4779_v24 }
 0x83b   : > { %v4767_v6 = vpop.f32.mrf.mxu0 }
 0x83c   : > { %v4780_v9 = vpop.f32.mrf.mxu1  ;;  %v4785_v15 = vmul.f32 %v4784_v41, %v4779_v24 }
 0x83e   : > { %v4786_v61 = vadd.f32 %v4785_v15, %v4779_v24 }
 0x840   : > { %v4787_v13 = vmul.f32 0.7978846, %v4786_v61 }
 0x842   : > { %7117 = vtanh.f32 %v4787_v13 }
 0x848   : > { %v7118_v49 = vpop.eup %7117 }
 0x849   : > { %v4789_v18 = vadd.f32 1.0, %v7118_v49 }
 0x84b   : > { %v4790_v8 = vmul.f32 %v4789_v18, %v4782_v63 }
 0x84d   : > { %v4795_v42 = vmul.f32 %v7099_v39, %v4790_v8 }
 0x84f   : > { %v4796_v33 = vsel %vm4304_vm5, %v4795_v42, 0.0 }
 0x850   : > { %4797 = vadd.xlane.f32.xlu1 %v4796_v33 }
 0x8c3   : > { %v4798_v32 = vpop.xlane.xlu1 %4797 }
 0x8c4   : > { %v4803_v30 = vadd.f32 %v7100_v11, %v4798_v32 }
 0x8c6   : > { %v4805_v38 = vmin.f32 %v4803_v30, 20.0  ;;  %vm4804_vm11 = vcmp.gt.f32.partialorder %v4803_v30, 20.0 }
 0x8c8   : > { %v4806_v36 = vmul.f32 1.442695, %v4805_v38 }
 0x8ca   : > { %7119 = vpow2.f32 %v4806_v36 }
 0x8d0   : > { %v7120_v1 = vpop.eup %7119 }
 0x8d1   : > { %v4808_v44 = vadd.f32 1.0, %v7120_v1  ;;  %v4811_v12 = vmul.f32 -0.5, %v7120_v1  ;;  %v4814_v16 = vand.u32 2147483647, %v7120_v1 }
 0x8d3   : > { %7121 = vlog2.f32 %v4808_v44  ;;  %v4812_v34 = vadd.f32 1.0, %v4811_v12  ;;  %vm4815_vm10 = vcmp.lt.f32.partialorder %v4814_v16, 0.0004427343 }
 0x8d5   : > { %v4813_v22 = vmul.f32 %v7120_v1, %v4812_v34 }
 0x8d9   : > { %v7122_v47 = vpop.eup %7121 }
 0x8da   : > { %v4810_v23 = vmul.f32 0.6931472, %v7122_v47 }
 0x8dc   : > { %v4816_v50 = vsel %vm4815_vm10, %v4813_v22, %v4810_v23 }
 0x8dd   : > { %v4817_v45 = vsel %vm4804_vm11, %v4803_v30, %v4816_v50 }
 0x8de   : > { %4819 = vst.msk [vmem:[%s10037_s25] sm:$0x3] %vm4818_vm9, %v4817_v45 }
 0x8df PF: > { %s10038_s17 = sld [smem:[#allocation47_spill]]  ;;  %s7789_s23 = smov [#allocation33]  }
 0x8e0   : > { %s4825_s4 = sshll.u32 %s7789_s23, 4  ;;  %s10039_s10 = sld [smem:[#allocation79_spill]]  ;;  %s4826_s4 = int_to_ptr.vmem [resolvable:$true] %s4825_s4 }
 0x8e1   : > { %s7790_s14 = smov 256   ;;  %s7791_s1 = smov 16  }
 0x8e5   : > { %p6826_p3 = scmp.eq.s32.totalorder %s10038_s17, 1 }
 0x8e6   : > { %s4827_s6 = sshll.u32 %s10039_s10, 4  ;;  %s4828_s6 = int_to_ptr.hbm [resolvable:$true] %s4827_s6 }
 0x8e7   : > { %6744 = dma.vmem_to_hbm [thread:$0]  (%p6826_p3), %s4826_s4, 1024, %s4828_s6, [#allocation6], %s7790_s14, %s7790_s14, %s7791_s1  }
 0x8e8   : > { %7748 = dma.done.wait (%p6826_p3), [#allocation6], 1024  }
 0x8e9   : > { %7750 = vsyncadd (%p6826_p3), [#allocation6], 4294966272 }
 0x8ea PF: > { %s10040_s7 = sld [smem:[#allocation49_spill]] }
 0x8eb   : > { %s10041_s6 = sld [smem:[#allocation45_spill]] }
 0x8ec   : > { %s10042_s30 = sld [smem:[#allocation46_spill]] }
 0x8ed   : > { %s10043_s22 = sld [smem:[#allocation50_spill]] }
 0x8f0   : > { %p54_p12 = scmp.ge.s32.totalorder %s10040_s7, 4  }
 0x8f2   :  { %56 = sbr.rel (!%p54_p12) target bundleno = 40 (0x28), region = 292 }
 0x8f7   :  { %4856 = vsyncpa [#allocation5], 1 }
 0x8f8   :  { %4858 = vsyncpa [#allocation5 + $0x1], 1 }
 0x8f9   :  { %4859 = vsyncpa [#allocation8], 1 }
 0x8fa   :  { %4861 = vsyncpa [#allocation8 + $0x1], 1 }
 0x8fb   :  { %4862 = vsyncpa [#allocation11], 1 }
 0x8fc   :  { %4864 = vsyncpa [#allocation11 + $0x1], 1 }
 0x8fd   :  { %4865 = vsyncpa [#allocation14], 1 }
 0x8fe   :  { %4867 = vsyncpa [#allocation14 + $0x1], 1 }
 0x8ff   :  { %4868 = vsyncpa [#allocation17], 1 }
 0x900   :  { %4869 = vsyncpa [#allocation20], 1 }
 0x901   :  { %4870 = vsyncpa [#allocation23], 1 }
 0x902   :  { %4871 = vsyncpa [#allocation26], 1 }
 0x903   :  { %4872 = vsyncpa [#allocation29], 1 }
 0x904   :  { %4873 = vsyncpa [#allocation32], 1 }
 0x905   :  { %4874 = vsyncpa [#allocation6], 1 }
 0x906   :  { %4876 = vsyncpa [#allocation6 + $0x1], 1 }

</bundles_post_ra>
